<compile_context>
chip_gen: v7x
topology: tpu7x:2x2x1
jax: 0.10.0
libtpu: 0.0.40
codegen_flags: <defaults>
</compile_context>

<pallas_src>
import functools

import jax
import jax.numpy as jnp
from jax.experimental import pallas as pl
from jax.experimental.pallas import tpu as pltpu

NEG_SLOPE = 0.2        # LeakyReLU negative slope
BN_EPS = 1e-5
LANE = 128             # TPU lane width
TM_MAX = 512           # max row tile (mem-bound roofline ~85% @512 vs ~29% @128)
K_TILE_MAX = 2048      # max reduction tile -> VMEM stays bounded even at real sizes
VMEM_LIMIT = 48 << 20  # raised scoped-VMEM limit; still < v7x's 64 MiB physical


def _round_up(v, m):
    return ((v + m - 1) // m) * m


def _cdiv(a, b):
    return (a + b - 1) // b


# ----------------------------------------------------------------------------- #
# Pallas kernels
# ----------------------------------------------------------------------------- #
def _conv_kernel(a_ref, w_ref, b_ref, *refs, apply_lrelu, emit_stats):
    """K-tiled matmul with f32 accumulator; epilogue: bias (+LeakyReLU) (+BN partial stats)."""
    if emit_stats:
        o_ref, stat_ref, acc_ref = refs
    else:
        o_ref, acc_ref = refs
        stat_ref = None

    j = pl.program_id(1)

    @pl.when(j == 0)
    def _():
        acc_ref[...] = jnp.zeros_like(acc_ref)

    acc_ref[...] += jnp.dot(a_ref[...], w_ref[...],
                            preferred_element_type=jnp.float32)

    @pl.when(j == pl.num_programs(1) - 1)
    def _():
        acc = acc_ref[...]
        z = acc + b_ref[...]
        if apply_lrelu:
            z = jnp.where(z >= 0, z, NEG_SLOPE * z)
        o_ref[...] = z.astype(o_ref.dtype)

        if emit_stats:
            # Per-row-block partial sums of the pre-activation conv output (BN layers
            # run with bias == 0 and LeakyReLU deferred to the affine kernel, so the
            # f32 accumulator IS the BN input).  Row 0 = sum, row 1 = sum of squares.
            cp = acc.shape[1]
            s = jnp.sum(acc, axis=0, keepdims=True)
            q = jnp.sum(acc * acc, axis=0, keepdims=True)
            rows = jax.lax.broadcasted_iota(jnp.int32, (8, cp), 0)
            tile = jnp.where(rows == 0, s, jnp.where(rows == 1, q, jnp.zeros_like(s)))
            stat_ref[...] = tile.reshape(1, 8, cp)


def conv_matmul(patches, w_mat, bias, *, apply_lrelu, emit_stats, out_dtype):
    """(M, K) @ (K, C) + bias, optional fused LeakyReLU / BN partial stats.

    Returns (z_padded (Mp, Cp), stats (nblk, 8, Cp) or None, tm).
    Padded rows of `patches` are zero -> their conv output is exactly `bias`
    (zero for BN layers), so they contribute nothing to the fused statistics.
    """
    M, K = patches.shape
    C = w_mat.shape[1]

    Cp = C if C >= 8 else LANE                     # lane-dense store for the 1-channel head
    Kp = _round_up(K, LANE)
    kt = _cdiv(Kp, K_TILE_MAX)
    ktile = _round_up(_cdiv(Kp, kt), LANE)
    Kp = ktile * kt
    tm = min(TM_MAX, _round_up(M, 8))
    Mp = _round_up(M, tm)
    nblk = Mp // tm

    a = jnp.pad(patches, ((0, Mp - M), (0, Kp - K))).astype(jnp.bfloat16)
    w = jnp.pad(w_mat, ((0, Kp - K), (0, Cp - C))).astype(jnp.bfloat16)
    b = jnp.pad(bias.astype(jnp.float32), (0, Cp - C)).reshape(1, Cp)

    out_shape = [jax.ShapeDtypeStruct((Mp, Cp), out_dtype)]
    out_specs = [pl.BlockSpec((tm, Cp), lambda i, j: (i, 0))]
    if emit_stats:
        out_shape.append(jax.ShapeDtypeStruct((nblk, 8, Cp), jnp.float32))
        out_specs.append(pl.BlockSpec((1, 8, Cp), lambda i, j: (i, 0, 0)))

    kernel = functools.partial(_conv_kernel, apply_lrelu=apply_lrelu,
                               emit_stats=emit_stats)
    res = pl.pallas_call(
        kernel,
        out_shape=tuple(out_shape),
        grid_spec=pltpu.PrefetchScalarGridSpec(
            num_scalar_prefetch=0,
            grid=(nblk, kt),                       # rows parallel, reduction last
            in_specs=[
                pl.BlockSpec((tm, ktile), lambda i, j: (i, j)),
                pl.BlockSpec((ktile, Cp), lambda i, j: (j, 0)),
                pl.BlockSpec((1, Cp), lambda i, j: (0, 0)),
            ],
            out_specs=tuple(out_specs),
            scratch_shapes=[pltpu.VMEM((tm, Cp), jnp.float32)],
        ),
        compiler_params=pltpu.CompilerParams(
            dimension_semantics=("parallel", "arbitrary"),
            vmem_limit_bytes=VMEM_LIMIT),
    )(a, w, b)

    if emit_stats:
        z, stats = res
    else:
        z = res[0] if isinstance(res, (tuple, list)) else res
        stats = None
    return z, stats, tm


def _affine_lrelu_kernel(z_ref, sc_ref, sh_ref, o_ref):
    y = z_ref[...].astype(jnp.float32) * sc_ref[...] + sh_ref[...]
    o_ref[...] = jnp.where(y >= 0, y, NEG_SLOPE * y).astype(o_ref.dtype)


def affine_lrelu(z_padded, scale, shift, tm):
    """Fused BatchNorm affine + LeakyReLU over a padded (Mp, C) activation."""
    Mp, C = z_padded.shape
    return pl.pallas_call(
        _affine_lrelu_kernel,
        out_shape=jax.ShapeDtypeStruct((Mp, C), jnp.bfloat16),
        grid=(Mp // tm,),
        in_specs=[
            pl.BlockSpec((tm, C), lambda i: (i, 0)),
            pl.BlockSpec((1, C), lambda i: (0, 0)),
            pl.BlockSpec((1, C), lambda i: (0, 0)),
        ],
        out_specs=pl.BlockSpec((tm, C), lambda i: (i, 0)),
        compiler_params=pltpu.CompilerParams(
            dimension_semantics=("parallel",),
            vmem_limit_bytes=VMEM_LIMIT),
    )(z_padded, scale.reshape(1, C).astype(jnp.float32),
      shift.reshape(1, C).astype(jnp.float32))


# ----------------------------------------------------------------------------- #
# Glue: im2col, layer plumbing, parameter init
# ----------------------------------------------------------------------------- #
def im2col_3d(x, k, stride, pad):
    """x: (N, D, H, W, C) -> patches (N*Do*Ho*Wo, k^3*C) in (kd, kh, kw, C) column order.

    No 8-D transpose of the big tensor: the 64 shifted slices are concatenated along
    the already-contiguous channel axis; the small weight is permuted to match.
    """
    n, d, h, w, c = x.shape
    xp = jnp.pad(x, ((0, 0), (pad, pad), (pad, pad), (pad, pad), (0, 0)))
    do = (d + 2 * pad - k) // stride + 1
    ho = (h + 2 * pad - k) // stride + 1
    wo = (w + 2 * pad - k) // stride + 1
    cols = []
    for kd in range(k):
        for kh in range(k):
            for kw in range(k):
                cols.append(
                    xp[:, kd:kd + stride * do:stride,
                          kh:kh + stride * ho:stride,
                          kw:kw + stride * wo:stride, :])
    patches = jnp.concatenate(cols, axis=-1)          # (N, Do, Ho, Wo, k^3*C)
    return patches.reshape(n * do * ho * wo, k * k * k * c), (n, do, ho, wo)


def build_configs(nc, ndf, n_layers):
    cfgs = [dict(cin=nc, cout=ndf, stride=2, bias=True, bn=False, lrelu=True)]
    mult = 1
    for n in range(1, n_layers):
        mult_prev, mult = mult, min(2 ** n, 8)
        cfgs.append(dict(cin=ndf * mult_prev, cout=ndf * mult, stride=2,
                         bias=False, bn=True, lrelu=True))
    mult_prev, mult = mult, min(2 ** n_layers, 8)
    cfgs.append(dict(cin=ndf * mult_prev, cout=ndf * mult, stride=1,
                     bias=False, bn=True, lrelu=True))
    cfgs.append(dict(cin=ndf * mult, cout=1, stride=1,
                     bias=True, bn=False, lrelu=False))
    return cfgs


def init_params(key, cfgs):
    params = []
    for cfg in cfgs:
        key, kw, kb = jax.random.split(key, 3)
        p = {"w": 0.05 * jax.random.normal(
            kw, (cfg["cout"], cfg["cin"], 4, 4, 4), jnp.float32)}
        if cfg["bias"]:
            p["b"] = 0.05 * jax.random.normal(kb, (cfg["cout"],), jnp.float32)
        if cfg["bn"]:
            p["gamma"] = jnp.ones((cfg["cout"],), jnp.float32)
            p["beta"] = jnp.zeros((cfg["cout"],), jnp.float32)
        params.append(p)
    return params


def run_layer(x, cfg, p):
    cout = cfg["cout"]
    patches, (n, do, ho, wo) = im2col_3d(x, 4, cfg["stride"], 1)
    m_true = patches.shape[0]
    # weight (Cout, Cin, kd, kh, kw) -> (kd, kh, kw, Cin, Cout) matches patch column order
    w_mat = jnp.transpose(p["w"], (2, 3, 4, 1, 0)).reshape(-1, cout)

    if cfg["bn"]:
        # conv (no bias) with BN partial stats fused into the matmul epilogue,
        # then fused normalize + affine + LeakyReLU.  Bias/BN math stays f32.
        zero_bias = jnp.zeros((cout,), jnp.float32)
        zp, stats, tm = conv_matmul(patches, w_mat, zero_bias,
                                    apply_lrelu=False, emit_stats=True,
                                    out_dtype=jnp.bfloat16)
        s = jnp.sum(stats[:, 0, :], axis=0)           # (cout,) f32
        q = jnp.sum(stats[:, 1, :], axis=0)
        mean = s / m_true
        # TODO(synk): E[x^2]-E[x]^2 can cancel for large-mean activations; a Welford /
        # two-pass centered variance would be safer at extreme scales.
        var = jnp.maximum(q / m_true - mean * mean, 0.0)
        scale = p["gamma"] * jax.lax.rsqrt(var + BN_EPS)
        shift = p["beta"] - mean * scale
        # TODO(synk): the affine+LeakyReLU could be folded into the next layer's patch
        # extraction to save one more activation read/write per BN layer.
        z = affine_lrelu(zp, scale, shift, tm)[:m_true, :cout]
    else:
        bias = p["b"] if cfg["bias"] else jnp.zeros((cout,), jnp.float32)
        out_dtype = jnp.bfloat16 if cfg["lrelu"] else jnp.float32
        zp, _, _ = conv_matmul(patches, w_mat, bias,
                               apply_lrelu=cfg["lrelu"], emit_stats=False,
                               out_dtype=out_dtype)
        z = zp[:m_true, :cout]                        # drops the lane-pad of the 1-ch head

    return z.reshape(n, do, ho, wo, cout)


def make_forward(cfgs):
    # cfgs is captured in the closure so strides / kernel sizes stay static Python ints
    # (passing them as a traced jit argument caused the "Slice entries must be static"
    #  failure in the previous version).
    @jax.jit
    def forward(x_ncdhw, params):
        x = jnp.transpose(x_ncdhw, (0, 2, 3, 4, 1)).astype(jnp.bfloat16)  # NCDHW -> NDHWC
        for cfg, p in zip(cfgs, params):
            x = run_layer(x, cfg, p)
        return jnp.transpose(x, (0, 4, 1, 2, 3))                          # NDHWC -> NCDHW
    return forward


# ----------------------------------------------------------------------------- #
if __name__ == "__main__":
    nc, ndf, n_layers = 3, 8, 3
    N, D, H, W = 2, 32, 32, 32

    key = jax.random.PRNGKey(0)
    kx, kp = jax.random.split(key)
    x = jax.random.normal(kx, (N, nc, D, H, W), jnp.float32)

    cfgs = build_configs(nc, ndf, n_layers)
    params = init_params(kp, cfgs)

    forward = make_forward(cfgs)
    out = jax.block_until_ready(forward(x, params))

    # 32 -> 16 -> 8 -> 4 (stride-2 x3) -> 3 (stride-1) -> 2 (stride-1), 1 output channel
    assert out.shape == (N, 1, 2, 2, 2), out.shape
    assert bool(jnp.all(jnp.isfinite(out)))
    print("KERNEL_OK")
</pallas_src>

<mosaic_0001>
module attributes {stable_mosaic.version = 11 : i64} {
  func.func @_conv_kernel(%arg0: i32, %arg1: i32, %arg2: memref<512x256xbf16, #tpu.memory_space<vmem>>, %arg3: memref<256x8xbf16, #tpu.memory_space<vmem>>, %arg4: memref<1x8xf32, #tpu.memory_space<vmem>>, %arg5: memref<512x8xbf16, #tpu.memory_space<vmem>>, %arg6: memref<512x8xf32, #tpu.memory_space<vmem>>) attributes {dimension_semantics = [#tpu.dimension_semantics<parallel>, #tpu.dimension_semantics<arbitrary>], iteration_bounds = array<i64: 16, 1>, scalar_prefetch = 0 : i64, scratch_operands = 1 : i64, tpu.core_type = #tpu.core_type<tc>, window_params = [{transform_indices = @transform_0, window_bounds = array<i64: 512, 256>}, {transform_indices = @transform_1, window_bounds = array<i64: 256, 8>}, {pipeline_mode = #tpu.pipeline_mode<synchronous>, transform_indices = @transform_2, window_bounds = array<i64: 1, 8>}, {transform_indices = @transform_3, window_bounds = array<i64: 512, 8>}]} {
    %c0_i32 = arith.constant 0 : i32
    %0 = arith.cmpi eq, %arg1, %c0_i32 : i32
    %1 = arith.extui %0 : i1 to i32
    %c0_i32_0 = arith.constant 0 : i32
    %2 = arith.cmpi ne, %1, %c0_i32_0 : i32
    scf.if %2 {
      %cst_10 = arith.constant 0.000000e+00 : f32
      %12 = vector.broadcast %cst_10 : f32 to vector<512x8xf32>
      %c0_11 = arith.constant 0 : index
      %c0_12 = arith.constant 0 : index
      %13 = vector.load %arg6[%c0_11, %c0_12] : memref<512x8xf32, #tpu.memory_space<vmem>>, vector<512x8xf32>
      tpu.vector_store %arg6[%c0_11, %c0_12], %12 {strides = array<i32>} : memref<512x8xf32, #tpu.memory_space<vmem>>, vector<512x8xf32>,
    } else {
    }
    %c0 = arith.constant 0 : index
    %c0_1 = arith.constant 0 : index
    %3 = vector.load %arg6[%c0, %c0_1] : memref<512x8xf32, #tpu.memory_space<vmem>>, vector<512x8xf32>
    %c0_2 = arith.constant 0 : index
    %c0_3 = arith.constant 0 : index
    %4 = vector.load %arg2[%c0_2, %c0_3] : memref<512x256xbf16, #tpu.memory_space<vmem>>, vector<512x256xbf16>
    %c0_4 = arith.constant 0 : index
    %c0_5 = arith.constant 0 : index
    %5 = vector.load %arg3[%c0_4, %c0_5] : memref<256x8xbf16, #tpu.memory_space<vmem>>, vector<256x8xbf16>
    %cst = arith.constant dense<0.000000e+00> : vector<512x8xf32>
    %6 = tpu.matmul %4, %5, %cst {dimension_numbers = #tpu.dot_dimension_numbers<[1], [0], [0], [1], [0, 0, 1, 1], [], []>} : vector<512x256xbf16>, vector<256x8xbf16>, vector<512x8xf32> -> vector<512x8xf32>
    %7 = arith.addf %3, %6 : vector<512x8xf32>
    %c0_6 = arith.constant 0 : index
    %c0_7 = arith.constant 0 : index
    %8 = vector.load %arg6[%c0_6, %c0_7] : memref<512x8xf32, #tpu.memory_space<vmem>>, vector<512x8xf32>
    tpu.vector_store %arg6[%c0_6, %c0_7], %7 {strides = array<i32>} : memref<512x8xf32, #tpu.memory_space<vmem>>, vector<512x8xf32>,
    %c0_i32_8 = arith.constant 0 : i32
    %9 = arith.cmpi eq, %arg1, %c0_i32_8 : i32
    %10 = arith.extui %9 : i1 to i32
    %c0_i32_9 = arith.constant 0 : i32
    %11 = arith.cmpi ne, %10, %c0_i32_9 : i32
    scf.if %11 {
      %c0_10 = arith.constant 0 : index
      %c0_11 = arith.constant 0 : index
      %12 = vector.load %arg6[%c0_10, %c0_11] : memref<512x8xf32, #tpu.memory_space<vmem>>, vector<512x8xf32>
      %c0_12 = arith.constant 0 : index
      %c0_13 = arith.constant 0 : index
      %13 = vector.load %arg4[%c0_12, %c0_13] : memref<1x8xf32, #tpu.memory_space<vmem>>, vector<1x8xf32>
      %14 = vector.broadcast %13 : vector<1x8xf32> to vector<512x8xf32>
      %15 = arith.addf %12, %14 : vector<512x8xf32>
      %cst_14 = arith.constant 0.000000e+00 : f32
      %16 = vector.broadcast %cst_14 : f32 to vector<512x8xf32>
      %17 = arith.cmpf oge, %15, %16 : vector<512x8xf32>
      %cst_15 = arith.constant 2.000000e-01 : f32
      %18 = vector.broadcast %cst_15 : f32 to vector<512x8xf32>
      %19 = arith.mulf %18, %15 : vector<512x8xf32>
      %20 = arith.select %17, %15, %19 : vector<512x8xi1>, vector<512x8xf32>
      %21 = arith.truncf %20 : vector<512x8xf32> to vector<512x8xbf16>
      %c0_16 = arith.constant 0 : index
      %c0_17 = arith.constant 0 : index
      %22 = vector.load %arg5[%c0_16, %c0_17] : memref<512x8xbf16, #tpu.memory_space<vmem>>, vector<512x8xbf16>
      tpu.vector_store %arg5[%c0_16, %c0_17], %21 {strides = array<i32>} : memref<512x8xbf16, #tpu.memory_space<vmem>>, vector<512x8xbf16>,
    } else {
    }
    return
  }
  func.func @transform_0(%arg0: i32, %arg1: i32) -> (i32, i32) {
    %c0_i32 = arith.constant 0 : i32
    return %arg0, %arg1 : i32, i32
  }
  func.func @transform_1(%arg0: i32, %arg1: i32) -> (i32, i32) {
    %c0_i32 = arith.constant 0 : i32
    %c0_i32_0 = arith.constant 0 : i32
    return %arg1, %c0_i32 : i32, i32
  }
  func.func @transform_2(%arg0: i32, %arg1: i32) -> (i32, i32) {
    %c0_i32 = arith.constant 0 : i32
    %c0_i32_0 = arith.constant 0 : i32
    %c0_i32_1 = arith.constant 0 : i32
    return %c0_i32, %c0_i32_0 : i32, i32
  }
  func.func @transform_3(%arg0: i32, %arg1: i32) -> (i32, i32) {
    %c0_i32 = arith.constant 0 : i32
    %c0_i32_0 = arith.constant 0 : i32
    return %arg0, %c0_i32 : i32, i32
  }
}

module attributes {stable_mosaic.version = 11 : i64} {
  func.func @_conv_kernel(%arg0: i32, %arg1: i32, %arg2: memref<512x512xbf16, #tpu.memory_space<vmem>>, %arg3: memref<512x16xbf16, #tpu.memory_space<vmem>>, %arg4: memref<1x16xf32, #tpu.memory_space<vmem>>, %arg5: memref<512x16xbf16, #tpu.memory_space<vmem>>, %arg6: memref<1x8x16xf32, #tpu.memory_space<vmem>>, %arg7: memref<512x16xf32, #tpu.memory_space<vmem>>) attributes {dimension_semantics = [#tpu.dimension_semantics<parallel>, #tpu.dimension_semantics<arbitrary>], iteration_bounds = array<i64: 2, 1>, scalar_prefetch = 0 : i64, scratch_operands = 1 : i64, tpu.core_type = #tpu.core_type<tc>, window_params = [{transform_indices = @transform_0, window_bounds = array<i64: 512, 512>}, {transform_indices = @transform_1, window_bounds = array<i64: 512, 16>}, {pipeline_mode = #tpu.pipeline_mode<synchronous>, transform_indices = @transform_2, window_bounds = array<i64: 1, 16>}, {transform_indices = @transform_3, window_bounds = array<i64: 512, 16>}, {transform_indices = @transform_4, window_bounds = array<i64: 1, 8, 16>}]} {
    %c0_i32 = arith.constant 0 : i32
    %0 = arith.cmpi eq, %arg1, %c0_i32 : i32
    %1 = arith.extui %0 : i1 to i32
    %c0_i32_0 = arith.constant 0 : i32
    %2 = arith.cmpi ne, %1, %c0_i32_0 : i32
    scf.if %2 {
      %cst_10 = arith.constant 0.000000e+00 : f32
      %12 = vector.broadcast %cst_10 : f32 to vector<512x16xf32>
      %c0_11 = arith.constant 0 : index
      %c0_12 = arith.constant 0 : index
      %13 = vector.load %arg7[%c0_11, %c0_12] : memref<512x16xf32, #tpu.memory_space<vmem>>, vector<512x16xf32>
      tpu.vector_store %arg7[%c0_11, %c0_12], %12 {strides = array<i32>} : memref<512x16xf32, #tpu.memory_space<vmem>>, vector<512x16xf32>,
    } else {
    }
    %c0 = arith.constant 0 : index
    %c0_1 = arith.constant 0 : index
    %3 = vector.load %arg7[%c0, %c0_1] : memref<512x16xf32, #tpu.memory_space<vmem>>, vector<512x16xf32>
    %c0_2 = arith.constant 0 : index
    %c0_3 = arith.constant 0 : index
    %4 = vector.load %arg2[%c0_2, %c0_3] : memref<512x512xbf16, #tpu.memory_space<vmem>>, vector<512x512xbf16>
    %c0_4 = arith.constant 0 : index
    %c0_5 = arith.constant 0 : index
    %5 = vector.load %arg3[%c0_4, %c0_5] : memref<512x16xbf16, #tpu.memory_space<vmem>>, vector<512x16xbf16>
    %cst = arith.constant dense<0.000000e+00> : vector<512x16xf32>
    %6 = tpu.matmul %4, %5, %cst {dimension_numbers = #tpu.dot_dimension_numbers<[1], [0], [0], [1], [0, 0, 1, 1], [], []>} : vector<512x512xbf16>, vector<512x16xbf16>, vector<512x16xf32> -> vector<512x16xf32>
    %7 = arith.addf %3, %6 : vector<512x16xf32>
    %c0_6 = arith.constant 0 : index
    %c0_7 = arith.constant 0 : index
    %8 = vector.load %arg7[%c0_6, %c0_7] : memref<512x16xf32, #tpu.memory_space<vmem>>, vector<512x16xf32>
    tpu.vector_store %arg7[%c0_6, %c0_7], %7 {strides = array<i32>} : memref<512x16xf32, #tpu.memory_space<vmem>>, vector<512x16xf32>,
    %c0_i32_8 = arith.constant 0 : i32
    %9 = arith.cmpi eq, %arg1, %c0_i32_8 : i32
    %10 = arith.extui %9 : i1 to i32
    %c0_i32_9 = arith.constant 0 : i32
    %11 = arith.cmpi ne, %10, %c0_i32_9 : i32
    scf.if %11 {
      %c0_10 = arith.constant 0 : index
      %c0_11 = arith.constant 0 : index
      %12 = vector.load %arg7[%c0_10, %c0_11] : memref<512x16xf32, #tpu.memory_space<vmem>>, vector<512x16xf32>
      %c0_12 = arith.constant 0 : index
      %c0_13 = arith.constant 0 : index
      %13 = vector.load %arg4[%c0_12, %c0_13] : memref<1x16xf32, #tpu.memory_space<vmem>>, vector<1x16xf32>
      %14 = vector.broadcast %13 : vector<1x16xf32> to vector<512x16xf32>
      %15 = arith.addf %12, %14 : vector<512x16xf32>
      %16 = arith.truncf %15 : vector<512x16xf32> to vector<512x16xbf16>
      %c0_14 = arith.constant 0 : index
      %c0_15 = arith.constant 0 : index
      %17 = vector.load %arg5[%c0_14, %c0_15] : memref<512x16xbf16, #tpu.memory_space<vmem>>, vector<512x16xbf16>
      tpu.vector_store %arg5[%c0_14, %c0_15], %16 {strides = array<i32>} : memref<512x16xbf16, #tpu.memory_space<vmem>>, vector<512x16xbf16>,
      %cst_16 = arith.constant dense<0.000000e+00> : vector<16xf32>
      %18 = vector.multi_reduction <add>, %12, %cst_16 [0] : vector<512x16xf32> to vector<16xf32>
      %19 = vector.shape_cast %18 : vector<16xf32> to vector<1x16xf32>
      %20 = arith.mulf %12, %12 : vector<512x16xf32>
      %cst_17 = arith.constant dense<0.000000e+00> : vector<16xf32>
      %21 = vector.multi_reduction <add>, %20, %cst_17 [0] : vector<512x16xf32> to vector<16xf32>
      %22 = vector.shape_cast %21 : vector<16xf32> to vector<1x16xf32>
      %23 = tpu.iota {dimensions = array<i32: 0>} : vector<8x16xi32>
      %c0_i32_18 = arith.constant 0 : i32
      %24 = vector.broadcast %c0_i32_18 : i32 to vector<8x16xi32>
      %25 = arith.cmpi eq, %23, %24 : vector<8x16xi32>
      %c1_i32 = arith.constant 1 : i32
      %26 = vector.broadcast %c1_i32 : i32 to vector<8x16xi32>
      %27 = arith.cmpi eq, %23, %26 : vector<8x16xi32>
      %cst_19 = arith.constant 0.000000e+00 : f32
      %28 = vector.broadcast %cst_19 : f32 to vector<1x16xf32>
      %29 = vector.shape_cast %22 : vector<1x16xf32> to vector<1x16xf32>
      %30 = vector.broadcast %29 : vector<1x16xf32> to vector<8x16xf32>
      %31 = vector.shape_cast %28 : vector<1x16xf32> to vector<1x16xf32>
      %32 = vector.broadcast %31 : vector<1x16xf32> to vector<8x16xf32>
      %33 = arith.select %27, %30, %32 : vector<8x16xi1>, vector<8x16xf32>
      %34 = vector.shape_cast %19 : vector<1x16xf32> to vector<1x16xf32>
      %35 = vector.broadcast %34 : vector<1x16xf32> to vector<8x16xf32>
      %36 = arith.select %25, %35, %33 : vector<8x16xi1>, vector<8x16xf32>
      %37 = vector.shape_cast %36 : vector<8x16xf32> to vector<1x8x16xf32>
      %c0_20 = arith.constant 0 : index
      %c0_21 = arith.constant 0 : index
      %c0_22 = arith.constant 0 : index
      %38 = vector.load %arg6[%c0_20, %c0_21, %c0_22] : memref<1x8x16xf32, #tpu.memory_space<vmem>>, vector<1x8x16xf32>
      tpu.vector_store %arg6[%c0_20, %c0_21, %c0_22], %37 {strides = array<i32>} : memref<1x8x16xf32, #tpu.memory_space<vmem>>, vector<1x8x16xf32>,
    } else {
    }
    return
  }
  func.func @transform_0(%arg0: i32, %arg1: i32) -> (i32, i32) {
    %c0_i32 = arith.constant 0 : i32
    return %arg0, %arg1 : i32, i32
  }
  func.func @transform_1(%arg0: i32, %arg1: i32) -> (i32, i32) {
    %c0_i32 = arith.constant 0 : i32
    %c0_i32_0 = arith.constant 0 : i32
    return %arg1, %c0_i32 : i32, i32
  }
  func.func @transform_2(%arg0: i32, %arg1: i32) -> (i32, i32) {
    %c0_i32 = arith.constant 0 : i32
    %c0_i32_0 = arith.constant 0 : i32
    %c0_i32_1 = arith.constant 0 : i32
    return %c0_i32, %c0_i32_0 : i32, i32
  }
  func.func @transform_3(%arg0: i32, %arg1: i32) -> (i32, i32) {
    %c0_i32 = arith.constant 0 : i32
    %c0_i32_0 = arith.constant 0 : i32
    return %arg0, %c0_i32 : i32, i32
  }
  func.func @transform_4(%arg0: i32, %arg1: i32) -> (i32, i32, i32) {
    %c0_i32 = arith.constant 0 : i32
    %c0_i32_0 = arith.constant 0 : i32
    %c0_i32_1 = arith.constant 0 : i32
    return %arg0, %c0_i32, %c0_i32_0 : i32, i32, i32
  }
}

module attributes {stable_mosaic.version = 11 : i64} {
  func.func @_affine_lrelu_kernel(%arg0: i32, %arg1: memref<512x16xbf16, #tpu.memory_space<vmem>>, %arg2: memref<1x16xf32, #tpu.memory_space<vmem>>, %arg3: memref<1x16xf32, #tpu.memory_space<vmem>>, %arg4: memref<512x16xbf16, #tpu.memory_space<vmem>>) attributes {dimension_semantics = [#tpu.dimension_semantics<parallel>], iteration_bounds = array<i64: 2>, scalar_prefetch = 0 : i64, scratch_operands = 0 : i64, tpu.core_type = #tpu.core_type<tc>, window_params = [{transform_indices = @transform_0, window_bounds = array<i64: 512, 16>}, {pipeline_mode = #tpu.pipeline_mode<synchronous>, transform_indices = @transform_1, window_bounds = array<i64: 1, 16>}, {pipeline_mode = #tpu.pipeline_mode<synchronous>, transform_indices = @transform_2, window_bounds = array<i64: 1, 16>}, {transform_indices = @transform_3, window_bounds = array<i64: 512, 16>}]} {
    %c0 = arith.constant 0 : index
    %c0_0 = arith.constant 0 : index
    %0 = vector.load %arg1[%c0, %c0_0] : memref<512x16xbf16, #tpu.memory_space<vmem>>, vector<512x16xbf16>
    %1 = arith.extf %0 : vector<512x16xbf16> to vector<512x16xf32>
    %c0_1 = arith.constant 0 : index
    %c0_2 = arith.constant 0 : index
    %2 = vector.load %arg2[%c0_1, %c0_2] : memref<1x16xf32, #tpu.memory_space<vmem>>, vector<1x16xf32>
    %3 = vector.broadcast %2 : vector<1x16xf32> to vector<512x16xf32>
    %4 = arith.mulf %1, %3 : vector<512x16xf32>
    %c0_3 = arith.constant 0 : index
    %c0_4 = arith.constant 0 : index
    %5 = vector.load %arg3[%c0_3, %c0_4] : memref<1x16xf32, #tpu.memory_space<vmem>>, vector<1x16xf32>
    %6 = vector.broadcast %5 : vector<1x16xf32> to vector<512x16xf32>
    %7 = arith.addf %4, %6 : vector<512x16xf32>
    %cst = arith.constant 0.000000e+00 : f32
    %8 = vector.broadcast %cst : f32 to vector<512x16xf32>
    %9 = arith.cmpf oge, %7, %8 : vector<512x16xf32>
    %cst_5 = arith.constant 2.000000e-01 : f32
    %10 = vector.broadcast %cst_5 : f32 to vector<512x16xf32>
    %11 = arith.mulf %10, %7 : vector<512x16xf32>
    %12 = arith.select %9, %7, %11 : vector<512x16xi1>, vector<512x16xf32>
    %13 = arith.truncf %12 : vector<512x16xf32> to vector<512x16xbf16>
    %c0_6 = arith.constant 0 : index
    %c0_7 = arith.constant 0 : index
    %14 = vector.load %arg4[%c0_6, %c0_7] : memref<512x16xbf16, #tpu.memory_space<vmem>>, vector<512x16xbf16>
    tpu.vector_store %arg4[%c0_6, %c0_7], %13 {strides = array<i32>} : memref<512x16xbf16, #tpu.memory_space<vmem>>, vector<512x16xbf16>,
    return
  }
  func.func @transform_0(%arg0: i32) -> (i32, i32) {
    %c0_i32 = arith.constant 0 : i32
    %c0_i32_0 = arith.constant 0 : i32
    return %arg0, %c0_i32 : i32, i32
  }
  func.func @transform_1(%arg0: i32) -> (i32, i32) {
    %c0_i32 = arith.constant 0 : i32
    %c0_i32_0 = arith.constant 0 : i32
    %c0_i32_1 = arith.constant 0 : i32
    return %c0_i32, %c0_i32_0 : i32, i32
  }
  func.func @transform_2(%arg0: i32) -> (i32, i32) {
    %c0_i32 = arith.constant 0 : i32
    %c0_i32_0 = arith.constant 0 : i32
    %c0_i32_1 = arith.constant 0 : i32
    return %c0_i32, %c0_i32_0 : i32, i32
  }
  func.func @transform_3(%arg0: i32) -> (i32, i32) {
    %c0_i32 = arith.constant 0 : i32
    %c0_i32_0 = arith.constant 0 : i32
    return %arg0, %c0_i32 : i32, i32
  }
}

module attributes {stable_mosaic.version = 11 : i64} {
  func.func @_conv_kernel(%arg0: i32, %arg1: i32, %arg2: memref<128x1024xbf16, #tpu.memory_space<vmem>>, %arg3: memref<1024x32xbf16, #tpu.memory_space<vmem>>, %arg4: memref<1x32xf32, #tpu.memory_space<vmem>>, %arg5: memref<128x32xbf16, #tpu.memory_space<vmem>>, %arg6: memref<1x8x32xf32, #tpu.memory_space<vmem>>, %arg7: memref<128x32xf32, #tpu.memory_space<vmem>>) attributes {dimension_semantics = [#tpu.dimension_semantics<parallel>, #tpu.dimension_semantics<arbitrary>], iteration_bounds = array<i64: 1, 1>, scalar_prefetch = 0 : i64, scratch_operands = 1 : i64, tpu.core_type = #tpu.core_type<tc>, window_params = [{transform_indices = @transform_0, window_bounds = array<i64: 128, 1024>}, {transform_indices = @transform_1, window_bounds = array<i64: 1024, 32>}, {pipeline_mode = #tpu.pipeline_mode<synchronous>, transform_indices = @transform_2, window_bounds = array<i64: 1, 32>}, {transform_indices = @transform_3, window_bounds = array<i64: 128, 32>}, {transform_indices = @transform_4, window_bounds = array<i64: 1, 8, 32>}]} {
    %c0_i32 = arith.constant 0 : i32
    %0 = arith.cmpi eq, %arg1, %c0_i32 : i32
    %1 = arith.extui %0 : i1 to i32
    %c0_i32_0 = arith.constant 0 : i32
    %2 = arith.cmpi ne, %1, %c0_i32_0 : i32
    scf.if %2 {
      %cst_10 = arith.constant 0.000000e+00 : f32
      %12 = vector.broadcast %cst_10 : f32 to vector<128x32xf32>
      %c0_11 = arith.constant 0 : index
      %c0_12 = arith.constant 0 : index
      %13 = vector.load %arg7[%c0_11, %c0_12] : memref<128x32xf32, #tpu.memory_space<vmem>>, vector<128x32xf32>
      tpu.vector_store %arg7[%c0_11, %c0_12], %12 {strides = array<i32>} : memref<128x32xf32, #tpu.memory_space<vmem>>, vector<128x32xf32>,
    } else {
    }
    %c0 = arith.constant 0 : index
    %c0_1 = arith.constant 0 : index
    %3 = vector.load %arg7[%c0, %c0_1] : memref<128x32xf32, #tpu.memory_space<vmem>>, vector<128x32xf32>
    %c0_2 = arith.constant 0 : index
    %c0_3 = arith.constant 0 : index
    %4 = vector.load %arg2[%c0_2, %c0_3] : memref<128x1024xbf16, #tpu.memory_space<vmem>>, vector<128x1024xbf16>
    %c0_4 = arith.constant 0 : index
    %c0_5 = arith.constant 0 : index
    %5 = vector.load %arg3[%c0_4, %c0_5] : memref<1024x32xbf16, #tpu.memory_space<vmem>>, vector<1024x32xbf16>
    %cst = arith.constant dense<0.000000e+00> : vector<128x32xf32>
    %6 = tpu.matmul %4, %5, %cst {dimension_numbers = #tpu.dot_dimension_numbers<[1], [0], [0], [1], [0, 0, 1, 1], [], []>} : vector<128x1024xbf16>, vector<1024x32xbf16>, vector<128x32xf32> -> vector<128x32xf32>
    %7 = arith.addf %3, %6 : vector<128x32xf32>
    %c0_6 = arith.constant 0 : index
    %c0_7 = arith.constant 0 : index
    %8 = vector.load %arg7[%c0_6, %c0_7] : memref<128x32xf32, #tpu.memory_space<vmem>>, vector<128x32xf32>
    tpu.vector_store %arg7[%c0_6, %c0_7], %7 {strides = array<i32>} : memref<128x32xf32, #tpu.memory_space<vmem>>, vector<128x32xf32>,
    %c0_i32_8 = arith.constant 0 : i32
    %9 = arith.cmpi eq, %arg1, %c0_i32_8 : i32
    %10 = arith.extui %9 : i1 to i32
    %c0_i32_9 = arith.constant 0 : i32
    %11 = arith.cmpi ne, %10, %c0_i32_9 : i32
    scf.if %11 {
      %c0_10 = arith.constant 0 : index
      %c0_11 = arith.constant 0 : index
      %12 = vector.load %arg7[%c0_10, %c0_11] : memref<128x32xf32, #tpu.memory_space<vmem>>, vector<128x32xf32>
      %c0_12 = arith.constant 0 : index
      %c0_13 = arith.constant 0 : index
      %13 = vector.load %arg4[%c0_12, %c0_13] : memref<1x32xf32, #tpu.memory_space<vmem>>, vector<1x32xf32>
      %14 = vector.broadcast %13 : vector<1x32xf32> to vector<128x32xf32>
      %15 = arith.addf %12, %14 : vector<128x32xf32>
      %16 = arith.truncf %15 : vector<128x32xf32> to vector<128x32xbf16>
      %c0_14 = arith.constant 0 : index
      %c0_15 = arith.constant 0 : index
      %17 = vector.load %arg5[%c0_14, %c0_15] : memref<128x32xbf16, #tpu.memory_space<vmem>>, vector<128x32xbf16>
      tpu.vector_store %arg5[%c0_14, %c0_15], %16 {strides = array<i32>} : memref<128x32xbf16, #tpu.memory_space<vmem>>, vector<128x32xbf16>,
      %cst_16 = arith.constant dense<0.000000e+00> : vector<32xf32>
      %18 = vector.multi_reduction <add>, %12, %cst_16 [0] : vector<128x32xf32> to vector<32xf32>
      %19 = vector.shape_cast %18 : vector<32xf32> to vector<1x32xf32>
      %20 = arith.mulf %12, %12 : vector<128x32xf32>
      %cst_17 = arith.constant dense<0.000000e+00> : vector<32xf32>
      %21 = vector.multi_reduction <add>, %20, %cst_17 [0] : vector<128x32xf32> to vector<32xf32>
      %22 = vector.shape_cast %21 : vector<32xf32> to vector<1x32xf32>
      %23 = tpu.iota {dimensions = array<i32: 0>} : vector<8x32xi32>
      %c0_i32_18 = arith.constant 0 : i32
      %24 = vector.broadcast %c0_i32_18 : i32 to vector<8x32xi32>
      %25 = arith.cmpi eq, %23, %24 : vector<8x32xi32>
      %c1_i32 = arith.constant 1 : i32
      %26 = vector.broadcast %c1_i32 : i32 to vector<8x32xi32>
      %27 = arith.cmpi eq, %23, %26 : vector<8x32xi32>
      %cst_19 = arith.constant 0.000000e+00 : f32
      %28 = vector.broadcast %cst_19 : f32 to vector<1x32xf32>
      %29 = vector.shape_cast %22 : vector<1x32xf32> to vector<1x32xf32>
      %30 = vector.broadcast %29 : vector<1x32xf32> to vector<8x32xf32>
      %31 = vector.shape_cast %28 : vector<1x32xf32> to vector<1x32xf32>
      %32 = vector.broadcast %31 : vector<1x32xf32> to vector<8x32xf32>
      %33 = arith.select %27, %30, %32 : vector<8x32xi1>, vector<8x32xf32>
      %34 = vector.shape_cast %19 : vector<1x32xf32> to vector<1x32xf32>
      %35 = vector.broadcast %34 : vector<1x32xf32> to vector<8x32xf32>
      %36 = arith.select %25, %35, %33 : vector<8x32xi1>, vector<8x32xf32>
      %37 = vector.shape_cast %36 : vector<8x32xf32> to vector<1x8x32xf32>
      %c0_20 = arith.constant 0 : index
      %c0_21 = arith.constant 0 : index
      %c0_22 = arith.constant 0 : index
      %38 = vector.load %arg6[%c0_20, %c0_21, %c0_22] : memref<1x8x32xf32, #tpu.memory_space<vmem>>, vector<1x8x32xf32>
      tpu.vector_store %arg6[%c0_20, %c0_21, %c0_22], %37 {strides = array<i32>} : memref<1x8x32xf32, #tpu.memory_space<vmem>>, vector<1x8x32xf32>,
    } else {
    }
    return
  }
  func.func @transform_0(%arg0: i32, %arg1: i32) -> (i32, i32) {
    %c0_i32 = arith.constant 0 : i32
    return %arg0, %arg1 : i32, i32
  }
  func.func @transform_1(%arg0: i32, %arg1: i32) -> (i32, i32) {
    %c0_i32 = arith.constant 0 : i32
    %c0_i32_0 = arith.constant 0 : i32
    return %arg1, %c0_i32 : i32, i32
  }
  func.func @transform_2(%arg0: i32, %arg1: i32) -> (i32, i32) {
    %c0_i32 = arith.constant 0 : i32
    %c0_i32_0 = arith.constant 0 : i32
    %c0_i32_1 = arith.constant 0 : i32
    return %c0_i32, %c0_i32_0 : i32, i32
  }
  func.func @transform_3(%arg0: i32, %arg1: i32) -> (i32, i32) {
    %c0_i32 = arith.constant 0 : i32
    %c0_i32_0 = arith.constant 0 : i32
    return %arg0, %c0_i32 : i32, i32
  }
  func.func @transform_4(%arg0: i32, %arg1: i32) -> (i32, i32, i32) {
    %c0_i32 = arith.constant 0 : i32
    %c0_i32_0 = arith.constant 0 : i32
    %c0_i32_1 = arith.constant 0 : i32
    return %arg0, %c0_i32, %c0_i32_0 : i32, i32, i32
  }
}

module attributes {stable_mosaic.version = 11 : i64} {
  func.func @_affine_lrelu_kernel(%arg0: i32, %arg1: memref<128x32xbf16, #tpu.memory_space<vmem>>, %arg2: memref<1x32xf32, #tpu.memory_space<vmem>>, %arg3: memref<1x32xf32, #tpu.memory_space<vmem>>, %arg4: memref<128x32xbf16, #tpu.memory_space<vmem>>) attributes {dimension_semantics = [#tpu.dimension_semantics<parallel>], iteration_bounds = array<i64: 1>, scalar_prefetch = 0 : i64, scratch_operands = 0 : i64, tpu.core_type = #tpu.core_type<tc>, window_params = [{transform_indices = @transform_0, window_bounds = array<i64: 128, 32>}, {pipeline_mode = #tpu.pipeline_mode<synchronous>, transform_indices = @transform_1, window_bounds = array<i64: 1, 32>}, {pipeline_mode = #tpu.pipeline_mode<synchronous>, transform_indices = @transform_2, window_bounds = array<i64: 1, 32>}, {transform_indices = @transform_3, window_bounds = array<i64: 128, 32>}]} {
    %c0 = arith.constant 0 : index
    %c0_0 = arith.constant 0 : index
    %0 = vector.load %arg1[%c0, %c0_0] : memref<128x32xbf16, #tpu.memory_space<vmem>>, vector<128x32xbf16>
    %1 = arith.extf %0 : vector<128x32xbf16> to vector<128x32xf32>
    %c0_1 = arith.constant 0 : index
    %c0_2 = arith.constant 0 : index
    %2 = vector.load %arg2[%c0_1, %c0_2] : memref<1x32xf32, #tpu.memory_space<vmem>>, vector<1x32xf32>
    %3 = vector.broadcast %2 : vector<1x32xf32> to vector<128x32xf32>
    %4 = arith.mulf %1, %3 : vector<128x32xf32>
    %c0_3 = arith.constant 0 : index
    %c0_4 = arith.constant 0 : index
    %5 = vector.load %arg3[%c0_3, %c0_4] : memref<1x32xf32, #tpu.memory_space<vmem>>, vector<1x32xf32>
    %6 = vector.broadcast %5 : vector<1x32xf32> to vector<128x32xf32>
    %7 = arith.addf %4, %6 : vector<128x32xf32>
    %cst = arith.constant 0.000000e+00 : f32
    %8 = vector.broadcast %cst : f32 to vector<128x32xf32>
    %9 = arith.cmpf oge, %7, %8 : vector<128x32xf32>
    %cst_5 = arith.constant 2.000000e-01 : f32
    %10 = vector.broadcast %cst_5 : f32 to vector<128x32xf32>
    %11 = arith.mulf %10, %7 : vector<128x32xf32>
    %12 = arith.select %9, %7, %11 : vector<128x32xi1>, vector<128x32xf32>
    %13 = arith.truncf %12 : vector<128x32xf32> to vector<128x32xbf16>
    %c0_6 = arith.constant 0 : index
    %c0_7 = arith.constant 0 : index
    %14 = vector.load %arg4[%c0_6, %c0_7] : memref<128x32xbf16, #tpu.memory_space<vmem>>, vector<128x32xbf16>
    tpu.vector_store %arg4[%c0_6, %c0_7], %13 {strides = array<i32>} : memref<128x32xbf16, #tpu.memory_space<vmem>>, vector<128x32xbf16>,
    return
  }
  func.func @transform_0(%arg0: i32) -> (i32, i32) {
    %c0_i32 = arith.constant 0 : i32
    %c0_i32_0 = arith.constant 0 : i32
    return %arg0, %c0_i32 : i32, i32
  }
  func.func @transform_1(%arg0: i32) -> (i32, i32) {
    %c0_i32 = arith.constant 0 : i32
    %c0_i32_0 = arith.constant 0 : i32
    %c0_i32_1 = arith.constant 0 : i32
    return %c0_i32, %c0_i32_0 : i32, i32
  }
  func.func @transform_2(%arg0: i32) -> (i32, i32) {
    %c0_i32 = arith.constant 0 : i32
    %c0_i32_0 = arith.constant 0 : i32
    %c0_i32_1 = arith.constant 0 : i32
    return %c0_i32, %c0_i32_0 : i32, i32
  }
  func.func @transform_3(%arg0: i32) -> (i32, i32) {
    %c0_i32 = arith.constant 0 : i32
    %c0_i32_0 = arith.constant 0 : i32
    return %arg0, %c0_i32 : i32, i32
  }
}

module attributes {stable_mosaic.version = 11 : i64} {
  func.func @_conv_kernel(%arg0: i32, %arg1: i32, %arg2: memref<56x2048xbf16, #tpu.memory_space<vmem>>, %arg3: memref<2048x64xbf16, #tpu.memory_space<vmem>>, %arg4: memref<1x64xf32, #tpu.memory_space<vmem>>, %arg5: memref<56x64xbf16, #tpu.memory_space<vmem>>, %arg6: memref<1x8x64xf32, #tpu.memory_space<vmem>>, %arg7: memref<56x64xf32, #tpu.memory_space<vmem>>) attributes {dimension_semantics = [#tpu.dimension_semantics<parallel>, #tpu.dimension_semantics<arbitrary>], iteration_bounds = array<i64: 1, 1>, scalar_prefetch = 0 : i64, scratch_operands = 1 : i64, tpu.core_type = #tpu.core_type<tc>, window_params = [{transform_indices = @transform_0, window_bounds = array<i64: 56, 2048>}, {transform_indices = @transform_1, window_bounds = array<i64: 2048, 64>}, {pipeline_mode = #tpu.pipeline_mode<synchronous>, transform_indices = @transform_2, window_bounds = array<i64: 1, 64>}, {transform_indices = @transform_3, window_bounds = array<i64: 56, 64>}, {transform_indices = @transform_4, window_bounds = array<i64: 1, 8, 64>}]} {
    %c0_i32 = arith.constant 0 : i32
    %0 = arith.cmpi eq, %arg1, %c0_i32 : i32
    %1 = arith.extui %0 : i1 to i32
    %c0_i32_0 = arith.constant 0 : i32
    %2 = arith.cmpi ne, %1, %c0_i32_0 : i32
    scf.if %2 {
      %cst_10 = arith.constant 0.000000e+00 : f32
      %12 = vector.broadcast %cst_10 : f32 to vector<56x64xf32>
      %c0_11 = arith.constant 0 : index
      %c0_12 = arith.constant 0 : index
      %13 = vector.load %arg7[%c0_11, %c0_12] : memref<56x64xf32, #tpu.memory_space<vmem>>, vector<56x64xf32>
      tpu.vector_store %arg7[%c0_11, %c0_12], %12 {strides = array<i32>} : memref<56x64xf32, #tpu.memory_space<vmem>>, vector<56x64xf32>,
    } else {
    }
    %c0 = arith.constant 0 : index
    %c0_1 = arith.constant 0 : index
    %3 = vector.load %arg7[%c0, %c0_1] : memref<56x64xf32, #tpu.memory_space<vmem>>, vector<56x64xf32>
    %c0_2 = arith.constant 0 : index
    %c0_3 = arith.constant 0 : index
    %4 = vector.load %arg2[%c0_2, %c0_3] : memref<56x2048xbf16, #tpu.memory_space<vmem>>, vector<56x2048xbf16>
    %c0_4 = arith.constant 0 : index
    %c0_5 = arith.constant 0 : index
    %5 = vector.load %arg3[%c0_4, %c0_5] : memref<2048x64xbf16, #tpu.memory_space<vmem>>, vector<2048x64xbf16>
    %cst = arith.constant dense<0.000000e+00> : vector<56x64xf32>
    %6 = tpu.matmul %4, %5, %cst {dimension_numbers = #tpu.dot_dimension_numbers<[1], [0], [0], [1], [0, 0, 1, 1], [], []>} : vector<56x2048xbf16>, vector<2048x64xbf16>, vector<56x64xf32> -> vector<56x64xf32>
    %7 = arith.addf %3, %6 : vector<56x64xf32>
    %c0_6 = arith.constant 0 : index
    %c0_7 = arith.constant 0 : index
    %8 = vector.load %arg7[%c0_6, %c0_7] : memref<56x64xf32, #tpu.memory_space<vmem>>, vector<56x64xf32>
    tpu.vector_store %arg7[%c0_6, %c0_7], %7 {strides = array<i32>} : memref<56x64xf32, #tpu.memory_space<vmem>>, vector<56x64xf32>,
    %c0_i32_8 = arith.constant 0 : i32
    %9 = arith.cmpi eq, %arg1, %c0_i32_8 : i32
    %10 = arith.extui %9 : i1 to i32
    %c0_i32_9 = arith.constant 0 : i32
    %11 = arith.cmpi ne, %10, %c0_i32_9 : i32
    scf.if %11 {
      %c0_10 = arith.constant 0 : index
      %c0_11 = arith.constant 0 : index
      %12 = vector.load %arg7[%c0_10, %c0_11] : memref<56x64xf32, #tpu.memory_space<vmem>>, vector<56x64xf32>
      %c0_12 = arith.constant 0 : index
      %c0_13 = arith.constant 0 : index
      %13 = vector.load %arg4[%c0_12, %c0_13] : memref<1x64xf32, #tpu.memory_space<vmem>>, vector<1x64xf32>
      %14 = vector.broadcast %13 : vector<1x64xf32> to vector<56x64xf32>
      %15 = arith.addf %12, %14 : vector<56x64xf32>
      %16 = arith.truncf %15 : vector<56x64xf32> to vector<56x64xbf16>
      %c0_14 = arith.constant 0 : index
      %c0_15 = arith.constant 0 : index
      %17 = vector.load %arg5[%c0_14, %c0_15] : memref<56x64xbf16, #tpu.memory_space<vmem>>, vector<56x64xbf16>
      tpu.vector_store %arg5[%c0_14, %c0_15], %16 {strides = array<i32>} : memref<56x64xbf16, #tpu.memory_space<vmem>>, vector<56x64xbf16>,
      %cst_16 = arith.constant dense<0.000000e+00> : vector<64xf32>
      %18 = vector.multi_reduction <add>, %12, %cst_16 [0] : vector<56x64xf32> to vector<64xf32>
      %19 = vector.shape_cast %18 : vector<64xf32> to vector<1x64xf32>
      %20 = arith.mulf %12, %12 : vector<56x64xf32>
      %cst_17 = arith.constant dense<0.000000e+00> : vector<64xf32>
      %21 = vector.multi_reduction <add>, %20, %cst_17 [0] : vector<56x64xf32> to vector<64xf32>
      %22 = vector.shape_cast %21 : vector<64xf32> to vector<1x64xf32>
      %23 = tpu.iota {dimensions = array<i32: 0>} : vector<8x64xi32>
      %c0_i32_18 = arith.constant 0 : i32
      %24 = vector.broadcast %c0_i32_18 : i32 to vector<8x64xi32>
      %25 = arith.cmpi eq, %23, %24 : vector<8x64xi32>
      %c1_i32 = arith.constant 1 : i32
      %26 = vector.broadcast %c1_i32 : i32 to vector<8x64xi32>
      %27 = arith.cmpi eq, %23, %26 : vector<8x64xi32>
      %cst_19 = arith.constant 0.000000e+00 : f32
      %28 = vector.broadcast %cst_19 : f32 to vector<1x64xf32>
      %29 = vector.shape_cast %22 : vector<1x64xf32> to vector<1x64xf32>
      %30 = vector.broadcast %29 : vector<1x64xf32> to vector<8x64xf32>
      %31 = vector.shape_cast %28 : vector<1x64xf32> to vector<1x64xf32>
      %32 = vector.broadcast %31 : vector<1x64xf32> to vector<8x64xf32>
      %33 = arith.select %27, %30, %32 : vector<8x64xi1>, vector<8x64xf32>
      %34 = vector.shape_cast %19 : vector<1x64xf32> to vector<1x64xf32>
      %35 = vector.broadcast %34 : vector<1x64xf32> to vector<8x64xf32>
      %36 = arith.select %25, %35, %33 : vector<8x64xi1>, vector<8x64xf32>
      %37 = vector.shape_cast %36 : vector<8x64xf32> to vector<1x8x64xf32>
      %c0_20 = arith.constant 0 : index
      %c0_21 = arith.constant 0 : index
      %c0_22 = arith.constant 0 : index
      %38 = vector.load %arg6[%c0_20, %c0_21, %c0_22] : memref<1x8x64xf32, #tpu.memory_space<vmem>>, vector<1x8x64xf32>
      tpu.vector_store %arg6[%c0_20, %c0_21, %c0_22], %37 {strides = array<i32>} : memref<1x8x64xf32, #tpu.memory_space<vmem>>, vector<1x8x64xf32>,
    } else {
    }
    return
  }
  func.func @transform_0(%arg0: i32, %arg1: i32) -> (i32, i32) {
    %c0_i32 = arith.constant 0 : i32
    return %arg0, %arg1 : i32, i32
  }
  func.func @transform_1(%arg0: i32, %arg1: i32) -> (i32, i32) {
    %c0_i32 = arith.constant 0 : i32
    %c0_i32_0 = arith.constant 0 : i32
    return %arg1, %c0_i32 : i32, i32
  }
  func.func @transform_2(%arg0: i32, %arg1: i32) -> (i32, i32) {
    %c0_i32 = arith.constant 0 : i32
    %c0_i32_0 = arith.constant 0 : i32
    %c0_i32_1 = arith.constant 0 : i32
    return %c0_i32, %c0_i32_0 : i32, i32
  }
  func.func @transform_3(%arg0: i32, %arg1: i32) -> (i32, i32) {
    %c0_i32 = arith.constant 0 : i32
    %c0_i32_0 = arith.constant 0 : i32
    return %arg0, %c0_i32 : i32, i32
  }
  func.func @transform_4(%arg0: i32, %arg1: i32) -> (i32, i32, i32) {
    %c0_i32 = arith.constant 0 : i32
    %c0_i32_0 = arith.constant 0 : i32
    %c0_i32_1 = arith.constant 0 : i32
    return %arg0, %c0_i32, %c0_i32_0 : i32, i32, i32
  }
}

module attributes {stable_mosaic.version = 11 : i64} {
  func.func @_affine_lrelu_kernel(%arg0: i32, %arg1: memref<56x64xbf16, #tpu.memory_space<vmem>>, %arg2: memref<1x64xf32, #tpu.memory_space<vmem>>, %arg3: memref<1x64xf32, #tpu.memory_space<vmem>>, %arg4: memref<56x64xbf16, #tpu.memory_space<vmem>>) attributes {dimension_semantics = [#tpu.dimension_semantics<parallel>], iteration_bounds = array<i64: 1>, scalar_prefetch = 0 : i64, scratch_operands = 0 : i64, tpu.core_type = #tpu.core_type<tc>, window_params = [{transform_indices = @transform_0, window_bounds = array<i64: 56, 64>}, {pipeline_mode = #tpu.pipeline_mode<synchronous>, transform_indices = @transform_1, window_bounds = array<i64: 1, 64>}, {pipeline_mode = #tpu.pipeline_mode<synchronous>, transform_indices = @transform_2, window_bounds = array<i64: 1, 64>}, {transform_indices = @transform_3, window_bounds = array<i64: 56, 64>}]} {
    %c0 = arith.constant 0 : index
    %c0_0 = arith.constant 0 : index
    %0 = vector.load %arg1[%c0, %c0_0] : memref<56x64xbf16, #tpu.memory_space<vmem>>, vector<56x64xbf16>
    %1 = arith.extf %0 : vector<56x64xbf16> to vector<56x64xf32>
    %c0_1 = arith.constant 0 : index
    %c0_2 = arith.constant 0 : index
    %2 = vector.load %arg2[%c0_1, %c0_2] : memref<1x64xf32, #tpu.memory_space<vmem>>, vector<1x64xf32>
    %3 = vector.broadcast %2 : vector<1x64xf32> to vector<56x64xf32>
    %4 = arith.mulf %1, %3 : vector<56x64xf32>
    %c0_3 = arith.constant 0 : index
    %c0_4 = arith.constant 0 : index
    %5 = vector.load %arg3[%c0_3, %c0_4] : memref<1x64xf32, #tpu.memory_space<vmem>>, vector<1x64xf32>
    %6 = vector.broadcast %5 : vector<1x64xf32> to vector<56x64xf32>
    %7 = arith.addf %4, %6 : vector<56x64xf32>
    %cst = arith.constant 0.000000e+00 : f32
    %8 = vector.broadcast %cst : f32 to vector<56x64xf32>
    %9 = arith.cmpf oge, %7, %8 : vector<56x64xf32>
    %cst_5 = arith.constant 2.000000e-01 : f32
    %10 = vector.broadcast %cst_5 : f32 to vector<56x64xf32>
    %11 = arith.mulf %10, %7 : vector<56x64xf32>
    %12 = arith.select %9, %7, %11 : vector<56x64xi1>, vector<56x64xf32>
    %13 = arith.truncf %12 : vector<56x64xf32> to vector<56x64xbf16>
    %c0_6 = arith.constant 0 : index
    %c0_7 = arith.constant 0 : index
    %14 = vector.load %arg4[%c0_6, %c0_7] : memref<56x64xbf16, #tpu.memory_space<vmem>>, vector<56x64xbf16>
    tpu.vector_store %arg4[%c0_6, %c0_7], %13 {strides = array<i32>} : memref<56x64xbf16, #tpu.memory_space<vmem>>, vector<56x64xbf16>,
    return
  }
  func.func @transform_0(%arg0: i32) -> (i32, i32) {
    %c0_i32 = arith.constant 0 : i32
    %c0_i32_0 = arith.constant 0 : i32
    return %arg0, %c0_i32 : i32, i32
  }
  func.func @transform_1(%arg0: i32) -> (i32, i32) {
    %c0_i32 = arith.constant 0 : i32
    %c0_i32_0 = arith.constant 0 : i32
    %c0_i32_1 = arith.constant 0 : i32
    return %c0_i32, %c0_i32_0 : i32, i32
  }
  func.func @transform_2(%arg0: i32) -> (i32, i32) {
    %c0_i32 = arith.constant 0 : i32
    %c0_i32_0 = arith.constant 0 : i32
    %c0_i32_1 = arith.constant 0 : i32
    return %c0_i32, %c0_i32_0 : i32, i32
  }
  func.func @transform_3(%arg0: i32) -> (i32, i32) {
    %c0_i32 = arith.constant 0 : i32
    %c0_i32_0 = arith.constant 0 : i32
    return %arg0, %c0_i32 : i32, i32
  }
}

module attributes {stable_mosaic.version = 11 : i64} {
  func.func @_conv_kernel(%arg0: i32, %arg1: i32, %arg2: memref<16x2048xbf16, #tpu.memory_space<vmem>>, %arg3: memref<2048x128xbf16, #tpu.memory_space<vmem>>, %arg4: memref<1x128xf32, #tpu.memory_space<vmem>>, %arg5: memref<16x128xf32, #tpu.memory_space<vmem>>, %arg6: memref<16x128xf32, #tpu.memory_space<vmem>>) attributes {dimension_semantics = [#tpu.dimension_semantics<parallel>, #tpu.dimension_semantics<arbitrary>], iteration_bounds = array<i64: 1, 2>, scalar_prefetch = 0 : i64, scratch_operands = 1 : i64, tpu.core_type = #tpu.core_type<tc>, window_params = [{transform_indices = @transform_0, window_bounds = array<i64: 16, 2048>}, {transform_indices = @transform_1, window_bounds = array<i64: 2048, 128>}, {pipeline_mode = #tpu.pipeline_mode<synchronous>, transform_indices = @transform_2, window_bounds = array<i64: 1, 128>}, {transform_indices = @transform_3, window_bounds = array<i64: 16, 128>}]} {
    %c0_i32 = arith.constant 0 : i32
    %0 = arith.cmpi eq, %arg1, %c0_i32 : i32
    %1 = arith.extui %0 : i1 to i32
    %c0_i32_0 = arith.constant 0 : i32
    %2 = arith.cmpi ne, %1, %c0_i32_0 : i32
    scf.if %2 {
      %cst_9 = arith.constant 0.000000e+00 : f32
      %12 = vector.broadcast %cst_9 : f32 to vector<16x128xf32>
      %c0_10 = arith.constant 0 : index
      %c0_11 = arith.constant 0 : index
      %13 = vector.load %arg6[%c0_10, %c0_11] : memref<16x128xf32, #tpu.memory_space<vmem>>, vector<16x128xf32>
      tpu.vector_store %arg6[%c0_10, %c0_11], %12 {strides = array<i32>} : memref<16x128xf32, #tpu.memory_space<vmem>>, vector<16x128xf32>,
    } else {
    }
    %c0 = arith.constant 0 : index
    %c0_1 = arith.constant 0 : index
    %3 = vector.load %arg6[%c0, %c0_1] : memref<16x128xf32, #tpu.memory_space<vmem>>, vector<16x128xf32>
    %c0_2 = arith.constant 0 : index
    %c0_3 = arith.constant 0 : index
    %4 = vector.load %arg2[%c0_2, %c0_3] : memref<16x2048xbf16, #tpu.memory_space<vmem>>, vector<16x2048xbf16>
    %c0_4 = arith.constant 0 : index
    %c0_5 = arith.constant 0 : index
    %5 = vector.load %arg3[%c0_4, %c0_5] : memref<2048x128xbf16, #tpu.memory_space<vmem>>, vector<2048x128xbf16>
    %cst = arith.constant dense<0.000000e+00> : vector<16x128xf32>
    %6 = tpu.matmul %4, %5, %cst {dimension_numbers = #tpu.dot_dimension_numbers<[1], [0], [0], [1], [0, 0, 1, 1], [], []>} : vector<16x2048xbf16>, vector<2048x128xbf16>, vector<16x128xf32> -> vector<16x128xf32>
    %7 = arith.addf %3, %6 : vector<16x128xf32>
    %c0_6 = arith.constant 0 : index
    %c0_7 = arith.constant 0 : index
    %8 = vector.load %arg6[%c0_6, %c0_7] : memref<16x128xf32, #tpu.memory_space<vmem>>, vector<16x128xf32>
    tpu.vector_store %arg6[%c0_6, %c0_7], %7 {strides = array<i32>} : memref<16x128xf32, #tpu.memory_space<vmem>>, vector<16x128xf32>,
    %c1_i32 = arith.constant 1 : i32
    %9 = arith.cmpi eq, %arg1, %c1_i32 : i32
    %10 = arith.extui %9 : i1 to i32
    %c0_i32_8 = arith.constant 0 : i32
    %11 = arith.cmpi ne, %10, %c0_i32_8 : i32
    scf.if %11 {
      %c0_9 = arith.constant 0 : index
      %c0_10 = arith.constant 0 : index
      %12 = vector.load %arg6[%c0_9, %c0_10] : memref<16x128xf32, #tpu.memory_space<vmem>>, vector<16x128xf32>
      %c0_11 = arith.constant 0 : index
      %c0_12 = arith.constant 0 : index
      %13 = vector.load %arg4[%c0_11, %c0_12] : memref<1x128xf32, #tpu.memory_space<vmem>>, vector<1x128xf32>
      %14 = vector.broadcast %13 : vector<1x128xf32> to vector<16x128xf32>
      %15 = arith.addf %12, %14 : vector<16x128xf32>
      %c0_13 = arith.constant 0 : index
      %c0_14 = arith.constant 0 : index
      %16 = vector.load %arg5[%c0_13, %c0_14] : memref<16x128xf32, #tpu.memory_space<vmem>>, vector<16x128xf32>
      tpu.vector_store %arg5[%c0_13, %c0_14], %15 {strides = array<i32>} : memref<16x128xf32, #tpu.memory_space<vmem>>, vector<16x128xf32>,
    } else {
    }
    return
  }
  func.func @transform_0(%arg0: i32, %arg1: i32) -> (i32, i32) {
    %c0_i32 = arith.constant 0 : i32
    return %arg0, %arg1 : i32, i32
  }
  func.func @transform_1(%arg0: i32, %arg1: i32) -> (i32, i32) {
    %c0_i32 = arith.constant 0 : i32
    %c0_i32_0 = arith.constant 0 : i32
    return %arg1, %c0_i32 : i32, i32
  }
  func.func @transform_2(%arg0: i32, %arg1: i32) -> (i32, i32) {
    %c0_i32 = arith.constant 0 : i32
    %c0_i32_0 = arith.constant 0 : i32
    %c0_i32_1 = arith.constant 0 : i32
    return %c0_i32, %c0_i32_0 : i32, i32
  }
  func.func @transform_3(%arg0: i32, %arg1: i32) -> (i32, i32) {
    %c0_i32 = arith.constant 0 : i32
    %c0_i32_0 = arith.constant 0 : i32
    return %arg0, %c0_i32 : i32, i32
  }
}

</mosaic_0001>

<bundles_post_ra>
// kernel: forward.8
= control target key start
LH: loop header
LB: loop body
LE: loop exit
PB: predicated region body
PF: predicated region fallthrough
CT: control target
= control target key end

     0   :  { %s2468_s12 = smov 0   ;;  %s2470_s13 = smov 0   ;;  %s3057_s0 = inlined_call_operand.vmem [shape: bf16[8192,256], index: 0, kind: input, shape index: {}]   ;;  %s3058_s1 = inlined_call_operand.vmem [shape: bf16[256,8], index: 1, kind: input, shape index: {}]   ;;  %s3059_s2 = inlined_call_operand.vmem [shape: f32[1,8], index: 2, kind: input, shape index: {}]   ;;  %s3060_s3 = inlined_call_operand.vmem [shape: bf16[8192,8], index: 3, kind: output, shape index: {}]  }
   0x1   :  { %s2472_s14 = smov 0  }
   0x2 LB: > { %s25_s15 = sadd.s32 1, %s2440_s13  ;;  %p2033_p0 = scmp.ge.s32.totalorder %s2444_s14, 1  ;;  %s2444_s14 = sphi %s2472_s14, %s13_s14   ;;  %s2440_s13 = sphi %s2470_s13, %s3062_s13   ;;  %s2436_s12 = sphi %s2468_s12, %s3061_s12  }
   0x3   : > { %p27_p1 = scmp.ge.s32.totalorder %s25_s15, 16  ;;  %p169_p2 = scmp.lt.s32.totalorder %s2444_s14, 17 }
   0x5   : > { %s3064_s15 = smov (%p27_p1, %s25_s15), 0  ;;  %p170_p3 = pnand %p2033_p0, %p169_p2 }
   0x6   : > { %v2309_v0 = vld [vmem:[%s3058_s1] sm:$0xff] (!%p170_p3)   ;;  %v2446_v1 = vmov (!%p170_p3), 0   ;;  %s2034_s18 = sshll.u32 (!%p170_p3), %s2436_s12, 6  ;;  %v2310_v2 = vld [vmem:[%s3058_s1 + $0x8] sm:$0xff] (!%p170_p3)   ;;  %v2311_v3 = vld [vmem:[%s3058_s1 + $0x10] sm:$0xff] (!%p170_p3)   ;;  %vm232_vm0 = vcmask (!%p170_p3), 64512  }
   0x7   : > { %173 = sbr.rel (%p170_p3) target bundleno = 426 (0x1aa), region = 32  ;;  %873 = vmatprep.subr.bf16.mxu0 (!%p170_p3), %v2446_v1  ;;  %2251 = vmatprep.subr.bf16.mxu1 (!%p170_p3), %v2446_v1  ;;  %p205_p4 = scmp.lt.s32.totalorder (!%p170_p3), %s2034_s18, 1023  ;;  %v2312_v4 = vld [vmem:[%s3058_s1 + $0x18] sm:$0xff] (!%p170_p3)   ;;  %v2313_v5 = vld [vmem:[%s3058_s1 + $0x20] sm:$0xff] (!%p170_p3)   ;;  %v2314_v7 = vld [vmem:[%s3058_s1 + $0x28] sm:$0xff] (!%p170_p3)   ;;  %v2447_v19 = vmov (!%p170_p3), 0.0  }
   0x8   : > { %874 = vmatpush1.bf16.msra.mxu0 (!%p170_p3), %v2309_v0  ;;  %2267 = vmatpush1.bf16.msra.mxu1 (!%p170_p3), %v2309_v0  ;;  %v2315_v9 = vld [vmem:[%s3058_s1 + $0x30] sm:$0xff] (!%p170_p3)   ;;  %v2316_v10 = vld [vmem:[%s3058_s1 + $0x38] sm:$0xff] (!%p170_p3)   ;;  %v2317_v11 = vld [vmem:[%s3058_s1 + $0x40] sm:$0xff] (!%p170_p3)   ;;  %233 = vst.msk [vmem:[#allocation2] sm:$0xff] (!%p170_p3), %vm232_vm0, %v2447_v19  ;;  %vm1877_vm3 = vcmask (!%p170_p3), 60416  }
   0x9   : > { %875 = vmatprep.subr.bf16.mxu0 (!%p170_p3), %v2446_v1  ;;  %2252 = vmatprep.subr.bf16.mxu1 (!%p170_p3), %v2446_v1  ;;  %v2318_v12 = vld [vmem:[%s3058_s1 + $0x48] sm:$0xff] (!%p170_p3)   ;;  %v2319_v13 = vld [vmem:[%s3058_s1 + $0x50] sm:$0xff] (!%p170_p3)   ;;  %v2320_v14 = vld [vmem:[%s3058_s1 + $0x58] sm:$0xff] (!%p170_p3)   ;;  %234 = vst.msk [vmem:[#allocation2 + $0x8] sm:$0xff] (!%p170_p3), %vm232_vm0, %v2447_v19 }
   0xa   : > { %v2321_v15 = vld [vmem:[%s3058_s1 + $0x60] sm:$0xff] (!%p170_p3)   ;;  %v2322_v16 = vld [vmem:[%s3058_s1 + $0x68] sm:$0xff] (!%p170_p3)   ;;  %v2323_v17 = vld [vmem:[%s3058_s1 + $0x70] sm:$0xff] (!%p170_p3)   ;;  %235 = vst.msk [vmem:[#allocation2 + $0x10] sm:$0xff] (!%p170_p3), %vm232_vm0, %v2447_v19 }
   0xb   : > { %v2574_v18 = vld [vmem:[%s3058_s1 + $0x78] sm:$0xff] (!%p170_p3)   ;;  %236 = vst.msk [vmem:[#allocation2 + $0x18] sm:$0xff] (!%p170_p3), %vm232_vm0, %v2447_v19  ;;  %237 = vst.msk [vmem:[#allocation2 + $0x20] sm:$0xff] (!%p170_p3), %vm232_vm0, %v2447_v19 }
   0xc   : > { %876 = vmatpush1.bf16.msra.mxu0 (!%p170_p3), %v2310_v2  ;;  %2268 = vmatpush1.bf16.msra.mxu1 (!%p170_p3), %v2310_v2  ;;  %238 = vst.msk [vmem:[#allocation2 + $0x28] sm:$0xff] (!%p170_p3), %vm232_vm0, %v2447_v19  ;;  %239 = vst.msk [vmem:[#allocation2 + $0x30] sm:$0xff] (!%p170_p3), %vm232_vm0, %v2447_v19 }
   0xd   : > { %877 = vmatprep.subr.bf16.mxu0 (!%p170_p3), %v2446_v1  ;;  %2253 = vmatprep.subr.bf16.mxu1 (!%p170_p3), %v2446_v1  ;;  %240 = vst.msk [vmem:[#allocation2 + $0x38] sm:$0xff] (!%p170_p3), %vm232_vm0, %v2447_v19  ;;  %241 = vst.msk [vmem:[#allocation2 + $0x40] sm:$0xff] (!%p170_p3), %vm232_vm0, %v2447_v19 }
   0xe   : > { %s3066_s18 = smov (!%p205_p4, %s2034_s18), 1023  ;;  %242 = vst.msk [vmem:[#allocation2 + $0x48] sm:$0xff] %vm232_vm0, %v2447_v19  ;;  %243 = vst.msk [vmem:[#allocation2 + $0x50] sm:$0xff] %vm232_vm0, %v2447_v19 }
   0xf   : > { %s2186_s25 = sshll.u32 %s3066_s18, 3  ;;  %244 = vst.msk [vmem:[#allocation2 + $0x58] sm:$0xff] %vm232_vm0, %v2447_v19  ;;  %245 = vst.msk [vmem:[#allocation2 + $0x60] sm:$0xff] %vm232_vm0, %v2447_v19  ;;  %s2038_s5 = sshll.u32 %s3066_s18, 2 }
  0x10   : > { %878 = vmatpush1.bf16.msra.mxu0 %v2311_v3  ;;  %2269 = vmatpush1.bf16.msra.mxu1 %v2311_v3  ;;  %s2515_s30 = scalar_lea.vmem %s3057_s0, %s2186_s25  ;;  %246 = vst.msk [vmem:[#allocation2 + $0x68] sm:$0xff] %vm232_vm0, %v2447_v19  ;;  %247 = vst.msk [vmem:[#allocation2 + $0x70] sm:$0xff] %vm232_vm0, %v2447_v19  ;;  %s2791_s18 = scalar_lea.vmem %s3060_s3, %s2038_s5 }
  0x11   : > { %879 = vmatprep.subr.bf16.mxu0 %v2446_v1  ;;  %2254 = vmatprep.subr.bf16.mxu1 %v2446_v1  ;;  %v2327_v6 = vld [vmem:[%s2515_s30 + $0x4] ss:$8 sps:$4 sm:$0xff]   ;;  %248 = vst.msk [vmem:[#allocation2 + $0x78] sm:$0xff] %vm232_vm0, %v2447_v19  ;;  %249 = vst.msk [vmem:[#allocation2 + $0x80] sm:$0xff] %vm232_vm0, %v2447_v19  ;;  %v2325_v20 = vld [vmem:[%s2515_s30] ss:$8 sps:$4 sm:$0xff]  }
  0x12   : > { %v2330_v8 = vld [vmem:[%s2515_s30 + $0x104] ss:$8 sps:$4 sm:$0xff]   ;;  %905 = vmatprep.mubr.bf16.mxu0 %v2327_v6  ;;  %250 = vst.msk [vmem:[#allocation2 + $0x88] sm:$0xff] %vm232_vm0, %v2447_v19  ;;  %251 = vst.msk [vmem:[#allocation2 + $0x90] sm:$0xff] %vm232_vm0, %v2447_v19  ;;  %v2328_v21 = vld [vmem:[%s2515_s30 + $0x100] ss:$8 sps:$4 sm:$0xff]  }
  0x13   : > { %1033 = vmatprep.mubr.bf16.mxu1 %v2330_v8  ;;  %252 = vst.msk [vmem:[#allocation2 + $0x98] sm:$0xff] %vm232_vm0, %v2447_v19  ;;  %253 = vst.msk [vmem:[#allocation2 + $0xa0] sm:$0xff] %vm232_vm0, %v2447_v19  ;;  %v2331_v22 = vld [vmem:[%s2515_s30 + $0x14] ss:$8 sps:$4 sm:$0xff]   ;;  %v2335_v24 = vld [vmem:[%s2515_s30 + $0x10] ss:$8 sps:$4 sm:$0xff]  }
  0x14   : > { %880 = vmatpush1.bf16.msra.mxu0 %v2312_v4  ;;  %2270 = vmatpush1.bf16.msra.mxu1 %v2312_v4  ;;  %254 = vst.msk [vmem:[#allocation2 + $0xa8] sm:$0xff] %vm232_vm0, %v2447_v19  ;;  %255 = vst.msk [vmem:[#allocation2 + $0xb0] sm:$0xff] %vm232_vm0, %v2447_v19  ;;  %v2333_v23 = vld [vmem:[%s2515_s30 + $0x114] ss:$8 sps:$4 sm:$0xff]   ;;  %v2336_v25 = vld [vmem:[%s2515_s30 + $0x110] ss:$8 sps:$4 sm:$0xff]  }
  0x15   : > { %881 = vmatprep.subr.bf16.mxu0 %v2446_v1  ;;  %2255 = vmatprep.subr.bf16.mxu1 %v2446_v1  ;;  %256 = vst.msk [vmem:[#allocation2 + $0xb8] sm:$0xff] %vm232_vm0, %v2447_v19  ;;  %257 = vst.msk [vmem:[#allocation2 + $0xc0] sm:$0xff] %vm232_vm0, %v2447_v19  ;;  %v2337_v26 = vld [vmem:[%s2515_s30 + $0x24] ss:$8 sps:$4 sm:$0xff]   ;;  %v2341_v28 = vld [vmem:[%s2515_s30 + $0x20] ss:$8 sps:$4 sm:$0xff]  }
  0x16   : > { %258 = vst.msk [vmem:[#allocation2 + $0xc8] sm:$0xff] %vm232_vm0, %v2447_v19  ;;  %259 = vst.msk [vmem:[#allocation2 + $0xd0] sm:$0xff] %vm232_vm0, %v2447_v19  ;;  %v2339_v27 = vld [vmem:[%s2515_s30 + $0x124] ss:$8 sps:$4 sm:$0xff]   ;;  %v2342_v29 = vld [vmem:[%s2515_s30 + $0x120] ss:$8 sps:$4 sm:$0xff]  }
  0x17   : > { %260 = vst.msk [vmem:[#allocation2 + $0xd8] sm:$0xff] %vm232_vm0, %v2447_v19  ;;  %261 = vst.msk [vmem:[#allocation2 + $0xe0] sm:$0xff] %vm232_vm0, %v2447_v19  ;;  %v2343_v30 = vld [vmem:[%s2515_s30 + $0x34] ss:$8 sps:$4 sm:$0xff]   ;;  %v2347_v32 = vld [vmem:[%s2515_s30 + $0x30] ss:$8 sps:$4 sm:$0xff]  }
  0x18   : > { %882 = vmatpush1.bf16.msra.mxu0 %v2313_v5  ;;  %2271 = vmatpush1.bf16.msra.mxu1 %v2313_v5  ;;  %262 = vst.msk [vmem:[#allocation2 + $0xe8] sm:$0xff] %vm232_vm0, %v2447_v19  ;;  %263 = vst.msk [vmem:[#allocation2 + $0xf0] sm:$0xff] %vm232_vm0, %v2447_v19  ;;  %v2345_v31 = vld [vmem:[%s2515_s30 + $0x134] ss:$8 sps:$4 sm:$0xff]   ;;  %v2348_v33 = vld [vmem:[%s2515_s30 + $0x130] ss:$8 sps:$4 sm:$0xff]  }
  0x19   : > { %883 = vmatprep.subr.bf16.mxu0 %v2446_v1  ;;  %2256 = vmatprep.subr.bf16.mxu1 %v2446_v1  ;;  %264 = vst.msk [vmem:[#allocation2 + $0xf8] sm:$0xff] %vm232_vm0, %v2447_v19  ;;  %265 = vst.msk [vmem:[#allocation2 + $0x100] sm:$0xff] %vm232_vm0, %v2447_v19  ;;  %v2349_v34 = vld [vmem:[%s2515_s30 + $0x44] ss:$8 sps:$4 sm:$0xff]   ;;  %v2353_v36 = vld [vmem:[%s2515_s30 + $0x40] ss:$8 sps:$4 sm:$0xff]  }
  0x1a   : > { %266 = vst.msk [vmem:[#allocation2 + $0x108] sm:$0xff] %vm232_vm0, %v2447_v19  ;;  %267 = vst.msk [vmem:[#allocation2 + $0x110] sm:$0xff] %vm232_vm0, %v2447_v19  ;;  %v2351_v35 = vld [vmem:[%s2515_s30 + $0x144] ss:$8 sps:$4 sm:$0xff]   ;;  %v2354_v37 = vld [vmem:[%s2515_s30 + $0x140] ss:$8 sps:$4 sm:$0xff]  }
  0x1b   : > { %268 = vst.msk [vmem:[#allocation2 + $0x118] sm:$0xff] %vm232_vm0, %v2447_v19  ;;  %269 = vst.msk [vmem:[#allocation2 + $0x120] sm:$0xff] %vm232_vm0, %v2447_v19  ;;  %v2355_v38 = vld [vmem:[%s2515_s30 + $0x54] ss:$8 sps:$4 sm:$0xff]   ;;  %v2359_v40 = vld [vmem:[%s2515_s30 + $0x50] ss:$8 sps:$4 sm:$0xff]  }
  0x1c   : > { %884 = vmatpush1.bf16.msra.mxu0 %v2314_v7  ;;  %2272 = vmatpush1.bf16.msra.mxu1 %v2314_v7  ;;  %270 = vst.msk [vmem:[#allocation2 + $0x128] sm:$0xff] %vm232_vm0, %v2447_v19  ;;  %271 = vst.msk [vmem:[#allocation2 + $0x130] sm:$0xff] %vm232_vm0, %v2447_v19  ;;  %v2357_v39 = vld [vmem:[%s2515_s30 + $0x154] ss:$8 sps:$4 sm:$0xff]   ;;  %v2360_v41 = vld [vmem:[%s2515_s30 + $0x150] ss:$8 sps:$4 sm:$0xff]  }
  0x1d   : > { %885 = vmatprep.subr.bf16.mxu0 %v2446_v1  ;;  %2257 = vmatprep.subr.bf16.mxu1 %v2446_v1  ;;  %272 = vst.msk [vmem:[#allocation2 + $0x138] sm:$0xff] %vm232_vm0, %v2447_v19  ;;  %273 = vst.msk [vmem:[#allocation2 + $0x140] sm:$0xff] %vm232_vm0, %v2447_v19  ;;  %v2361_v42 = vld [vmem:[%s2515_s30 + $0x64] ss:$8 sps:$4 sm:$0xff]   ;;  %v2365_v44 = vld [vmem:[%s2515_s30 + $0x60] ss:$8 sps:$4 sm:$0xff]  }
  0x1e   : > { %274 = vst.msk [vmem:[#allocation2 + $0x148] sm:$0xff] %vm232_vm0, %v2447_v19  ;;  %275 = vst.msk [vmem:[#allocation2 + $0x150] sm:$0xff] %vm232_vm0, %v2447_v19  ;;  %v2363_v43 = vld [vmem:[%s2515_s30 + $0x164] ss:$8 sps:$4 sm:$0xff]   ;;  %v2366_v45 = vld [vmem:[%s2515_s30 + $0x160] ss:$8 sps:$4 sm:$0xff]  }
  0x1f   : > { %276 = vst.msk [vmem:[#allocation2 + $0x158] sm:$0xff] %vm232_vm0, %v2447_v19  ;;  %277 = vst.msk [vmem:[#allocation2 + $0x160] sm:$0xff] %vm232_vm0, %v2447_v19  ;;  %v2367_v46 = vld [vmem:[%s2515_s30 + $0x74] ss:$8 sps:$4 sm:$0xff]   ;;  %v2371_v48 = vld [vmem:[%s2515_s30 + $0x70] ss:$8 sps:$4 sm:$0xff]  }
  0x20   : > { %886 = vmatpush1.bf16.msra.mxu0 %v2315_v9  ;;  %2273 = vmatpush1.bf16.msra.mxu1 %v2315_v9  ;;  %278 = vst.msk [vmem:[#allocation2 + $0x168] sm:$0xff] %vm232_vm0, %v2447_v19  ;;  %279 = vst.msk [vmem:[#allocation2 + $0x170] sm:$0xff] %vm232_vm0, %v2447_v19  ;;  %v2369_v47 = vld [vmem:[%s2515_s30 + $0x174] ss:$8 sps:$4 sm:$0xff]   ;;  %v2372_v49 = vld [vmem:[%s2515_s30 + $0x170] ss:$8 sps:$4 sm:$0xff]  }
  0x21   : > { %887 = vmatprep.subr.bf16.mxu0 %v2446_v1  ;;  %2258 = vmatprep.subr.bf16.mxu1 %v2446_v1  ;;  %280 = vst.msk [vmem:[#allocation2 + $0x178] sm:$0xff] %vm232_vm0, %v2447_v19  ;;  %281 = vst.msk [vmem:[#allocation2 + $0x180] sm:$0xff] %vm232_vm0, %v2447_v19  ;;  %v2373_v50 = vld [vmem:[%s2515_s30 + $0x84] ss:$8 sps:$4 sm:$0xff]   ;;  %v2377_v52 = vld [vmem:[%s2515_s30 + $0x80] ss:$8 sps:$4 sm:$0xff]  }
  0x22   : > { %282 = vst.msk [vmem:[#allocation2 + $0x188] sm:$0xff] %vm232_vm0, %v2447_v19  ;;  %283 = vst.msk [vmem:[#allocation2 + $0x190] sm:$0xff] %vm232_vm0, %v2447_v19  ;;  %v2375_v51 = vld [vmem:[%s2515_s30 + $0x184] ss:$8 sps:$4 sm:$0xff]   ;;  %v2378_v53 = vld [vmem:[%s2515_s30 + $0x180] ss:$8 sps:$4 sm:$0xff]  }
  0x23   : > { %284 = vst.msk [vmem:[#allocation2 + $0x198] sm:$0xff] %vm232_vm0, %v2447_v19  ;;  %285 = vst.msk [vmem:[#allocation2 + $0x1a0] sm:$0xff] %vm232_vm0, %v2447_v19  ;;  %v2379_v54 = vld [vmem:[%s2515_s30 + $0x94] ss:$8 sps:$4 sm:$0xff]   ;;  %v2383_v56 = vld [vmem:[%s2515_s30 + $0x90] ss:$8 sps:$4 sm:$0xff]  }
  0x24   : > { %888 = vmatpush1.bf16.msra.mxu0 %v2316_v10  ;;  %2274 = vmatpush1.bf16.msra.mxu1 %v2316_v10  ;;  %286 = vst.msk [vmem:[#allocation2 + $0x1a8] sm:$0xff] %vm232_vm0, %v2447_v19  ;;  %287 = vst.msk [vmem:[#allocation2 + $0x1b0] sm:$0xff] %vm232_vm0, %v2447_v19  ;;  %v2381_v55 = vld [vmem:[%s2515_s30 + $0x194] ss:$8 sps:$4 sm:$0xff]   ;;  %v2384_v57 = vld [vmem:[%s2515_s30 + $0x190] ss:$8 sps:$4 sm:$0xff]  }
  0x25   : > { %889 = vmatprep.subr.bf16.mxu0 %v2446_v1  ;;  %2259 = vmatprep.subr.bf16.mxu1 %v2446_v1  ;;  %288 = vst.msk [vmem:[#allocation2 + $0x1b8] sm:$0xff] %vm232_vm0, %v2447_v19  ;;  %289 = vst.msk [vmem:[#allocation2 + $0x1c0] sm:$0xff] %vm232_vm0, %v2447_v19  ;;  %v2385_v58 = vld [vmem:[%s2515_s30 + $0xa4] ss:$8 sps:$4 sm:$0xff]   ;;  %v2389_v60 = vld [vmem:[%s2515_s30 + $0xa0] ss:$8 sps:$4 sm:$0xff]  }
  0x26   : > { %290 = vst.msk [vmem:[#allocation2 + $0x1c8] sm:$0xff] %vm232_vm0, %v2447_v19  ;;  %291 = vst.msk [vmem:[#allocation2 + $0x1d0] sm:$0xff] %vm232_vm0, %v2447_v19  ;;  %v2387_v59 = vld [vmem:[%s2515_s30 + $0x1a4] ss:$8 sps:$4 sm:$0xff]   ;;  %v2390_v61 = vld [vmem:[%s2515_s30 + $0x1a0] ss:$8 sps:$4 sm:$0xff]  }
  0x27   : > { %292 = vst.msk [vmem:[#allocation2 + $0x1d8] sm:$0xff] %vm232_vm0, %v2447_v19  ;;  %293 = vst.msk [vmem:[#allocation2 + $0x1e0] sm:$0xff] %vm232_vm0, %v2447_v19  ;;  %v2391_v62 = vld [vmem:[%s2515_s30 + $0xb4] ss:$8 sps:$4 sm:$0xff]   ;;  %v2395_v0 = vld [vmem:[%s2515_s30 + $0xb0] ss:$8 sps:$4 sm:$0xff]  }
  0x28   : > { %890 = vmatpush1.bf16.msra.mxu0 %v2317_v11  ;;  %2275 = vmatpush1.bf16.msra.mxu1 %v2317_v11  ;;  %294 = vst.msk [vmem:[#allocation2 + $0x1e8] sm:$0xff] %vm232_vm0, %v2447_v19  ;;  %295 = vst.msk [vmem:[#allocation2 + $0x1f0] sm:$0xff] %vm232_vm0, %v2447_v19  ;;  %v2393_v63 = vld [vmem:[%s2515_s30 + $0x1b4] ss:$8 sps:$4 sm:$0xff]   ;;  %v2397_v2 = vld [vmem:[%s2515_s30 + $0xc4] ss:$8 sps:$4 sm:$0xff]  }
  0x29   : > { %891 = vmatprep.subr.bf16.mxu0 %v2446_v1  ;;  %2260 = vmatprep.subr.bf16.mxu1 %v2446_v1  ;;  %296 = vst.msk [vmem:[#allocation2 + $0x1f8] sm:$0xff] %vm232_vm0, %v2447_v19  ;;  %v2399_v3 = vld [vmem:[%s2515_s30 + $0x1c4] ss:$8 sps:$4 sm:$0xff]   ;;  %v2401_v4 = vld [vmem:[%s2515_s30 + $0xc0] ss:$8 sps:$4 sm:$0xff]  }
  0x2a   : > { %v2402_v5 = vld [vmem:[%s2515_s30 + $0x1c0] ss:$8 sps:$4 sm:$0xff]   ;;  %v2403_v6 = vld [vmem:[%s2515_s30 + $0xd4] ss:$8 sps:$4 sm:$0xff]   ;;  %v2407_v8 = vld [vmem:[%s2515_s30 + $0xd0] ss:$8 sps:$4 sm:$0xff]  }
  0x2b   : > { %v2405_v7 = vld [vmem:[%s2515_s30 + $0x1d4] ss:$8 sps:$4 sm:$0xff]   ;;  %v2408_v9 = vld [vmem:[%s2515_s30 + $0x1d0] ss:$8 sps:$4 sm:$0xff]   ;;  %v2409_v10 = vld [vmem:[%s2515_s30 + $0xe4] ss:$8 sps:$4 sm:$0xff]  }
  0x2c   : > { %892 = vmatpush1.bf16.msra.mxu0 %v2318_v12  ;;  %2276 = vmatpush1.bf16.msra.mxu1 %v2318_v12  ;;  %v2411_v11 = vld [vmem:[%s2515_s30 + $0x1e4] ss:$8 sps:$4 sm:$0xff]   ;;  %v2413_v12 = vld [vmem:[%s2515_s30 + $0xe0] ss:$8 sps:$4 sm:$0xff]  }
  0x2d   : > { %893 = vmatprep.subr.bf16.mxu0 %v2446_v1  ;;  %2261 = vmatprep.subr.bf16.mxu1 %v2446_v1  ;;  %v329_v19 = vld [vmem:[#allocation2 + $0x100] sm:$0xff] }
  0x30   : > { %894 = vmatpush1.bf16.msra.mxu0 %v2319_v13  ;;  %2277 = vmatpush1.bf16.msra.mxu1 %v2319_v13  ;;  %v2414_v13 = vld [vmem:[%s2515_s30 + $0x1e0] ss:$8 sps:$4 sm:$0xff]  }
  0x31   : > { %895 = vmatprep.subr.bf16.mxu0 %v2446_v1  ;;  %2262 = vmatprep.subr.bf16.mxu1 %v2446_v1 }
  0x34   : > { %896 = vmatpush1.bf16.msra.mxu0 %v2320_v14  ;;  %2278 = vmatpush1.bf16.msra.mxu1 %v2320_v14  ;;  %v2415_v14 = vld [vmem:[%s2515_s30 + $0xf4] ss:$8 sps:$4 sm:$0xff]  }
  0x35   : > { %897 = vmatprep.subr.bf16.mxu0 %v2446_v1  ;;  %2263 = vmatprep.subr.bf16.mxu1 %v2446_v1 }
  0x38   : > { %898 = vmatpush1.bf16.msra.mxu0 %v2321_v15  ;;  %2279 = vmatpush1.bf16.msra.mxu1 %v2321_v15  ;;  %v2417_v15 = vld [vmem:[%s2515_s30 + $0x1f4] ss:$8 sps:$4 sm:$0xff]  }
  0x39   : > { %899 = vmatprep.subr.bf16.mxu0 %v2446_v1  ;;  %2264 = vmatprep.subr.bf16.mxu1 %v2446_v1 }
  0x3c   : > { %900 = vmatpush1.bf16.msra.mxu0 %v2322_v16  ;;  %2280 = vmatpush1.bf16.msra.mxu1 %v2322_v16  ;;  %v2419_v16 = vld [vmem:[%s2515_s30 + $0xf0] ss:$8 sps:$4 sm:$0xff]  }
  0x3d   : > { %901 = vmatprep.subr.bf16.mxu0 %v2446_v1  ;;  %2265 = vmatprep.subr.bf16.mxu1 %v2446_v1 }
  0x40   : > { %902 = vmatpush1.bf16.msra.mxu0 %v2323_v17  ;;  %2281 = vmatpush1.bf16.msra.mxu1 %v2323_v17  ;;  %v2420_v17 = vld [vmem:[%s2515_s30 + $0x1f0] ss:$8 sps:$4 sm:$0xff]  }
  0x41   : > { %903 = vmatprep.subr.bf16.mxu0 %v2446_v1  ;;  %2266 = vmatprep.subr.bf16.mxu1 %v2446_v1  ;;  %v2396_v1 = vld [vmem:[%s2515_s30 + $0x1b0] ss:$8 sps:$4 sm:$0xff]  }
  0x44   : > { %904 = vmatpush1.bf16.msra.mxu0 %v2574_v18  ;;  %2282 = vmatpush1.bf16.msra.mxu1 %v2574_v18  ;;  %v297_v18 = vld [vmem:[#allocation2] sm:$0xff] }
  0x47   : > { %906 = vmatmul.mubr.bf16.vlgmr.msra.gmra.mrb[0].mxu0 %v2325_v20  ;;  %1034 = vmatmul.mubr.bf16.vlgmr.msra.gmra.mrb[0].mxu1 %v2328_v21 }
  0x48   : > { %913 = vmatprep.mubr.bf16.mxu0 %v2331_v22  ;;  %1041 = vmatprep.mubr.bf16.mxu1 %v2333_v23  ;;  %v298_v22 = vld [vmem:[#allocation2 + $0x8] sm:$0xff] }
  0x49   : > { %v330_v23 = vld [vmem:[#allocation2 + $0x108] sm:$0xff] }
  0x4f   : > { %914 = vmatmul.mubr.bf16.gmra.mrb[4].mxu0 %v2335_v24  ;;  %1042 = vmatmul.mubr.bf16.gmra.mrb[4].mxu1 %v2336_v25 }
  0x50   : > { %921 = vmatprep.mubr.bf16.mxu0 %v2337_v26  ;;  %1049 = vmatprep.mubr.bf16.mxu1 %v2339_v27 }
  0x57   : > { %922 = vmatmul.mubr.bf16.gmra.mrb[8].mxu0 %v2341_v28  ;;  %1050 = vmatmul.mubr.bf16.gmra.mrb[8].mxu1 %v2342_v29 }
  0x58   : > { %929 = vmatprep.mubr.bf16.mxu0 %v2343_v30  ;;  %1057 = vmatprep.mubr.bf16.mxu1 %v2345_v31 }
  0x5f   : > { %930 = vmatmul.mubr.bf16.gmra.mrb[12].mxu0 %v2347_v32  ;;  %1058 = vmatmul.mubr.bf16.gmra.mrb[12].mxu1 %v2348_v33 }
  0x60   : > { %937 = vmatprep.mubr.bf16.mxu0 %v2349_v34  ;;  %1065 = vmatprep.mubr.bf16.mxu1 %v2351_v35  ;;  %v299_v34 = vld [vmem:[#allocation2 + $0x10] sm:$0xff] }
  0x61   : > { %v331_v35 = vld [vmem:[#allocation2 + $0x110] sm:$0xff] }
  0x67   : > { %938 = vmatmul.mubr.bf16.gmra.mrb[16].mxu0 %v2353_v36  ;;  %1066 = vmatmul.mubr.bf16.gmra.mrb[16].mxu1 %v2354_v37  ;;  %v2777_v36 = vld [vmem:[%s3059_s2] ss:$0 sm:$0xff] }
  0x68   : > { %945 = vmatprep.mubr.bf16.mxu0 %v2355_v38  ;;  %1073 = vmatprep.mubr.bf16.mxu1 %v2357_v39  ;;  %v300_v39 = vld [vmem:[#allocation2 + $0x18] sm:$0xff] }
  0x6f   : > { %946 = vmatmul.mubr.bf16.gmra.mrb[20].mxu0 %v2359_v40  ;;  %1074 = vmatmul.mubr.bf16.gmra.mrb[20].mxu1 %v2360_v41  ;;  %v332_v40 = vld [vmem:[#allocation2 + $0x118] sm:$0xff] }
  0x70   : > { %953 = vmatprep.mubr.bf16.mxu0 %v2361_v42  ;;  %1081 = vmatprep.mubr.bf16.mxu1 %v2363_v43 }
  0x77   : > { %954 = vmatmul.mubr.bf16.gmra.mrb[24].mxu0 %v2365_v44  ;;  %1082 = vmatmul.mubr.bf16.gmra.mrb[24].mxu1 %v2366_v45 }
  0x78   : > { %961 = vmatprep.mubr.bf16.mxu0 %v2367_v46  ;;  %1089 = vmatprep.mubr.bf16.mxu1 %v2369_v47 }
  0x7f   : > { %962 = vmatmul.mubr.bf16.gmra.mrb[28].mxu0 %v2371_v48  ;;  %1090 = vmatmul.mubr.bf16.gmra.mrb[28].mxu1 %v2372_v49 }
  0x80   : > { %969 = vmatprep.mubr.bf16.mxu0 %v2373_v50  ;;  %1097 = vmatprep.mubr.bf16.mxu1 %v2375_v51 }
  0x87   : > { %970 = vmatmul.mubr.bf16.gmra.mrb[32].mxu0 %v2377_v52  ;;  %1098 = vmatmul.mubr.bf16.gmra.mrb[32].mxu1 %v2378_v53 }
  0x88   : > { %977 = vmatprep.mubr.bf16.mxu0 %v2379_v54  ;;  %1105 = vmatprep.mubr.bf16.mxu1 %v2381_v55 }
  0x8f   : > { %978 = vmatmul.mubr.bf16.gmra.mrb[36].mxu0 %v2383_v56  ;;  %1106 = vmatmul.mubr.bf16.gmra.mrb[36].mxu1 %v2384_v57 }
  0x90   : > { %985 = vmatprep.mubr.bf16.mxu0 %v2385_v58  ;;  %1113 = vmatprep.mubr.bf16.mxu1 %v2387_v59 }
  0x97   : > { %986 = vmatmul.mubr.bf16.gmra.mrb[40].mxu0 %v2389_v60  ;;  %1114 = vmatmul.mubr.bf16.gmra.mrb[40].mxu1 %v2390_v61  ;;  %v301_v61 = vld [vmem:[#allocation2 + $0x20] sm:$0xff] }
  0x98   : > { %993 = vmatprep.mubr.bf16.mxu0 %v2391_v62  ;;  %1121 = vmatprep.mubr.bf16.mxu1 %v2393_v63  ;;  %v333_v62 = vld [vmem:[#allocation2 + $0x120] sm:$0xff] }
  0x9f   : > { %994 = vmatmul.mubr.bf16.gmra.mrb[44].mxu0 %v2395_v0  ;;  %1122 = vmatmul.mubr.bf16.gmra.mrb[44].mxu1 %v2396_v1 }
  0xa0   : > { %1001 = vmatprep.mubr.bf16.mxu0 %v2397_v2  ;;  %1129 = vmatprep.mubr.bf16.mxu1 %v2399_v3 }
  0xa7   : > { %1002 = vmatmul.mubr.bf16.gmra.mrb[48].mxu0 %v2401_v4  ;;  %1130 = vmatmul.mubr.bf16.gmra.mrb[48].mxu1 %v2402_v5 }
  0xa8   : > { %1009 = vmatprep.mubr.bf16.mxu0 %v2403_v6  ;;  %1137 = vmatprep.mubr.bf16.mxu1 %v2405_v7  ;;  %v302_v6 = vld [vmem:[#allocation2 + $0x28] sm:$0xff] }
  0xaf   : > { %1010 = vmatmul.mubr.bf16.gmra.mrb[52].mxu0 %v2407_v8  ;;  %1138 = vmatmul.mubr.bf16.gmra.mrb[52].mxu1 %v2408_v9 }
  0xb0   : > { %1017 = vmatprep.mubr.bf16.mxu0 %v2409_v10  ;;  %1145 = vmatprep.mubr.bf16.mxu1 %v2411_v11 }
  0xb7   : > { %1018 = vmatmul.mubr.bf16.gmra.mrb[56].mxu0 %v2413_v12  ;;  %1146 = vmatmul.mubr.bf16.gmra.mrb[56].mxu1 %v2414_v13  ;;  %v334_v12 = vld [vmem:[#allocation2 + $0x128] sm:$0xff] }
  0xb8   : > { %1025 = vmatprep.mubr.bf16.mxu0 %v2415_v14  ;;  %1153 = vmatprep.mubr.bf16.mxu1 %v2417_v15 }
  0xbf   : > { %1026 = vmatmul.mubr.bf16.gmra.mrb[60].mxu0 %v2419_v16  ;;  %1154 = vmatmul.mubr.bf16.gmra.mrb[60].mxu1 %v2420_v17 }
 0x11a   : > { %v907_v20 = vpop.f32.mrb[0].mxu0  ;;  %v1035_v21 = vpop.f32.mrb[0].mxu1 }
 0x11b   : > { %v1162_v24 = vadd.f32 %v907_v20, %v297_v18  ;;  %v1194_v25 = vadd.f32 %v1035_v21, %v329_v19  ;;  %v909_v26 = vpop.f32.mrb[1].mxu0  ;;  %v1037_v27 = vpop.f32.mrb[1].mxu1 }
 0x11c   : > { %v910_v28 = vpop.f32.mrb[2].mxu0  ;;  %v1038_v29 = vpop.f32.mrb[2].mxu1 }
 0x11d   : > { %1227 = vst.msk [vmem:[#allocation2] sm:$0xff] %vm232_vm0, %v1162_v24  ;;  %1259 = vst.msk [vmem:[#allocation2 + $0x100] sm:$0xff] %vm232_vm0, %v1194_v25  ;;  %v1163_v30 = vadd.f32 %v910_v28, %v298_v22  ;;  %v1195_v31 = vadd.f32 %v1038_v29, %v330_v23  ;;  %v912_v32 = vpop.f32.mrb[3].mxu0  ;;  %v1040_v33 = vpop.f32.mrb[3].mxu1 }
 0x11e   : > { %v303_v33 = vld [vmem:[#allocation2 + $0x30] sm:$0xff] }
 0x11f   : > { %1228 = vst.msk [vmem:[#allocation2 + $0x8] sm:$0xff] %vm232_vm0, %v1163_v30  ;;  %1260 = vst.msk [vmem:[#allocation2 + $0x108] sm:$0xff] %vm232_vm0, %v1195_v31 }
 0x122   : > { %v915_v37 = vpop.f32.mrb[4].mxu0  ;;  %v1043_v38 = vpop.f32.mrb[4].mxu1 }
 0x123   : > { %v1164_v41 = vadd.f32 %v915_v37, %v299_v34  ;;  %v1196_v42 = vadd.f32 %v1043_v38, %v331_v35  ;;  %v917_v43 = vpop.f32.mrb[5].mxu0  ;;  %v1045_v44 = vpop.f32.mrb[5].mxu1  ;;  %v335_v34 = vld [vmem:[#allocation2 + $0x130] sm:$0xff] }
 0x124   : > { %v1294_v45 = vld [vmem:[#allocation2] sm:$0xff]  ;;  %v918_v47 = vpop.f32.mrb[6].mxu0  ;;  %v1046_v48 = vpop.f32.mrb[6].mxu1  ;;  %v304_v43 = vld [vmem:[#allocation2 + $0x38] sm:$0xff] }
 0x125   : > { %v1326_v46 = vld [vmem:[#allocation2 + $0x100] sm:$0xff]  ;;  %v1365_v49 = vadd.f32 %v2777_v36, %v1294_v45  ;;  %1229 = vst.msk [vmem:[#allocation2 + $0x10] sm:$0xff] %vm232_vm0, %v1164_v41  ;;  %1261 = vst.msk [vmem:[#allocation2 + $0x110] sm:$0xff] %vm232_vm0, %v1196_v42  ;;  %v1165_v51 = vadd.f32 %v918_v47, %v300_v39  ;;  %v1197_v52 = vadd.f32 %v1046_v48, %v332_v40  ;;  %v920_v53 = vpop.f32.mrb[7].mxu0  ;;  %v1048_v54 = vpop.f32.mrb[7].mxu1 }
 0x126   : > { %v1397_v50 = vadd.f32 %v2777_v36, %v1326_v46  ;;  %v1295_v55 = vld [vmem:[#allocation2 + $0x8] sm:$0xff] }
 0x127   : > { %v1327_v56 = vld [vmem:[#allocation2 + $0x108] sm:$0xff]  ;;  %vm1429_vm1 = vcmp.ge.f32.partialorder %v1365_v49, 0.0  ;;  %v1493_v57 = vmul.f32 0.2, %v1365_v49  ;;  %1230 = vst.msk [vmem:[#allocation2 + $0x18] sm:$0xff] %vm232_vm0, %v1165_v51  ;;  %1262 = vst.msk [vmem:[#allocation2 + $0x118] sm:$0xff] %vm232_vm0, %v1197_v52  ;;  %v1366_v59 = vadd.f32 %v2777_v36, %v1295_v55 }
 0x128   : > { %vm1461_vm2 = vcmp.ge.f32.partialorder %v1397_v50, 0.0  ;;  %v1525_v58 = vmul.f32 0.2, %v1397_v50  ;;  %v1398_v60 = vadd.f32 %v2777_v36, %v1327_v56 }
 0x129   : > { %v1557_v63 = vsel %vm1429_vm1, %v1365_v49, %v1493_v57  ;;  %vm1430_vm4 = vcmp.ge.f32.partialorder %v1366_v59, 0.0  ;;  %v1494_v3 = vmul.f32 0.2, %v1366_v59  ;;  %v336_v49 = vld [vmem:[#allocation2 + $0x138] sm:$0xff] }
 0x12a   : > { %v1589_v0 = vsel %vm1461_vm2, %v1397_v50, %v1525_v58  ;;  %v2187_v1 = vpack.c.bf16 %v1557_v63, %v1557_v63  ;;  %v923_v4 = vpop.f32.mrb[8].mxu0  ;;  %v1051_v5 = vpop.f32.mrb[8].mxu1  ;;  %vm1462_vm5 = vcmp.ge.f32.partialorder %v1398_v60, 0.0  ;;  %v1526_v7 = vmul.f32 0.2, %v1398_v60 }
 0x12b   : > { %v2219_v2 = vpack.c.bf16 %v1589_v0, %v1589_v0  ;;  %v1166_v8 = vadd.f32 %v923_v4, %v301_v61  ;;  %v1198_v9 = vadd.f32 %v1051_v5, %v333_v62  ;;  %v925_v10 = vpop.f32.mrb[9].mxu0  ;;  %v1053_v11 = vpop.f32.mrb[9].mxu1  ;;  %v1558_v13 = vsel %vm1430_vm4, %v1366_v59, %v1494_v3 }
 0x12c   : > { %1878 = vst.msk [vmem:[%s2791_s18] sm:$0xf] %vm1877_vm3, %v2187_v1  ;;  %v1296_v14 = vld [vmem:[#allocation2 + $0x10] sm:$0xff]  ;;  %v926_v16 = vpop.f32.mrb[10].mxu0  ;;  %v1054_v17 = vpop.f32.mrb[10].mxu1  ;;  %v2188_v18 = vpack.c.bf16 %v1558_v13, %v1558_v13  ;;  %v1590_v19 = vsel %vm1462_vm5, %v1398_v60, %v1526_v7 }
 0x12d   : > { %1910 = vst.msk [vmem:[%s2791_s18 + $0x80] sm:$0xf] %vm1877_vm3, %v2219_v2  ;;  %v1328_v15 = vld [vmem:[#allocation2 + $0x110] sm:$0xff]  ;;  %v1367_v20 = vadd.f32 %v2777_v36, %v1296_v14  ;;  %v928_v22 = vpop.f32.mrb[11].mxu0  ;;  %v1056_v23 = vpop.f32.mrb[11].mxu1  ;;  %v2220_v24 = vpack.c.bf16 %v1590_v19, %v1590_v19  ;;  %v1167_v27 = vadd.f32 %v926_v16, %v302_v6  ;;  %v1199_v28 = vadd.f32 %v1054_v17, %v334_v12  ;;  %v306_v14 = vld [vmem:[#allocation2 + $0x48] sm:$0xff] }
 0x12e   : > { %v1399_v21 = vadd.f32 %v2777_v36, %v1328_v15  ;;  %1231 = vst.msk [vmem:[#allocation2 + $0x20] sm:$0xff] %vm232_vm0, %v1166_v8  ;;  %1263 = vst.msk [vmem:[#allocation2 + $0x120] sm:$0xff] %vm232_vm0, %v1198_v9  ;;  %v1297_v25 = vld [vmem:[#allocation2 + $0x18] sm:$0xff]  ;;  %v305_v8 = vld [vmem:[#allocation2 + $0x40] sm:$0xff] }
 0x12f   : > { %v1329_v26 = vld [vmem:[#allocation2 + $0x118] sm:$0xff]  ;;  %1879 = vst.msk [vmem:[%s2791_s18 + $0x4] sm:$0xf] %vm1877_vm3, %v2188_v18  ;;  %vm1431_vm6 = vcmp.ge.f32.partialorder %v1367_v20, 0.0  ;;  %v1495_v29 = vmul.f32 0.2, %v1367_v20  ;;  %v1368_v31 = vadd.f32 %v2777_v36, %v1297_v25 }
 0x130   : > { %vm1463_vm7 = vcmp.ge.f32.partialorder %v1399_v21, 0.0  ;;  %v1527_v30 = vmul.f32 0.2, %v1399_v21  ;;  %1911 = vst.msk [vmem:[%s2791_s18 + $0x84] sm:$0xf] %vm1877_vm3, %v2220_v24  ;;  %v1400_v32 = vadd.f32 %v2777_v36, %v1329_v26  ;;  %v337_v9 = vld [vmem:[#allocation2 + $0x140] sm:$0xff] }
 0x131   : > { %1232 = vst.msk [vmem:[#allocation2 + $0x28] sm:$0xff] %vm232_vm0, %v1167_v27  ;;  %1264 = vst.msk [vmem:[#allocation2 + $0x128] sm:$0xff] %vm232_vm0, %v1199_v28  ;;  %v1559_v35 = vsel %vm1431_vm6, %v1367_v20, %v1495_v29  ;;  %vm1432_vm8 = vcmp.ge.f32.partialorder %v1368_v31, 0.0  ;;  %v1496_v40 = vmul.f32 0.2, %v1368_v31  ;;  %v338_v15 = vld [vmem:[#allocation2 + $0x148] sm:$0xff] }
 0x132   : > { %v1591_v37 = vsel %vm1463_vm7, %v1399_v21, %v1527_v30  ;;  %v2189_v38 = vpack.c.bf16 %v1559_v35, %v1559_v35  ;;  %v931_v41 = vpop.f32.mrb[12].mxu0  ;;  %v1059_v42 = vpop.f32.mrb[12].mxu1  ;;  %vm1464_vm9 = vcmp.ge.f32.partialorder %v1400_v32, 0.0  ;;  %v1528_v44 = vmul.f32 0.2, %v1400_v32 }
 0x133   : > { %v2221_v39 = vpack.c.bf16 %v1591_v37, %v1591_v37  ;;  %v1168_v45 = vadd.f32 %v931_v41, %v303_v33  ;;  %v1200_v46 = vadd.f32 %v1059_v42, %v335_v34  ;;  %v933_v47 = vpop.f32.mrb[13].mxu0  ;;  %v1061_v48 = vpop.f32.mrb[13].mxu1  ;;  %v1560_v50 = vsel %vm1432_vm8, %v1368_v31, %v1496_v40 }
 0x134   : > { %1880 = vst.msk [vmem:[%s2791_s18 + $0x8] sm:$0xf] %vm1877_vm3, %v2189_v38  ;;  %v934_v53 = vpop.f32.mrb[14].mxu0  ;;  %v1062_v54 = vpop.f32.mrb[14].mxu1  ;;  %v2190_v55 = vpack.c.bf16 %v1560_v50, %v1560_v50  ;;  %v1592_v56 = vsel %vm1464_vm9, %v1400_v32, %v1528_v44 }
 0x135   : > { %1912 = vst.msk [vmem:[%s2791_s18 + $0x88] sm:$0xf] %vm1877_vm3, %v2221_v39  ;;  %v1298_v51 = vld [vmem:[#allocation2 + $0x20] sm:$0xff]  ;;  %v936_v59 = vpop.f32.mrb[15].mxu0  ;;  %v1064_v60 = vpop.f32.mrb[15].mxu1  ;;  %v2222_v61 = vpack.c.bf16 %v1592_v56, %v1592_v56  ;;  %v1169_v62 = vadd.f32 %v934_v53, %v304_v43  ;;  %v1201_v63 = vadd.f32 %v1062_v54, %v336_v49 }
 0x136   : > { %v1330_v52 = vld [vmem:[#allocation2 + $0x120] sm:$0xff]  ;;  %v1369_v57 = vadd.f32 %v2777_v36, %v1298_v51  ;;  %1233 = vst.msk [vmem:[#allocation2 + $0x30] sm:$0xff] %vm232_vm0, %v1168_v45  ;;  %1265 = vst.msk [vmem:[#allocation2 + $0x130] sm:$0xff] %vm232_vm0, %v1200_v46  ;;  %v307_v45 = vld [vmem:[#allocation2 + $0x50] sm:$0xff] }
 0x137   : > { %v1401_v58 = vadd.f32 %v2777_v36, %v1330_v52  ;;  %1881 = vst.msk [vmem:[%s2791_s18 + $0xc] sm:$0xf] %vm1877_vm3, %v2190_v55  ;;  %1913 = vst.msk [vmem:[%s2791_s18 + $0x8c] sm:$0xf] %vm1877_vm3, %v2222_v61  ;;  %v339_v46 = vld [vmem:[#allocation2 + $0x150] sm:$0xff] }
 0x138   : > { %vm1433_vm10 = vcmp.ge.f32.partialorder %v1369_v57, 0.0  ;;  %v1497_v0 = vmul.f32 0.2, %v1369_v57  ;;  %v1299_v2 = vld [vmem:[#allocation2 + $0x28] sm:$0xff]  ;;  %1234 = vst.msk [vmem:[#allocation2 + $0x38] sm:$0xff] %vm232_vm0, %v1169_v62  ;;  %1266 = vst.msk [vmem:[#allocation2 + $0x138] sm:$0xff] %vm232_vm0, %v1201_v63 }
 0x139   : > { %vm1465_vm11 = vcmp.ge.f32.partialorder %v1401_v58, 0.0  ;;  %v1529_v1 = vmul.f32 0.2, %v1401_v58  ;;  %v1331_v3 = vld [vmem:[#allocation2 + $0x128] sm:$0xff]  ;;  %v1370_v6 = vadd.f32 %v2777_v36, %v1299_v2 }
 0x13a   : > { %v1561_v4 = vsel %vm1433_vm10, %v1369_v57, %v1497_v0  ;;  %v1402_v7 = vadd.f32 %v2777_v36, %v1331_v3  ;;  %v939_v12 = vpop.f32.mrb[16].mxu0  ;;  %v1067_v13 = vpop.f32.mrb[16].mxu1  ;;  %v308_v57 = vld [vmem:[#allocation2 + $0x58] sm:$0xff] }
 0x13b   : > { %v1593_v5 = vsel %vm1465_vm11, %v1401_v58, %v1529_v1  ;;  %v2191_v10 = vpack.c.bf16 %v1561_v4, %v1561_v4  ;;  %vm1434_vm12 = vcmp.ge.f32.partialorder %v1370_v6, 0.0  ;;  %v1498_v16 = vmul.f32 0.2, %v1370_v6  ;;  %v941_v22 = vpop.f32.mrb[17].mxu0  ;;  %v1069_v23 = vpop.f32.mrb[17].mxu1  ;;  %v340_v58 = vld [vmem:[#allocation2 + $0x158] sm:$0xff] }
 0x13c   : > { %v2223_v11 = vpack.c.bf16 %v1593_v5, %v1593_v5  ;;  %vm1466_vm13 = vcmp.ge.f32.partialorder %v1402_v7, 0.0  ;;  %v1530_v17 = vmul.f32 0.2, %v1402_v7  ;;  %v1170_v20 = vadd.f32 %v939_v12, %v305_v8  ;;  %v942_v28 = vpop.f32.mrb[18].mxu0  ;;  %v1070_v29 = vpop.f32.mrb[18].mxu1  ;;  %v342_v22 = vld [vmem:[#allocation2 + $0x168] sm:$0xff] }
 0x13d   : > { %1882 = vst.msk [vmem:[%s2791_s18 + $0x10] sm:$0xf] %vm1877_vm3, %v2191_v10  ;;  %v1300_v18 = vld [vmem:[#allocation2 + $0x30] sm:$0xff]  ;;  %v1202_v21 = vadd.f32 %v1067_v13, %v337_v9  ;;  %v1562_v24 = vsel %vm1434_vm12, %v1370_v6, %v1498_v16  ;;  %v1171_v32 = vadd.f32 %v942_v28, %v306_v14  ;;  %v1203_v33 = vadd.f32 %v1070_v29, %v338_v15  ;;  %v944_v34 = vpop.f32.mrb[19].mxu0  ;;  %v1072_v35 = vpop.f32.mrb[19].mxu1  ;;  %v309_v15 = vld [vmem:[#allocation2 + $0x60] sm:$0xff] }
 0x13e   : > { %1914 = vst.msk [vmem:[%s2791_s18 + $0x90] sm:$0xf] %vm1877_vm3, %v2223_v11  ;;  %v1332_v19 = vld [vmem:[#allocation2 + $0x130] sm:$0xff]  ;;  %v1594_v25 = vsel %vm1466_vm13, %v1402_v7, %v1530_v17  ;;  %v1371_v26 = vadd.f32 %v2777_v36, %v1300_v18  ;;  %v2192_v30 = vpack.c.bf16 %v1562_v24, %v1562_v24  ;;  %v341_v16 = vld [vmem:[#allocation2 + $0x160] sm:$0xff] }
 0x13f   : > { %v1403_v27 = vadd.f32 %v2777_v36, %v1332_v19  ;;  %v2224_v31 = vpack.c.bf16 %v1594_v25, %v1594_v25  ;;  %1235 = vst.msk [vmem:[#allocation2 + $0x40] sm:$0xff] %vm232_vm0, %v1170_v20  ;;  %1267 = vst.msk [vmem:[#allocation2 + $0x140] sm:$0xff] %vm232_vm0, %v1202_v21  ;;  %v1301_v39 = vld [vmem:[#allocation2 + $0x38] sm:$0xff]  ;;  %v310_v21 = vld [vmem:[#allocation2 + $0x68] sm:$0xff] }
 0x140   : > { %vm1435_vm14 = vcmp.ge.f32.partialorder %v1371_v26, 0.0  ;;  %v1499_v37 = vmul.f32 0.2, %v1371_v26  ;;  %1883 = vst.msk [vmem:[%s2791_s18 + $0x14] sm:$0xf] %vm1877_vm3, %v2192_v30  ;;  %v1333_v40 = vld [vmem:[#allocation2 + $0x138] sm:$0xff]  ;;  %v1372_v43 = vadd.f32 %v2777_v36, %v1301_v39 }
 0x141   : > { %vm1467_vm15 = vcmp.ge.f32.partialorder %v1403_v27, 0.0  ;;  %v1531_v38 = vmul.f32 0.2, %v1403_v27  ;;  %1915 = vst.msk [vmem:[%s2791_s18 + $0x94] sm:$0xf] %vm1877_vm3, %v2224_v31  ;;  %v1404_v44 = vadd.f32 %v2777_v36, %v1333_v40 }
 0x142   : > { %1236 = vst.msk [vmem:[#allocation2 + $0x48] sm:$0xff] %vm232_vm0, %v1171_v32  ;;  %1268 = vst.msk [vmem:[#allocation2 + $0x148] sm:$0xff] %vm232_vm0, %v1203_v33  ;;  %v1563_v41 = vsel %vm1435_vm14, %v1371_v26, %v1499_v37  ;;  %v947_v49 = vpop.f32.mrb[20].mxu0  ;;  %v1075_v50 = vpop.f32.mrb[20].mxu1  ;;  %vm1436_vm1 = vcmp.ge.f32.partialorder %v1372_v43, 0.0 }
 0x143   : > { %v1595_v42 = vsel %vm1467_vm15, %v1403_v27, %v1531_v38  ;;  %v2193_v47 = vpack.c.bf16 %v1563_v41, %v1563_v41  ;;  %v1500_v51 = vmul.f32 0.2, %v1372_v43  ;;  %vm1468_vm2 = vcmp.ge.f32.partialorder %v1404_v44, 0.0  ;;  %v949_v55 = vpop.f32.mrb[21].mxu0  ;;  %v1077_v56 = vpop.f32.mrb[21].mxu1 }
 0x144   : > { %v2225_v48 = vpack.c.bf16 %v1595_v42, %v1595_v42  ;;  %v1532_v52 = vmul.f32 0.2, %v1404_v44  ;;  %v1172_v53 = vadd.f32 %v947_v49, %v307_v45  ;;  %v1204_v54 = vadd.f32 %v1075_v50, %v339_v46  ;;  %v950_v63 = vpop.f32.mrb[22].mxu0  ;;  %v1078_v0 = vpop.f32.mrb[22].mxu1  ;;  %v311_v46 = vld [vmem:[#allocation2 + $0x70] sm:$0xff] }
 0x145   : > { %1884 = vst.msk [vmem:[%s2791_s18 + $0x18] sm:$0xf] %vm1877_vm3, %v2193_v47  ;;  %v1564_v59 = vsel %vm1436_vm1, %v1372_v43, %v1500_v51  ;;  %v952_v5 = vpop.f32.mrb[23].mxu0  ;;  %v1080_v6 = vpop.f32.mrb[23].mxu1  ;;  %v1173_v9 = vadd.f32 %v950_v63, %v308_v57  ;;  %v1205_v10 = vadd.f32 %v1078_v0, %v340_v58  ;;  %v343_v47 = vld [vmem:[#allocation2 + $0x170] sm:$0xff] }
 0x146   : > { %1916 = vst.msk [vmem:[%s2791_s18 + $0x98] sm:$0xf] %vm1877_vm3, %v2225_v48  ;;  %v1596_v60 = vsel %vm1468_vm2, %v1404_v44, %v1532_v52  ;;  %v1302_v61 = vld [vmem:[#allocation2 + $0x40] sm:$0xff]  ;;  %v2194_v1 = vpack.c.bf16 %v1564_v59, %v1564_v59 }
 0x147   : > { %v1334_v62 = vld [vmem:[#allocation2 + $0x140] sm:$0xff]  ;;  %v2226_v2 = vpack.c.bf16 %v1596_v60, %v1596_v60  ;;  %v1373_v3 = vadd.f32 %v2777_v36, %v1302_v61  ;;  %1237 = vst.msk [vmem:[#allocation2 + $0x50] sm:$0xff] %vm232_vm0, %v1172_v53  ;;  %1269 = vst.msk [vmem:[#allocation2 + $0x150] sm:$0xff] %vm232_vm0, %v1204_v54 }
 0x148   : > { %v1405_v4 = vadd.f32 %v2777_v36, %v1334_v62  ;;  %1885 = vst.msk [vmem:[%s2791_s18 + $0x1c] sm:$0xf] %vm1877_vm3, %v2194_v1 }
 0x149   : > { %v1303_v7 = vld [vmem:[#allocation2 + $0x48] sm:$0xff]  ;;  %1917 = vst.msk [vmem:[%s2791_s18 + $0x9c] sm:$0xf] %vm1877_vm3, %v2226_v2  ;;  %vm1437_vm4 = vcmp.ge.f32.partialorder %v1373_v3, 0.0  ;;  %v1501_v11 = vmul.f32 0.2, %v1373_v3 }
 0x14a   : > { %v1335_v8 = vld [vmem:[#allocation2 + $0x148] sm:$0xff]  ;;  %vm1469_vm5 = vcmp.ge.f32.partialorder %v1405_v4, 0.0  ;;  %v1533_v12 = vmul.f32 0.2, %v1405_v4  ;;  %v1374_v13 = vadd.f32 %v2777_v36, %v1303_v7  ;;  %1238 = vst.msk [vmem:[#allocation2 + $0x58] sm:$0xff] %vm232_vm0, %v1173_v9  ;;  %1270 = vst.msk [vmem:[#allocation2 + $0x158] sm:$0xff] %vm232_vm0, %v1205_v10 }
 0x14b   : > { %v1406_v14 = vadd.f32 %v2777_v36, %v1335_v8  ;;  %v1565_v17 = vsel %vm1437_vm4, %v1373_v3, %v1501_v11  ;;  %v955_v19 = vpop.f32.mrb[24].mxu0  ;;  %v1083_v20 = vpop.f32.mrb[24].mxu1 }
 0x14c   : > { %v1597_v18 = vsel %vm1469_vm5, %v1405_v4, %v1533_v12  ;;  %v2195_v23 = vpack.c.bf16 %v1565_v17, %v1565_v17  ;;  %vm1438_vm6 = vcmp.ge.f32.partialorder %v1374_v13, 0.0  ;;  %v1502_v25 = vmul.f32 0.2, %v1374_v13  ;;  %v957_v26 = vpop.f32.mrb[25].mxu0  ;;  %v1085_v27 = vpop.f32.mrb[25].mxu1  ;;  %v312_v12 = vld [vmem:[#allocation2 + $0x78] sm:$0xff] }
 0x14d   : > { %v2227_v24 = vpack.c.bf16 %v1597_v18, %v1597_v18  ;;  %vm1470_vm7 = vcmp.ge.f32.partialorder %v1406_v14, 0.0  ;;  %v1534_v28 = vmul.f32 0.2, %v1406_v14  ;;  %v1174_v29 = vadd.f32 %v955_v19, %v309_v15  ;;  %v958_v31 = vpop.f32.mrb[26].mxu0  ;;  %v1086_v32 = vpop.f32.mrb[26].mxu1  ;;  %v344_v19 = vld [vmem:[#allocation2 + $0x178] sm:$0xff] }
 0x14e   : > { %v1206_v30 = vadd.f32 %v1083_v20, %v341_v16  ;;  %1886 = vst.msk [vmem:[%s2791_s18 + $0x20] sm:$0xf] %vm1877_vm3, %v2195_v23  ;;  %v1566_v33 = vsel %vm1438_vm6, %v1374_v13, %v1502_v25  ;;  %v1304_v34 = vld [vmem:[#allocation2 + $0x50] sm:$0xff]  ;;  %v1175_v37 = vadd.f32 %v958_v31, %v310_v21  ;;  %v1207_v38 = vadd.f32 %v1086_v32, %v342_v22  ;;  %v960_v39 = vpop.f32.mrb[27].mxu0  ;;  %v1088_v40 = vpop.f32.mrb[27].mxu1  ;;  %v313_v20 = vld [vmem:[#allocation2 + $0x80] sm:$0xff] }
 0x14f   : > { %1918 = vst.msk [vmem:[%s2791_s18 + $0xa0] sm:$0xf] %vm1877_vm3, %v2227_v24  ;;  %v1336_v35 = vld [vmem:[#allocation2 + $0x150] sm:$0xff]  ;;  %v2196_v41 = vpack.c.bf16 %v1566_v33, %v1566_v33  ;;  %v1598_v42 = vsel %vm1470_vm7, %v1406_v14, %v1534_v28  ;;  %v1375_v43 = vadd.f32 %v2777_v36, %v1304_v34  ;;  %v345_v21 = vld [vmem:[#allocation2 + $0x180] sm:$0xff]  ;;  %v314_v32 = vld [vmem:[#allocation2 + $0x88] sm:$0xff] }
 0x150   : > { %v1407_v44 = vadd.f32 %v2777_v36, %v1336_v35  ;;  %1239 = vst.msk [vmem:[#allocation2 + $0x60] sm:$0xff] %vm232_vm0, %v1174_v29  ;;  %1271 = vst.msk [vmem:[#allocation2 + $0x160] sm:$0xff] %vm232_vm0, %v1206_v30  ;;  %v2228_v45 = vpack.c.bf16 %v1598_v42, %v1598_v42  ;;  %v346_v33 = vld [vmem:[#allocation2 + $0x188] sm:$0xff] }
 0x151   : > { %1240 = vst.msk [vmem:[#allocation2 + $0x68] sm:$0xff] %vm232_vm0, %v1175_v37  ;;  %1272 = vst.msk [vmem:[#allocation2 + $0x168] sm:$0xff] %vm232_vm0, %v1207_v38  ;;  %vm1439_vm8 = vcmp.ge.f32.partialorder %v1375_v43, 0.0  ;;  %v1503_v48 = vmul.f32 0.2, %v1375_v43  ;;  %v1305_v50 = vld [vmem:[#allocation2 + $0x58] sm:$0xff] }
 0x152   : > { %1887 = vst.msk [vmem:[%s2791_s18 + $0x24] sm:$0xf] %vm1877_vm3, %v2196_v41  ;;  %vm1471_vm9 = vcmp.ge.f32.partialorder %v1407_v44, 0.0  ;;  %v1535_v49 = vmul.f32 0.2, %v1407_v44  ;;  %v1337_v51 = vld [vmem:[#allocation2 + $0x158] sm:$0xff]  ;;  %v1376_v54 = vadd.f32 %v2777_v36, %v1305_v50 }
 0x153   : > { %1919 = vst.msk [vmem:[%s2791_s18 + $0xa4] sm:$0xf] %vm1877_vm3, %v2228_v45  ;;  %v1567_v52 = vsel %vm1439_vm8, %v1375_v43, %v1503_v48  ;;  %v1408_v55 = vadd.f32 %v2777_v36, %v1337_v51  ;;  %v963_v56 = vpop.f32.mrb[28].mxu0  ;;  %v1091_v57 = vpop.f32.mrb[28].mxu1 }
 0x154   : > { %v1599_v53 = vsel %vm1471_vm9, %v1407_v44, %v1535_v49  ;;  %v2197_v58 = vpack.c.bf16 %v1567_v52, %v1567_v52  ;;  %v1176_v60 = vadd.f32 %v963_v56, %v311_v46  ;;  %v1208_v61 = vadd.f32 %v1091_v57, %v343_v47  ;;  %v965_v62 = vpop.f32.mrb[29].mxu0  ;;  %v1093_v63 = vpop.f32.mrb[29].mxu1  ;;  %v315_v57 = vld [vmem:[#allocation2 + $0x90] sm:$0xff] }
 0x155   : > { %v2229_v59 = vpack.c.bf16 %v1599_v53, %v1599_v53  ;;  %vm1440_vm10 = vcmp.ge.f32.partialorder %v1376_v54, 0.0  ;;  %v1504_v0 = vmul.f32 0.2, %v1376_v54  ;;  %vm1472_vm11 = vcmp.ge.f32.partialorder %v1408_v55, 0.0  ;;  %v966_v4 = vpop.f32.mrb[30].mxu0  ;;  %v1094_v5 = vpop.f32.mrb[30].mxu1 }
 0x156   : > { %v1536_v1 = vmul.f32 0.2, %v1408_v55  ;;  %1888 = vst.msk [vmem:[%s2791_s18 + $0x28] sm:$0xf] %vm1877_vm3, %v2197_v58  ;;  %v968_v13 = vpop.f32.mrb[31].mxu0  ;;  %v1096_v14 = vpop.f32.mrb[31].mxu1  ;;  %v1177_v28 = vadd.f32 %v966_v4, %v312_v12  ;;  %v1209_v29 = vadd.f32 %v1094_v5, %v344_v19 }
 0x157   : > { %1920 = vst.msk [vmem:[%s2791_s18 + $0xa8] sm:$0xf] %vm1877_vm3, %v2229_v59  ;;  %v1306_v2 = vld [vmem:[#allocation2 + $0x60] sm:$0xff]  ;;  %v1568_v6 = vsel %vm1440_vm10, %v1376_v54, %v1504_v0  ;;  %v347_v58 = vld [vmem:[#allocation2 + $0x190] sm:$0xff] }
 0x158   : > { %v1338_v3 = vld [vmem:[#allocation2 + $0x160] sm:$0xff]  ;;  %1241 = vst.msk [vmem:[#allocation2 + $0x70] sm:$0xff] %vm232_vm0, %v1176_v60  ;;  %1273 = vst.msk [vmem:[#allocation2 + $0x170] sm:$0xff] %vm232_vm0, %v1208_v61  ;;  %v1600_v7 = vsel %vm1472_vm11, %v1408_v55, %v1536_v1  ;;  %v1377_v8 = vadd.f32 %v2777_v36, %v1306_v2  ;;  %v1307_v10 = vld [vmem:[#allocation2 + $0x68] sm:$0xff]  ;;  %v2198_v15 = vpack.c.bf16 %v1568_v6, %v1568_v6 }
 0x159   : > { %v1409_v9 = vadd.f32 %v2777_v36, %v1338_v3  ;;  %v1339_v11 = vld [vmem:[#allocation2 + $0x168] sm:$0xff]  ;;  %v2230_v16 = vpack.c.bf16 %v1600_v7, %v1600_v7  ;;  %v1378_v17 = vadd.f32 %v2777_v36, %v1307_v10  ;;  %1242 = vst.msk [vmem:[#allocation2 + $0x78] sm:$0xff] %vm232_vm0, %v1177_v28  ;;  %1274 = vst.msk [vmem:[#allocation2 + $0x178] sm:$0xff] %vm232_vm0, %v1209_v29  ;;  %v316_v1 = vld [vmem:[#allocation2 + $0x98] sm:$0xff] }
 0x15a   : > { %v1410_v18 = vadd.f32 %v2777_v36, %v1339_v11  ;;  %vm1441_vm12 = vcmp.ge.f32.partialorder %v1377_v8, 0.0  ;;  %v1505_v22 = vmul.f32 0.2, %v1377_v8  ;;  %1889 = vst.msk [vmem:[%s2791_s18 + $0x2c] sm:$0xf] %vm1877_vm3, %v2198_v15  ;;  %v971_v30 = vpop.f32.mrb[32].mxu0 }
 0x15b   : > { %vm1473_vm13 = vcmp.ge.f32.partialorder %v1409_v9, 0.0  ;;  %v1537_v23 = vmul.f32 0.2, %v1409_v9  ;;  %1921 = vst.msk [vmem:[%s2791_s18 + $0xac] sm:$0xf] %vm1877_vm3, %v2230_v16  ;;  %vm1442_vm14 = vcmp.ge.f32.partialorder %v1378_v17, 0.0  ;;  %v1178_v45 = vadd.f32 %v971_v30, %v313_v20 }
 0x15c   : > { %v1506_v24 = vmul.f32 0.2, %v1378_v17  ;;  %vm1474_vm15 = vcmp.ge.f32.partialorder %v1410_v18, 0.0  ;;  %v1538_v25 = vmul.f32 0.2, %v1410_v18  ;;  %v1569_v26 = vsel %vm1441_vm12, %v1377_v8, %v1505_v22  ;;  %v1099_v31 = vpop.f32.mrb[32].mxu1 }
 0x15d   : > { %v1601_v27 = vsel %vm1473_vm13, %v1409_v9, %v1537_v23  ;;  %v2199_v34 = vpack.c.bf16 %v1569_v26, %v1569_v26  ;;  %v973_v39 = vpop.f32.mrb[33].mxu0  ;;  %v1101_v40 = vpop.f32.mrb[33].mxu1  ;;  %v1210_v46 = vadd.f32 %v1099_v31, %v345_v21  ;;  %1243 = vst.msk [vmem:[#allocation2 + $0x80] sm:$0xff] %vm232_vm0, %v1178_v45  ;;  %v348_v2 = vld [vmem:[#allocation2 + $0x198] sm:$0xff] }
 0x15e   : > { %v2231_v35 = vpack.c.bf16 %v1601_v27, %v1601_v27  ;;  %v1570_v37 = vsel %vm1442_vm14, %v1378_v17, %v1506_v24  ;;  %v1602_v38 = vsel %vm1474_vm15, %v1410_v18, %v1538_v25  ;;  %v974_v47 = vpop.f32.mrb[34].mxu0  ;;  %v1102_v48 = vpop.f32.mrb[34].mxu1 }
 0x15f   : > { %v2200_v41 = vpack.c.bf16 %v1570_v37, %v1570_v37  ;;  %v2232_v42 = vpack.c.bf16 %v1602_v38, %v1602_v38  ;;  %v1308_v43 = vld [vmem:[#allocation2 + $0x70] sm:$0xff]  ;;  %1890 = vst.msk [vmem:[%s2791_s18 + $0x30] sm:$0xf] %vm1877_vm3, %v2199_v34  ;;  %v1179_v51 = vadd.f32 %v974_v47, %v314_v32  ;;  %v1211_v52 = vadd.f32 %v1102_v48, %v346_v33  ;;  %v976_v53 = vpop.f32.mrb[35].mxu0  ;;  %v1104_v54 = vpop.f32.mrb[35].mxu1  ;;  %v317_v32 = vld [vmem:[#allocation2 + $0xa0] sm:$0xff] }
 0x160   : > { %v1340_v44 = vld [vmem:[#allocation2 + $0x170] sm:$0xff]  ;;  %1922 = vst.msk [vmem:[%s2791_s18 + $0xb0] sm:$0xf] %vm1877_vm3, %v2231_v35  ;;  %v1379_v49 = vadd.f32 %v2777_v36, %v1308_v43  ;;  %v1309_v3 = vld [vmem:[#allocation2 + $0x78] sm:$0xff]  ;;  %v349_v33 = vld [vmem:[#allocation2 + $0x1a0] sm:$0xff] }
 0x161   : > { %v1411_v50 = vadd.f32 %v2777_v36, %v1340_v44  ;;  %1891 = vst.msk [vmem:[%s2791_s18 + $0x34] sm:$0xf] %vm1877_vm3, %v2200_v41  ;;  %1923 = vst.msk [vmem:[%s2791_s18 + $0xb4] sm:$0xf] %vm1877_vm3, %v2232_v42  ;;  %v1341_v4 = vld [vmem:[#allocation2 + $0x178] sm:$0xff]  ;;  %v1380_v9 = vadd.f32 %v2777_v36, %v1309_v3  ;;  %v318_v41 = vld [vmem:[#allocation2 + $0xa8] sm:$0xff] }
 0x162   : > { %1275 = vst.msk [vmem:[#allocation2 + $0x180] sm:$0xff] %vm232_vm0, %v1210_v46  ;;  %vm1443_vm1 = vcmp.ge.f32.partialorder %v1379_v49, 0.0  ;;  %v1507_v55 = vmul.f32 0.2, %v1379_v49  ;;  %1244 = vst.msk [vmem:[#allocation2 + $0x88] sm:$0xff] %vm232_vm0, %v1179_v51  ;;  %v979_v63 = vpop.f32.mrb[36].mxu0  ;;  %v1412_v10 = vadd.f32 %v2777_v36, %v1341_v4 }
 0x163   : > { %vm1475_vm2 = vcmp.ge.f32.partialorder %v1411_v50, 0.0  ;;  %v1539_v56 = vmul.f32 0.2, %v1411_v50  ;;  %1276 = vst.msk [vmem:[#allocation2 + $0x188] sm:$0xff] %vm232_vm0, %v1211_v52  ;;  %v1107_v0 = vpop.f32.mrb[36].mxu1  ;;  %v1180_v5 = vadd.f32 %v979_v63, %v315_v57  ;;  %v981_v7 = vpop.f32.mrb[37].mxu0 }
 0x164   : > { %v1571_v59 = vsel %vm1443_vm1, %v1379_v49, %v1507_v55  ;;  %v1212_v6 = vadd.f32 %v1107_v0, %v347_v58  ;;  %v1109_v8 = vpop.f32.mrb[37].mxu1  ;;  %v982_v11 = vpop.f32.mrb[38].mxu0  ;;  %v1310_v13 = vld [vmem:[#allocation2 + $0x80] sm:$0xff]  ;;  %vm1444_vm4 = vcmp.ge.f32.partialorder %v1380_v9, 0.0  ;;  %v1508_v19 = vmul.f32 0.2, %v1380_v9 }
 0x165   : > { %v1603_v60 = vsel %vm1475_vm2, %v1411_v50, %v1539_v56  ;;  %v2201_v61 = vpack.c.bf16 %v1571_v59, %v1571_v59  ;;  %v1110_v12 = vpop.f32.mrb[38].mxu1  ;;  %1245 = vst.msk [vmem:[#allocation2 + $0x90] sm:$0xff] %vm232_vm0, %v1180_v5  ;;  %v1181_v15 = vadd.f32 %v982_v11, %v316_v1  ;;  %v984_v17 = vpop.f32.mrb[39].mxu0  ;;  %vm1476_vm5 = vcmp.ge.f32.partialorder %v1412_v10, 0.0  ;;  %v350_v55 = vld [vmem:[#allocation2 + $0x1a8] sm:$0xff]  ;;  %v351_v7 = vld [vmem:[#allocation2 + $0x1b0] sm:$0xff] }
 0x166   : > { %v2233_v62 = vpack.c.bf16 %v1603_v60, %v1603_v60  ;;  %1277 = vst.msk [vmem:[#allocation2 + $0x190] sm:$0xff] %vm232_vm0, %v1212_v6  ;;  %v1213_v16 = vadd.f32 %v1110_v12, %v348_v2  ;;  %v1112_v18 = vpop.f32.mrb[39].mxu1  ;;  %v1540_v20 = vmul.f32 0.2, %v1412_v10  ;;  %v1381_v21 = vadd.f32 %v2777_v36, %v1310_v13  ;;  %v319_v6 = vld [vmem:[#allocation2 + $0xb0] sm:$0xff] }
 0x167   : > { %1892 = vst.msk [vmem:[%s2791_s18 + $0x38] sm:$0xf] %vm1877_vm3, %v2201_v61  ;;  %v1572_v25 = vsel %vm1444_vm4, %v1380_v9, %v1508_v19 }
 0x168   : > { %1924 = vst.msk [vmem:[%s2791_s18 + $0xb8] sm:$0xf] %vm1877_vm3, %v2233_v62  ;;  %v1604_v26 = vsel %vm1476_vm5, %v1412_v10, %v1540_v20  ;;  %v2202_v29 = vpack.c.bf16 %v1572_v25, %v1572_v25  ;;  %vm1445_vm6 = vcmp.ge.f32.partialorder %v1381_v21, 0.0  ;;  %v1509_v31 = vmul.f32 0.2, %v1381_v21 }
 0x169   : > { %v1342_v14 = vld [vmem:[#allocation2 + $0x180] sm:$0xff]  ;;  %v1311_v23 = vld [vmem:[#allocation2 + $0x88] sm:$0xff]  ;;  %1246 = vst.msk [vmem:[#allocation2 + $0x98] sm:$0xff] %vm232_vm0, %v1181_v15  ;;  %1278 = vst.msk [vmem:[#allocation2 + $0x198] sm:$0xff] %vm232_vm0, %v1213_v16  ;;  %v2234_v30 = vpack.c.bf16 %v1604_v26, %v1604_v26 }
 0x16a   : > { %v1413_v22 = vadd.f32 %v2777_v36, %v1342_v14  ;;  %v1343_v24 = vld [vmem:[#allocation2 + $0x188] sm:$0xff]  ;;  %v1382_v27 = vadd.f32 %v2777_v36, %v1311_v23  ;;  %1893 = vst.msk [vmem:[%s2791_s18 + $0x3c] sm:$0xf] %vm1877_vm3, %v2202_v29  ;;  %v1573_v37 = vsel %vm1445_vm6, %v1381_v21, %v1509_v31  ;;  %v987_v39 = vpop.f32.mrb[40].mxu0  ;;  %v1115_v40 = vpop.f32.mrb[40].mxu1  ;;  %v320_v15 = vld [vmem:[#allocation2 + $0xb8] sm:$0xff] }
 0x16b   : > { %v1414_v28 = vadd.f32 %v2777_v36, %v1343_v24  ;;  %1925 = vst.msk [vmem:[%s2791_s18 + $0xbc] sm:$0xf] %vm1877_vm3, %v2234_v30  ;;  %v2203_v42 = vpack.c.bf16 %v1573_v37, %v1573_v37  ;;  %v1182_v47 = vadd.f32 %v987_v39, %v317_v32  ;;  %v989_v48 = vpop.f32.mrb[41].mxu0  ;;  %v1117_v49 = vpop.f32.mrb[41].mxu1  ;;  %v1214_v61 = vadd.f32 %v1115_v40, %v349_v33  ;;  %v352_v16 = vld [vmem:[#allocation2 + $0x1b8] sm:$0xff]  ;;  %v321_v40 = vld [vmem:[#allocation2 + $0xc0] sm:$0xff] }
 0x16c   : > { %vm1477_vm7 = vcmp.ge.f32.partialorder %v1413_v22, 0.0  ;;  %v1541_v34 = vmul.f32 0.2, %v1413_v22  ;;  %vm1446_vm8 = vcmp.ge.f32.partialorder %v1382_v27, 0.0  ;;  %v1510_v35 = vmul.f32 0.2, %v1382_v27 }
 0x16d   : > { %vm1478_vm9 = vcmp.ge.f32.partialorder %v1414_v28, 0.0  ;;  %v1542_v38 = vmul.f32 0.2, %v1414_v28  ;;  %v1312_v45 = vld [vmem:[#allocation2 + $0x90] sm:$0xff]  ;;  %v990_v54 = vpop.f32.mrb[42].mxu0  ;;  %v1118_v56 = vpop.f32.mrb[42].mxu1 }
 0x16e   : > { %v1605_v43 = vsel %vm1477_vm7, %v1413_v22, %v1541_v34  ;;  %v1574_v44 = vsel %vm1446_vm8, %v1382_v27, %v1510_v35  ;;  %v1344_v46 = vld [vmem:[#allocation2 + $0x190] sm:$0xff]  ;;  %v1383_v53 = vadd.f32 %v2777_v36, %v1312_v45  ;;  %1894 = vst.msk [vmem:[%s2791_s18 + $0x40] sm:$0xf] %vm1877_vm3, %v2203_v42  ;;  %v1183_v62 = vadd.f32 %v990_v54, %v318_v41  ;;  %v992_v63 = vpop.f32.mrb[43].mxu0  ;;  %v1120_v0 = vpop.f32.mrb[43].mxu1  ;;  %v353_v42 = vld [vmem:[#allocation2 + $0x1c0] sm:$0xff] }
 0x16f   : > { %v2235_v50 = vpack.c.bf16 %v1605_v43, %v1605_v43  ;;  %v2204_v51 = vpack.c.bf16 %v1574_v44, %v1574_v44  ;;  %v1606_v52 = vsel %vm1478_vm9, %v1414_v28, %v1542_v38  ;;  %v1415_v58 = vadd.f32 %v2777_v36, %v1344_v46  ;;  %1247 = vst.msk [vmem:[#allocation2 + $0xa0] sm:$0xff] %vm232_vm0, %v1182_v47  ;;  %v2957_v49 = vld [vmem:[%s3059_s2] ss:$0 sm:$0xff] }
 0x170   : > { %v2236_v57 = vpack.c.bf16 %v1606_v52, %v1606_v52  ;;  %v1313_v59 = vld [vmem:[#allocation2 + $0x98] sm:$0xff]  ;;  %vm1447_vm10 = vcmp.ge.f32.partialorder %v1383_v53, 0.0  ;;  %v1511_v1 = vmul.f32 0.2, %v1383_v53  ;;  %1279 = vst.msk [vmem:[#allocation2 + $0x1a0] sm:$0xff] %vm232_vm0, %v1214_v61  ;;  %1248 = vst.msk [vmem:[#allocation2 + $0xa8] sm:$0xff] %vm232_vm0, %v1183_v62  ;;  %v1215_v5 = vadd.f32 %v1118_v56, %v350_v55 }
 0x171   : > { %v1345_v60 = vld [vmem:[#allocation2 + $0x198] sm:$0xff]  ;;  %1926 = vst.msk [vmem:[%s2791_s18 + $0xc0] sm:$0xf] %vm1877_vm3, %v2235_v50  ;;  %1895 = vst.msk [vmem:[%s2791_s18 + $0x44] sm:$0xf] %vm1877_vm3, %v2204_v51  ;;  %v1384_v2 = vadd.f32 %v2777_v36, %v1313_v59  ;;  %vm1479_vm11 = vcmp.ge.f32.partialorder %v1415_v58, 0.0 }
 0x172   : > { %v1416_v3 = vadd.f32 %v2777_v36, %v1345_v60  ;;  %1927 = vst.msk [vmem:[%s2791_s18 + $0xc4] sm:$0xf] %vm1877_vm3, %v2236_v57  ;;  %v1543_v4 = vmul.f32 0.2, %v1415_v58  ;;  %v1575_v8 = vsel %vm1447_vm10, %v1383_v53, %v1511_v1  ;;  %v995_v13 = vpop.f32.mrb[44].mxu0  ;;  %v1123_v14 = vpop.f32.mrb[44].mxu1 }
 0x173   : > { %vm1448_vm12 = vcmp.ge.f32.partialorder %v1384_v2, 0.0  ;;  %v1512_v9 = vmul.f32 0.2, %v1384_v2  ;;  %v2205_v10 = vpack.c.bf16 %v1575_v8, %v1575_v8  ;;  %1280 = vst.msk [vmem:[#allocation2 + $0x1a8] sm:$0xff] %vm232_vm0, %v1215_v5  ;;  %v1184_v19 = vadd.f32 %v995_v13, %v319_v6  ;;  %v997_v21 = vpop.f32.mrb[45].mxu0  ;;  %v1125_v22 = vpop.f32.mrb[45].mxu1 }
 0x174   : > { %vm1480_vm13 = vcmp.ge.f32.partialorder %v1416_v3, 0.0  ;;  %v1607_v11 = vsel %vm1479_vm11, %v1415_v58, %v1543_v4  ;;  %v1544_v12 = vmul.f32 0.2, %v1416_v3  ;;  %v1216_v20 = vadd.f32 %v1123_v14, %v351_v7  ;;  %v998_v25 = vpop.f32.mrb[46].mxu0  ;;  %v1126_v26 = vpop.f32.mrb[46].mxu1  ;;  %v322_v53 = vld [vmem:[#allocation2 + $0xc8] sm:$0xff] }
 0x175   : > { %v2237_v17 = vpack.c.bf16 %v1607_v11, %v1607_v11  ;;  %v1576_v18 = vsel %vm1448_vm12, %v1384_v2, %v1512_v9  ;;  %1896 = vst.msk [vmem:[%s2791_s18 + $0x48] sm:$0xf] %vm1877_vm3, %v2205_v10  ;;  %v1185_v29 = vadd.f32 %v998_v25, %v320_v15  ;;  %v1217_v30 = vadd.f32 %v1126_v26, %v352_v16  ;;  %v1000_v31 = vpop.f32.mrb[47].mxu0  ;;  %v1128_v32 = vpop.f32.mrb[47].mxu1  ;;  %v354_v59 = vld [vmem:[#allocation2 + $0x1c8] sm:$0xff]  ;;  %v323_v14 = vld [vmem:[#allocation2 + $0xd0] sm:$0xff] }
 0x176   : > { %v2206_v23 = vpack.c.bf16 %v1576_v18, %v1576_v18  ;;  %v1608_v24 = vsel %vm1480_vm13, %v1416_v3, %v1544_v12  ;;  %v1314_v28 = vld [vmem:[#allocation2 + $0xa0] sm:$0xff]  ;;  %1249 = vst.msk [vmem:[#allocation2 + $0xb0] sm:$0xff] %vm232_vm0, %v1184_v19  ;;  %1281 = vst.msk [vmem:[#allocation2 + $0x1b0] sm:$0xff] %vm232_vm0, %v1216_v20  ;;  %v355_v15 = vld [vmem:[#allocation2 + $0x1d0] sm:$0xff] }
 0x177   : > { %1928 = vst.msk [vmem:[%s2791_s18 + $0xc8] sm:$0xf] %vm1877_vm3, %v2237_v17  ;;  %v2238_v27 = vpack.c.bf16 %v1608_v24, %v1608_v24  ;;  %v1385_v33 = vadd.f32 %v2777_v36, %v1314_v28  ;;  %v1346_v34 = vld [vmem:[#allocation2 + $0x1a0] sm:$0xff]  ;;  %v1315_v35 = vld [vmem:[#allocation2 + $0xa8] sm:$0xff]  ;;  %v324_v22 = vld [vmem:[#allocation2 + $0xd8] sm:$0xff] }
 0x178   : > { %1897 = vst.msk [vmem:[%s2791_s18 + $0x4c] sm:$0xf] %vm1877_vm3, %v2206_v23  ;;  %v1417_v38 = vadd.f32 %v2777_v36, %v1346_v34  ;;  %v1386_v39 = vadd.f32 %v2777_v36, %v1315_v35  ;;  %v356_v23 = vld [vmem:[#allocation2 + $0x1d8] sm:$0xff] }
 0x179   : > { %1929 = vst.msk [vmem:[%s2791_s18 + $0xcc] sm:$0xf] %vm1877_vm3, %v2238_v27  ;;  %vm1449_vm14 = vcmp.ge.f32.partialorder %v1385_v33, 0.0  ;;  %v1513_v37 = vmul.f32 0.2, %v1385_v33 }
 0x17a   : > { %1250 = vst.msk [vmem:[#allocation2 + $0xb8] sm:$0xff] %vm232_vm0, %v1185_v29  ;;  %1282 = vst.msk [vmem:[#allocation2 + $0x1b8] sm:$0xff] %vm232_vm0, %v1217_v30  ;;  %v1347_v41 = vld [vmem:[#allocation2 + $0x1a8] sm:$0xff]  ;;  %vm1481_vm15 = vcmp.ge.f32.partialorder %v1417_v38, 0.0  ;;  %v1545_v44 = vmul.f32 0.2, %v1417_v38 }
 0x17b   : > { %v1577_v43 = vsel %vm1449_vm14, %v1385_v33, %v1513_v37  ;;  %vm1450_vm1 = vcmp.ge.f32.partialorder %v1386_v39, 0.0  ;;  %v1003_v45 = vpop.f32.mrb[48].mxu0  ;;  %v1131_v46 = vpop.f32.mrb[48].mxu1  ;;  %v1514_v48 = vmul.f32 0.2, %v1386_v39  ;;  %v1418_v50 = vadd.f32 %v2957_v49, %v1347_v41 }
 0x17c   : > { %v2207_v47 = vpack.c.bf16 %v1577_v43, %v1577_v43  ;;  %v1186_v36 = vadd.f32 %v1003_v45, %v321_v40  ;;  %v1005_v51 = vpop.f32.mrb[49].mxu0  ;;  %v1133_v52 = vpop.f32.mrb[49].mxu1  ;;  %v1609_v54 = vsel %vm1481_vm15, %v1417_v38, %v1545_v44  ;;  %v1218_v57 = vadd.f32 %v1131_v46, %v353_v42 }
 0x17d   : > { %v1316_v55 = vld [vmem:[#allocation2 + $0xb0] sm:$0xff]  ;;  %v1006_v58 = vpop.f32.mrb[50].mxu0  ;;  %v1134_v60 = vpop.f32.mrb[50].mxu1  ;;  %v2239_v61 = vpack.c.bf16 %v1609_v54, %v1609_v54  ;;  %v1578_v62 = vsel %vm1450_vm1, %v1386_v39, %v1514_v48  ;;  %vm1482_vm2 = vcmp.ge.f32.partialorder %v1418_v50, 0.0  ;;  %v1546_v63 = vmul.f32 0.2, %v1418_v50 }
 0x17e   : > { %v1348_v56 = vld [vmem:[#allocation2 + $0x1b0] sm:$0xff]  ;;  %1898 = vst.msk [vmem:[%s2791_s18 + $0x50] sm:$0xf] %vm1877_vm3, %v2207_v47  ;;  %v1008_v0 = vpop.f32.mrb[51].mxu0  ;;  %v1136_v1 = vpop.f32.mrb[51].mxu1  ;;  %v2208_v2 = vpack.c.bf16 %v1578_v62, %v1578_v62  ;;  %v1387_v3 = vadd.f32 %v2957_v49, %v1316_v55  ;;  %v1187_v7 = vadd.f32 %v1006_v58, %v322_v53  ;;  %v1219_v11 = vadd.f32 %v1134_v60, %v354_v59  ;;  %v325_v51 = vld [vmem:[#allocation2 + $0xe0] sm:$0xff] }
 0x17f   : > { %1251 = vst.msk [vmem:[#allocation2 + $0xc0] sm:$0xff] %vm232_vm0, %v1186_v36  ;;  %v1419_v4 = vadd.f32 %v2957_v49, %v1348_v56  ;;  %1283 = vst.msk [vmem:[#allocation2 + $0x1c0] sm:$0xff] %vm232_vm0, %v1218_v57  ;;  %v1610_v8 = vsel %vm1482_vm2, %v1418_v50, %v1546_v63  ;;  %v357_v54 = vld [vmem:[#allocation2 + $0x1e0] sm:$0xff]  ;;  %v326_v60 = vld [vmem:[#allocation2 + $0xe8] sm:$0xff] }
 0x180   : > { %1930 = vst.msk [vmem:[%s2791_s18 + $0xd0] sm:$0xf] %vm1877_vm3, %v2239_v61  ;;  %1899 = vst.msk [vmem:[%s2791_s18 + $0x54] sm:$0xf] %vm1877_vm3, %v2208_v2  ;;  %v2240_v12 = vpack.c.bf16 %v1610_v8, %v1610_v8  ;;  %vm1451_vm4 = vcmp.ge.f32.partialorder %v1387_v3, 0.0  ;;  %v358_v2 = vld [vmem:[#allocation2 + $0x1e8] sm:$0xff] }
 0x181   : > { %v1317_v5 = vld [vmem:[#allocation2 + $0xb8] sm:$0xff]  ;;  %v1515_v13 = vmul.f32 0.2, %v1387_v3  ;;  %vm1483_vm5 = vcmp.ge.f32.partialorder %v1419_v4, 0.0  ;;  %1252 = vst.msk [vmem:[#allocation2 + $0xc8] sm:$0xff] %vm232_vm0, %v1187_v7  ;;  %1284 = vst.msk [vmem:[#allocation2 + $0x1c8] sm:$0xff] %vm232_vm0, %v1219_v11 }
 0x182   : > { %v1349_v6 = vld [vmem:[#allocation2 + $0x1b8] sm:$0xff]  ;;  %v1388_v9 = vadd.f32 %v2957_v49, %v1317_v5  ;;  %v1547_v16 = vmul.f32 0.2, %v1419_v4  ;;  %1931 = vst.msk [vmem:[%s2791_s18 + $0xd4] sm:$0xf] %vm1877_vm3, %v2240_v12  ;;  %v1011_v20 = vpop.f32.mrb[52].mxu0 }
 0x183   : > { %v1420_v10 = vadd.f32 %v2957_v49, %v1349_v6  ;;  %v1579_v18 = vsel %vm1451_vm4, %v1387_v3, %v1515_v13  ;;  %v1139_v21 = vpop.f32.mrb[52].mxu1  ;;  %v1188_v27 = vadd.f32 %v1011_v20, %v323_v14  ;;  %v1013_v28 = vpop.f32.mrb[53].mxu0 }
 0x184   : > { %vm1452_vm6 = vcmp.ge.f32.partialorder %v1388_v9, 0.0  ;;  %v1516_v17 = vmul.f32 0.2, %v1388_v9  ;;  %v2209_v24 = vpack.c.bf16 %v1579_v18, %v1579_v18  ;;  %v1611_v25 = vsel %vm1483_vm5, %v1419_v4, %v1547_v16  ;;  %v1141_v29 = vpop.f32.mrb[53].mxu1  ;;  %v1014_v35 = vpop.f32.mrb[54].mxu0 }
 0x185   : > { %vm1484_vm7 = vcmp.ge.f32.partialorder %v1420_v10, 0.0  ;;  %v1548_v19 = vmul.f32 0.2, %v1420_v10  ;;  %v2241_v30 = vpack.c.bf16 %v1611_v25, %v1611_v25  ;;  %v1220_v34 = vadd.f32 %v1139_v21, %v355_v15  ;;  %v1142_v37 = vpop.f32.mrb[54].mxu1  ;;  %1253 = vst.msk [vmem:[#allocation2 + $0xd0] sm:$0xff] %vm232_vm0, %v1188_v27  ;;  %v1016_v43 = vpop.f32.mrb[55].mxu0 }
 0x186   : > { %v1580_v26 = vsel %vm1452_vm6, %v1388_v9, %v1516_v17  ;;  %v1318_v33 = vld [vmem:[#allocation2 + $0xc0] sm:$0xff]  ;;  %1900 = vst.msk [vmem:[%s2791_s18 + $0x58] sm:$0xf] %vm1877_vm3, %v2209_v24  ;;  %v1189_v41 = vadd.f32 %v1014_v35, %v324_v22  ;;  %v1221_v42 = vadd.f32 %v1142_v37, %v356_v23  ;;  %v1144_v44 = vpop.f32.mrb[55].mxu1  ;;  %v327_v24 = vld [vmem:[#allocation2 + $0xf0] sm:$0xff] }
 0x187   : > { %v2210_v31 = vpack.c.bf16 %v1580_v26, %v1580_v26  ;;  %v1612_v32 = vsel %vm1484_vm7, %v1420_v10, %v1548_v19  ;;  %v1389_v39 = vadd.f32 %v2957_v49, %v1318_v33  ;;  %v1350_v40 = vld [vmem:[#allocation2 + $0x1c0] sm:$0xff]  ;;  %1932 = vst.msk [vmem:[%s2791_s18 + $0xd8] sm:$0xf] %vm1877_vm3, %v2241_v30  ;;  %v359_v25 = vld [vmem:[#allocation2 + $0x1f0] sm:$0xff]  ;;  %v328_v33 = vld [vmem:[#allocation2 + $0xf8] sm:$0xff] }
 0x188   : > { %v2242_v38 = vpack.c.bf16 %v1612_v32, %v1612_v32  ;;  %v1421_v45 = vadd.f32 %v2957_v49, %v1350_v40  ;;  %1285 = vst.msk [vmem:[#allocation2 + $0x1d0] sm:$0xff] %vm232_vm0, %v1220_v34  ;;  %v1319_v47 = vld [vmem:[#allocation2 + $0xc8] sm:$0xff]  ;;  %1254 = vst.msk [vmem:[#allocation2 + $0xd8] sm:$0xff] %vm232_vm0, %v1189_v41  ;;  %v360_v34 = vld [vmem:[#allocation2 + $0x1f8] sm:$0xff] }
 0x189   : > { %1901 = vst.msk [vmem:[%s2791_s18 + $0x5c] sm:$0xf] %vm1877_vm3, %v2210_v31  ;;  %vm1453_vm8 = vcmp.ge.f32.partialorder %v1389_v39, 0.0  ;;  %v1517_v46 = vmul.f32 0.2, %v1389_v39  ;;  %v1390_v50 = vadd.f32 %v2957_v49, %v1319_v47  ;;  %v1351_v36 = vld [vmem:[#allocation2 + $0x1c8] sm:$0xff] }
 0x18a   : > { %1933 = vst.msk [vmem:[%s2791_s18 + $0xdc] sm:$0xf] %vm1877_vm3, %v2242_v38  ;;  %vm1485_vm9 = vcmp.ge.f32.partialorder %v1421_v45, 0.0  ;;  %v1549_v48 = vmul.f32 0.2, %v1421_v45  ;;  %v1422_v53 = vadd.f32 %v2957_v49, %v1351_v36  ;;  %v1019_v58 = vpop.f32.mrb[56].mxu0 }
 0x18b   : > { %1286 = vst.msk [vmem:[#allocation2 + $0x1d8] sm:$0xff] %vm232_vm0, %v1221_v42  ;;  %v1581_v52 = vsel %vm1453_vm8, %v1389_v39, %v1517_v46  ;;  %vm1454_vm10 = vcmp.ge.f32.partialorder %v1390_v50, 0.0  ;;  %v1518_v57 = vmul.f32 0.2, %v1390_v50  ;;  %v1147_v59 = vpop.f32.mrb[56].mxu1  ;;  %v1190_v63 = vadd.f32 %v1019_v58, %v325_v51  ;;  %v1021_v0 = vpop.f32.mrb[57].mxu0 }
 0x18c   : > { %v2211_v55 = vpack.c.bf16 %v1581_v52, %v1581_v52  ;;  %v1613_v56 = vsel %vm1485_vm9, %v1421_v45, %v1549_v48  ;;  %vm1486_vm11 = vcmp.ge.f32.partialorder %v1422_v53, 0.0  ;;  %v1550_v62 = vmul.f32 0.2, %v1422_v53  ;;  %v1149_v1 = vpop.f32.mrb[57].mxu1  ;;  %v1320_v4 = vld [vmem:[#allocation2 + $0xd0] sm:$0xff]  ;;  %v1022_v6 = vpop.f32.mrb[58].mxu0 }
 0x18d   : > { %v2243_v61 = vpack.c.bf16 %v1613_v56, %v1613_v56  ;;  %v1582_v3 = vsel %vm1454_vm10, %v1390_v50, %v1518_v57  ;;  %v1222_v5 = vadd.f32 %v1147_v59, %v357_v54  ;;  %v1150_v7 = vpop.f32.mrb[58].mxu1  ;;  %v1391_v10 = vadd.f32 %v2957_v49, %v1320_v4  ;;  %1255 = vst.msk [vmem:[#allocation2 + $0xe0] sm:$0xff] %vm232_vm0, %v1190_v63  ;;  %v1024_v13 = vpop.f32.mrb[59].mxu0 }
 0x18e   : > { %1902 = vst.msk [vmem:[%s2791_s18 + $0x60] sm:$0xf] %vm1877_vm3, %v2211_v55  ;;  %v2212_v8 = vpack.c.bf16 %v1582_v3, %v1582_v3  ;;  %v1614_v9 = vsel %vm1486_vm11, %v1422_v53, %v1550_v62  ;;  %v1191_v12 = vadd.f32 %v1022_v6, %v326_v60  ;;  %v1152_v14 = vpop.f32.mrb[59].mxu1  ;;  %v1223_v19 = vadd.f32 %v1150_v7, %v358_v2 }
 0x18f   : > { %1934 = vst.msk [vmem:[%s2791_s18 + $0xe0] sm:$0xf] %vm1877_vm3, %v2243_v61  ;;  %v1352_v11 = vld [vmem:[#allocation2 + $0x1d0] sm:$0xff]  ;;  %v2244_v15 = vpack.c.bf16 %v1614_v9, %v1614_v9  ;;  %v1321_v17 = vld [vmem:[#allocation2 + $0xd8] sm:$0xff]  ;;  %vm1455_vm12 = vcmp.ge.f32.partialorder %v1391_v10, 0.0 }
 0x190   : > { %v1423_v16 = vadd.f32 %v2957_v49, %v1352_v11  ;;  %1287 = vst.msk [vmem:[#allocation2 + $0x1e0] sm:$0xff] %vm232_vm0, %v1222_v5  ;;  %v1519_v20 = vmul.f32 0.2, %v1391_v10  ;;  %v1392_v21 = vadd.f32 %v2957_v49, %v1321_v17  ;;  %1256 = vst.msk [vmem:[#allocation2 + $0xe8] sm:$0xff] %vm232_vm0, %v1191_v12 }
 0x191   : > { %1903 = vst.msk [vmem:[%s2791_s18 + $0x64] sm:$0xf] %vm1877_vm3, %v2212_v8  ;;  %1935 = vst.msk [vmem:[%s2791_s18 + $0xe4] sm:$0xf] %vm1877_vm3, %v2244_v15 }
 0x192   : > { %v1353_v18 = vld [vmem:[#allocation2 + $0x1d8] sm:$0xff]  ;;  %vm1487_vm13 = vcmp.ge.f32.partialorder %v1423_v16, 0.0  ;;  %v1551_v23 = vmul.f32 0.2, %v1423_v16  ;;  %1288 = vst.msk [vmem:[#allocation2 + $0x1e8] sm:$0xff] %vm232_vm0, %v1223_v19  ;;  %v1583_v26 = vsel %vm1455_vm12, %v1391_v10, %v1519_v20  ;;  %vm1456_vm14 = vcmp.ge.f32.partialorder %v1392_v21, 0.0 }
 0x193   : > { %v1424_v22 = vadd.f32 %v2957_v49, %v1353_v18  ;;  %v1520_v27 = vmul.f32 0.2, %v1392_v21  ;;  %v2213_v28 = vpack.c.bf16 %v1583_v26, %v1583_v26  ;;  %v1027_v31 = vpop.f32.mrb[60].mxu0  ;;  %v1155_v32 = vpop.f32.mrb[60].mxu1 }
 0x194   : > { %v1615_v29 = vsel %vm1487_vm13, %v1423_v16, %v1551_v23  ;;  %v1192_v38 = vadd.f32 %v1027_v31, %v327_v24  ;;  %v1224_v39 = vadd.f32 %v1155_v32, %v359_v25  ;;  %v1029_v40 = vpop.f32.mrb[61].mxu0  ;;  %v1157_v41 = vpop.f32.mrb[61].mxu1  ;;  %v1322_v44 = vld [vmem:[#allocation2 + $0xe0] sm:$0xff] }
 0x195   : > { %vm1488_vm15 = vcmp.ge.f32.partialorder %v1424_v22, 0.0  ;;  %v1552_v30 = vmul.f32 0.2, %v1424_v22  ;;  %v2245_v35 = vpack.c.bf16 %v1615_v29, %v1615_v29  ;;  %v1584_v37 = vsel %vm1456_vm14, %v1392_v21, %v1520_v27  ;;  %1904 = vst.msk [vmem:[%s2791_s18 + $0x68] sm:$0xf] %vm1877_vm3, %v2213_v28  ;;  %v1030_v45 = vpop.f32.mrb[62].mxu0 }
 0x196   : > { %v2214_v42 = vpack.c.bf16 %v1584_v37, %v1584_v37  ;;  %v1158_v46 = vpop.f32.mrb[62].mxu1  ;;  %v1393_v48 = vadd.f32 %v2957_v49, %v1322_v44  ;;  %1257 = vst.msk [vmem:[#allocation2 + $0xf0] sm:$0xff] %vm232_vm0, %v1192_v38  ;;  %1289 = vst.msk [vmem:[#allocation2 + $0x1f0] sm:$0xff] %vm232_vm0, %v1224_v39  ;;  %v1193_v36 = vadd.f32 %v1030_v45, %v328_v33  ;;  %v1032_v52 = vpop.f32.mrb[63].mxu0 }
 0x197   : > { %v1616_v43 = vsel %vm1488_vm15, %v1424_v22, %v1552_v30  ;;  %1936 = vst.msk [vmem:[%s2791_s18 + $0xe8] sm:$0xf] %vm1877_vm3, %v2245_v35  ;;  %v1354_v50 = vld [vmem:[#allocation2 + $0x1e0] sm:$0xff]  ;;  %v1225_v51 = vadd.f32 %v1158_v46, %v360_v34  ;;  %v1160_v53 = vpop.f32.mrb[63].mxu1  ;;  %v1323_v55 = vld [vmem:[#allocation2 + $0xe8] sm:$0xff] }
 0x198   : > { %v2246_v47 = vpack.c.bf16 %v1616_v43, %v1616_v43  ;;  %1905 = vst.msk [vmem:[%s2791_s18 + $0x6c] sm:$0xf] %vm1877_vm3, %v2214_v42  ;;  %v1425_v54 = vadd.f32 %v2957_v49, %v1354_v50  ;;  %vm1457_vm1 = vcmp.ge.f32.partialorder %v1393_v48, 0.0  ;;  %v1521_v56 = vmul.f32 0.2, %v1393_v48 }
 0x199   : > { %v1394_v57 = vadd.f32 %v2957_v49, %v1323_v55  ;;  %v1355_v58 = vld [vmem:[#allocation2 + $0x1e8] sm:$0xff]  ;;  %1258 = vst.msk [vmem:[#allocation2 + $0xf8] sm:$0xff] %vm232_vm0, %v1193_v36  ;;  %1290 = vst.msk [vmem:[#allocation2 + $0x1f8] sm:$0xff] %vm232_vm0, %v1225_v51 }
 0x19a   : > { %1937 = vst.msk [vmem:[%s2791_s18 + $0xec] sm:$0xf] %vm1877_vm3, %v2246_v47  ;;  %vm1489_vm2 = vcmp.ge.f32.partialorder %v1425_v54, 0.0  ;;  %v1553_v59 = vmul.f32 0.2, %v1425_v54  ;;  %v1426_v60 = vadd.f32 %v2957_v49, %v1355_v58  ;;  %v1585_v61 = vsel %vm1457_vm1, %v1393_v48, %v1521_v56 }
 0x19b   : > { %vm1458_vm4 = vcmp.ge.f32.partialorder %v1394_v57, 0.0  ;;  %v1522_v62 = vmul.f32 0.2, %v1394_v57  ;;  %v2215_v63 = vpack.c.bf16 %v1585_v61, %v1585_v61 }
 0x19c   : > { %v1617_v0 = vsel %vm1489_vm2, %v1425_v54, %v1553_v59  ;;  %vm1490_vm5 = vcmp.ge.f32.partialorder %v1426_v60, 0.0  ;;  %v1554_v1 = vmul.f32 0.2, %v1426_v60 }
 0x19d   : > { %v2247_v2 = vpack.c.bf16 %v1617_v0, %v1617_v0  ;;  %v1586_v3 = vsel %vm1458_vm4, %v1394_v57, %v1522_v62  ;;  %1906 = vst.msk [vmem:[%s2791_s18 + $0x70] sm:$0xf] %vm1877_vm3, %v2215_v63  ;;  %v1324_v6 = vld [vmem:[#allocation2 + $0xf0] sm:$0xff] }
 0x19e   : > { %v2216_v4 = vpack.c.bf16 %v1586_v3, %v1586_v3  ;;  %v1618_v5 = vsel %vm1490_vm5, %v1426_v60, %v1554_v1  ;;  %v1356_v7 = vld [vmem:[#allocation2 + $0x1f0] sm:$0xff]  ;;  %v1395_v9 = vadd.f32 %v2957_v49, %v1324_v6 }
 0x19f   : > { %1938 = vst.msk [vmem:[%s2791_s18 + $0xf0] sm:$0xf] %vm1877_vm3, %v2247_v2  ;;  %v2248_v8 = vpack.c.bf16 %v1618_v5, %v1618_v5  ;;  %v1427_v10 = vadd.f32 %v2957_v49, %v1356_v7 }
 0x1a0   : > { %1907 = vst.msk [vmem:[%s2791_s18 + $0x74] sm:$0xf] %vm1877_vm3, %v2216_v4  ;;  %v1325_v11 = vld [vmem:[#allocation2 + $0xf8] sm:$0xff]  ;;  %vm1459_vm0 = vcmp.ge.f32.partialorder %v1395_v9, 0.0  ;;  %v1523_v13 = vmul.f32 0.2, %v1395_v9 }
 0x1a1   : > { %v1357_v12 = vld [vmem:[#allocation2 + $0x1f8] sm:$0xff]  ;;  %1939 = vst.msk [vmem:[%s2791_s18 + $0xf4] sm:$0xf] %vm1877_vm3, %v2248_v8  ;;  %vm1491_vm6 = vcmp.ge.f32.partialorder %v1427_v10, 0.0  ;;  %v1555_v14 = vmul.f32 0.2, %v1427_v10  ;;  %v1396_v15 = vadd.f32 %v2957_v49, %v1325_v11 }
 0x1a2   : > { %v1428_v16 = vadd.f32 %v2957_v49, %v1357_v12  ;;  %v1587_v17 = vsel %vm1459_vm0, %v1395_v9, %v1523_v13 }
 0x1a3   : > { %v1619_v18 = vsel %vm1491_vm6, %v1427_v10, %v1555_v14  ;;  %v2217_v19 = vpack.c.bf16 %v1587_v17, %v1587_v17  ;;  %vm1460_vm7 = vcmp.ge.f32.partialorder %v1396_v15, 0.0  ;;  %v1524_v21 = vmul.f32 0.2, %v1396_v15 }
 0x1a4   : > { %v2249_v20 = vpack.c.bf16 %v1619_v18, %v1619_v18  ;;  %vm1492_vm8 = vcmp.ge.f32.partialorder %v1428_v16, 0.0  ;;  %v1556_v22 = vmul.f32 0.2, %v1428_v16 }
 0x1a5   : > { %1908 = vst.msk [vmem:[%s2791_s18 + $0x78] sm:$0xf] %vm1877_vm3, %v2217_v19  ;;  %v1588_v23 = vsel %vm1460_vm7, %v1396_v15, %v1524_v21 }
 0x1a6   : > { %1940 = vst.msk [vmem:[%s2791_s18 + $0xf8] sm:$0xf] %vm1877_vm3, %v2249_v20  ;;  %v2218_v24 = vpack.c.bf16 %v1588_v23, %v1588_v23  ;;  %v1620_v25 = vsel %vm1492_vm8, %v1428_v16, %v1556_v22 }
 0x1a7   : > { %v2250_v26 = vpack.c.bf16 %v1620_v25, %v1620_v25 }
 0x1a8   : > { %1909 = vst.msk [vmem:[%s2791_s18 + $0x7c] sm:$0xf] %vm1877_vm3, %v2218_v24 }
 0x1a9   : > { %1941 = vst.msk [vmem:[%s2791_s18 + $0xfc] sm:$0xf] %vm1877_vm3, %v2250_v26 }
 0x1aa PF: > { %s13_s14 = sadd.s32 1, %s2444_s14   ;;  %s3061_s12 = smov %s2440_s13 }
 0x1ab   : > { %p10_p5 = scmp.ge.s32.totalorder %s13_s14, 18   ;;  %s3062_s13 = smov %s3064_s15 }
 0x1ad   :  { %12 = sbr.rel (!%p10_p5) target bundleno = 2 (0x2), region = 73 }

// kernel: forward.10
= control target key start
LH: loop header
LB: loop body
LE: loop exit
PB: predicated region body
PF: predicated region fallthrough
CT: control target
= control target key end

     0   :  { %s1351_s12 = smov 0   ;;  %s1681_s0 = inlined_call_operand.vmem [shape: bf16[1024,16], index: 0, kind: input, shape index: {}]   ;;  %s1682_s1 = inlined_call_operand.vmem [shape: f32[1,16], index: 1, kind: input, shape index: {}]   ;;  %s1683_s2 = inlined_call_operand.vmem [shape: f32[1,16], index: 2, kind: input, shape index: {}]   ;;  %s1684_s3 = inlined_call_operand.vmem [shape: bf16[1024,16], index: 3, kind: output, shape index: {}]  }
   0x1 LB: > { %s1013_s13 = sadd.s32 4294967295, %s1329_s12   ;;  %p1017_p0 = scmp.ge.s32.totalorder %s1329_s12, 1  ;;  %s1329_s12 = sphi %s1351_s12, %s13_s12  }
   0x2   : > { %p138_p1 = scmp.lt.s32.totalorder %s1329_s12, 3 }
   0x4   : > { %p139_p2 = pnand %p1017_p0, %p138_p1 }
   0x5   : > { %s1018_s14 = sshll.u32 (!%p139_p2), %s1013_s13, 6  ;;  %v1372_v0 = vld [vmem:[%s1682_s1] ss:$0 sm:$0xff] (!%p139_p2)  ;;  %vm892_vm0 = vcmask (!%p139_p2), 125952  }
   0x6   : > { %142 = sbr.rel (%p139_p2) target bundleno = 135 (0x87), region = 32  ;;  %p163_p3 = scmp.lt.s32.totalorder (!%p139_p2), %s1018_s14, 127  ;;  %v1381_v9 = vld [vmem:[%s1683_s2] ss:$0 sm:$0xff] (!%p139_p2) }
   0xd   : > { %s1686_s14 = smov (!%p163_p3, %s1018_s14), 127 }
   0xe   : > { %s1019_s15 = sshll.u32 %s1686_s14, 2 }
   0xf   : > { %s1367_s18 = scalar_lea.vmem %s1681_s0, %s1019_s15  ;;  %s1404_s25 = scalar_lea.vmem %s1684_s3, %s1019_s15 }
  0x10   : > { %v1155_v1 = vld [vmem:[%s1367_s18] sm:$0xff]   ;;  %v1282_v2 = vld [vmem:[%s1367_s18 + $0x8] sm:$0xff]   ;;  %v1283_v3 = vld [vmem:[%s1367_s18 + $0x10] sm:$0xff]  }
  0x11   : > { %v1156_v4 = vunpack.c.l.bf16 %v1155_v1  ;;  %v1157_v5 = vunpack.c.h.bf16 %v1155_v1  ;;  %v1160_v6 = vunpack.c.l.bf16 %v1282_v2  ;;  %v1161_v7 = vunpack.c.h.bf16 %v1282_v2  ;;  %v1284_v8 = vld [vmem:[%s1367_s18 + $0x18] sm:$0xff]   ;;  %v1285_v41 = vld [vmem:[%s1367_s18 + $0x20] sm:$0xff]   ;;  %v1286_v45 = vld [vmem:[%s1367_s18 + $0x28] sm:$0xff]  }
  0x12   : > { %v1164_v10 = vunpack.c.l.bf16 %v1283_v3  ;;  %v1165_v11 = vunpack.c.h.bf16 %v1283_v3  ;;  %v1168_v12 = vunpack.c.l.bf16 %v1284_v8  ;;  %v1169_v13 = vunpack.c.h.bf16 %v1284_v8  ;;  %v1287_v56 = vld [vmem:[%s1367_s18 + $0x30] sm:$0xff]   ;;  %v1288_v57 = vld [vmem:[%s1367_s18 + $0x38] sm:$0xff]  }
  0x13   : > { %v309_v14 = vmul.f32 %v1156_v4, %v1372_v0  ;;  %v310_v15 = vmul.f32 %v1157_v5, %v1372_v0  ;;  %v311_v16 = vmul.f32 %v1160_v6, %v1372_v0  ;;  %v312_v17 = vmul.f32 %v1161_v7, %v1372_v0 }
  0x14   : > { %v313_v18 = vmul.f32 %v1164_v10, %v1372_v0  ;;  %v314_v19 = vmul.f32 %v1165_v11, %v1372_v0  ;;  %v315_v20 = vmul.f32 %v1168_v12, %v1372_v0  ;;  %v316_v21 = vmul.f32 %v1169_v13, %v1372_v0 }
  0x15   : > { %v380_v22 = vadd.f32 %v1381_v9, %v309_v14  ;;  %v381_v23 = vadd.f32 %v1381_v9, %v310_v15  ;;  %v382_v24 = vadd.f32 %v1381_v9, %v311_v16  ;;  %v383_v25 = vadd.f32 %v1381_v9, %v312_v17 }
  0x16   : > { %v384_v26 = vadd.f32 %v1381_v9, %v313_v18  ;;  %v385_v27 = vadd.f32 %v1381_v9, %v314_v19  ;;  %v386_v28 = vadd.f32 %v1381_v9, %v315_v20  ;;  %v387_v29 = vadd.f32 %v1381_v9, %v316_v21 }
  0x17   : > { %vm444_vm1 = vcmp.ge.f32.partialorder %v380_v22, 0.0  ;;  %v508_v30 = vmul.f32 0.2, %v380_v22  ;;  %vm445_vm2 = vcmp.ge.f32.partialorder %v381_v23, 0.0  ;;  %v509_v31 = vmul.f32 0.2, %v381_v23 }
  0x18   : > { %vm446_vm3 = vcmp.ge.f32.partialorder %v382_v24, 0.0  ;;  %v510_v32 = vmul.f32 0.2, %v382_v24  ;;  %vm447_vm4 = vcmp.ge.f32.partialorder %v383_v25, 0.0  ;;  %v511_v33 = vmul.f32 0.2, %v383_v25 }
  0x19   : > { %v572_v34 = vsel %vm444_vm1, %v380_v22, %v508_v30  ;;  %v573_v35 = vsel %vm445_vm2, %v381_v23, %v509_v31  ;;  %vm448_vm5 = vcmp.ge.f32.partialorder %v384_v26, 0.0  ;;  %v512_v36 = vmul.f32 0.2, %v384_v26 }
  0x1a   : > { %v1090_v37 = vpack.c.bf16 %v572_v34, %v572_v34  ;;  %v1091_v38 = vpack.c.bf16 %v573_v35, %v573_v35  ;;  %v574_v39 = vsel %vm446_vm3, %v382_v24, %v510_v32  ;;  %v575_v40 = vsel %vm447_vm4, %v383_v25, %v511_v33  ;;  %v1289_v24 = vld [vmem:[%s1367_s18 + $0x40] sm:$0xff]  }
  0x1b   : > { %v1092_v42 = vpack.c.bf16 %v574_v39, %v574_v39  ;;  %v1093_v43 = vpack.c.bf16 %v575_v40, %v575_v40  ;;  %v576_v44 = vsel %vm448_vm5, %v384_v26, %v512_v36  ;;  %vm449_vm6 = vcmp.ge.f32.partialorder %v385_v27, 0.0 }
  0x1c   : > { %893 = vst.msk [vmem:[%s1404_s25] sm:$0xf] %vm892_vm0, %v1090_v37  ;;  %894 = vst.msk [vmem:[%s1404_s25 + $0x4] sm:$0xf] %vm892_vm0, %v1091_v38  ;;  %v1094_v46 = vpack.c.bf16 %v576_v44, %v576_v44  ;;  %v513_v47 = vmul.f32 0.2, %v385_v27  ;;  %v1172_v50 = vunpack.c.l.bf16 %v1285_v41  ;;  %v1173_v51 = vunpack.c.h.bf16 %v1285_v41 }
  0x1d   : > { %vm450_vm7 = vcmp.ge.f32.partialorder %v386_v28, 0.0  ;;  %v514_v48 = vmul.f32 0.2, %v386_v28  ;;  %895 = vst.msk [vmem:[%s1404_s25 + $0x8] sm:$0xf] %vm892_vm0, %v1092_v42  ;;  %vm451_vm8 = vcmp.ge.f32.partialorder %v387_v29, 0.0  ;;  %v1176_v54 = vunpack.c.l.bf16 %v1286_v45 }
  0x1e   : > { %896 = vst.msk [vmem:[%s1404_s25 + $0xc] sm:$0xf] %vm892_vm0, %v1093_v43  ;;  %v515_v49 = vmul.f32 0.2, %v387_v29  ;;  %897 = vst.msk [vmem:[%s1404_s25 + $0x10] sm:$0xf] %vm892_vm0, %v1094_v46  ;;  %v577_v52 = vsel %vm449_vm6, %v385_v27, %v513_v47  ;;  %v1177_v55 = vunpack.c.h.bf16 %v1286_v45  ;;  %v317_v61 = vmul.f32 %v1172_v50, %v1372_v0 }
  0x1f   : > { %v578_v53 = vsel %vm450_vm7, %v386_v28, %v514_v48  ;;  %v1095_v58 = vpack.c.bf16 %v577_v52, %v577_v52  ;;  %v318_v63 = vmul.f32 %v1173_v51, %v1372_v0  ;;  %v319_v1 = vmul.f32 %v1176_v54, %v1372_v0  ;;  %v1290_v28 = vld [vmem:[%s1367_s18 + $0x48] sm:$0xff]   ;;  %v1291_v48 = vld [vmem:[%s1367_s18 + $0x50] sm:$0xff]  }
  0x20   : > { %v1096_v59 = vpack.c.bf16 %v578_v53, %v578_v53  ;;  %v579_v60 = vsel %vm451_vm8, %v387_v29, %v515_v49  ;;  %v320_v2 = vmul.f32 %v1177_v55, %v1372_v0  ;;  %v388_v3 = vadd.f32 %v1381_v9, %v317_v61 }
  0x21   : > { %v1097_v62 = vpack.c.bf16 %v579_v60, %v579_v60  ;;  %898 = vst.msk [vmem:[%s1404_s25 + $0x14] sm:$0xf] %vm892_vm0, %v1095_v58  ;;  %v1180_v4 = vunpack.c.l.bf16 %v1287_v56  ;;  %v1181_v5 = vunpack.c.h.bf16 %v1287_v56  ;;  %v1184_v6 = vunpack.c.l.bf16 %v1288_v57 }
  0x22   : > { %899 = vst.msk [vmem:[%s1404_s25 + $0x18] sm:$0xf] %vm892_vm0, %v1096_v59  ;;  %v389_v7 = vadd.f32 %v1381_v9, %v318_v63  ;;  %v390_v8 = vadd.f32 %v1381_v9, %v319_v1  ;;  %v391_v10 = vadd.f32 %v1381_v9, %v320_v2  ;;  %v1185_v11 = vunpack.c.h.bf16 %v1288_v57 }
  0x23   : > { %900 = vst.msk [vmem:[%s1404_s25 + $0x1c] sm:$0xf] %vm892_vm0, %v1097_v62  ;;  %vm452_vm9 = vcmp.ge.f32.partialorder %v388_v3, 0.0  ;;  %v516_v12 = vmul.f32 0.2, %v388_v3  ;;  %v321_v13 = vmul.f32 %v1180_v4, %v1372_v0  ;;  %v322_v14 = vmul.f32 %v1181_v5, %v1372_v0  ;;  %v1292_v4 = vld [vmem:[%s1367_s18 + $0x58] sm:$0xff]  }
  0x24   : > { %vm453_vm10 = vcmp.ge.f32.partialorder %v389_v7, 0.0  ;;  %v517_v15 = vmul.f32 0.2, %v389_v7  ;;  %vm454_vm11 = vcmp.ge.f32.partialorder %v390_v8, 0.0  ;;  %v518_v16 = vmul.f32 0.2, %v390_v8 }
  0x25   : > { %v580_v17 = vsel %vm452_vm9, %v388_v3, %v516_v12  ;;  %vm455_vm12 = vcmp.ge.f32.partialorder %v391_v10, 0.0  ;;  %v519_v18 = vmul.f32 0.2, %v391_v10  ;;  %v392_v19 = vadd.f32 %v1381_v9, %v321_v13 }
  0x26   : > { %v1098_v20 = vpack.c.bf16 %v580_v17, %v580_v17  ;;  %v581_v21 = vsel %vm453_vm10, %v389_v7, %v517_v15  ;;  %v582_v22 = vsel %vm454_vm11, %v390_v8, %v518_v16  ;;  %v393_v23 = vadd.f32 %v1381_v9, %v322_v14 }
  0x27   : > { %v1099_v25 = vpack.c.bf16 %v581_v21, %v581_v21  ;;  %v1100_v26 = vpack.c.bf16 %v582_v22, %v582_v22  ;;  %v583_v27 = vsel %vm455_vm12, %v391_v10, %v519_v18  ;;  %vm456_vm13 = vcmp.ge.f32.partialorder %v392_v19, 0.0  ;;  %v1293_v10 = vld [vmem:[%s1367_s18 + $0x60] sm:$0xff]  }
  0x28   : > { %901 = vst.msk [vmem:[%s1404_s25 + $0x20] sm:$0xf] %vm892_vm0, %v1098_v20  ;;  %v1101_v29 = vpack.c.bf16 %v583_v27, %v583_v27  ;;  %v520_v30 = vmul.f32 0.2, %v392_v19  ;;  %vm457_vm14 = vcmp.ge.f32.partialorder %v393_v23, 0.0  ;;  %v323_v32 = vmul.f32 %v1184_v6, %v1372_v0 }
  0x29   : > { %v521_v31 = vmul.f32 0.2, %v393_v23  ;;  %902 = vst.msk [vmem:[%s1404_s25 + $0x24] sm:$0xf] %vm892_vm0, %v1099_v25  ;;  %903 = vst.msk [vmem:[%s1404_s25 + $0x28] sm:$0xf] %vm892_vm0, %v1100_v26  ;;  %v324_v33 = vmul.f32 %v1185_v11, %v1372_v0  ;;  %v1188_v34 = vunpack.c.l.bf16 %v1289_v24  ;;  %v1189_v35 = vunpack.c.h.bf16 %v1289_v24 }
  0x2a   : > { %904 = vst.msk [vmem:[%s1404_s25 + $0x2c] sm:$0xf] %vm892_vm0, %v1101_v29  ;;  %v584_v36 = vsel %vm456_vm13, %v392_v19, %v520_v30  ;;  %v1192_v38 = vunpack.c.l.bf16 %v1290_v28  ;;  %v1193_v39 = vunpack.c.h.bf16 %v1290_v28  ;;  %v394_v42 = vadd.f32 %v1381_v9, %v323_v32  ;;  %v1294_v19 = vld [vmem:[%s1367_s18 + $0x68] sm:$0xff]  }
  0x2b   : > { %v585_v37 = vsel %vm457_vm14, %v393_v23, %v521_v31  ;;  %v1102_v40 = vpack.c.bf16 %v584_v36, %v584_v36  ;;  %v395_v43 = vadd.f32 %v1381_v9, %v324_v33  ;;  %v325_v44 = vmul.f32 %v1188_v34, %v1372_v0 }
  0x2c   : > { %v1103_v41 = vpack.c.bf16 %v585_v37, %v585_v37  ;;  %v326_v45 = vmul.f32 %v1189_v35, %v1372_v0  ;;  %v327_v46 = vmul.f32 %v1192_v38, %v1372_v0  ;;  %v328_v47 = vmul.f32 %v1193_v39, %v1372_v0 }
  0x2d   : > { %905 = vst.msk [vmem:[%s1404_s25 + $0x30] sm:$0xf] %vm892_vm0, %v1102_v40  ;;  %vm458_vm15 = vcmp.ge.f32.partialorder %v394_v42, 0.0  ;;  %v522_v49 = vmul.f32 0.2, %v394_v42  ;;  %vm459_vm1 = vcmp.ge.f32.partialorder %v395_v43, 0.0  ;;  %v396_v51 = vadd.f32 %v1381_v9, %v325_v44 }
  0x2e   : > { %906 = vst.msk [vmem:[%s1404_s25 + $0x34] sm:$0xf] %vm892_vm0, %v1103_v41  ;;  %v523_v50 = vmul.f32 0.2, %v395_v43  ;;  %v397_v52 = vadd.f32 %v1381_v9, %v326_v45  ;;  %v398_v53 = vadd.f32 %v1381_v9, %v327_v46  ;;  %v399_v54 = vadd.f32 %v1381_v9, %v328_v47  ;;  %v1295_v46 = vld [vmem:[%s1367_s18 + $0x70] sm:$0xff]   ;;  %v1296_v47 = vld [vmem:[%s1367_s18 + $0x78] sm:$0xff]  }
  0x2f   : > { %v586_v55 = vsel %vm458_vm15, %v394_v42, %v522_v49  ;;  %v1196_v57 = vunpack.c.l.bf16 %v1291_v48  ;;  %v1197_v58 = vunpack.c.h.bf16 %v1291_v48  ;;  %vm460_vm2 = vcmp.ge.f32.partialorder %v396_v51, 0.0 }
  0x30   : > { %v587_v56 = vsel %vm459_vm1, %v395_v43, %v523_v50  ;;  %v1104_v59 = vpack.c.bf16 %v586_v55, %v586_v55  ;;  %v524_v61 = vmul.f32 0.2, %v396_v51  ;;  %vm461_vm3 = vcmp.ge.f32.partialorder %v397_v52, 0.0 }
  0x31   : > { %v1105_v60 = vpack.c.bf16 %v587_v56, %v587_v56  ;;  %v525_v62 = vmul.f32 0.2, %v397_v52  ;;  %vm462_vm4 = vcmp.ge.f32.partialorder %v398_v53, 0.0  ;;  %v526_v63 = vmul.f32 0.2, %v398_v53 }
  0x32   : > { %907 = vst.msk [vmem:[%s1404_s25 + $0x38] sm:$0xf] %vm892_vm0, %v1104_v59  ;;  %v588_v1 = vsel %vm460_vm2, %v396_v51, %v524_v61  ;;  %vm463_vm5 = vcmp.ge.f32.partialorder %v399_v54, 0.0  ;;  %v527_v2 = vmul.f32 0.2, %v399_v54  ;;  %v329_v3 = vmul.f32 %v1196_v57, %v1372_v0 }
  0x33   : > { %908 = vst.msk [vmem:[%s1404_s25 + $0x3c] sm:$0xf] %vm892_vm0, %v1105_v60  ;;  %v1106_v5 = vpack.c.bf16 %v588_v1, %v588_v1  ;;  %v589_v6 = vsel %vm461_vm3, %v397_v52, %v525_v62  ;;  %v590_v7 = vsel %vm462_vm4, %v398_v53, %v526_v63  ;;  %v330_v8 = vmul.f32 %v1197_v58, %v1372_v0  ;;  %v1297_v52 = vld [vmem:[%s1367_s18 + $0x80] sm:$0xff]  }
  0x34   : > { %v1107_v11 = vpack.c.bf16 %v589_v6, %v589_v6  ;;  %v1108_v12 = vpack.c.bf16 %v590_v7, %v590_v7  ;;  %v591_v13 = vsel %vm463_vm5, %v399_v54, %v527_v2  ;;  %v400_v14 = vadd.f32 %v1381_v9, %v329_v3 }
  0x35   : > { %909 = vst.msk [vmem:[%s1404_s25 + $0x40] sm:$0xf] %vm892_vm0, %v1106_v5  ;;  %v1109_v15 = vpack.c.bf16 %v591_v13, %v591_v13  ;;  %v401_v16 = vadd.f32 %v1381_v9, %v330_v8  ;;  %v1200_v17 = vunpack.c.l.bf16 %v1292_v4  ;;  %v1201_v18 = vunpack.c.h.bf16 %v1292_v4 }
  0x36   : > { %910 = vst.msk [vmem:[%s1404_s25 + $0x44] sm:$0xf] %vm892_vm0, %v1107_v11  ;;  %911 = vst.msk [vmem:[%s1404_s25 + $0x48] sm:$0xf] %vm892_vm0, %v1108_v12  ;;  %vm464_vm6 = vcmp.ge.f32.partialorder %v400_v14, 0.0  ;;  %v1204_v21 = vunpack.c.l.bf16 %v1293_v10  ;;  %v1205_v22 = vunpack.c.h.bf16 %v1293_v10  ;;  %v1208_v29 = vunpack.c.l.bf16 %v1294_v19 }
  0x37   : > { %v528_v20 = vmul.f32 0.2, %v400_v14  ;;  %912 = vst.msk [vmem:[%s1404_s25 + $0x4c] sm:$0xf] %vm892_vm0, %v1109_v15  ;;  %vm465_vm7 = vcmp.ge.f32.partialorder %v401_v16, 0.0  ;;  %v331_v24 = vmul.f32 %v1200_v17, %v1372_v0  ;;  %v332_v25 = vmul.f32 %v1201_v18, %v1372_v0 }
  0x38   : > { %v529_v23 = vmul.f32 0.2, %v401_v16  ;;  %v333_v27 = vmul.f32 %v1204_v21, %v1372_v0  ;;  %v334_v28 = vmul.f32 %v1205_v22, %v1372_v0  ;;  %v335_v37 = vmul.f32 %v1208_v29, %v1372_v0  ;;  %v1299_v29 = vld [vmem:[%s1367_s18 + $0x90] sm:$0xff]  }
  0x39   : > { %v592_v26 = vsel %vm464_vm6, %v400_v14, %v528_v20  ;;  %v402_v32 = vadd.f32 %v1381_v9, %v331_v24  ;;  %v403_v33 = vadd.f32 %v1381_v9, %v332_v25  ;;  %v1209_v45 = vunpack.c.h.bf16 %v1294_v19  ;;  %v1298_v24 = vld [vmem:[%s1367_s18 + $0x88] sm:$0xff]  }
  0x3a   : > { %v1110_v30 = vpack.c.bf16 %v592_v26, %v592_v26  ;;  %v593_v31 = vsel %vm465_vm7, %v401_v16, %v529_v23  ;;  %v404_v35 = vadd.f32 %v1381_v9, %v333_v27  ;;  %v405_v36 = vadd.f32 %v1381_v9, %v334_v28 }
  0x3b   : > { %v1111_v34 = vpack.c.bf16 %v593_v31, %v593_v31  ;;  %vm466_vm8 = vcmp.ge.f32.partialorder %v402_v32, 0.0  ;;  %v530_v38 = vmul.f32 0.2, %v402_v32  ;;  %vm467_vm9 = vcmp.ge.f32.partialorder %v403_v33, 0.0 }
  0x3c   : > { %913 = vst.msk [vmem:[%s1404_s25 + $0x50] sm:$0xf] %vm892_vm0, %v1110_v30  ;;  %v531_v39 = vmul.f32 0.2, %v403_v33  ;;  %vm468_vm10 = vcmp.ge.f32.partialorder %v404_v35, 0.0  ;;  %vm469_vm11 = vcmp.ge.f32.partialorder %v405_v36, 0.0  ;;  %v406_v44 = vadd.f32 %v1381_v9, %v335_v37 }
  0x3d   : > { %914 = vst.msk [vmem:[%s1404_s25 + $0x54] sm:$0xf] %vm892_vm0, %v1111_v34  ;;  %v532_v40 = vmul.f32 0.2, %v404_v35  ;;  %v533_v41 = vmul.f32 0.2, %v405_v36  ;;  %v594_v42 = vsel %vm466_vm8, %v402_v32, %v530_v38  ;;  %v336_v56 = vmul.f32 %v1209_v45, %v1372_v0 }
  0x3e   : > { %v595_v43 = vsel %vm467_vm9, %v403_v33, %v531_v39  ;;  %v1112_v48 = vpack.c.bf16 %v594_v42, %v594_v42  ;;  %vm470_vm12 = vcmp.ge.f32.partialorder %v406_v44, 0.0  ;;  %v534_v55 = vmul.f32 0.2, %v406_v44  ;;  %v1300_v33 = vld [vmem:[%s1367_s18 + $0x98] sm:$0xff]   ;;  %v1301_v42 = vld [vmem:[%s1367_s18 + $0xa0] sm:$0xff]  }
  0x3f   : > { %v1113_v49 = vpack.c.bf16 %v595_v43, %v595_v43  ;;  %v596_v50 = vsel %vm468_vm10, %v404_v35, %v532_v40  ;;  %v597_v51 = vsel %vm469_vm11, %v405_v36, %v533_v41  ;;  %v1212_v57 = vunpack.c.l.bf16 %v1295_v46 }
  0x40   : > { %v1114_v53 = vpack.c.bf16 %v596_v50, %v596_v50  ;;  %v1115_v54 = vpack.c.bf16 %v597_v51, %v597_v51  ;;  %915 = vst.msk [vmem:[%s1404_s25 + $0x58] sm:$0xf] %vm892_vm0, %v1112_v48  ;;  %v1213_v58 = vunpack.c.h.bf16 %v1295_v46  ;;  %v1216_v59 = vunpack.c.l.bf16 %v1296_v47 }
  0x41   : > { %916 = vst.msk [vmem:[%s1404_s25 + $0x5c] sm:$0xf] %vm892_vm0, %v1113_v49  ;;  %v598_v60 = vsel %vm470_vm12, %v406_v44, %v534_v55  ;;  %v1217_v61 = vunpack.c.h.bf16 %v1296_v47  ;;  %v1220_v62 = vunpack.c.l.bf16 %v1297_v52  ;;  %v1221_v63 = vunpack.c.h.bf16 %v1297_v52 }
  0x42   : > { %917 = vst.msk [vmem:[%s1404_s25 + $0x60] sm:$0xf] %vm892_vm0, %v1114_v53  ;;  %918 = vst.msk [vmem:[%s1404_s25 + $0x64] sm:$0xf] %vm892_vm0, %v1115_v54  ;;  %v1116_v1 = vpack.c.bf16 %v598_v60, %v598_v60  ;;  %v407_v2 = vadd.f32 %v1381_v9, %v336_v56  ;;  %v337_v3 = vmul.f32 %v1212_v57, %v1372_v0  ;;  %v1224_v37 = vunpack.c.l.bf16 %v1298_v24 }
  0x43   : > { %v338_v4 = vmul.f32 %v1213_v58, %v1372_v0  ;;  %v339_v5 = vmul.f32 %v1216_v59, %v1372_v0  ;;  %v340_v6 = vmul.f32 %v1217_v61, %v1372_v0  ;;  %v341_v7 = vmul.f32 %v1220_v62, %v1372_v0 }
  0x44   : > { %v342_v8 = vmul.f32 %v1221_v63, %v1372_v0  ;;  %919 = vst.msk [vmem:[%s1404_s25 + $0x68] sm:$0xf] %vm892_vm0, %v1116_v1  ;;  %vm471_vm13 = vcmp.ge.f32.partialorder %v407_v2, 0.0  ;;  %v535_v10 = vmul.f32 0.2, %v407_v2  ;;  %v408_v11 = vadd.f32 %v1381_v9, %v337_v3 }
  0x45   : > { %v409_v12 = vadd.f32 %v1381_v9, %v338_v4  ;;  %v410_v13 = vadd.f32 %v1381_v9, %v339_v5  ;;  %v411_v14 = vadd.f32 %v1381_v9, %v340_v6  ;;  %v412_v15 = vadd.f32 %v1381_v9, %v341_v7  ;;  %v1302_v7 = vld [vmem:[%s1367_s18 + $0xa8] sm:$0xff]  }
  0x46   : > { %v413_v16 = vadd.f32 %v1381_v9, %v342_v8  ;;  %v599_v17 = vsel %vm471_vm13, %v407_v2, %v535_v10  ;;  %vm472_vm14 = vcmp.ge.f32.partialorder %v408_v11, 0.0  ;;  %v536_v18 = vmul.f32 0.2, %v408_v11 }
  0x47   : > { %vm473_vm15 = vcmp.ge.f32.partialorder %v409_v12, 0.0  ;;  %v1117_v19 = vpack.c.bf16 %v599_v17, %v599_v17  ;;  %v537_v20 = vmul.f32 0.2, %v409_v12  ;;  %vm474_vm1 = vcmp.ge.f32.partialorder %v410_v13, 0.0 }
  0x48   : > { %v538_v21 = vmul.f32 0.2, %v410_v13  ;;  %v600_v22 = vsel %vm472_vm14, %v408_v11, %v536_v18  ;;  %vm475_vm2 = vcmp.ge.f32.partialorder %v411_v14, 0.0  ;;  %v539_v23 = vmul.f32 0.2, %v411_v14 }
  0x49   : > { %vm476_vm3 = vcmp.ge.f32.partialorder %v412_v15, 0.0  ;;  %920 = vst.msk [vmem:[%s1404_s25 + $0x6c] sm:$0xf] %vm892_vm0, %v1117_v19  ;;  %v1118_v25 = vpack.c.bf16 %v600_v22, %v600_v22  ;;  %v601_v26 = vsel %vm473_vm15, %v409_v12, %v537_v20  ;;  %v540_v28 = vmul.f32 0.2, %v412_v15  ;;  %v1303_v12 = vld [vmem:[%s1367_s18 + $0xb0] sm:$0xff]  }
  0x4a   : > { %v602_v27 = vsel %vm474_vm1, %v410_v13, %v538_v21  ;;  %v1119_v30 = vpack.c.bf16 %v601_v26, %v601_v26  ;;  %v603_v32 = vsel %vm475_vm2, %v411_v14, %v539_v23  ;;  %vm477_vm4 = vcmp.ge.f32.partialorder %v413_v16, 0.0 }
  0x4b   : > { %v1120_v31 = vpack.c.bf16 %v602_v27, %v602_v27  ;;  %921 = vst.msk [vmem:[%s1404_s25 + $0x70] sm:$0xf] %vm892_vm0, %v1118_v25  ;;  %v1121_v34 = vpack.c.bf16 %v603_v32, %v603_v32  ;;  %v604_v35 = vsel %vm476_vm3, %v412_v15, %v540_v28  ;;  %v541_v36 = vmul.f32 0.2, %v413_v16 }
  0x4c   : > { %922 = vst.msk [vmem:[%s1404_s25 + $0x74] sm:$0xf] %vm892_vm0, %v1119_v30  ;;  %v1122_v38 = vpack.c.bf16 %v604_v35, %v604_v35  ;;  %v1225_v39 = vunpack.c.h.bf16 %v1298_v24  ;;  %v1228_v40 = vunpack.c.l.bf16 %v1299_v29  ;;  %v1229_v41 = vunpack.c.h.bf16 %v1299_v29  ;;  %v1304_v29 = vld [vmem:[%s1367_s18 + $0xb8] sm:$0xff]  }
  0x4d   : > { %923 = vst.msk [vmem:[%s1404_s25 + $0x78] sm:$0xf] %vm892_vm0, %v1120_v31  ;;  %924 = vst.msk [vmem:[%s1404_s25 + $0x7c] sm:$0xf] %vm892_vm0, %v1121_v34  ;;  %v605_v43 = vsel %vm477_vm4, %v413_v16, %v541_v36  ;;  %v343_v44 = vmul.f32 %v1224_v37, %v1372_v0  ;;  %v1232_v45 = vunpack.c.l.bf16 %v1300_v33  ;;  %v1233_v46 = vunpack.c.h.bf16 %v1300_v33 }
  0x4e   : > { %925 = vst.msk [vmem:[%s1404_s25 + $0x80] sm:$0xf] %vm892_vm0, %v1122_v38  ;;  %v1123_v47 = vpack.c.bf16 %v605_v43, %v605_v43  ;;  %v344_v48 = vmul.f32 %v1225_v39, %v1372_v0  ;;  %v345_v49 = vmul.f32 %v1228_v40, %v1372_v0  ;;  %v346_v50 = vmul.f32 %v1229_v41, %v1372_v0 }
  0x4f   : > { %v414_v51 = vadd.f32 %v1381_v9, %v343_v44  ;;  %v347_v52 = vmul.f32 %v1232_v45, %v1372_v0  ;;  %v348_v53 = vmul.f32 %v1233_v46, %v1372_v0  ;;  %v1236_v54 = vunpack.c.l.bf16 %v1301_v42  ;;  %v1305_v45 = vld [vmem:[%s1367_s18 + $0xc0] sm:$0xff]  }
  0x50   : > { %926 = vst.msk [vmem:[%s1404_s25 + $0x84] sm:$0xf] %vm892_vm0, %v1123_v47  ;;  %v415_v55 = vadd.f32 %v1381_v9, %v344_v48  ;;  %v416_v56 = vadd.f32 %v1381_v9, %v345_v49  ;;  %v417_v57 = vadd.f32 %v1381_v9, %v346_v50  ;;  %v1237_v58 = vunpack.c.h.bf16 %v1301_v42 }
  0x51   : > { %vm478_vm5 = vcmp.ge.f32.partialorder %v414_v51, 0.0  ;;  %v542_v59 = vmul.f32 0.2, %v414_v51  ;;  %v418_v60 = vadd.f32 %v1381_v9, %v347_v52  ;;  %v419_v61 = vadd.f32 %v1381_v9, %v348_v53  ;;  %v1306_v53 = vld [vmem:[%s1367_s18 + $0xc8] sm:$0xff]  }
  0x52   : > { %vm479_vm6 = vcmp.ge.f32.partialorder %v415_v55, 0.0  ;;  %v543_v62 = vmul.f32 0.2, %v415_v55  ;;  %vm480_vm7 = vcmp.ge.f32.partialorder %v416_v56, 0.0  ;;  %v544_v63 = vmul.f32 0.2, %v416_v56 }
  0x53   : > { %v606_v1 = vsel %vm478_vm5, %v414_v51, %v542_v59  ;;  %vm481_vm8 = vcmp.ge.f32.partialorder %v417_v57, 0.0  ;;  %v545_v2 = vmul.f32 0.2, %v417_v57  ;;  %vm482_vm9 = vcmp.ge.f32.partialorder %v418_v60, 0.0 }
  0x54   : > { %v1124_v3 = vpack.c.bf16 %v606_v1, %v606_v1  ;;  %v607_v4 = vsel %vm479_vm6, %v415_v55, %v543_v62  ;;  %v608_v5 = vsel %vm480_vm7, %v416_v56, %v544_v63  ;;  %v546_v6 = vmul.f32 0.2, %v418_v60 }
  0x55   : > { %v1125_v8 = vpack.c.bf16 %v607_v4, %v607_v4  ;;  %v1126_v10 = vpack.c.bf16 %v608_v5, %v608_v5  ;;  %v609_v11 = vsel %vm481_vm8, %v417_v57, %v545_v2  ;;  %vm483_vm10 = vcmp.ge.f32.partialorder %v419_v61, 0.0 }
  0x56   : > { %927 = vst.msk [vmem:[%s1404_s25 + $0x88] sm:$0xf] %vm892_vm0, %v1124_v3  ;;  %v1127_v13 = vpack.c.bf16 %v609_v11, %v609_v11  ;;  %v610_v14 = vsel %vm482_vm9, %v418_v60, %v546_v6  ;;  %v547_v15 = vmul.f32 0.2, %v419_v61  ;;  %v349_v16 = vmul.f32 %v1236_v54, %v1372_v0 }
  0x57   : > { %928 = vst.msk [vmem:[%s1404_s25 + $0x8c] sm:$0xf] %vm892_vm0, %v1125_v8  ;;  %929 = vst.msk [vmem:[%s1404_s25 + $0x90] sm:$0xf] %vm892_vm0, %v1126_v10  ;;  %v1128_v17 = vpack.c.bf16 %v610_v14, %v610_v14  ;;  %v350_v18 = vmul.f32 %v1237_v58, %v1372_v0  ;;  %v1240_v19 = vunpack.c.l.bf16 %v1302_v7  ;;  %v1241_v20 = vunpack.c.h.bf16 %v1302_v7  ;;  %v1590_v58 = vld [vmem:[%s1367_s18 + $0xd0] sm:$0xff]  }
  0x58   : > { %930 = vst.msk [vmem:[%s1404_s25 + $0x94] sm:$0xf] %vm892_vm0, %v1127_v13  ;;  %v611_v21 = vsel %vm483_vm10, %v419_v61, %v547_v15  ;;  %v420_v22 = vadd.f32 %v1381_v9, %v349_v16  ;;  %v1244_v23 = vunpack.c.l.bf16 %v1303_v12  ;;  %v1245_v24 = vunpack.c.h.bf16 %v1303_v12 }
  0x59   : > { %931 = vst.msk [vmem:[%s1404_s25 + $0x98] sm:$0xf] %vm892_vm0, %v1128_v17  ;;  %v1129_v25 = vpack.c.bf16 %v611_v21, %v611_v21  ;;  %v421_v26 = vadd.f32 %v1381_v9, %v350_v18  ;;  %v351_v27 = vmul.f32 %v1240_v19, %v1372_v0  ;;  %v352_v28 = vmul.f32 %v1241_v20, %v1372_v0 }
  0x5a   : > { %vm484_vm11 = vcmp.ge.f32.partialorder %v420_v22, 0.0  ;;  %v548_v30 = vmul.f32 0.2, %v420_v22  ;;  %v353_v31 = vmul.f32 %v1244_v23, %v1372_v0  ;;  %v354_v32 = vmul.f32 %v1245_v24, %v1372_v0 }
  0x5b   : > { %932 = vst.msk [vmem:[%s1404_s25 + $0x9c] sm:$0xf] %vm892_vm0, %v1129_v25  ;;  %vm485_vm12 = vcmp.ge.f32.partialorder %v421_v26, 0.0  ;;  %v549_v33 = vmul.f32 0.2, %v421_v26  ;;  %v422_v34 = vadd.f32 %v1381_v9, %v351_v27  ;;  %v423_v35 = vadd.f32 %v1381_v9, %v352_v28  ;;  %v1308_v25 = vld [vmem:[%s1367_s18 + $0xd8] sm:$0xff]  }
  0x5c   : > { %v612_v36 = vsel %vm484_vm11, %v420_v22, %v548_v30  ;;  %v424_v37 = vadd.f32 %v1381_v9, %v353_v31  ;;  %v425_v38 = vadd.f32 %v1381_v9, %v354_v32  ;;  %v1248_v39 = vunpack.c.l.bf16 %v1304_v29 }
  0x5d   : > { %v1130_v40 = vpack.c.bf16 %v612_v36, %v612_v36  ;;  %v613_v41 = vsel %vm485_vm12, %v421_v26, %v549_v33  ;;  %vm486_vm13 = vcmp.ge.f32.partialorder %v422_v34, 0.0  ;;  %v550_v42 = vmul.f32 0.2, %v422_v34  ;;  %v1310_v36 = vld [vmem:[%s1367_s18 + $0xe8] sm:$0xff]  }
  0x5e   : > { %v1131_v43 = vpack.c.bf16 %v613_v41, %v613_v41  ;;  %vm487_vm14 = vcmp.ge.f32.partialorder %v423_v35, 0.0  ;;  %v551_v44 = vmul.f32 0.2, %v423_v35  ;;  %vm488_vm15 = vcmp.ge.f32.partialorder %v424_v37, 0.0  ;;  %v1311_v41 = vld [vmem:[%s1367_s18 + $0xf0] sm:$0xff]  }
  0x5f   : > { %933 = vst.msk [vmem:[%s1404_s25 + $0xa0] sm:$0xf] %vm892_vm0, %v1130_v40  ;;  %v614_v46 = vsel %vm486_vm13, %v422_v34, %v550_v42  ;;  %v552_v47 = vmul.f32 0.2, %v424_v37  ;;  %vm489_vm1 = vcmp.ge.f32.partialorder %v425_v38, 0.0  ;;  %v355_v51 = vmul.f32 %v1248_v39, %v1372_v0 }
  0x60   : > { %v553_v48 = vmul.f32 0.2, %v425_v38  ;;  %934 = vst.msk [vmem:[%s1404_s25 + $0xa4] sm:$0xf] %vm892_vm0, %v1131_v43  ;;  %v1132_v49 = vpack.c.bf16 %v614_v46, %v614_v46  ;;  %v615_v50 = vsel %vm487_vm14, %v423_v35, %v551_v44  ;;  %v1249_v52 = vunpack.c.h.bf16 %v1304_v29  ;;  %v1309_v35 = vld [vmem:[%s1367_s18 + $0xe0] sm:$0xff]  }
  0x61   : > { %v1133_v54 = vpack.c.bf16 %v615_v50, %v615_v50  ;;  %v616_v55 = vsel %vm488_vm15, %v424_v37, %v552_v47  ;;  %v1252_v57 = vunpack.c.l.bf16 %v1305_v45  ;;  %v426_v61 = vadd.f32 %v1381_v9, %v355_v51 }
  0x62   : > { %v617_v56 = vsel %vm489_vm1, %v425_v38, %v553_v48  ;;  %935 = vst.msk [vmem:[%s1404_s25 + $0xa8] sm:$0xf] %vm892_vm0, %v1132_v49  ;;  %v1134_v59 = vpack.c.bf16 %v616_v55, %v616_v55  ;;  %v356_v62 = vmul.f32 %v1249_v52, %v1372_v0  ;;  %v1253_v1 = vunpack.c.h.bf16 %v1305_v45 }
  0x63   : > { %v1135_v60 = vpack.c.bf16 %v617_v56, %v617_v56  ;;  %936 = vst.msk [vmem:[%s1404_s25 + $0xac] sm:$0xf] %vm892_vm0, %v1133_v54  ;;  %v357_v63 = vmul.f32 %v1252_v57, %v1372_v0  ;;  %v1256_v2 = vunpack.c.l.bf16 %v1306_v53  ;;  %v1257_v3 = vunpack.c.h.bf16 %v1306_v53 }
  0x64   : > { %937 = vst.msk [vmem:[%s1404_s25 + $0xb0] sm:$0xf] %vm892_vm0, %v1134_v59  ;;  %vm490_vm2 = vcmp.ge.f32.partialorder %v426_v61, 0.0  ;;  %v554_v4 = vmul.f32 0.2, %v426_v61  ;;  %v427_v5 = vadd.f32 %v1381_v9, %v356_v62  ;;  %v1260_v6 = vunpack.c.l.bf16 %v1590_v58 }
  0x65   : > { %938 = vst.msk [vmem:[%s1404_s25 + $0xb4] sm:$0xf] %vm892_vm0, %v1135_v60  ;;  %v428_v7 = vadd.f32 %v1381_v9, %v357_v63  ;;  %v358_v8 = vmul.f32 %v1253_v1, %v1372_v0  ;;  %v359_v10 = vmul.f32 %v1256_v2, %v1372_v0  ;;  %v360_v11 = vmul.f32 %v1257_v3, %v1372_v0 }
  0x66   : > { %v618_v12 = vsel %vm490_vm2, %v426_v61, %v554_v4  ;;  %vm491_vm3 = vcmp.ge.f32.partialorder %v427_v5, 0.0  ;;  %v555_v13 = vmul.f32 0.2, %v427_v5  ;;  %v361_v14 = vmul.f32 %v1260_v6, %v1372_v0 }
  0x67   : > { %v1136_v15 = vpack.c.bf16 %v618_v12, %v618_v12  ;;  %vm492_vm4 = vcmp.ge.f32.partialorder %v428_v7, 0.0  ;;  %v556_v16 = vmul.f32 0.2, %v428_v7  ;;  %v429_v17 = vadd.f32 %v1381_v9, %v358_v8 }
  0x68   : > { %v619_v18 = vsel %vm491_vm3, %v427_v5, %v555_v13  ;;  %v430_v19 = vadd.f32 %v1381_v9, %v359_v10  ;;  %v431_v20 = vadd.f32 %v1381_v9, %v360_v11  ;;  %v432_v21 = vadd.f32 %v1381_v9, %v361_v14 }
  0x69   : > { %939 = vst.msk [vmem:[%s1404_s25 + $0xb8] sm:$0xf] %vm892_vm0, %v1136_v15  ;;  %v1137_v22 = vpack.c.bf16 %v619_v18, %v619_v18  ;;  %v620_v23 = vsel %vm492_vm4, %v428_v7, %v556_v16  ;;  %vm493_vm5 = vcmp.ge.f32.partialorder %v429_v17, 0.0  ;;  %v557_v24 = vmul.f32 0.2, %v429_v17  ;;  %v1312_v7 = vld [vmem:[%s1367_s18 + $0xf8] sm:$0xff]  }
  0x6a   : > { %v1138_v26 = vpack.c.bf16 %v620_v23, %v620_v23  ;;  %vm494_vm6 = vcmp.ge.f32.partialorder %v430_v19, 0.0  ;;  %v558_v27 = vmul.f32 0.2, %v430_v19  ;;  %vm495_vm7 = vcmp.ge.f32.partialorder %v431_v20, 0.0 }
  0x6b   : > { %940 = vst.msk [vmem:[%s1404_s25 + $0xbc] sm:$0xf] %vm892_vm0, %v1137_v22  ;;  %v621_v28 = vsel %vm493_vm5, %v429_v17, %v557_v24  ;;  %v559_v29 = vmul.f32 0.2, %v431_v20  ;;  %vm496_vm8 = vcmp.ge.f32.partialorder %v432_v21, 0.0  ;;  %v1261_v33 = vunpack.c.h.bf16 %v1590_v58 }
  0x6c   : > { %v560_v30 = vmul.f32 0.2, %v432_v21  ;;  %941 = vst.msk [vmem:[%s1404_s25 + $0xc0] sm:$0xf] %vm892_vm0, %v1138_v26  ;;  %v1139_v31 = vpack.c.bf16 %v621_v28, %v621_v28  ;;  %v622_v32 = vsel %vm494_vm6, %v430_v19, %v558_v27  ;;  %v1264_v34 = vunpack.c.l.bf16 %v1308_v25 }
  0x6d   : > { %v1140_v37 = vpack.c.bf16 %v622_v32, %v622_v32  ;;  %v623_v38 = vsel %vm495_vm7, %v431_v20, %v559_v29  ;;  %v1265_v40 = vunpack.c.h.bf16 %v1308_v25  ;;  %v362_v44 = vmul.f32 %v1261_v33, %v1372_v0 }
  0x6e   : > { %v624_v39 = vsel %vm496_vm8, %v432_v21, %v560_v30  ;;  %942 = vst.msk [vmem:[%s1404_s25 + $0xc4] sm:$0xf] %vm892_vm0, %v1139_v31  ;;  %v1141_v42 = vpack.c.bf16 %v623_v38, %v623_v38  ;;  %v363_v45 = vmul.f32 %v1264_v34, %v1372_v0  ;;  %v1268_v47 = vunpack.c.l.bf16 %v1309_v35 }
  0x6f   : > { %v1142_v43 = vpack.c.bf16 %v624_v39, %v624_v39  ;;  %943 = vst.msk [vmem:[%s1404_s25 + $0xc8] sm:$0xf] %vm892_vm0, %v1140_v37  ;;  %v364_v46 = vmul.f32 %v1265_v40, %v1372_v0  ;;  %v1269_v48 = vunpack.c.h.bf16 %v1309_v35  ;;  %v1272_v49 = vunpack.c.l.bf16 %v1310_v36 }
  0x70   : > { %944 = vst.msk [vmem:[%s1404_s25 + $0xcc] sm:$0xf] %vm892_vm0, %v1141_v42  ;;  %v433_v50 = vadd.f32 %v1381_v9, %v362_v44  ;;  %v434_v51 = vadd.f32 %v1381_v9, %v363_v45  ;;  %v1273_v52 = vunpack.c.h.bf16 %v1310_v36  ;;  %v1276_v53 = vunpack.c.l.bf16 %v1311_v41 }
  0x71   : > { %945 = vst.msk [vmem:[%s1404_s25 + $0xd0] sm:$0xf] %vm892_vm0, %v1142_v43  ;;  %v435_v54 = vadd.f32 %v1381_v9, %v364_v46  ;;  %v365_v55 = vmul.f32 %v1268_v47, %v1372_v0  ;;  %v366_v56 = vmul.f32 %v1269_v48, %v1372_v0  ;;  %v367_v57 = vmul.f32 %v1272_v49, %v1372_v0 }
  0x72   : > { %vm497_vm9 = vcmp.ge.f32.partialorder %v433_v50, 0.0  ;;  %v561_v58 = vmul.f32 0.2, %v433_v50  ;;  %vm498_vm10 = vcmp.ge.f32.partialorder %v434_v51, 0.0  ;;  %v562_v59 = vmul.f32 0.2, %v434_v51 }
  0x73   : > { %vm499_vm11 = vcmp.ge.f32.partialorder %v435_v54, 0.0  ;;  %v563_v60 = vmul.f32 0.2, %v435_v54  ;;  %v436_v61 = vadd.f32 %v1381_v9, %v365_v55  ;;  %v437_v62 = vadd.f32 %v1381_v9, %v366_v56 }
  0x74   : > { %v625_v63 = vsel %vm497_vm9, %v433_v50, %v561_v58  ;;  %v626_v1 = vsel %vm498_vm10, %v434_v51, %v562_v59  ;;  %v438_v2 = vadd.f32 %v1381_v9, %v367_v57  ;;  %v368_v3 = vmul.f32 %v1273_v52, %v1372_v0 }
  0x75   : > { %v1143_v4 = vpack.c.bf16 %v625_v63, %v625_v63  ;;  %v1144_v5 = vpack.c.bf16 %v626_v1, %v626_v1  ;;  %v627_v6 = vsel %vm499_vm11, %v435_v54, %v563_v60  ;;  %vm500_vm12 = vcmp.ge.f32.partialorder %v436_v61, 0.0 }
  0x76   : > { %v1145_v8 = vpack.c.bf16 %v627_v6, %v627_v6  ;;  %v564_v10 = vmul.f32 0.2, %v436_v61  ;;  %vm501_vm13 = vcmp.ge.f32.partialorder %v437_v62, 0.0  ;;  %v565_v11 = vmul.f32 0.2, %v437_v62 }
  0x77   : > { %946 = vst.msk [vmem:[%s1404_s25 + $0xd4] sm:$0xf] %vm892_vm0, %v1143_v4  ;;  %947 = vst.msk [vmem:[%s1404_s25 + $0xd8] sm:$0xf] %vm892_vm0, %v1144_v5  ;;  %vm502_vm14 = vcmp.ge.f32.partialorder %v438_v2, 0.0  ;;  %v439_v13 = vadd.f32 %v1381_v9, %v368_v3  ;;  %v369_v14 = vmul.f32 %v1276_v53, %v1372_v0  ;;  %v1277_v17 = vunpack.c.h.bf16 %v1311_v41 }
  0x78   : > { %v566_v12 = vmul.f32 0.2, %v438_v2  ;;  %948 = vst.msk [vmem:[%s1404_s25 + $0xdc] sm:$0xf] %vm892_vm0, %v1145_v8  ;;  %v628_v15 = vsel %vm500_vm12, %v436_v61, %v564_v10  ;;  %v629_v16 = vsel %vm501_vm13, %v437_v62, %v565_v11  ;;  %v1280_v18 = vunpack.c.l.bf16 %v1312_v7  ;;  %v1321_v0 = vld [vmem:[%s1682_s1] ss:$0 sm:$0xff] }
  0x79   : > { %v1146_v19 = vpack.c.bf16 %v628_v15, %v628_v15  ;;  %v1147_v20 = vpack.c.bf16 %v629_v16, %v629_v16  ;;  %vm503_vm15 = vcmp.ge.f32.partialorder %v439_v13, 0.0  ;;  %v567_v23 = vmul.f32 0.2, %v439_v13 }
  0x7a   : > { %v630_v21 = vsel %vm502_vm14, %v438_v2, %v566_v12  ;;  %v440_v24 = vadd.f32 %v1381_v9, %v369_v14  ;;  %v370_v25 = vmul.f32 %v1321_v0, %v1277_v17  ;;  %v371_v26 = vmul.f32 %v1321_v0, %v1280_v18  ;;  %v1322_v9 = vld [vmem:[%s1683_s2] ss:$0 sm:$0xff] }
  0x7b   : > { %v1148_v22 = vpack.c.bf16 %v630_v21, %v630_v21  ;;  %949 = vst.msk [vmem:[%s1404_s25 + $0xe0] sm:$0xf] %vm892_vm0, %v1146_v19  ;;  %950 = vst.msk [vmem:[%s1404_s25 + $0xe4] sm:$0xf] %vm892_vm0, %v1147_v20  ;;  %v1281_v27 = vunpack.c.h.bf16 %v1312_v7  ;;  %v631_v28 = vsel %vm503_vm15, %v439_v13, %v567_v23 }
  0x7c   : > { %vm504_vm1 = vcmp.ge.f32.partialorder %v440_v24, 0.0  ;;  %v568_v29 = vmul.f32 0.2, %v440_v24  ;;  %v441_v30 = vadd.f32 %v1322_v9, %v370_v25  ;;  %v1149_v31 = vpack.c.bf16 %v631_v28, %v631_v28 }
  0x7d   : > { %951 = vst.msk [vmem:[%s1404_s25 + $0xe8] sm:$0xf] %vm892_vm0, %v1148_v22  ;;  %v442_v32 = vadd.f32 %v1322_v9, %v371_v26  ;;  %v372_v33 = vmul.f32 %v1321_v0, %v1281_v27 }
  0x7e   : > { %v632_v34 = vsel %vm504_vm1, %v440_v24, %v568_v29  ;;  %vm505_vm2 = vcmp.ge.f32.partialorder %v441_v30, 0.0  ;;  %v569_v35 = vmul.f32 0.2, %v441_v30  ;;  %952 = vst.msk [vmem:[%s1404_s25 + $0xec] sm:$0xf] %vm892_vm0, %v1149_v31 }
  0x7f   : > { %v1150_v36 = vpack.c.bf16 %v632_v34, %v632_v34  ;;  %vm506_vm3 = vcmp.ge.f32.partialorder %v442_v32, 0.0  ;;  %v570_v37 = vmul.f32 0.2, %v442_v32  ;;  %v443_v38 = vadd.f32 %v1322_v9, %v372_v33 }
  0x80   : > { %v633_v39 = vsel %vm505_vm2, %v441_v30, %v569_v35 }
  0x81   : > { %953 = vst.msk [vmem:[%s1404_s25 + $0xf0] sm:$0xf] %vm892_vm0, %v1150_v36  ;;  %v1151_v40 = vpack.c.bf16 %v633_v39, %v633_v39  ;;  %v634_v41 = vsel %vm506_vm3, %v442_v32, %v570_v37  ;;  %vm507_vm4 = vcmp.ge.f32.partialorder %v443_v38, 0.0  ;;  %v571_v42 = vmul.f32 0.2, %v443_v38 }
  0x82   : > { %v1152_v43 = vpack.c.bf16 %v634_v41, %v634_v41 }
  0x83   : > { %954 = vst.msk [vmem:[%s1404_s25 + $0xf4] sm:$0xf] %vm892_vm0, %v1151_v40  ;;  %v635_v44 = vsel %vm507_vm4, %v443_v38, %v571_v42 }
  0x84   : > { %955 = vst.msk [vmem:[%s1404_s25 + $0xf8] sm:$0xf] %vm892_vm0, %v1152_v43  ;;  %v1153_v45 = vpack.c.bf16 %v635_v44, %v635_v44 }
  0x86   : > { %956 = vst.msk [vmem:[%s1404_s25 + $0xfc] sm:$0xf] %vm892_vm0, %v1153_v45 }
  0x87 PF: > { %s13_s12 = sadd.s32 1, %s1329_s12  }
  0x88   : > { %p10_p4 = scmp.ge.s32.totalorder %s13_s12, 4  }
  0x8a   :  { %12 = sbr.rel (!%p10_p4) target bundleno = 1 (0x1), region = 62 }

// kernel: forward.9
= control target key start
LH: loop header
LB: loop body
LE: loop exit
PB: predicated region body
PF: predicated region fallthrough
CT: control target
= control target key end

     0   :  { %s3650_s15 = smov 0   ;;  %s3652_s16 = smov 0   ;;  %s4596_s0 = inlined_call_operand.vmem [shape: bf16[1024,512], index: 0, kind: input, shape index: {}]   ;;  %s4597_s1 = inlined_call_operand.vmem [shape: bf16[512,16], index: 1, kind: input, shape index: {}]   ;;  %s4598_s2 = inlined_call_operand.vmem [shape: f32[1,16], index: 2, kind: input, shape index: {}]   ;;  %s4599_s3 = inlined_call_operand.vmem [shape: bf16[1024,16], index: 3, kind: output, shape index: {0}]   ;;  %s4600_s4 = inlined_call_operand.vmem [shape: f32[2,8,16], index: 4, kind: output, shape index: {1}]  }
   0x1   :  { %s3654_s17 = smov 0  }
   0x2 LB: > { %s27_s18 = sadd.s32 1, %s3617_s16  ;;  %p3048_p0 = scmp.ge.s32.totalorder %s3621_s17, 1  ;;  %s3621_s17 = sphi %s3654_s17, %s15_s17   ;;  %s3617_s16 = sphi %s3652_s16, %s4602_s16   ;;  %s3613_s15 = sphi %s3650_s15, %s4601_s15  }
   0x3   : > { %p29_p1 = scmp.ge.s32.totalorder %s27_s18, 2  ;;  %p197_p2 = scmp.lt.s32.totalorder %s3621_s17, 3 }
   0x5   : > { %s4604_s18 = smov (%p29_p1, %s27_s18), 0  ;;  %p198_p3 = pnand %p3048_p0, %p197_p2 }
   0x6   : > { %v3373_v0 = vld [vmem:[%s4597_s1] sm:$0xff] (!%p198_p3)   ;;  %v3623_v1 = vmov (!%p198_p3), 0   ;;  %v3375_v3 = vld [vmem:[%s4597_s1 + $0x8] sm:$0xff] (!%p198_p3)   ;;  %v3377_v5 = vld [vmem:[%s4597_s1 + $0x10] sm:$0xff] (!%p198_p3)   ;;  %s3049_s13 = sshll.u32 (!%p198_p3), %s3613_s15, 6  ;;  %vm270_vm0 = vcmask (!%p198_p3), 130048  }
   0x7   : > { %201 = sbr.rel (%p198_p3) target bundleno = 567 (0x237), region = 32  ;;  %1423 = vmatprep.subr.bf16.mxu0 (!%p198_p3), %v3623_v1  ;;  %1712 = vmatprep.subr.bf16.mxu1 (!%p198_p3), %v3623_v1  ;;  %v3374_v2 = vld [vmem:[%s4597_s1 + $0x80] sm:$0xff] (!%p198_p3)   ;;  %v3376_v4 = vld [vmem:[%s4597_s1 + $0x88] sm:$0xff] (!%p198_p3)   ;;  %v3378_v6 = vld [vmem:[%s4597_s1 + $0x90] sm:$0xff] (!%p198_p3)   ;;  %p239_p4 = scmp.lt.s32.totalorder (!%p198_p3), %s3049_s13, 127  ;;  %vm2524_vm1 = vcmask (!%p198_p3), 125952  }
   0x8   : > { %1424 = vmatpush1.bf16.msra.mxu0 (!%p198_p3), %v3373_v0  ;;  %1713 = vmatpush1.bf16.msra.mxu1 (!%p198_p3), %v3374_v2  ;;  %v3379_v7 = vld [vmem:[%s4597_s1 + $0x18] sm:$0xff] (!%p198_p3)   ;;  %v3381_v9 = vld [vmem:[%s4597_s1 + $0x20] sm:$0xff] (!%p198_p3)   ;;  %v3383_v11 = vld [vmem:[%s4597_s1 + $0x28] sm:$0xff] (!%p198_p3)   ;;  %p261_p5 = scmp.lt.s32.totalorder (!%p198_p3), %s3613_s15, 1 }
   0x9   : > { %1425 = vmatprep.subr.bf16.mxu0 (!%p198_p3), %v3623_v1  ;;  %1714 = vmatprep.subr.bf16.mxu1 (!%p198_p3), %v3623_v1  ;;  %v3380_v8 = vld [vmem:[%s4597_s1 + $0x98] sm:$0xff] (!%p198_p3)   ;;  %v3382_v10 = vld [vmem:[%s4597_s1 + $0xa0] sm:$0xff] (!%p198_p3)   ;;  %v3384_v12 = vld [vmem:[%s4597_s1 + $0xa8] sm:$0xff] (!%p198_p3)  }
   0xa   : > { %v3385_v13 = vld [vmem:[%s4597_s1 + $0x30] sm:$0xff] (!%p198_p3)   ;;  %v3387_v15 = vld [vmem:[%s4597_s1 + $0x38] sm:$0xff] (!%p198_p3)   ;;  %v3389_v17 = vld [vmem:[%s4597_s1 + $0x40] sm:$0xff] (!%p198_p3)  }
   0xb   : > { %v3386_v14 = vld [vmem:[%s4597_s1 + $0xb0] sm:$0xff] (!%p198_p3)   ;;  %v3388_v16 = vld [vmem:[%s4597_s1 + $0xb8] sm:$0xff] (!%p198_p3)   ;;  %v3390_v18 = vld [vmem:[%s4597_s1 + $0xc0] sm:$0xff] (!%p198_p3)  }
   0xc   : > { %1426 = vmatpush1.bf16.msra.mxu0 (!%p198_p3), %v3375_v3  ;;  %1715 = vmatpush1.bf16.msra.mxu1 (!%p198_p3), %v3376_v4  ;;  %v3391_v20 = vld [vmem:[%s4597_s1 + $0x48] sm:$0xff] (!%p198_p3)   ;;  %v3393_v23 = vld [vmem:[%s4597_s1 + $0x50] sm:$0xff] (!%p198_p3)   ;;  %v3395_v25 = vld [vmem:[%s4597_s1 + $0x58] sm:$0xff] (!%p198_p3)  }
   0xd   : > { %1427 = vmatprep.subr.bf16.mxu0 (!%p198_p3), %v3623_v1  ;;  %1716 = vmatprep.subr.bf16.mxu1 (!%p198_p3), %v3623_v1  ;;  %v3392_v22 = vld [vmem:[%s4597_s1 + $0xc8] sm:$0xff] (!%p198_p3)   ;;  %v3394_v24 = vld [vmem:[%s4597_s1 + $0xd0] sm:$0xff] (!%p198_p3)   ;;  %v3396_v26 = vld [vmem:[%s4597_s1 + $0xd8] sm:$0xff] (!%p198_p3)  }
   0xe   : > { %s4606_s13 = smov (!%p239_p4, %s3049_s13), 127  ;;  %v3397_v27 = vld [vmem:[%s4597_s1 + $0x60] sm:$0xff]   ;;  %v3399_v29 = vld [vmem:[%s4597_s1 + $0x68] sm:$0xff]   ;;  %v3401_v31 = vld [vmem:[%s4597_s1 + $0x70] sm:$0xff]   ;;  %s4608_s15 = smov (!%p261_p5, %s3613_s15), 1 }
   0xf   : > { %s3282_s30 = sshll.u32 %s4606_s13, 4  ;;  %v3398_v28 = vld [vmem:[%s4597_s1 + $0xe0] sm:$0xff]   ;;  %v3400_v30 = vld [vmem:[%s4597_s1 + $0xe8] sm:$0xff]   ;;  %v3402_v32 = vld [vmem:[%s4597_s1 + $0xf0] sm:$0xff]   ;;  %s3053_s27 = sshll.u32 %s4606_s13, 2 }
  0x10   : > { %1428 = vmatpush1.bf16.msra.mxu0 %v3377_v5  ;;  %1717 = vmatpush1.bf16.msra.mxu1 %v3378_v6  ;;  %s3744_s9 = scalar_lea.vmem %s4596_s0, %s3282_s30  ;;  %v3403_v33 = vld [vmem:[%s4597_s1 + $0x78] sm:$0xff]   ;;  %s4078_s30 = scalar_lea.vmem %s4599_s3, %s3053_s27 }
  0x11   : > { %1429 = vmatprep.subr.bf16.mxu0 %v3623_v1  ;;  %1718 = vmatprep.subr.bf16.mxu1 %v3623_v1  ;;  %v3407_v19 = vld [vmem:[%s3744_s9 + $0x4] ss:$16 sps:$4 sm:$0xff]   ;;  %v3410_v21 = vld [vmem:[%s3744_s9 + $0xc] ss:$16 sps:$4 sm:$0xff]   ;;  %v3405_v35 = vld [vmem:[%s3744_s9] ss:$16 sps:$4 sm:$0xff]  }
  0x12   : > { %1455 = vmatprep.mubr.bf16.mxu0 %v3407_v19  ;;  %1744 = vmatprep.mubr.bf16.mxu1 %v3410_v21  ;;  %v3404_v34 = vld [vmem:[%s4597_s1 + $0xf8] sm:$0xff]   ;;  %v3411_v37 = vld [vmem:[%s3744_s9 + $0x24] ss:$16 sps:$4 sm:$0xff]   ;;  %v3415_v39 = vld [vmem:[%s3744_s9 + $0x20] ss:$16 sps:$4 sm:$0xff]   ;;  %s3054_s7 = sshll.u32 %s4608_s15, 3 }
  0x13   : > { %v3408_v36 = vld [vmem:[%s3744_s9 + $0x8] ss:$16 sps:$4 sm:$0xff]   ;;  %v3413_v38 = vld [vmem:[%s3744_s9 + $0x2c] ss:$16 sps:$4 sm:$0xff]   ;;  %v3417_v41 = vld [vmem:[%s3744_s9 + $0x44] ss:$16 sps:$4 sm:$0xff]   ;;  %s264_s11 = scalar_lea.vmem %s4600_s4, %s3054_s7 }
  0x14   : > { %1430 = vmatpush1.bf16.msra.mxu0 %v3379_v7  ;;  %1719 = vmatpush1.bf16.msra.mxu1 %v3380_v8  ;;  %v3416_v40 = vld [vmem:[%s3744_s9 + $0x28] ss:$16 sps:$4 sm:$0xff]   ;;  %v3419_v42 = vld [vmem:[%s3744_s9 + $0x4c] ss:$16 sps:$4 sm:$0xff]   ;;  %v3421_v43 = vld [vmem:[%s3744_s9 + $0x40] ss:$16 sps:$4 sm:$0xff]  }
  0x15   : > { %1431 = vmatprep.subr.bf16.mxu0 %v3623_v1  ;;  %1720 = vmatprep.subr.bf16.mxu1 %v3623_v1  ;;  %v3422_v44 = vld [vmem:[%s3744_s9 + $0x48] ss:$16 sps:$4 sm:$0xff]   ;;  %v3423_v45 = vld [vmem:[%s3744_s9 + $0x64] ss:$16 sps:$4 sm:$0xff]   ;;  %v3425_v46 = vld [vmem:[%s3744_s9 + $0x6c] ss:$16 sps:$4 sm:$0xff]  }
  0x16   : > { %v3427_v47 = vld [vmem:[%s3744_s9 + $0x60] ss:$16 sps:$4 sm:$0xff]   ;;  %v3428_v48 = vld [vmem:[%s3744_s9 + $0x68] ss:$16 sps:$4 sm:$0xff]   ;;  %v3429_v49 = vld [vmem:[%s3744_s9 + $0x84] ss:$16 sps:$4 sm:$0xff]  }
  0x17   : > { %v3431_v50 = vld [vmem:[%s3744_s9 + $0x8c] ss:$16 sps:$4 sm:$0xff]   ;;  %v3433_v51 = vld [vmem:[%s3744_s9 + $0x80] ss:$16 sps:$4 sm:$0xff]   ;;  %v3434_v52 = vld [vmem:[%s3744_s9 + $0x88] ss:$16 sps:$4 sm:$0xff]  }
  0x18   : > { %1432 = vmatpush1.bf16.msra.mxu0 %v3381_v9  ;;  %1721 = vmatpush1.bf16.msra.mxu1 %v3382_v10  ;;  %v3435_v53 = vld [vmem:[%s3744_s9 + $0xa4] ss:$16 sps:$4 sm:$0xff]   ;;  %v3437_v54 = vld [vmem:[%s3744_s9 + $0xac] ss:$16 sps:$4 sm:$0xff]   ;;  %v3439_v55 = vld [vmem:[%s3744_s9 + $0xa0] ss:$16 sps:$4 sm:$0xff]  }
  0x19   : > { %1433 = vmatprep.subr.bf16.mxu0 %v3623_v1  ;;  %1722 = vmatprep.subr.bf16.mxu1 %v3623_v1  ;;  %v3440_v56 = vld [vmem:[%s3744_s9 + $0xa8] ss:$16 sps:$4 sm:$0xff]   ;;  %v3441_v57 = vld [vmem:[%s3744_s9 + $0xc4] ss:$16 sps:$4 sm:$0xff]   ;;  %v3443_v58 = vld [vmem:[%s3744_s9 + $0xcc] ss:$16 sps:$4 sm:$0xff]  }
  0x1a   : > { %v3445_v59 = vld [vmem:[%s3744_s9 + $0xc0] ss:$16 sps:$4 sm:$0xff]   ;;  %v3446_v60 = vld [vmem:[%s3744_s9 + $0xc8] ss:$16 sps:$4 sm:$0xff]   ;;  %v3447_v61 = vld [vmem:[%s3744_s9 + $0xe4] ss:$16 sps:$4 sm:$0xff]  }
  0x1b   : > { %v3449_v62 = vld [vmem:[%s3744_s9 + $0xec] ss:$16 sps:$4 sm:$0xff]   ;;  %v3451_v63 = vld [vmem:[%s3744_s9 + $0xe0] ss:$16 sps:$4 sm:$0xff]   ;;  %v3452_v0 = vld [vmem:[%s3744_s9 + $0xe8] ss:$16 sps:$4 sm:$0xff]  }
  0x1c   : > { %1434 = vmatpush1.bf16.msra.mxu0 %v3383_v11  ;;  %1723 = vmatpush1.bf16.msra.mxu1 %v3384_v12  ;;  %v3455_v2 = vld [vmem:[%s3744_s9 + $0x10c] ss:$16 sps:$4 sm:$0xff]   ;;  %v3457_v3 = vld [vmem:[%s3744_s9 + $0x100] ss:$16 sps:$4 sm:$0xff]   ;;  %v3458_v4 = vld [vmem:[%s3744_s9 + $0x108] ss:$16 sps:$4 sm:$0xff]  }
  0x1d   : > { %1435 = vmatprep.subr.bf16.mxu0 %v3623_v1  ;;  %1724 = vmatprep.subr.bf16.mxu1 %v3623_v1  ;;  %v3459_v5 = vld [vmem:[%s3744_s9 + $0x124] ss:$16 sps:$4 sm:$0xff]   ;;  %v3461_v6 = vld [vmem:[%s3744_s9 + $0x12c] ss:$16 sps:$4 sm:$0xff]   ;;  %v3463_v7 = vld [vmem:[%s3744_s9 + $0x120] ss:$16 sps:$4 sm:$0xff]  }
  0x1e   : > { %v3464_v8 = vld [vmem:[%s3744_s9 + $0x128] ss:$16 sps:$4 sm:$0xff]   ;;  %v3465_v9 = vld [vmem:[%s3744_s9 + $0x144] ss:$16 sps:$4 sm:$0xff]   ;;  %v3467_v10 = vld [vmem:[%s3744_s9 + $0x14c] ss:$16 sps:$4 sm:$0xff]  }
  0x1f   : > { %v3850_v11 = vld [vmem:[%s3744_s9 + $0x140] ss:$16 sps:$4 sm:$0xff]   ;;  %v3853_v12 = vld [vmem:[%s3744_s9 + $0x148] ss:$16 sps:$4 sm:$0xff]   ;;  %v3479_v19 = vld [vmem:[%s3744_s9 + $0x18c] ss:$16 sps:$4 sm:$0xff]  }
  0x20   : > { %1436 = vmatpush1.bf16.msra.mxu0 %v3385_v13  ;;  %1725 = vmatpush1.bf16.msra.mxu1 %v3386_v14  ;;  %v3856_v13 = vld [vmem:[%s3744_s9 + $0x164] ss:$16 sps:$4 sm:$0xff]   ;;  %v3859_v14 = vld [vmem:[%s3744_s9 + $0x16c] ss:$16 sps:$4 sm:$0xff]   ;;  %v3482_v21 = vld [vmem:[%s3744_s9 + $0x188] ss:$16 sps:$4 sm:$0xff]  }
  0x21   : > { %1437 = vmatprep.subr.bf16.mxu0 %v3623_v1  ;;  %1726 = vmatprep.subr.bf16.mxu1 %v3623_v1 }
  0x24   : > { %1438 = vmatpush1.bf16.msra.mxu0 %v3387_v15  ;;  %1727 = vmatpush1.bf16.msra.mxu1 %v3388_v16  ;;  %v3624_v15 = vmov 0.0   ;;  %v3475_v16 = vld [vmem:[%s3744_s9 + $0x160] ss:$16 sps:$4 sm:$0xff]  }
  0x25   : > { %1439 = vmatprep.subr.bf16.mxu0 %v3623_v1  ;;  %1728 = vmatprep.subr.bf16.mxu1 %v3623_v1  ;;  %271 = vst.msk [vmem:[#allocation2] sm:$0xff] %vm270_vm0, %v3624_v15  ;;  %272 = vst.msk [vmem:[#allocation2 + $0x8] sm:$0xff] %vm270_vm0, %v3624_v15 }
  0x26   : > { %273 = vst.msk [vmem:[#allocation2 + $0x10] sm:$0xff] %vm270_vm0, %v3624_v15  ;;  %274 = vst.msk [vmem:[#allocation2 + $0x18] sm:$0xff] %vm270_vm0, %v3624_v15 }
  0x27   : > { %275 = vst.msk [vmem:[#allocation2 + $0x20] sm:$0xff] %vm270_vm0, %v3624_v15  ;;  %276 = vst.msk [vmem:[#allocation2 + $0x28] sm:$0xff] %vm270_vm0, %v3624_v15 }
  0x28   : > { %1440 = vmatpush1.bf16.msra.mxu0 %v3389_v17  ;;  %1729 = vmatpush1.bf16.msra.mxu1 %v3390_v18  ;;  %277 = vst.msk [vmem:[#allocation2 + $0x30] sm:$0xff] %vm270_vm0, %v3624_v15  ;;  %278 = vst.msk [vmem:[#allocation2 + $0x38] sm:$0xff] %vm270_vm0, %v3624_v15  ;;  %v3476_v17 = vld [vmem:[%s3744_s9 + $0x168] ss:$16 sps:$4 sm:$0xff]   ;;  %v3477_v18 = vld [vmem:[%s3744_s9 + $0x184] ss:$16 sps:$4 sm:$0xff]  }
  0x29   : > { %1441 = vmatprep.subr.bf16.mxu0 %v3623_v1  ;;  %1730 = vmatprep.subr.bf16.mxu1 %v3623_v1  ;;  %279 = vst.msk [vmem:[#allocation2 + $0x40] sm:$0xff] %vm270_vm0, %v3624_v15  ;;  %280 = vst.msk [vmem:[#allocation2 + $0x48] sm:$0xff] %vm270_vm0, %v3624_v15 }
  0x2a   : > { %281 = vst.msk [vmem:[#allocation2 + $0x50] sm:$0xff] %vm270_vm0, %v3624_v15  ;;  %282 = vst.msk [vmem:[#allocation2 + $0x58] sm:$0xff] %vm270_vm0, %v3624_v15 }
  0x2b   : > { %283 = vst.msk [vmem:[#allocation2 + $0x60] sm:$0xff] %vm270_vm0, %v3624_v15  ;;  %284 = vst.msk [vmem:[#allocation2 + $0x68] sm:$0xff] %vm270_vm0, %v3624_v15 }
  0x2c   : > { %1442 = vmatpush1.bf16.msra.mxu0 %v3391_v20  ;;  %1731 = vmatpush1.bf16.msra.mxu1 %v3392_v22  ;;  %285 = vst.msk [vmem:[#allocation2 + $0x70] sm:$0xff] %vm270_vm0, %v3624_v15  ;;  %286 = vst.msk [vmem:[#allocation2 + $0x78] sm:$0xff] %vm270_vm0, %v3624_v15  ;;  %v3481_v20 = vld [vmem:[%s3744_s9 + $0x180] ss:$16 sps:$4 sm:$0xff]   ;;  %v3483_v22 = vld [vmem:[%s3744_s9 + $0x1a4] ss:$16 sps:$4 sm:$0xff]  }
  0x2d   : > { %1443 = vmatprep.subr.bf16.mxu0 %v3623_v1  ;;  %1732 = vmatprep.subr.bf16.mxu1 %v3623_v1  ;;  %287 = vst.msk [vmem:[#allocation2 + $0x80] sm:$0xff] %vm270_vm0, %v3624_v15  ;;  %288 = vst.msk [vmem:[#allocation2 + $0x88] sm:$0xff] %vm270_vm0, %v3624_v15 }
  0x2e   : > { %289 = vst.msk [vmem:[#allocation2 + $0x90] sm:$0xff] %vm270_vm0, %v3624_v15  ;;  %290 = vst.msk [vmem:[#allocation2 + $0x98] sm:$0xff] %vm270_vm0, %v3624_v15 }
  0x2f   : > { %291 = vst.msk [vmem:[#allocation2 + $0xa0] sm:$0xff] %vm270_vm0, %v3624_v15  ;;  %292 = vst.msk [vmem:[#allocation2 + $0xa8] sm:$0xff] %vm270_vm0, %v3624_v15 }
  0x30   : > { %1444 = vmatpush1.bf16.msra.mxu0 %v3393_v23  ;;  %1733 = vmatpush1.bf16.msra.mxu1 %v3394_v24  ;;  %293 = vst.msk [vmem:[#allocation2 + $0xb0] sm:$0xff] %vm270_vm0, %v3624_v15  ;;  %294 = vst.msk [vmem:[#allocation2 + $0xb8] sm:$0xff] %vm270_vm0, %v3624_v15  ;;  %v3485_v23 = vld [vmem:[%s3744_s9 + $0x1ac] ss:$16 sps:$4 sm:$0xff]   ;;  %v3487_v24 = vld [vmem:[%s3744_s9 + $0x1a0] ss:$16 sps:$4 sm:$0xff]  }
  0x31   : > { %1445 = vmatprep.subr.bf16.mxu0 %v3623_v1  ;;  %1734 = vmatprep.subr.bf16.mxu1 %v3623_v1  ;;  %295 = vst.msk [vmem:[#allocation2 + $0xc0] sm:$0xff] %vm270_vm0, %v3624_v15  ;;  %296 = vst.msk [vmem:[#allocation2 + $0xc8] sm:$0xff] %vm270_vm0, %v3624_v15 }
  0x32   : > { %297 = vst.msk [vmem:[#allocation2 + $0xd0] sm:$0xff] %vm270_vm0, %v3624_v15  ;;  %298 = vst.msk [vmem:[#allocation2 + $0xd8] sm:$0xff] %vm270_vm0, %v3624_v15 }
  0x33   : > { %299 = vst.msk [vmem:[#allocation2 + $0xe0] sm:$0xff] %vm270_vm0, %v3624_v15  ;;  %300 = vst.msk [vmem:[#allocation2 + $0xe8] sm:$0xff] %vm270_vm0, %v3624_v15 }
  0x34   : > { %1446 = vmatpush1.bf16.msra.mxu0 %v3395_v25  ;;  %1735 = vmatpush1.bf16.msra.mxu1 %v3396_v26  ;;  %301 = vst.msk [vmem:[#allocation2 + $0xf0] sm:$0xff] %vm270_vm0, %v3624_v15  ;;  %302 = vst.msk [vmem:[#allocation2 + $0xf8] sm:$0xff] %vm270_vm0, %v3624_v15  ;;  %v3488_v25 = vld [vmem:[%s3744_s9 + $0x1a8] ss:$16 sps:$4 sm:$0xff]   ;;  %v3489_v26 = vld [vmem:[%s3744_s9 + $0x1c4] ss:$16 sps:$4 sm:$0xff]  }
  0x35   : > { %1447 = vmatprep.subr.bf16.mxu0 %v3623_v1  ;;  %1736 = vmatprep.subr.bf16.mxu1 %v3623_v1  ;;  %303 = vst.msk [vmem:[#allocation2 + $0x100] sm:$0xff] %vm270_vm0, %v3624_v15  ;;  %304 = vst.msk [vmem:[#allocation2 + $0x108] sm:$0xff] %vm270_vm0, %v3624_v15 }
  0x36   : > { %305 = vst.msk [vmem:[#allocation2 + $0x110] sm:$0xff] %vm270_vm0, %v3624_v15  ;;  %306 = vst.msk [vmem:[#allocation2 + $0x118] sm:$0xff] %vm270_vm0, %v3624_v15 }
  0x37   : > { %307 = vst.msk [vmem:[#allocation2 + $0x120] sm:$0xff] %vm270_vm0, %v3624_v15  ;;  %308 = vst.msk [vmem:[#allocation2 + $0x128] sm:$0xff] %vm270_vm0, %v3624_v15 }
  0x38   : > { %1448 = vmatpush1.bf16.msra.mxu0 %v3397_v27  ;;  %1737 = vmatpush1.bf16.msra.mxu1 %v3398_v28  ;;  %309 = vst.msk [vmem:[#allocation2 + $0x130] sm:$0xff] %vm270_vm0, %v3624_v15  ;;  %310 = vst.msk [vmem:[#allocation2 + $0x138] sm:$0xff] %vm270_vm0, %v3624_v15  ;;  %v3491_v27 = vld [vmem:[%s3744_s9 + $0x1cc] ss:$16 sps:$4 sm:$0xff]   ;;  %v3493_v28 = vld [vmem:[%s3744_s9 + $0x1c0] ss:$16 sps:$4 sm:$0xff]  }
  0x39   : > { %1449 = vmatprep.subr.bf16.mxu0 %v3623_v1  ;;  %1738 = vmatprep.subr.bf16.mxu1 %v3623_v1  ;;  %311 = vst.msk [vmem:[#allocation2 + $0x140] sm:$0xff] %vm270_vm0, %v3624_v15  ;;  %312 = vst.msk [vmem:[#allocation2 + $0x148] sm:$0xff] %vm270_vm0, %v3624_v15 }
  0x3a   : > { %313 = vst.msk [vmem:[#allocation2 + $0x150] sm:$0xff] %vm270_vm0, %v3624_v15  ;;  %314 = vst.msk [vmem:[#allocation2 + $0x158] sm:$0xff] %vm270_vm0, %v3624_v15 }
  0x3b   : > { %315 = vst.msk [vmem:[#allocation2 + $0x160] sm:$0xff] %vm270_vm0, %v3624_v15  ;;  %316 = vst.msk [vmem:[#allocation2 + $0x168] sm:$0xff] %vm270_vm0, %v3624_v15 }
  0x3c   : > { %1450 = vmatpush1.bf16.msra.mxu0 %v3399_v29  ;;  %1739 = vmatpush1.bf16.msra.mxu1 %v3400_v30  ;;  %317 = vst.msk [vmem:[#allocation2 + $0x170] sm:$0xff] %vm270_vm0, %v3624_v15  ;;  %318 = vst.msk [vmem:[#allocation2 + $0x178] sm:$0xff] %vm270_vm0, %v3624_v15  ;;  %v3494_v29 = vld [vmem:[%s3744_s9 + $0x1c8] ss:$16 sps:$4 sm:$0xff]   ;;  %v3495_v30 = vld [vmem:[%s3744_s9 + $0x1e4] ss:$16 sps:$4 sm:$0xff]  }
  0x3d   : > { %1451 = vmatprep.subr.bf16.mxu0 %v3623_v1  ;;  %1740 = vmatprep.subr.bf16.mxu1 %v3623_v1  ;;  %319 = vst.msk [vmem:[#allocation2 + $0x180] sm:$0xff] %vm270_vm0, %v3624_v15  ;;  %320 = vst.msk [vmem:[#allocation2 + $0x188] sm:$0xff] %vm270_vm0, %v3624_v15 }
  0x3e   : > { %321 = vst.msk [vmem:[#allocation2 + $0x190] sm:$0xff] %vm270_vm0, %v3624_v15  ;;  %322 = vst.msk [vmem:[#allocation2 + $0x198] sm:$0xff] %vm270_vm0, %v3624_v15 }
  0x3f   : > { %323 = vst.msk [vmem:[#allocation2 + $0x1a0] sm:$0xff] %vm270_vm0, %v3624_v15  ;;  %324 = vst.msk [vmem:[#allocation2 + $0x1a8] sm:$0xff] %vm270_vm0, %v3624_v15 }
  0x40   : > { %1452 = vmatpush1.bf16.msra.mxu0 %v3401_v31  ;;  %1741 = vmatpush1.bf16.msra.mxu1 %v3402_v32  ;;  %325 = vst.msk [vmem:[#allocation2 + $0x1b0] sm:$0xff] %vm270_vm0, %v3624_v15  ;;  %326 = vst.msk [vmem:[#allocation2 + $0x1b8] sm:$0xff] %vm270_vm0, %v3624_v15  ;;  %v3497_v31 = vld [vmem:[%s3744_s9 + $0x1ec] ss:$16 sps:$4 sm:$0xff]   ;;  %v3499_v32 = vld [vmem:[%s3744_s9 + $0x1e0] ss:$16 sps:$4 sm:$0xff]  }
  0x41   : > { %1453 = vmatprep.subr.bf16.mxu0 %v3623_v1  ;;  %1742 = vmatprep.subr.bf16.mxu1 %v3623_v1  ;;  %v3453_v1 = vld [vmem:[%s3744_s9 + $0x104] ss:$16 sps:$4 sm:$0xff]   ;;  %327 = vst.msk [vmem:[#allocation2 + $0x1c0] sm:$0xff] %vm270_vm0, %v3624_v15  ;;  %328 = vst.msk [vmem:[#allocation2 + $0x1c8] sm:$0xff] %vm270_vm0, %v3624_v15 }
  0x42   : > { %329 = vst.msk [vmem:[#allocation2 + $0x1d0] sm:$0xff] %vm270_vm0, %v3624_v15  ;;  %330 = vst.msk [vmem:[#allocation2 + $0x1d8] sm:$0xff] %vm270_vm0, %v3624_v15 }
  0x43   : > { %331 = vst.msk [vmem:[#allocation2 + $0x1e0] sm:$0xff] %vm270_vm0, %v3624_v15  ;;  %332 = vst.msk [vmem:[#allocation2 + $0x1e8] sm:$0xff] %vm270_vm0, %v3624_v15 }
  0x44   : > { %1454 = vmatpush1.bf16.msra.mxu0 %v3403_v33  ;;  %1743 = vmatpush1.bf16.msra.mxu1 %v3404_v34  ;;  %333 = vst.msk [vmem:[#allocation2 + $0x1f0] sm:$0xff] %vm270_vm0, %v3624_v15  ;;  %334 = vst.msk [vmem:[#allocation2 + $0x1f8] sm:$0xff] %vm270_vm0, %v3624_v15  ;;  %v3500_v33 = vld [vmem:[%s3744_s9 + $0x1e8] ss:$16 sps:$4 sm:$0xff]   ;;  %v3501_v34 = vld [vmem:[%s3744_s9 + $0x204] ss:$16 sps:$4 sm:$0xff]  }
  0x45   : > { %v3569_v15 = vld [vmem:[%s3744_s9 + $0x36c] ss:$16 sps:$4 sm:$0xff]  }
  0x47   : > { %1456 = vmatmul.mubr.bf16.vlgmr.msra.gmra.mrb[0].mxu0 %v3405_v35  ;;  %1745 = vmatmul.mubr.bf16.vlgmr.msra.gmra.mrb[0].mxu1 %v3408_v36  ;;  %v3503_v35 = vld [vmem:[%s3744_s9 + $0x20c] ss:$16 sps:$4 sm:$0xff]   ;;  %v3505_v36 = vld [vmem:[%s3744_s9 + $0x200] ss:$16 sps:$4 sm:$0xff]  }
  0x48   : > { %1463 = vmatprep.mubr.bf16.mxu0 %v3411_v37  ;;  %1752 = vmatprep.mubr.bf16.mxu1 %v3413_v38  ;;  %v3506_v37 = vld [vmem:[%s3744_s9 + $0x208] ss:$16 sps:$4 sm:$0xff]   ;;  %v3507_v38 = vld [vmem:[%s3744_s9 + $0x224] ss:$16 sps:$4 sm:$0xff]  }
  0x4f   : > { %1464 = vmatmul.mubr.bf16.gmra.mrb[4].mxu0 %v3415_v39  ;;  %1753 = vmatmul.mubr.bf16.gmra.mrb[4].mxu1 %v3416_v40  ;;  %v3509_v39 = vld [vmem:[%s3744_s9 + $0x22c] ss:$16 sps:$4 sm:$0xff]   ;;  %v3511_v40 = vld [vmem:[%s3744_s9 + $0x220] ss:$16 sps:$4 sm:$0xff]  }
  0x50   : > { %1471 = vmatprep.mubr.bf16.mxu0 %v3417_v41  ;;  %1760 = vmatprep.mubr.bf16.mxu1 %v3419_v42  ;;  %v3512_v41 = vld [vmem:[%s3744_s9 + $0x228] ss:$16 sps:$4 sm:$0xff]   ;;  %v3513_v42 = vld [vmem:[%s3744_s9 + $0x244] ss:$16 sps:$4 sm:$0xff]  }
  0x57   : > { %1472 = vmatmul.mubr.bf16.gmra.mrb[8].mxu0 %v3421_v43  ;;  %1761 = vmatmul.mubr.bf16.gmra.mrb[8].mxu1 %v3422_v44  ;;  %v3515_v43 = vld [vmem:[%s3744_s9 + $0x24c] ss:$16 sps:$4 sm:$0xff]   ;;  %v3517_v44 = vld [vmem:[%s3744_s9 + $0x240] ss:$16 sps:$4 sm:$0xff]  }
  0x58   : > { %1479 = vmatprep.mubr.bf16.mxu0 %v3423_v45  ;;  %1768 = vmatprep.mubr.bf16.mxu1 %v3425_v46  ;;  %v3518_v45 = vld [vmem:[%s3744_s9 + $0x248] ss:$16 sps:$4 sm:$0xff]   ;;  %v3519_v46 = vld [vmem:[%s3744_s9 + $0x264] ss:$16 sps:$4 sm:$0xff]  }
  0x5f   : > { %1480 = vmatmul.mubr.bf16.gmra.mrb[12].mxu0 %v3427_v47  ;;  %1769 = vmatmul.mubr.bf16.gmra.mrb[12].mxu1 %v3428_v48  ;;  %v3521_v47 = vld [vmem:[%s3744_s9 + $0x26c] ss:$16 sps:$4 sm:$0xff]   ;;  %v3523_v48 = vld [vmem:[%s3744_s9 + $0x260] ss:$16 sps:$4 sm:$0xff]  }
  0x60   : > { %1487 = vmatprep.mubr.bf16.mxu0 %v3429_v49  ;;  %1776 = vmatprep.mubr.bf16.mxu1 %v3431_v50  ;;  %v3524_v49 = vld [vmem:[%s3744_s9 + $0x268] ss:$16 sps:$4 sm:$0xff]   ;;  %v3525_v50 = vld [vmem:[%s3744_s9 + $0x284] ss:$16 sps:$4 sm:$0xff]  }
  0x67   : > { %1488 = vmatmul.mubr.bf16.gmra.mrb[16].mxu0 %v3433_v51  ;;  %1777 = vmatmul.mubr.bf16.gmra.mrb[16].mxu1 %v3434_v52  ;;  %v3527_v51 = vld [vmem:[%s3744_s9 + $0x28c] ss:$16 sps:$4 sm:$0xff]   ;;  %v3529_v52 = vld [vmem:[%s3744_s9 + $0x280] ss:$16 sps:$4 sm:$0xff]  }
  0x68   : > { %1495 = vmatprep.mubr.bf16.mxu0 %v3435_v53  ;;  %1784 = vmatprep.mubr.bf16.mxu1 %v3437_v54  ;;  %v3530_v53 = vld [vmem:[%s3744_s9 + $0x288] ss:$16 sps:$4 sm:$0xff]   ;;  %v3531_v54 = vld [vmem:[%s3744_s9 + $0x2a4] ss:$16 sps:$4 sm:$0xff]  }
  0x6f   : > { %1496 = vmatmul.mubr.bf16.gmra.mrb[20].mxu0 %v3439_v55  ;;  %1785 = vmatmul.mubr.bf16.gmra.mrb[20].mxu1 %v3440_v56  ;;  %v3533_v55 = vld [vmem:[%s3744_s9 + $0x2ac] ss:$16 sps:$4 sm:$0xff]   ;;  %v3535_v56 = vld [vmem:[%s3744_s9 + $0x2a0] ss:$16 sps:$4 sm:$0xff]  }
  0x70   : > { %1503 = vmatprep.mubr.bf16.mxu0 %v3441_v57  ;;  %1792 = vmatprep.mubr.bf16.mxu1 %v3443_v58  ;;  %v3536_v57 = vld [vmem:[%s3744_s9 + $0x2a8] ss:$16 sps:$4 sm:$0xff]   ;;  %v3537_v58 = vld [vmem:[%s3744_s9 + $0x2c4] ss:$16 sps:$4 sm:$0xff]  }
  0x77   : > { %1504 = vmatmul.mubr.bf16.gmra.mrb[24].mxu0 %v3445_v59  ;;  %1793 = vmatmul.mubr.bf16.gmra.mrb[24].mxu1 %v3446_v60  ;;  %v3539_v59 = vld [vmem:[%s3744_s9 + $0x2cc] ss:$16 sps:$4 sm:$0xff]   ;;  %v3541_v60 = vld [vmem:[%s3744_s9 + $0x2c0] ss:$16 sps:$4 sm:$0xff]  }
  0x78   : > { %1511 = vmatprep.mubr.bf16.mxu0 %v3447_v61  ;;  %1800 = vmatprep.mubr.bf16.mxu1 %v3449_v62  ;;  %v3542_v61 = vld [vmem:[%s3744_s9 + $0x2c8] ss:$16 sps:$4 sm:$0xff]   ;;  %v3543_v62 = vld [vmem:[%s3744_s9 + $0x2e4] ss:$16 sps:$4 sm:$0xff]  }
  0x7f   : > { %1512 = vmatmul.mubr.bf16.gmra.mrb[28].mxu0 %v3451_v63  ;;  %1801 = vmatmul.mubr.bf16.gmra.mrb[28].mxu1 %v3452_v0  ;;  %v3545_v63 = vld [vmem:[%s3744_s9 + $0x2ec] ss:$16 sps:$4 sm:$0xff]   ;;  %v3547_v0 = vld [vmem:[%s3744_s9 + $0x2e0] ss:$16 sps:$4 sm:$0xff]  }
  0x80   : > { %1519 = vmatprep.mubr.bf16.mxu0 %v3453_v1  ;;  %1808 = vmatprep.mubr.bf16.mxu1 %v3455_v2  ;;  %v3548_v1 = vld [vmem:[%s3744_s9 + $0x2e8] ss:$16 sps:$4 sm:$0xff]   ;;  %v3549_v2 = vld [vmem:[%s3744_s9 + $0x304] ss:$16 sps:$4 sm:$0xff]  }
  0x87   : > { %1520 = vmatmul.mubr.bf16.gmra.mrb[32].mxu0 %v3457_v3  ;;  %1809 = vmatmul.mubr.bf16.gmra.mrb[32].mxu1 %v3458_v4  ;;  %v3551_v3 = vld [vmem:[%s3744_s9 + $0x30c] ss:$16 sps:$4 sm:$0xff]   ;;  %v3553_v4 = vld [vmem:[%s3744_s9 + $0x300] ss:$16 sps:$4 sm:$0xff]  }
  0x88   : > { %1527 = vmatprep.mubr.bf16.mxu0 %v3459_v5  ;;  %1816 = vmatprep.mubr.bf16.mxu1 %v3461_v6  ;;  %v3554_v5 = vld [vmem:[%s3744_s9 + $0x308] ss:$16 sps:$4 sm:$0xff]   ;;  %v3555_v6 = vld [vmem:[%s3744_s9 + $0x324] ss:$16 sps:$4 sm:$0xff]  }
  0x8f   : > { %1528 = vmatmul.mubr.bf16.gmra.mrb[36].mxu0 %v3463_v7  ;;  %1817 = vmatmul.mubr.bf16.gmra.mrb[36].mxu1 %v3464_v8  ;;  %v3557_v7 = vld [vmem:[%s3744_s9 + $0x32c] ss:$16 sps:$4 sm:$0xff]   ;;  %v3559_v8 = vld [vmem:[%s3744_s9 + $0x320] ss:$16 sps:$4 sm:$0xff]  }
  0x90   : > { %1535 = vmatprep.mubr.bf16.mxu0 %v3465_v9  ;;  %1824 = vmatprep.mubr.bf16.mxu1 %v3467_v10  ;;  %v3560_v9 = vld [vmem:[%s3744_s9 + $0x328] ss:$16 sps:$4 sm:$0xff]   ;;  %v3561_v10 = vld [vmem:[%s3744_s9 + $0x344] ss:$16 sps:$4 sm:$0xff]  }
  0x97   : > { %1536 = vmatmul.mubr.bf16.gmra.mrb[40].mxu0 %v3850_v11  ;;  %1825 = vmatmul.mubr.bf16.gmra.mrb[40].mxu1 %v3853_v12  ;;  %v3563_v11 = vld [vmem:[%s3744_s9 + $0x34c] ss:$16 sps:$4 sm:$0xff]   ;;  %v3565_v12 = vld [vmem:[%s3744_s9 + $0x340] ss:$16 sps:$4 sm:$0xff]  }
  0x98   : > { %1543 = vmatprep.mubr.bf16.mxu0 %v3856_v13  ;;  %1832 = vmatprep.mubr.bf16.mxu1 %v3859_v14  ;;  %v3566_v13 = vld [vmem:[%s3744_s9 + $0x348] ss:$16 sps:$4 sm:$0xff]   ;;  %v3567_v14 = vld [vmem:[%s3744_s9 + $0x364] ss:$16 sps:$4 sm:$0xff]  }
  0x9f   : > { %1544 = vmatmul.mubr.bf16.gmra.mrb[44].mxu0 %v3475_v16  ;;  %1833 = vmatmul.mubr.bf16.gmra.mrb[44].mxu1 %v3476_v17  ;;  %v335_v17 = vld [vmem:[#allocation2] sm:$0xff] }
  0xa0   : > { %1551 = vmatprep.mubr.bf16.mxu0 %v3477_v18  ;;  %1840 = vmatprep.mubr.bf16.mxu1 %v3479_v19 }
  0xa7   : > { %1552 = vmatmul.mubr.bf16.gmra.mrb[48].mxu0 %v3481_v20  ;;  %1841 = vmatmul.mubr.bf16.gmra.mrb[48].mxu1 %v3482_v21  ;;  %v3571_v20 = vld [vmem:[%s3744_s9 + $0x360] ss:$16 sps:$4 sm:$0xff]  }
  0xa8   : > { %1559 = vmatprep.mubr.bf16.mxu0 %v3483_v22  ;;  %1848 = vmatprep.mubr.bf16.mxu1 %v3485_v23 }
  0xaf   : > { %1560 = vmatmul.mubr.bf16.gmra.mrb[52].mxu0 %v3487_v24  ;;  %1849 = vmatmul.mubr.bf16.gmra.mrb[52].mxu1 %v3488_v25  ;;  %v3572_v24 = vld [vmem:[%s3744_s9 + $0x368] ss:$16 sps:$4 sm:$0xff]   ;;  %v3573_v25 = vld [vmem:[%s3744_s9 + $0x384] ss:$16 sps:$4 sm:$0xff]  }
  0xb0   : > { %1567 = vmatprep.mubr.bf16.mxu0 %v3489_v26  ;;  %1856 = vmatprep.mubr.bf16.mxu1 %v3491_v27  ;;  %v336_v26 = vld [vmem:[#allocation2 + $0x8] sm:$0xff] }
  0xb7   : > { %1568 = vmatmul.mubr.bf16.gmra.mrb[56].mxu0 %v3493_v28  ;;  %1857 = vmatmul.mubr.bf16.gmra.mrb[56].mxu1 %v3494_v29  ;;  %v3575_v29 = vld [vmem:[%s3744_s9 + $0x38c] ss:$16 sps:$4 sm:$0xff]  }
  0xb8   : > { %1575 = vmatprep.mubr.bf16.mxu0 %v3495_v30  ;;  %1864 = vmatprep.mubr.bf16.mxu1 %v3497_v31 }
  0xbf   : > { %1576 = vmatmul.mubr.bf16.gmra.mrb[60].mxu0 %v3499_v32  ;;  %1865 = vmatmul.mubr.bf16.gmra.mrb[60].mxu1 %v3500_v33 }
  0xc0   : > { %1583 = vmatprep.mubr.bf16.mxu0 %v3501_v34  ;;  %1872 = vmatprep.mubr.bf16.mxu1 %v3503_v35  ;;  %v337_v35 = vld [vmem:[#allocation2 + $0x10] sm:$0xff] }
  0xc7   : > { %1584 = vmatmul.mubr.bf16.gmra.mrb[64].mxu0 %v3505_v36  ;;  %1873 = vmatmul.mubr.bf16.gmra.mrb[64].mxu1 %v3506_v37  ;;  %v4066_v36 = vld [vmem:[%s4598_s2] ss:$0 sm:$0xff] }
  0xc8   : > { %1591 = vmatprep.mubr.bf16.mxu0 %v3507_v38  ;;  %1880 = vmatprep.mubr.bf16.mxu1 %v3509_v39  ;;  %v3577_v39 = vld [vmem:[%s3744_s9 + $0x380] ss:$16 sps:$4 sm:$0xff]  }
  0xcf   : > { %1592 = vmatmul.mubr.bf16.gmra.mrb[68].mxu0 %v3511_v40  ;;  %1881 = vmatmul.mubr.bf16.gmra.mrb[68].mxu1 %v3512_v41 }
  0xd0   : > { %1599 = vmatprep.mubr.bf16.mxu0 %v3513_v42  ;;  %1888 = vmatprep.mubr.bf16.mxu1 %v3515_v43  ;;  %v3578_v43 = vld [vmem:[%s3744_s9 + $0x388] ss:$16 sps:$4 sm:$0xff]  }
  0xd7   : > { %1600 = vmatmul.mubr.bf16.gmra.mrb[72].mxu0 %v3517_v44  ;;  %1889 = vmatmul.mubr.bf16.gmra.mrb[72].mxu1 %v3518_v45  ;;  %v3579_v44 = vld [vmem:[%s3744_s9 + $0x3a4] ss:$16 sps:$4 sm:$0xff]   ;;  %v338_v45 = vld [vmem:[#allocation2 + $0x18] sm:$0xff] }
  0xd8   : > { %1607 = vmatprep.mubr.bf16.mxu0 %v3519_v46  ;;  %1896 = vmatprep.mubr.bf16.mxu1 %v3521_v47 }
  0xdf   : > { %1608 = vmatmul.mubr.bf16.gmra.mrb[76].mxu0 %v3523_v48  ;;  %1897 = vmatmul.mubr.bf16.gmra.mrb[76].mxu1 %v3524_v49  ;;  %v3581_v48 = vld [vmem:[%s3744_s9 + $0x3ac] ss:$16 sps:$4 sm:$0xff]  }
  0xe0   : > { %1615 = vmatprep.mubr.bf16.mxu0 %v3525_v50  ;;  %1904 = vmatprep.mubr.bf16.mxu1 %v3527_v51 }
  0xe7   : > { %1616 = vmatmul.mubr.bf16.gmra.mrb[80].mxu0 %v3529_v52  ;;  %1905 = vmatmul.mubr.bf16.gmra.mrb[80].mxu1 %v3530_v53 }
  0xe8   : > { %1623 = vmatprep.mubr.bf16.mxu0 %v3531_v54  ;;  %1912 = vmatprep.mubr.bf16.mxu1 %v3533_v55 }
  0xef   : > { %1624 = vmatmul.mubr.bf16.gmra.mrb[84].mxu0 %v3535_v56  ;;  %1913 = vmatmul.mubr.bf16.gmra.mrb[84].mxu1 %v3536_v57 }
  0xf0   : > { %1631 = vmatprep.mubr.bf16.mxu0 %v3537_v58  ;;  %1920 = vmatprep.mubr.bf16.mxu1 %v3539_v59 }
  0xf7   : > { %1632 = vmatmul.mubr.bf16.gmra.mrb[88].mxu0 %v3541_v60  ;;  %1921 = vmatmul.mubr.bf16.gmra.mrb[88].mxu1 %v3542_v61 }
  0xf8   : > { %1639 = vmatprep.mubr.bf16.mxu0 %v3543_v62  ;;  %1928 = vmatprep.mubr.bf16.mxu1 %v3545_v63  ;;  %v339_v62 = vld [vmem:[#allocation2 + $0x20] sm:$0xff] }
  0xff   : > { %1640 = vmatmul.mubr.bf16.gmra.mrb[92].mxu0 %v3547_v0  ;;  %1929 = vmatmul.mubr.bf16.gmra.mrb[92].mxu1 %v3548_v1 }
 0x100   : > { %1647 = vmatprep.mubr.bf16.mxu0 %v3549_v2  ;;  %1936 = vmatprep.mubr.bf16.mxu1 %v3551_v3  ;;  %v3583_v3 = vld [vmem:[%s3744_s9 + $0x3a0] ss:$16 sps:$4 sm:$0xff]  }
 0x107   : > { %1648 = vmatmul.mubr.bf16.gmra.mrb[96].mxu0 %v3553_v4  ;;  %1937 = vmatmul.mubr.bf16.gmra.mrb[96].mxu1 %v3554_v5  ;;  %v3584_v4 = vld [vmem:[%s3744_s9 + $0x3a8] ss:$16 sps:$4 sm:$0xff]  }
 0x108   : > { %1655 = vmatprep.mubr.bf16.mxu0 %v3555_v6  ;;  %1944 = vmatprep.mubr.bf16.mxu1 %v3557_v7 }
 0x10f   : > { %1656 = vmatmul.mubr.bf16.gmra.mrb[100].mxu0 %v3559_v8  ;;  %1945 = vmatmul.mubr.bf16.gmra.mrb[100].mxu1 %v3560_v9  ;;  %v340_v9 = vld [vmem:[#allocation2 + $0x28] sm:$0xff] }
 0x110   : > { %1663 = vmatprep.mubr.bf16.mxu0 %v3561_v10  ;;  %1952 = vmatprep.mubr.bf16.mxu1 %v3563_v11  ;;  %v3585_v10 = vld [vmem:[%s3744_s9 + $0x3c4] ss:$16 sps:$4 sm:$0xff]  }
 0x117   : > { %1664 = vmatmul.mubr.bf16.gmra.mrb[104].mxu0 %v3565_v12  ;;  %1953 = vmatmul.mubr.bf16.gmra.mrb[104].mxu1 %v3566_v13 }
 0x118   : > { %1671 = vmatprep.mubr.bf16.mxu0 %v3567_v14  ;;  %1960 = vmatprep.mubr.bf16.mxu1 %v3569_v15  ;;  %v3587_v15 = vld [vmem:[%s3744_s9 + $0x3cc] ss:$16 sps:$4 sm:$0xff]  }
 0x11a   : > { %v1457_v16 = vpop.f32.mrb[0].mxu0  ;;  %v1746_v18 = vpop.f32.mrb[0].mxu1 }
 0x11b   : > { %v1459_v19 = vpop.f32.mrb[1].mxu0  ;;  %v1747_v21 = vadd.f32 %v1746_v18, %v1457_v16  ;;  %v1748_v22 = vpop.f32.mrb[1].mxu1 }
 0x11c   : > { %v1460_v23 = vpop.f32.mrb[2].mxu0  ;;  %v1749_v27 = vpop.f32.mrb[2].mxu1 }
 0x11d   : > { %v1462_v28 = vpop.f32.mrb[3].mxu0  ;;  %v2001_v30 = vadd.f32 %v1747_v21, %v335_v17  ;;  %v1750_v31 = vadd.f32 %v1749_v27, %v1460_v23  ;;  %v1751_v32 = vpop.f32.mrb[3].mxu1 }
 0x11f   : > { %1672 = vmatmul.mubr.bf16.gmra.mrb[108].mxu0 %v3571_v20  ;;  %2066 = vst.msk [vmem:[#allocation2] sm:$0xff] %vm270_vm0, %v2001_v30  ;;  %v2002_v33 = vadd.f32 %v1750_v31, %v336_v26  ;;  %1961 = vmatmul.mubr.bf16.gmra.mrb[108].mxu1 %v3572_v24 }
 0x120   : > { %1679 = vmatprep.mubr.bf16.mxu0 %v3573_v25  ;;  %1968 = vmatprep.mubr.bf16.mxu1 %v3575_v29 }
 0x121   : > { %2067 = vst.msk [vmem:[#allocation2 + $0x8] sm:$0xff] %vm270_vm0, %v2002_v33 }
 0x122   : > { %v1465_v34 = vpop.f32.mrb[4].mxu0  ;;  %v1754_v37 = vpop.f32.mrb[4].mxu1 }
 0x123   : > { %v1467_v38 = vpop.f32.mrb[5].mxu0  ;;  %v1755_v40 = vadd.f32 %v1754_v37, %v1465_v34  ;;  %v1756_v41 = vpop.f32.mrb[5].mxu1 }
 0x124   : > { %v1468_v42 = vpop.f32.mrb[6].mxu0  ;;  %v1757_v46 = vpop.f32.mrb[6].mxu1 }
 0x125   : > { %v1470_v47 = vpop.f32.mrb[7].mxu0  ;;  %v2003_v49 = vadd.f32 %v1755_v40, %v337_v35  ;;  %v1758_v50 = vadd.f32 %v1757_v46, %v1468_v42  ;;  %v1759_v51 = vpop.f32.mrb[7].mxu1  ;;  %v341_v35 = vld [vmem:[#allocation2 + $0x30] sm:$0xff] }
 0x126   : > { %v2133_v52 = vld [vmem:[#allocation2] sm:$0xff]  ;;  %v342_v47 = vld [vmem:[#allocation2 + $0x38] sm:$0xff] }
 0x127   : > { %1680 = vmatmul.mubr.bf16.gmra.mrb[112].mxu0 %v3577_v39  ;;  %v2204_v53 = vadd.f32 %v4066_v36, %v2133_v52  ;;  %2068 = vst.msk [vmem:[#allocation2 + $0x10] sm:$0xff] %vm270_vm0, %v2003_v49  ;;  %v2004_v54 = vadd.f32 %v1758_v50, %v338_v45  ;;  %1969 = vmatmul.mubr.bf16.gmra.mrb[112].mxu1 %v3578_v43  ;;  %v2589_v58 = vsel %vm270_vm0, %v2133_v52, 0.0  ;;  %v3589_v39 = vld [vmem:[%s3744_s9 + $0x3c0] ss:$16 sps:$4 sm:$0xff]   ;;  %v3591_v45 = vld [vmem:[%s3744_s9 + $0x3e4] ss:$16 sps:$4 sm:$0xff]  }
 0x128   : > { %1687 = vmatprep.mubr.bf16.mxu0 %v3579_v44  ;;  %v2722_v55 = vmul.f32 %v2133_v52, %v2133_v52  ;;  %v2134_v56 = vld [vmem:[#allocation2 + $0x8] sm:$0xff]  ;;  %1976 = vmatprep.mubr.bf16.mxu1 %v3581_v48 }
 0x129   : > { %v3283_v57 = vpack.c.bf16 %v2204_v53, %v2204_v53  ;;  %v2205_v59 = vadd.f32 %v4066_v36, %v2134_v56  ;;  %v2590_v60 = vsel %vm270_vm0, %v2134_v56, 0.0  ;;  %2069 = vst.msk [vmem:[#allocation2 + $0x18] sm:$0xff] %vm270_vm0, %v2004_v54  ;;  %v2723_v0 = vmul.f32 %v2134_v56, %v2134_v56  ;;  %v3590_v44 = vld [vmem:[%s3744_s9 + $0x3c8] ss:$16 sps:$4 sm:$0xff]   ;;  %v3593_v50 = vld [vmem:[%s3744_s9 + $0x3ec] ss:$16 sps:$4 sm:$0xff]  }
 0x12a   : > { %v1473_v61 = vpop.f32.mrb[8].mxu0  ;;  %v2591_v63 = vadd.f32 %v2590_v60, %v2589_v58  ;;  %v1762_v1 = vpop.f32.mrb[8].mxu1  ;;  %v2786_v11 = vsel %vm270_vm0, %v2722_v55, 0.0 }
 0x12b   : > { %v1475_v2 = vpop.f32.mrb[9].mxu0  ;;  %2525 = vst.msk [vmem:[%s4078_s30] sm:$0xf] %vm2524_vm1, %v3283_v57  ;;  %v3284_v5 = vpack.c.bf16 %v2205_v59, %v2205_v59  ;;  %v1763_v6 = vadd.f32 %v1762_v1, %v1473_v61  ;;  %v1764_v7 = vpop.f32.mrb[9].mxu1  ;;  %v2787_v12 = vsel %vm270_vm0, %v2723_v0, 0.0 }
 0x12c   : > { %v1476_v8 = vpop.f32.mrb[10].mxu0  ;;  %v1765_v13 = vpop.f32.mrb[10].mxu1  ;;  %v2788_v16 = vadd.f32 %v2787_v12, %v2786_v11 }
 0x12d   : > { %v1478_v14 = vpop.f32.mrb[11].mxu0  ;;  %2526 = vst.msk [vmem:[%s4078_s30 + $0x4] sm:$0xf] %vm2524_vm1, %v3284_v5  ;;  %v2005_v17 = vadd.f32 %v1763_v6, %v339_v62  ;;  %v1766_v18 = vadd.f32 %v1765_v13, %v1476_v8  ;;  %v1767_v19 = vpop.f32.mrb[11].mxu1  ;;  %v343_v6 = vld [vmem:[#allocation2 + $0x40] sm:$0xff] }
 0x12e   : > { %v2135_v20 = vld [vmem:[#allocation2 + $0x10] sm:$0xff]  ;;  %v3596_v14 = vld [vmem:[%s3744_s9 + $0x3e8] ss:$16 sps:$4 sm:$0xff]  }
 0x12f   : > { %1688 = vmatmul.mubr.bf16.gmra.mrb[116].mxu0 %v3583_v3  ;;  %v2206_v21 = vadd.f32 %v4066_v36, %v2135_v20  ;;  %v2592_v22 = vsel %vm270_vm0, %v2135_v20, 0.0  ;;  %v2724_v23 = vmul.f32 %v2135_v20, %v2135_v20  ;;  %2070 = vst.msk [vmem:[#allocation2 + $0x20] sm:$0xff] %vm270_vm0, %v2005_v17  ;;  %v2006_v24 = vadd.f32 %v1766_v18, %v340_v9  ;;  %v3595_v9 = vld [vmem:[%s3744_s9 + $0x3e0] ss:$16 sps:$4 sm:$0xff]  }
 0x130   : > { %1977 = vmatmul.mubr.bf16.gmra.mrb[116].mxu1 %v3584_v4  ;;  %1695 = vmatprep.mubr.bf16.mxu0 %v3585_v10  ;;  %v2593_v25 = vadd.f32 %v2592_v22, %v2591_v63  ;;  %v2136_v26 = vld [vmem:[#allocation2 + $0x18] sm:$0xff] }
 0x131   : > { %1984 = vmatprep.mubr.bf16.mxu1 %v3587_v15  ;;  %v3285_v27 = vpack.c.bf16 %v2206_v21, %v2206_v21  ;;  %v2789_v28 = vsel %vm270_vm0, %v2724_v23, 0.0  ;;  %v2207_v29 = vadd.f32 %v4066_v36, %v2136_v26  ;;  %v2594_v30 = vsel %vm270_vm0, %v2136_v26, 0.0  ;;  %2071 = vst.msk [vmem:[#allocation2 + $0x28] sm:$0xff] %vm270_vm0, %v2006_v24 }
 0x132   : > { %v1481_v31 = vpop.f32.mrb[12].mxu0  ;;  %v2790_v32 = vadd.f32 %v2789_v28, %v2788_v16  ;;  %v2595_v33 = vadd.f32 %v2594_v30, %v2593_v25  ;;  %v2725_v34 = vmul.f32 %v2136_v26, %v2136_v26  ;;  %v1770_v37 = vpop.f32.mrb[12].mxu1  ;;  %v344_v16 = vld [vmem:[#allocation2 + $0x48] sm:$0xff] }
 0x133   : > { %v1483_v38 = vpop.f32.mrb[13].mxu0  ;;  %2527 = vst.msk [vmem:[%s4078_s30 + $0x8] sm:$0xf] %vm2524_vm1, %v3285_v27  ;;  %v3286_v40 = vpack.c.bf16 %v2207_v29, %v2207_v29  ;;  %v1771_v41 = vadd.f32 %v1770_v37, %v1481_v31  ;;  %v1772_v42 = vpop.f32.mrb[13].mxu1 }
 0x134   : > { %v1484_v43 = vpop.f32.mrb[14].mxu0  ;;  %v2791_v46 = vsel %vm270_vm0, %v2725_v34, 0.0  ;;  %v1773_v48 = vpop.f32.mrb[14].mxu1 }
 0x135   : > { %v1486_v49 = vpop.f32.mrb[15].mxu0  ;;  %2528 = vst.msk [vmem:[%s4078_s30 + $0xc] sm:$0xf] %vm2524_vm1, %v3286_v40  ;;  %v2792_v51 = vadd.f32 %v2791_v46, %v2790_v32  ;;  %v2007_v52 = vadd.f32 %v1771_v41, %v341_v35  ;;  %v1774_v53 = vadd.f32 %v1773_v48, %v1484_v43  ;;  %v1775_v54 = vpop.f32.mrb[15].mxu1 }
 0x136   : > { %v2137_v55 = vld [vmem:[#allocation2 + $0x20] sm:$0xff] }
 0x137   : > { %1696 = vmatmul.mubr.bf16.gmra.mrb[120].mxu0 %v3589_v39  ;;  %v2208_v56 = vadd.f32 %v4066_v36, %v2137_v55  ;;  %v2596_v57 = vsel %vm270_vm0, %v2137_v55, 0.0  ;;  %v2726_v58 = vmul.f32 %v2137_v55, %v2137_v55  ;;  %2072 = vst.msk [vmem:[#allocation2 + $0x30] sm:$0xff] %vm270_vm0, %v2007_v52  ;;  %v2008_v59 = vadd.f32 %v1774_v53, %v342_v47  ;;  %v345_v39 = vld [vmem:[#allocation2 + $0x50] sm:$0xff]  ;;  %v346_v47 = vld [vmem:[#allocation2 + $0x58] sm:$0xff] }
 0x138   : > { %1985 = vmatmul.mubr.bf16.gmra.mrb[120].mxu1 %v3590_v44  ;;  %1703 = vmatprep.mubr.bf16.mxu0 %v3591_v45  ;;  %v2597_v60 = vadd.f32 %v2596_v57, %v2595_v33  ;;  %v2138_v61 = vld [vmem:[#allocation2 + $0x28] sm:$0xff] }
 0x139   : > { %1992 = vmatprep.mubr.bf16.mxu1 %v3593_v50  ;;  %v3287_v62 = vpack.c.bf16 %v2208_v56, %v2208_v56  ;;  %v2793_v63 = vsel %vm270_vm0, %v2726_v58, 0.0  ;;  %v2209_v0 = vadd.f32 %v4066_v36, %v2138_v61  ;;  %v2598_v1 = vsel %vm270_vm0, %v2138_v61, 0.0  ;;  %2073 = vst.msk [vmem:[#allocation2 + $0x38] sm:$0xff] %vm270_vm0, %v2008_v59 }
 0x13a   : > { %v1489_v2 = vpop.f32.mrb[16].mxu0  ;;  %v2794_v3 = vadd.f32 %v2793_v63, %v2792_v51  ;;  %v2599_v4 = vadd.f32 %v2598_v1, %v2597_v60  ;;  %v2727_v5 = vmul.f32 %v2138_v61, %v2138_v61  ;;  %v1778_v7 = vpop.f32.mrb[16].mxu1 }
 0x13b   : > { %v1491_v8 = vpop.f32.mrb[17].mxu0  ;;  %2529 = vst.msk [vmem:[%s4078_s30 + $0x10] sm:$0xf] %vm2524_vm1, %v3287_v62  ;;  %v3288_v10 = vpack.c.bf16 %v2209_v0, %v2209_v0  ;;  %v1779_v11 = vadd.f32 %v1778_v7, %v1489_v2  ;;  %v1780_v12 = vpop.f32.mrb[17].mxu1 }
 0x13c   : > { %v1492_v13 = vpop.f32.mrb[18].mxu0  ;;  %v2795_v15 = vsel %vm270_vm0, %v2727_v5, 0.0  ;;  %v1781_v17 = vpop.f32.mrb[18].mxu1  ;;  %v347_v5 = vld [vmem:[#allocation2 + $0x60] sm:$0xff] }
 0x13d   : > { %v1494_v18 = vpop.f32.mrb[19].mxu0  ;;  %2530 = vst.msk [vmem:[%s4078_s30 + $0x14] sm:$0xf] %vm2524_vm1, %v3288_v10  ;;  %v2796_v19 = vadd.f32 %v2795_v15, %v2794_v3  ;;  %v2009_v20 = vadd.f32 %v1779_v11, %v343_v6  ;;  %v1782_v21 = vadd.f32 %v1781_v17, %v1492_v13  ;;  %v1783_v22 = vpop.f32.mrb[19].mxu1  ;;  %v348_v13 = vld [vmem:[#allocation2 + $0x68] sm:$0xff] }
 0x13e   : > { %v2139_v23 = vld [vmem:[#allocation2 + $0x30] sm:$0xff] }
 0x13f   : > { %1704 = vmatmul.mubr.bf16.gmra.mrb[124].mxu0 %v3595_v9  ;;  %v2210_v24 = vadd.f32 %v4066_v36, %v2139_v23  ;;  %v2600_v25 = vsel %vm270_vm0, %v2139_v23, 0.0  ;;  %v2728_v26 = vmul.f32 %v2139_v23, %v2139_v23  ;;  %2074 = vst.msk [vmem:[#allocation2 + $0x40] sm:$0xff] %vm270_vm0, %v2009_v20  ;;  %v2010_v27 = vadd.f32 %v1782_v21, %v344_v16 }
 0x140   : > { %1993 = vmatmul.mubr.bf16.gmra.mrb[124].mxu1 %v3596_v14  ;;  %v2601_v28 = vadd.f32 %v2600_v25, %v2599_v4  ;;  %v2140_v29 = vld [vmem:[#allocation2 + $0x38] sm:$0xff] }
 0x141   : > { %v3289_v30 = vpack.c.bf16 %v2210_v24, %v2210_v24  ;;  %v2797_v31 = vsel %vm270_vm0, %v2728_v26, 0.0  ;;  %v2211_v32 = vadd.f32 %v4066_v36, %v2140_v29  ;;  %v2602_v33 = vsel %vm270_vm0, %v2140_v29, 0.0  ;;  %2075 = vst.msk [vmem:[#allocation2 + $0x48] sm:$0xff] %vm270_vm0, %v2010_v27 }
 0x142   : > { %v1497_v34 = vpop.f32.mrb[20].mxu0  ;;  %v2798_v35 = vadd.f32 %v2797_v31, %v2796_v19  ;;  %v2603_v37 = vadd.f32 %v2602_v33, %v2601_v28  ;;  %v2729_v38 = vmul.f32 %v2140_v29, %v2140_v29  ;;  %v1786_v40 = vpop.f32.mrb[20].mxu1 }
 0x143   : > { %v1499_v41 = vpop.f32.mrb[21].mxu0  ;;  %2531 = vst.msk [vmem:[%s4078_s30 + $0x18] sm:$0xf] %vm2524_vm1, %v3289_v30  ;;  %v3290_v42 = vpack.c.bf16 %v2211_v32, %v2211_v32  ;;  %v1787_v43 = vadd.f32 %v1786_v40, %v1497_v34  ;;  %v1788_v44 = vpop.f32.mrb[21].mxu1 }
 0x144   : > { %v1500_v45 = vpop.f32.mrb[22].mxu0  ;;  %v2799_v46 = vsel %vm270_vm0, %v2729_v38, 0.0  ;;  %v1789_v48 = vpop.f32.mrb[22].mxu1  ;;  %v350_v44 = vld [vmem:[#allocation2 + $0x78] sm:$0xff] }
 0x145   : > { %v1502_v49 = vpop.f32.mrb[23].mxu0  ;;  %2532 = vst.msk [vmem:[%s4078_s30 + $0x1c] sm:$0xf] %vm2524_vm1, %v3290_v42  ;;  %v2800_v50 = vadd.f32 %v2799_v46, %v2798_v35  ;;  %v2011_v51 = vadd.f32 %v1787_v43, %v345_v39  ;;  %v1790_v52 = vadd.f32 %v1789_v48, %v1500_v45  ;;  %v1791_v53 = vpop.f32.mrb[23].mxu1  ;;  %v349_v35 = vld [vmem:[#allocation2 + $0x70] sm:$0xff] }
 0x146   : > { %v2141_v54 = vld [vmem:[#allocation2 + $0x40] sm:$0xff] }
 0x147   : > { %v2212_v55 = vadd.f32 %v4066_v36, %v2141_v54  ;;  %v2604_v56 = vsel %vm270_vm0, %v2141_v54, 0.0  ;;  %v2730_v57 = vmul.f32 %v2141_v54, %v2141_v54  ;;  %2076 = vst.msk [vmem:[#allocation2 + $0x50] sm:$0xff] %vm270_vm0, %v2011_v51  ;;  %v2012_v58 = vadd.f32 %v1790_v52, %v346_v47 }
 0x148   : > { %v2605_v59 = vadd.f32 %v2604_v56, %v2603_v37  ;;  %v2142_v60 = vld [vmem:[#allocation2 + $0x48] sm:$0xff] }
 0x149   : > { %v3291_v61 = vpack.c.bf16 %v2212_v55, %v2212_v55  ;;  %v2801_v62 = vsel %vm270_vm0, %v2730_v57, 0.0  ;;  %v2213_v63 = vadd.f32 %v4066_v36, %v2142_v60  ;;  %v2606_v0 = vsel %vm270_vm0, %v2142_v60, 0.0  ;;  %2077 = vst.msk [vmem:[#allocation2 + $0x58] sm:$0xff] %vm270_vm0, %v2012_v58 }
 0x14a   : > { %v1505_v1 = vpop.f32.mrb[24].mxu0  ;;  %v2802_v2 = vadd.f32 %v2801_v62, %v2800_v50  ;;  %v2607_v3 = vadd.f32 %v2606_v0, %v2605_v59  ;;  %v2731_v4 = vmul.f32 %v2142_v60, %v2142_v60  ;;  %v1794_v6 = vpop.f32.mrb[24].mxu1 }
 0x14b   : > { %v1507_v7 = vpop.f32.mrb[25].mxu0  ;;  %2533 = vst.msk [vmem:[%s4078_s30 + $0x20] sm:$0xf] %vm2524_vm1, %v3291_v61  ;;  %v3292_v8 = vpack.c.bf16 %v2213_v63, %v2213_v63  ;;  %v1795_v9 = vadd.f32 %v1794_v6, %v1505_v1  ;;  %v1796_v10 = vpop.f32.mrb[25].mxu1 }
 0x14c   : > { %v1508_v11 = vpop.f32.mrb[26].mxu0  ;;  %v2803_v12 = vsel %vm270_vm0, %v2731_v4, 0.0  ;;  %v1797_v14 = vpop.f32.mrb[26].mxu1  ;;  %v352_v10 = vld [vmem:[#allocation2 + $0x88] sm:$0xff] }
 0x14d   : > { %v1510_v15 = vpop.f32.mrb[27].mxu0  ;;  %2534 = vst.msk [vmem:[%s4078_s30 + $0x24] sm:$0xf] %vm2524_vm1, %v3292_v8  ;;  %v2804_v16 = vadd.f32 %v2803_v12, %v2802_v2  ;;  %v2013_v17 = vadd.f32 %v1795_v9, %v347_v5  ;;  %v1798_v18 = vadd.f32 %v1797_v14, %v1508_v11  ;;  %v1799_v19 = vpop.f32.mrb[27].mxu1  ;;  %v351_v2 = vld [vmem:[#allocation2 + $0x80] sm:$0xff] }
 0x14e   : > { %v2143_v20 = vld [vmem:[#allocation2 + $0x50] sm:$0xff] }
 0x14f   : > { %v2214_v21 = vadd.f32 %v4066_v36, %v2143_v20  ;;  %v2608_v22 = vsel %vm270_vm0, %v2143_v20, 0.0  ;;  %v2732_v23 = vmul.f32 %v2143_v20, %v2143_v20  ;;  %2078 = vst.msk [vmem:[#allocation2 + $0x60] sm:$0xff] %vm270_vm0, %v2013_v17  ;;  %v2014_v24 = vadd.f32 %v1798_v18, %v348_v13 }
 0x150   : > { %v2609_v25 = vadd.f32 %v2608_v22, %v2607_v3  ;;  %v2144_v26 = vld [vmem:[#allocation2 + $0x58] sm:$0xff] }
 0x151   : > { %v3293_v27 = vpack.c.bf16 %v2214_v21, %v2214_v21  ;;  %v2805_v28 = vsel %vm270_vm0, %v2732_v23, 0.0  ;;  %v2215_v29 = vadd.f32 %v4066_v36, %v2144_v26  ;;  %v2610_v30 = vsel %vm270_vm0, %v2144_v26, 0.0  ;;  %2079 = vst.msk [vmem:[#allocation2 + $0x68] sm:$0xff] %vm270_vm0, %v2014_v24 }
 0x152   : > { %v1513_v31 = vpop.f32.mrb[28].mxu0  ;;  %v2806_v32 = vadd.f32 %v2805_v28, %v2804_v16  ;;  %v2611_v33 = vadd.f32 %v2610_v30, %v2609_v25  ;;  %v2733_v34 = vmul.f32 %v2144_v26, %v2144_v26  ;;  %v1802_v37 = vpop.f32.mrb[28].mxu1 }
 0x153   : > { %v1515_v38 = vpop.f32.mrb[29].mxu0  ;;  %2535 = vst.msk [vmem:[%s4078_s30 + $0x28] sm:$0xf] %vm2524_vm1, %v3293_v27  ;;  %v3294_v39 = vpack.c.bf16 %v2215_v29, %v2215_v29  ;;  %v1803_v40 = vadd.f32 %v1802_v37, %v1513_v31  ;;  %v1804_v41 = vpop.f32.mrb[29].mxu1 }
 0x154   : > { %v1516_v42 = vpop.f32.mrb[30].mxu0  ;;  %v2807_v43 = vsel %vm270_vm0, %v2733_v34, 0.0  ;;  %v1805_v45 = vpop.f32.mrb[30].mxu1  ;;  %v354_v41 = vld [vmem:[#allocation2 + $0x98] sm:$0xff] }
 0x155   : > { %v1518_v46 = vpop.f32.mrb[31].mxu0  ;;  %2536 = vst.msk [vmem:[%s4078_s30 + $0x2c] sm:$0xf] %vm2524_vm1, %v3294_v39  ;;  %v2808_v47 = vadd.f32 %v2807_v43, %v2806_v32  ;;  %v2015_v48 = vadd.f32 %v1803_v40, %v349_v35  ;;  %v1806_v49 = vadd.f32 %v1805_v45, %v1516_v42  ;;  %v1807_v50 = vpop.f32.mrb[31].mxu1  ;;  %v353_v32 = vld [vmem:[#allocation2 + $0x90] sm:$0xff] }
 0x156   : > { %v2145_v51 = vld [vmem:[#allocation2 + $0x60] sm:$0xff] }
 0x157   : > { %v2216_v52 = vadd.f32 %v4066_v36, %v2145_v51  ;;  %v2612_v53 = vsel %vm270_vm0, %v2145_v51, 0.0  ;;  %v2734_v54 = vmul.f32 %v2145_v51, %v2145_v51  ;;  %2080 = vst.msk [vmem:[#allocation2 + $0x70] sm:$0xff] %vm270_vm0, %v2015_v48  ;;  %v2016_v55 = vadd.f32 %v1806_v49, %v350_v44 }
 0x158   : > { %v2613_v56 = vadd.f32 %v2612_v53, %v2611_v33  ;;  %v2146_v57 = vld [vmem:[#allocation2 + $0x68] sm:$0xff] }
 0x159   : > { %v3295_v58 = vpack.c.bf16 %v2216_v52, %v2216_v52  ;;  %v2809_v59 = vsel %vm270_vm0, %v2734_v54, 0.0  ;;  %v2217_v60 = vadd.f32 %v4066_v36, %v2146_v57  ;;  %v2614_v61 = vsel %vm270_vm0, %v2146_v57, 0.0  ;;  %2081 = vst.msk [vmem:[#allocation2 + $0x78] sm:$0xff] %vm270_vm0, %v2016_v55 }
 0x15a   : > { %v1521_v62 = vpop.f32.mrb[32].mxu0  ;;  %v2810_v63 = vadd.f32 %v2809_v59, %v2808_v47  ;;  %v2615_v0 = vadd.f32 %v2614_v61, %v2613_v56  ;;  %v2735_v1 = vmul.f32 %v2146_v57, %v2146_v57  ;;  %v1810_v3 = vpop.f32.mrb[32].mxu1 }
 0x15b   : > { %v1523_v4 = vpop.f32.mrb[33].mxu0  ;;  %2537 = vst.msk [vmem:[%s4078_s30 + $0x30] sm:$0xf] %vm2524_vm1, %v3295_v58  ;;  %v3296_v5 = vpack.c.bf16 %v2217_v60, %v2217_v60  ;;  %v1811_v6 = vadd.f32 %v1810_v3, %v1521_v62  ;;  %v1812_v7 = vpop.f32.mrb[33].mxu1 }
 0x15c   : > { %v1524_v8 = vpop.f32.mrb[34].mxu0  ;;  %v2811_v9 = vsel %vm270_vm0, %v2735_v1, 0.0  ;;  %v1813_v11 = vpop.f32.mrb[34].mxu1  ;;  %v356_v7 = vld [vmem:[#allocation2 + $0xa8] sm:$0xff] }
 0x15d   : > { %v1526_v12 = vpop.f32.mrb[35].mxu0  ;;  %2538 = vst.msk [vmem:[%s4078_s30 + $0x34] sm:$0xf] %vm2524_vm1, %v3296_v5  ;;  %v2812_v13 = vadd.f32 %v2811_v9, %v2810_v63  ;;  %v2017_v14 = vadd.f32 %v1811_v6, %v351_v2  ;;  %v1814_v15 = vadd.f32 %v1813_v11, %v1524_v8  ;;  %v1815_v16 = vpop.f32.mrb[35].mxu1  ;;  %v355_v63 = vld [vmem:[#allocation2 + $0xa0] sm:$0xff] }
 0x15e   : > { %v2147_v17 = vld [vmem:[#allocation2 + $0x70] sm:$0xff] }
 0x15f   : > { %v2218_v18 = vadd.f32 %v4066_v36, %v2147_v17  ;;  %v2616_v19 = vsel %vm270_vm0, %v2147_v17, 0.0  ;;  %v2736_v20 = vmul.f32 %v2147_v17, %v2147_v17  ;;  %2082 = vst.msk [vmem:[#allocation2 + $0x80] sm:$0xff] %vm270_vm0, %v2017_v14  ;;  %v2018_v21 = vadd.f32 %v1814_v15, %v352_v10 }
 0x160   : > { %v2617_v22 = vadd.f32 %v2616_v19, %v2615_v0  ;;  %v2148_v23 = vld [vmem:[#allocation2 + $0x78] sm:$0xff] }
 0x161   : > { %v3297_v24 = vpack.c.bf16 %v2218_v18, %v2218_v18  ;;  %v2813_v25 = vsel %vm270_vm0, %v2736_v20, 0.0  ;;  %v2219_v26 = vadd.f32 %v4066_v36, %v2148_v23  ;;  %v2618_v27 = vsel %vm270_vm0, %v2148_v23, 0.0  ;;  %2083 = vst.msk [vmem:[#allocation2 + $0x88] sm:$0xff] %vm270_vm0, %v2018_v21 }
 0x162   : > { %v1529_v28 = vpop.f32.mrb[36].mxu0  ;;  %v2814_v29 = vadd.f32 %v2813_v25, %v2812_v13  ;;  %v2619_v30 = vadd.f32 %v2618_v27, %v2617_v22  ;;  %v2737_v31 = vmul.f32 %v2148_v23, %v2148_v23  ;;  %v1818_v33 = vpop.f32.mrb[36].mxu1 }
 0x163   : > { %v1531_v34 = vpop.f32.mrb[37].mxu0  ;;  %2539 = vst.msk [vmem:[%s4078_s30 + $0x38] sm:$0xf] %vm2524_vm1, %v3297_v24  ;;  %v3298_v35 = vpack.c.bf16 %v2219_v26, %v2219_v26  ;;  %v1819_v37 = vadd.f32 %v1818_v33, %v1529_v28  ;;  %v1820_v38 = vpop.f32.mrb[37].mxu1 }
 0x164   : > { %v1532_v39 = vpop.f32.mrb[38].mxu0  ;;  %v2815_v40 = vsel %vm270_vm0, %v2737_v31, 0.0  ;;  %v1821_v42 = vpop.f32.mrb[38].mxu1  ;;  %v358_v38 = vld [vmem:[#allocation2 + $0xb8] sm:$0xff] }
 0x165   : > { %v1534_v43 = vpop.f32.mrb[39].mxu0  ;;  %2540 = vst.msk [vmem:[%s4078_s30 + $0x3c] sm:$0xf] %vm2524_vm1, %v3298_v35  ;;  %v2816_v44 = vadd.f32 %v2815_v40, %v2814_v29  ;;  %v2019_v45 = vadd.f32 %v1819_v37, %v353_v32  ;;  %v1822_v46 = vadd.f32 %v1821_v42, %v1532_v39  ;;  %v1823_v47 = vpop.f32.mrb[39].mxu1  ;;  %v357_v29 = vld [vmem:[#allocation2 + $0xb0] sm:$0xff] }
 0x166   : > { %v2149_v48 = vld [vmem:[#allocation2 + $0x80] sm:$0xff] }
 0x167   : > { %v2220_v49 = vadd.f32 %v4066_v36, %v2149_v48  ;;  %v2620_v50 = vsel %vm270_vm0, %v2149_v48, 0.0  ;;  %v2738_v51 = vmul.f32 %v2149_v48, %v2149_v48  ;;  %2084 = vst.msk [vmem:[#allocation2 + $0x90] sm:$0xff] %vm270_vm0, %v2019_v45  ;;  %v2020_v52 = vadd.f32 %v1822_v46, %v354_v41 }
 0x168   : > { %v2621_v53 = vadd.f32 %v2620_v50, %v2619_v30  ;;  %v2150_v54 = vld [vmem:[#allocation2 + $0x88] sm:$0xff] }
 0x169   : > { %v3299_v55 = vpack.c.bf16 %v2220_v49, %v2220_v49  ;;  %v2817_v56 = vsel %vm270_vm0, %v2738_v51, 0.0  ;;  %v2221_v57 = vadd.f32 %v4066_v36, %v2150_v54  ;;  %v2622_v58 = vsel %vm270_vm0, %v2150_v54, 0.0  ;;  %2085 = vst.msk [vmem:[#allocation2 + $0x98] sm:$0xff] %vm270_vm0, %v2020_v52 }
 0x16a   : > { %v1537_v59 = vpop.f32.mrb[40].mxu0  ;;  %v2818_v60 = vadd.f32 %v2817_v56, %v2816_v44  ;;  %v2623_v61 = vadd.f32 %v2622_v58, %v2621_v53  ;;  %v2739_v62 = vmul.f32 %v2150_v54, %v2150_v54  ;;  %v1826_v0 = vpop.f32.mrb[40].mxu1 }
 0x16b   : > { %v1539_v1 = vpop.f32.mrb[41].mxu0  ;;  %2541 = vst.msk [vmem:[%s4078_s30 + $0x40] sm:$0xf] %vm2524_vm1, %v3299_v55  ;;  %v3300_v2 = vpack.c.bf16 %v2221_v57, %v2221_v57  ;;  %v1827_v3 = vadd.f32 %v1826_v0, %v1537_v59  ;;  %v1828_v4 = vpop.f32.mrb[41].mxu1 }
 0x16c   : > { %v1540_v5 = vpop.f32.mrb[42].mxu0  ;;  %v2819_v6 = vsel %vm270_vm0, %v2739_v62, 0.0  ;;  %v1829_v8 = vpop.f32.mrb[42].mxu1  ;;  %v360_v4 = vld [vmem:[#allocation2 + $0xc8] sm:$0xff] }
 0x16d   : > { %v1542_v9 = vpop.f32.mrb[43].mxu0  ;;  %2542 = vst.msk [vmem:[%s4078_s30 + $0x44] sm:$0xf] %vm2524_vm1, %v3300_v2  ;;  %v2820_v10 = vadd.f32 %v2819_v6, %v2818_v60  ;;  %v2021_v11 = vadd.f32 %v1827_v3, %v355_v63  ;;  %v1830_v12 = vadd.f32 %v1829_v8, %v1540_v5  ;;  %v1831_v13 = vpop.f32.mrb[43].mxu1  ;;  %v359_v60 = vld [vmem:[#allocation2 + $0xc0] sm:$0xff] }
 0x16e   : > { %v2151_v14 = vld [vmem:[#allocation2 + $0x90] sm:$0xff] }
 0x16f   : > { %v2222_v15 = vadd.f32 %v4066_v36, %v2151_v14  ;;  %v2624_v16 = vsel %vm270_vm0, %v2151_v14, 0.0  ;;  %v2740_v17 = vmul.f32 %v2151_v14, %v2151_v14  ;;  %2086 = vst.msk [vmem:[#allocation2 + $0xa0] sm:$0xff] %vm270_vm0, %v2021_v11  ;;  %v2022_v18 = vadd.f32 %v1830_v12, %v356_v7 }
 0x170   : > { %v2625_v19 = vadd.f32 %v2624_v16, %v2623_v61  ;;  %v2152_v20 = vld [vmem:[#allocation2 + $0x98] sm:$0xff] }
 0x171   : > { %v3301_v21 = vpack.c.bf16 %v2222_v15, %v2222_v15  ;;  %v2821_v22 = vsel %vm270_vm0, %v2740_v17, 0.0  ;;  %v2223_v23 = vadd.f32 %v4066_v36, %v2152_v20  ;;  %v2626_v24 = vsel %vm270_vm0, %v2152_v20, 0.0  ;;  %2087 = vst.msk [vmem:[#allocation2 + $0xa8] sm:$0xff] %vm270_vm0, %v2022_v18 }
 0x172   : > { %v1545_v25 = vpop.f32.mrb[44].mxu0  ;;  %v2822_v26 = vadd.f32 %v2821_v22, %v2820_v10  ;;  %v2627_v27 = vadd.f32 %v2626_v24, %v2625_v19  ;;  %v2741_v28 = vmul.f32 %v2152_v20, %v2152_v20  ;;  %v1834_v30 = vpop.f32.mrb[44].mxu1 }
 0x173   : > { %v1547_v31 = vpop.f32.mrb[45].mxu0  ;;  %2543 = vst.msk [vmem:[%s4078_s30 + $0x48] sm:$0xf] %vm2524_vm1, %v3301_v21  ;;  %v3302_v32 = vpack.c.bf16 %v2223_v23, %v2223_v23  ;;  %v1835_v33 = vadd.f32 %v1834_v30, %v1545_v25  ;;  %v1836_v34 = vpop.f32.mrb[45].mxu1 }
 0x174   : > { %v1548_v35 = vpop.f32.mrb[46].mxu0  ;;  %v2823_v37 = vsel %vm270_vm0, %v2741_v28, 0.0  ;;  %v1837_v39 = vpop.f32.mrb[46].mxu1  ;;  %v362_v34 = vld [vmem:[#allocation2 + $0xd8] sm:$0xff] }
 0x175   : > { %v1550_v40 = vpop.f32.mrb[47].mxu0  ;;  %2544 = vst.msk [vmem:[%s4078_s30 + $0x4c] sm:$0xf] %vm2524_vm1, %v3302_v32  ;;  %v2824_v41 = vadd.f32 %v2823_v37, %v2822_v26  ;;  %v2023_v42 = vadd.f32 %v1835_v33, %v357_v29  ;;  %v1838_v43 = vadd.f32 %v1837_v39, %v1548_v35  ;;  %v1839_v44 = vpop.f32.mrb[47].mxu1  ;;  %v361_v26 = vld [vmem:[#allocation2 + $0xd0] sm:$0xff] }
 0x176   : > { %v2153_v45 = vld [vmem:[#allocation2 + $0xa0] sm:$0xff] }
 0x177   : > { %v2224_v46 = vadd.f32 %v4066_v36, %v2153_v45  ;;  %v2628_v47 = vsel %vm270_vm0, %v2153_v45, 0.0  ;;  %v2742_v48 = vmul.f32 %v2153_v45, %v2153_v45  ;;  %2088 = vst.msk [vmem:[#allocation2 + $0xb0] sm:$0xff] %vm270_vm0, %v2023_v42  ;;  %v2024_v49 = vadd.f32 %v1838_v43, %v358_v38 }
 0x178   : > { %v2629_v50 = vadd.f32 %v2628_v47, %v2627_v27  ;;  %v2154_v51 = vld [vmem:[#allocation2 + $0xa8] sm:$0xff] }
 0x179   : > { %v3303_v52 = vpack.c.bf16 %v2224_v46, %v2224_v46  ;;  %v2825_v53 = vsel %vm270_vm0, %v2742_v48, 0.0  ;;  %v2225_v54 = vadd.f32 %v4066_v36, %v2154_v51  ;;  %v2630_v55 = vsel %vm270_vm0, %v2154_v51, 0.0  ;;  %2089 = vst.msk [vmem:[#allocation2 + $0xb8] sm:$0xff] %vm270_vm0, %v2024_v49 }
 0x17a   : > { %v1553_v56 = vpop.f32.mrb[48].mxu0  ;;  %v2826_v57 = vadd.f32 %v2825_v53, %v2824_v41  ;;  %v2631_v58 = vadd.f32 %v2630_v55, %v2629_v50  ;;  %v2743_v59 = vmul.f32 %v2154_v51, %v2154_v51  ;;  %v1842_v61 = vpop.f32.mrb[48].mxu1 }
 0x17b   : > { %v1555_v62 = vpop.f32.mrb[49].mxu0  ;;  %2545 = vst.msk [vmem:[%s4078_s30 + $0x50] sm:$0xf] %vm2524_vm1, %v3303_v52  ;;  %v3304_v63 = vpack.c.bf16 %v2225_v54, %v2225_v54  ;;  %v1843_v0 = vadd.f32 %v1842_v61, %v1553_v56  ;;  %v1844_v1 = vpop.f32.mrb[49].mxu1 }
 0x17c   : > { %v1556_v2 = vpop.f32.mrb[50].mxu0  ;;  %v2827_v3 = vsel %vm270_vm0, %v2743_v59, 0.0  ;;  %v1845_v5 = vpop.f32.mrb[50].mxu1  ;;  %v364_v1 = vld [vmem:[#allocation2 + $0xe8] sm:$0xff] }
 0x17d   : > { %v1558_v6 = vpop.f32.mrb[51].mxu0  ;;  %2546 = vst.msk [vmem:[%s4078_s30 + $0x54] sm:$0xf] %vm2524_vm1, %v3304_v63  ;;  %v2828_v7 = vadd.f32 %v2827_v3, %v2826_v57  ;;  %v2025_v8 = vadd.f32 %v1843_v0, %v359_v60  ;;  %v1846_v9 = vadd.f32 %v1845_v5, %v1556_v2  ;;  %v1847_v10 = vpop.f32.mrb[51].mxu1  ;;  %v363_v57 = vld [vmem:[#allocation2 + $0xe0] sm:$0xff] }
 0x17e   : > { %v2155_v11 = vld [vmem:[#allocation2 + $0xb0] sm:$0xff] }
 0x17f   : > { %v2226_v12 = vadd.f32 %v4066_v36, %v2155_v11  ;;  %v2632_v13 = vsel %vm270_vm0, %v2155_v11, 0.0  ;;  %v2744_v14 = vmul.f32 %v2155_v11, %v2155_v11  ;;  %2090 = vst.msk [vmem:[#allocation2 + $0xc0] sm:$0xff] %vm270_vm0, %v2025_v8  ;;  %v2026_v15 = vadd.f32 %v1846_v9, %v360_v4 }
 0x180   : > { %v2633_v16 = vadd.f32 %v2632_v13, %v2631_v58  ;;  %v2156_v17 = vld [vmem:[#allocation2 + $0xb8] sm:$0xff] }
 0x181   : > { %v3305_v18 = vpack.c.bf16 %v2226_v12, %v2226_v12  ;;  %v2829_v19 = vsel %vm270_vm0, %v2744_v14, 0.0  ;;  %v2227_v20 = vadd.f32 %v4066_v36, %v2156_v17  ;;  %v2634_v21 = vsel %vm270_vm0, %v2156_v17, 0.0  ;;  %2091 = vst.msk [vmem:[#allocation2 + $0xc8] sm:$0xff] %vm270_vm0, %v2026_v15 }
 0x182   : > { %v1561_v22 = vpop.f32.mrb[52].mxu0  ;;  %v2830_v23 = vadd.f32 %v2829_v19, %v2828_v7  ;;  %v2635_v24 = vadd.f32 %v2634_v21, %v2633_v16  ;;  %v2745_v25 = vmul.f32 %v2156_v17, %v2156_v17  ;;  %v1850_v27 = vpop.f32.mrb[52].mxu1 }
 0x183   : > { %v1563_v28 = vpop.f32.mrb[53].mxu0  ;;  %2547 = vst.msk [vmem:[%s4078_s30 + $0x58] sm:$0xf] %vm2524_vm1, %v3305_v18  ;;  %v3306_v29 = vpack.c.bf16 %v2227_v20, %v2227_v20  ;;  %v1851_v30 = vadd.f32 %v1850_v27, %v1561_v22  ;;  %v1852_v31 = vpop.f32.mrb[53].mxu1 }
 0x184   : > { %v1564_v32 = vpop.f32.mrb[54].mxu0  ;;  %v2831_v33 = vsel %vm270_vm0, %v2745_v25, 0.0  ;;  %v1853_v35 = vpop.f32.mrb[54].mxu1 }
 0x185   : > { %v1566_v37 = vpop.f32.mrb[55].mxu0  ;;  %2548 = vst.msk [vmem:[%s4078_s30 + $0x5c] sm:$0xf] %vm2524_vm1, %v3306_v29  ;;  %v2832_v38 = vadd.f32 %v2831_v33, %v2830_v23  ;;  %v2027_v39 = vadd.f32 %v1851_v30, %v361_v26  ;;  %v1854_v40 = vadd.f32 %v1853_v35, %v1564_v32  ;;  %v1855_v41 = vpop.f32.mrb[55].mxu1  ;;  %v365_v23 = vld [vmem:[#allocation2 + $0xf0] sm:$0xff]  ;;  %v366_v30 = vld [vmem:[#allocation2 + $0xf8] sm:$0xff] }
 0x186   : > { %v2157_v42 = vld [vmem:[#allocation2 + $0xc0] sm:$0xff] }
 0x187   : > { %v2228_v43 = vadd.f32 %v4066_v36, %v2157_v42  ;;  %v2636_v44 = vsel %vm270_vm0, %v2157_v42, 0.0  ;;  %v2746_v45 = vmul.f32 %v2157_v42, %v2157_v42  ;;  %2092 = vst.msk [vmem:[#allocation2 + $0xd0] sm:$0xff] %vm270_vm0, %v2027_v39  ;;  %v2028_v46 = vadd.f32 %v1854_v40, %v362_v34  ;;  %v4259_v39 = vld [vmem:[%s4598_s2] ss:$0 sm:$0xff] }
 0x188   : > { %v2637_v47 = vadd.f32 %v2636_v44, %v2635_v24  ;;  %v2158_v48 = vld [vmem:[#allocation2 + $0xc8] sm:$0xff] }
 0x189   : > { %v3307_v49 = vpack.c.bf16 %v2228_v43, %v2228_v43  ;;  %v2833_v50 = vsel %vm270_vm0, %v2746_v45, 0.0  ;;  %v2229_v51 = vadd.f32 %v4066_v36, %v2158_v48  ;;  %v2638_v52 = vsel %vm270_vm0, %v2158_v48, 0.0  ;;  %2093 = vst.msk [vmem:[#allocation2 + $0xd8] sm:$0xff] %vm270_vm0, %v2028_v46 }
 0x18a   : > { %v1569_v53 = vpop.f32.mrb[56].mxu0  ;;  %v2834_v54 = vadd.f32 %v2833_v50, %v2832_v38  ;;  %v2639_v55 = vadd.f32 %v2638_v52, %v2637_v47  ;;  %v2747_v56 = vmul.f32 %v2158_v48, %v2158_v48  ;;  %v1858_v58 = vpop.f32.mrb[56].mxu1 }
 0x18b   : > { %v1571_v59 = vpop.f32.mrb[57].mxu0  ;;  %2549 = vst.msk [vmem:[%s4078_s30 + $0x60] sm:$0xf] %vm2524_vm1, %v3307_v49  ;;  %v3308_v60 = vpack.c.bf16 %v2229_v51, %v2229_v51  ;;  %v1859_v61 = vadd.f32 %v1858_v58, %v1569_v53  ;;  %v1860_v62 = vpop.f32.mrb[57].mxu1 }
 0x18c   : > { %v1572_v63 = vpop.f32.mrb[58].mxu0  ;;  %v2835_v0 = vsel %vm270_vm0, %v2747_v56, 0.0  ;;  %v1861_v2 = vpop.f32.mrb[58].mxu1  ;;  %v368_v62 = vld [vmem:[#allocation2 + $0x108] sm:$0xff] }
 0x18d   : > { %v1574_v3 = vpop.f32.mrb[59].mxu0  ;;  %2550 = vst.msk [vmem:[%s4078_s30 + $0x64] sm:$0xf] %vm2524_vm1, %v3308_v60  ;;  %v2836_v4 = vadd.f32 %v2835_v0, %v2834_v54  ;;  %v2029_v5 = vadd.f32 %v1859_v61, %v363_v57  ;;  %v1862_v6 = vadd.f32 %v1861_v2, %v1572_v63  ;;  %v1863_v7 = vpop.f32.mrb[59].mxu1  ;;  %v367_v54 = vld [vmem:[#allocation2 + $0x100] sm:$0xff] }
 0x18e   : > { %v2159_v8 = vld [vmem:[#allocation2 + $0xd0] sm:$0xff] }
 0x18f   : > { %v2230_v9 = vadd.f32 %v4066_v36, %v2159_v8  ;;  %v2640_v10 = vsel %vm270_vm0, %v2159_v8, 0.0  ;;  %v2748_v11 = vmul.f32 %v2159_v8, %v2159_v8  ;;  %2094 = vst.msk [vmem:[#allocation2 + $0xe0] sm:$0xff] %vm270_vm0, %v2029_v5  ;;  %v2030_v12 = vadd.f32 %v1862_v6, %v364_v1 }
 0x190   : > { %v2641_v13 = vadd.f32 %v2640_v10, %v2639_v55  ;;  %v2160_v14 = vld [vmem:[#allocation2 + $0xd8] sm:$0xff] }
 0x191   : > { %v3309_v15 = vpack.c.bf16 %v2230_v9, %v2230_v9  ;;  %v2837_v16 = vsel %vm270_vm0, %v2748_v11, 0.0  ;;  %v2231_v17 = vadd.f32 %v4066_v36, %v2160_v14  ;;  %v2642_v18 = vsel %vm270_vm0, %v2160_v14, 0.0  ;;  %2095 = vst.msk [vmem:[#allocation2 + $0xe8] sm:$0xff] %vm270_vm0, %v2030_v12 }
 0x192   : > { %v1577_v19 = vpop.f32.mrb[60].mxu0  ;;  %v2838_v20 = vadd.f32 %v2837_v16, %v2836_v4  ;;  %v2643_v21 = vadd.f32 %v2642_v18, %v2641_v13  ;;  %v2749_v22 = vmul.f32 %v2160_v14, %v2160_v14  ;;  %v1866_v24 = vpop.f32.mrb[60].mxu1 }
 0x193   : > { %v1579_v25 = vpop.f32.mrb[61].mxu0  ;;  %2551 = vst.msk [vmem:[%s4078_s30 + $0x68] sm:$0xf] %vm2524_vm1, %v3309_v15  ;;  %v3310_v26 = vpack.c.bf16 %v2231_v17, %v2231_v17  ;;  %v1867_v27 = vadd.f32 %v1866_v24, %v1577_v19  ;;  %v1868_v28 = vpop.f32.mrb[61].mxu1 }
 0x194   : > { %v1580_v29 = vpop.f32.mrb[62].mxu0  ;;  %v2839_v36 = vsel %vm270_vm0, %v2749_v22, 0.0  ;;  %v1869_v31 = vpop.f32.mrb[62].mxu1  ;;  %v370_v28 = vld [vmem:[#allocation2 + $0x118] sm:$0xff] }
 0x195   : > { %v1582_v32 = vpop.f32.mrb[63].mxu0  ;;  %2552 = vst.msk [vmem:[%s4078_s30 + $0x6c] sm:$0xf] %vm2524_vm1, %v3310_v26  ;;  %v2840_v33 = vadd.f32 %v2839_v36, %v2838_v20  ;;  %v2031_v34 = vadd.f32 %v1867_v27, %v365_v23  ;;  %v1870_v35 = vadd.f32 %v1869_v31, %v1580_v29  ;;  %v1871_v37 = vpop.f32.mrb[63].mxu1  ;;  %v369_v20 = vld [vmem:[#allocation2 + $0x110] sm:$0xff] }
 0x196   : > { %v2161_v38 = vld [vmem:[#allocation2 + $0xe0] sm:$0xff] }
 0x197   : > { %v2232_v40 = vadd.f32 %v4259_v39, %v2161_v38  ;;  %v2644_v41 = vsel %vm270_vm0, %v2161_v38, 0.0  ;;  %v2750_v42 = vmul.f32 %v2161_v38, %v2161_v38  ;;  %2096 = vst.msk [vmem:[#allocation2 + $0xf0] sm:$0xff] %vm270_vm0, %v2031_v34  ;;  %v2032_v43 = vadd.f32 %v1870_v35, %v366_v30 }
 0x198   : > { %v2645_v44 = vadd.f32 %v2644_v41, %v2643_v21  ;;  %v2162_v45 = vld [vmem:[#allocation2 + $0xe8] sm:$0xff] }
 0x199   : > { %v3311_v46 = vpack.c.bf16 %v2232_v40, %v2232_v40  ;;  %v2841_v47 = vsel %vm270_vm0, %v2750_v42, 0.0  ;;  %v2233_v48 = vadd.f32 %v4259_v39, %v2162_v45  ;;  %v2646_v49 = vsel %vm270_vm0, %v2162_v45, 0.0  ;;  %2097 = vst.msk [vmem:[#allocation2 + $0xf8] sm:$0xff] %vm270_vm0, %v2032_v43 }
 0x19a   : > { %v1585_v50 = vpop.f32.mrb[64].mxu0  ;;  %v2842_v51 = vadd.f32 %v2841_v47, %v2840_v33  ;;  %v2647_v52 = vadd.f32 %v2646_v49, %v2645_v44  ;;  %v2751_v53 = vmul.f32 %v2162_v45, %v2162_v45  ;;  %v1874_v55 = vpop.f32.mrb[64].mxu1  ;;  %v371_v47 = vld [vmem:[#allocation2 + $0x120] sm:$0xff] }
 0x19b   : > { %v1587_v56 = vpop.f32.mrb[65].mxu0  ;;  %2553 = vst.msk [vmem:[%s4078_s30 + $0x70] sm:$0xf] %vm2524_vm1, %v3311_v46  ;;  %v3312_v57 = vpack.c.bf16 %v2233_v48, %v2233_v48  ;;  %v1875_v58 = vadd.f32 %v1874_v55, %v1585_v50  ;;  %v1876_v59 = vpop.f32.mrb[65].mxu1 }
 0x19c   : > { %v1588_v60 = vpop.f32.mrb[66].mxu0  ;;  %v2843_v61 = vsel %vm270_vm0, %v2751_v53, 0.0  ;;  %v1877_v63 = vpop.f32.mrb[66].mxu1 }
 0x19d   : > { %v1590_v0 = vpop.f32.mrb[67].mxu0  ;;  %2554 = vst.msk [vmem:[%s4078_s30 + $0x74] sm:$0xf] %vm2524_vm1, %v3312_v57  ;;  %v2844_v1 = vadd.f32 %v2843_v61, %v2842_v51  ;;  %v2033_v2 = vadd.f32 %v1875_v58, %v367_v54  ;;  %v1878_v3 = vadd.f32 %v1877_v63, %v1588_v60  ;;  %v1879_v4 = vpop.f32.mrb[67].mxu1  ;;  %v372_v54 = vld [vmem:[#allocation2 + $0x128] sm:$0xff] }
 0x19e   : > { %v2163_v5 = vld [vmem:[#allocation2 + $0xf0] sm:$0xff] }
 0x19f   : > { %v2234_v6 = vadd.f32 %v4259_v39, %v2163_v5  ;;  %v2648_v7 = vsel %vm270_vm0, %v2163_v5, 0.0  ;;  %v2752_v8 = vmul.f32 %v2163_v5, %v2163_v5  ;;  %2098 = vst.msk [vmem:[#allocation2 + $0x100] sm:$0xff] %vm270_vm0, %v2033_v2  ;;  %v2034_v9 = vadd.f32 %v1878_v3, %v368_v62  ;;  %v373_v3 = vld [vmem:[#allocation2 + $0x130] sm:$0xff] }
 0x1a0   : > { %v2649_v10 = vadd.f32 %v2648_v7, %v2647_v52  ;;  %v2164_v11 = vld [vmem:[#allocation2 + $0xf8] sm:$0xff] }
 0x1a1   : > { %v3313_v12 = vpack.c.bf16 %v2234_v6, %v2234_v6  ;;  %v2845_v13 = vsel %vm270_vm0, %v2752_v8, 0.0  ;;  %v2235_v14 = vadd.f32 %v4259_v39, %v2164_v11  ;;  %v2650_v15 = vsel %vm270_vm0, %v2164_v11, 0.0  ;;  %2099 = vst.msk [vmem:[#allocation2 + $0x108] sm:$0xff] %vm270_vm0, %v2034_v9 }
 0x1a2   : > { %v1593_v16 = vpop.f32.mrb[68].mxu0  ;;  %v2846_v17 = vadd.f32 %v2845_v13, %v2844_v1  ;;  %v2651_v18 = vadd.f32 %v2650_v15, %v2649_v10  ;;  %v2753_v19 = vmul.f32 %v2164_v11, %v2164_v11  ;;  %v1882_v21 = vpop.f32.mrb[68].mxu1  ;;  %v374_v10 = vld [vmem:[#allocation2 + $0x138] sm:$0xff] }
 0x1a3   : > { %v1595_v22 = vpop.f32.mrb[69].mxu0  ;;  %2555 = vst.msk [vmem:[%s4078_s30 + $0x78] sm:$0xf] %vm2524_vm1, %v3313_v12  ;;  %v3314_v23 = vpack.c.bf16 %v2235_v14, %v2235_v14  ;;  %v1883_v24 = vadd.f32 %v1882_v21, %v1593_v16  ;;  %v1884_v25 = vpop.f32.mrb[69].mxu1 }
 0x1a4   : > { %v1596_v26 = vpop.f32.mrb[70].mxu0  ;;  %v2847_v27 = vsel %vm270_vm0, %v2753_v19, 0.0  ;;  %v1885_v29 = vpop.f32.mrb[70].mxu1 }
 0x1a5   : > { %v1598_v36 = vpop.f32.mrb[71].mxu0  ;;  %2556 = vst.msk [vmem:[%s4078_s30 + $0x7c] sm:$0xf] %vm2524_vm1, %v3314_v23  ;;  %v4285_v30 = vadd.f32 %v2847_v27, %v2846_v17  ;;  %v2035_v31 = vadd.f32 %v1883_v24, %v369_v20  ;;  %v1886_v32 = vadd.f32 %v1885_v29, %v1596_v26  ;;  %v1887_v33 = vpop.f32.mrb[71].mxu1  ;;  %v375_v23 = vld [vmem:[#allocation2 + $0x140] sm:$0xff] }
 0x1a6   : > { %v4287_v34 = vld [vmem:[#allocation2 + $0x100] sm:$0xff]  ;;  %v376_v36 = vld [vmem:[#allocation2 + $0x148] sm:$0xff] }
 0x1a7   : > { %v2236_v35 = vadd.f32 %v4259_v39, %v4287_v34  ;;  %v2652_v37 = vsel %vm270_vm0, %v4287_v34, 0.0  ;;  %2100 = vst.msk [vmem:[#allocation2 + $0x110] sm:$0xff] %vm270_vm0, %v2035_v31  ;;  %v2036_v38 = vadd.f32 %v1886_v32, %v370_v28 }
 0x1a8   : > { %v2653_v40 = vadd.f32 %v2652_v37, %v2651_v18  ;;  %v4294_v41 = vld [vmem:[#allocation2 + $0x108] sm:$0xff] }
 0x1a9   : > { %v3315_v42 = vpack.c.bf16 %v2236_v35, %v2236_v35  ;;  %v2237_v43 = vadd.f32 %v4259_v39, %v4294_v41  ;;  %v2654_v44 = vsel %vm270_vm0, %v4294_v41, 0.0  ;;  %2101 = vst.msk [vmem:[#allocation2 + $0x118] sm:$0xff] %vm270_vm0, %v2036_v38 }
 0x1aa   : > { %v1601_v45 = vpop.f32.mrb[72].mxu0  ;;  %v4301_v46 = vadd.f32 %v2654_v44, %v2653_v40  ;;  %v1890_v48 = vpop.f32.mrb[72].mxu1  ;;  %v2754_v44 = vmul.f32 %v4287_v34, %v4287_v34 }
 0x1ab   : > { %v1603_v49 = vpop.f32.mrb[73].mxu0  ;;  %2557 = vst.msk [vmem:[%s4078_s30 + $0x80] sm:$0xf] %vm2524_vm1, %v3315_v42  ;;  %v3316_v50 = vpack.c.bf16 %v2237_v43, %v2237_v43  ;;  %v1891_v51 = vadd.f32 %v1890_v48, %v1601_v45  ;;  %v1892_v52 = vpop.f32.mrb[73].mxu1 }
 0x1ac   : > { %v1604_v53 = vpop.f32.mrb[74].mxu0  ;;  %v1893_v55 = vpop.f32.mrb[74].mxu1  ;;  %v377_v49 = vld [vmem:[#allocation2 + $0x150] sm:$0xff] }
 0x1ad   : > { %v1606_v56 = vpop.f32.mrb[75].mxu0  ;;  %2558 = vst.msk [vmem:[%s4078_s30 + $0x84] sm:$0xf] %vm2524_vm1, %v3316_v50  ;;  %v2037_v57 = vadd.f32 %v1891_v51, %v371_v47  ;;  %v1894_v58 = vadd.f32 %v1893_v55, %v1604_v53  ;;  %v1895_v59 = vpop.f32.mrb[75].mxu1 }
 0x1ae   : > { %v4307_v60 = vld [vmem:[#allocation2 + $0x110] sm:$0xff]  ;;  %v378_v56 = vld [vmem:[#allocation2 + $0x158] sm:$0xff]  ;;  %v2755_v59 = vmul.f32 %v4294_v41, %v4294_v41 }
 0x1af   : > { %v2238_v61 = vadd.f32 %v4259_v39, %v4307_v60  ;;  %2102 = vst.msk [vmem:[#allocation2 + $0x120] sm:$0xff] %vm270_vm0, %v2037_v57  ;;  %v2038_v62 = vadd.f32 %v1894_v58, %v372_v54  ;;  %v2849_v58 = vsel %vm270_vm0, %v2754_v44, 0.0 }
 0x1b0   : > { %v4312_v63 = vld [vmem:[#allocation2 + $0x118] sm:$0xff] }
 0x1b1   : > { %v3317_v0 = vpack.c.bf16 %v2238_v61, %v2238_v61  ;;  %v2239_v1 = vadd.f32 %v4259_v39, %v4312_v63  ;;  %2103 = vst.msk [vmem:[#allocation2 + $0x128] sm:$0xff] %vm270_vm0, %v2038_v62 }
 0x1b2   : > { %v1609_v2 = vpop.f32.mrb[76].mxu0  ;;  %v1898_v4 = vpop.f32.mrb[76].mxu1 }
 0x1b3   : > { %v1611_v5 = vpop.f32.mrb[77].mxu0  ;;  %2559 = vst.msk [vmem:[%s4078_s30 + $0x88] sm:$0xf] %vm2524_vm1, %v3317_v0  ;;  %v3318_v6 = vpack.c.bf16 %v2239_v1, %v2239_v1  ;;  %v1899_v7 = vadd.f32 %v1898_v4, %v1609_v2  ;;  %v1900_v8 = vpop.f32.mrb[77].mxu1  ;;  %v2756_v2 = vmul.f32 %v4307_v60, %v4307_v60 }
 0x1b4   : > { %v1612_v9 = vpop.f32.mrb[78].mxu0  ;;  %v1901_v11 = vpop.f32.mrb[78].mxu1  ;;  %v2850_v5 = vadd.f32 %v2849_v58, %v4285_v30  ;;  %v382_v58 = vld [vmem:[#allocation2 + $0x178] sm:$0xff] }
 0x1b5   : > { %v1614_v12 = vpop.f32.mrb[79].mxu0  ;;  %2560 = vst.msk [vmem:[%s4078_s30 + $0x8c] sm:$0xf] %vm2524_vm1, %v3318_v6  ;;  %v2039_v13 = vadd.f32 %v1899_v7, %v373_v3  ;;  %v1902_v14 = vadd.f32 %v1901_v11, %v1612_v9  ;;  %v1903_v15 = vpop.f32.mrb[79].mxu1  ;;  %v2851_v6 = vsel %vm270_vm0, %v2755_v59, 0.0  ;;  %v2656_v7 = vsel %vm270_vm0, %v4307_v60, 0.0 }
 0x1b6   : > { %v4321_v16 = vld [vmem:[#allocation2 + $0x120] sm:$0xff]  ;;  %v2853_v30 = vsel %vm270_vm0, %v2756_v2, 0.0 }
 0x1b7   : > { %v2240_v17 = vadd.f32 %v4259_v39, %v4321_v16  ;;  %2104 = vst.msk [vmem:[#allocation2 + $0x130] sm:$0xff] %vm270_vm0, %v2039_v13  ;;  %v2040_v18 = vadd.f32 %v1902_v14, %v374_v10  ;;  %v379_v11 = vld [vmem:[#allocation2 + $0x160] sm:$0xff]  ;;  %v2757_v14 = vmul.f32 %v4312_v63, %v4312_v63 }
 0x1b8   : > { %v4326_v19 = vld [vmem:[#allocation2 + $0x128] sm:$0xff] }
 0x1b9   : > { %v3319_v20 = vpack.c.bf16 %v2240_v17, %v2240_v17  ;;  %v2241_v21 = vadd.f32 %v4259_v39, %v4326_v19  ;;  %2105 = vst.msk [vmem:[#allocation2 + $0x138] sm:$0xff] %vm270_vm0, %v2040_v18 }
 0x1ba   : > { %v1617_v22 = vpop.f32.mrb[80].mxu0  ;;  %v1906_v24 = vpop.f32.mrb[80].mxu1 }
 0x1bb   : > { %v1619_v25 = vpop.f32.mrb[81].mxu0  ;;  %2561 = vst.msk [vmem:[%s4078_s30 + $0x90] sm:$0xf] %vm2524_vm1, %v3319_v20  ;;  %v3320_v26 = vpack.c.bf16 %v2241_v21, %v2241_v21  ;;  %v1907_v27 = vadd.f32 %v1906_v24, %v1617_v22  ;;  %v1908_v28 = vpop.f32.mrb[81].mxu1  ;;  %v2852_v20 = vadd.f32 %v2851_v6, %v2850_v5  ;;  %v2657_v21 = vadd.f32 %v2656_v7, %v4301_v46  ;;  %v380_v22 = vld [vmem:[#allocation2 + $0x168] sm:$0xff] }
 0x1bc   : > { %v1620_v29 = vpop.f32.mrb[82].mxu0  ;;  %v1909_v31 = vpop.f32.mrb[82].mxu1  ;;  %v2658_v25 = vsel %vm270_vm0, %v4312_v63, 0.0  ;;  %v2660_v46 = vsel %vm270_vm0, %v4321_v16, 0.0 }
 0x1bd   : > { %v1622_v32 = vpop.f32.mrb[83].mxu0  ;;  %2562 = vst.msk [vmem:[%s4078_s30 + $0x94] sm:$0xf] %vm2524_vm1, %v3320_v26  ;;  %v2041_v33 = vadd.f32 %v1907_v27, %v375_v23  ;;  %v1910_v35 = vadd.f32 %v1909_v31, %v1620_v29  ;;  %v1911_v37 = vpop.f32.mrb[83].mxu1  ;;  %v2758_v26 = vmul.f32 %v4321_v16, %v4321_v16 }
 0x1be   : > { %v4335_v38 = vld [vmem:[#allocation2 + $0x130] sm:$0xff]  ;;  %v2855_v32 = vsel %vm270_vm0, %v2757_v14, 0.0 }
 0x1bf   : > { %v2242_v40 = vadd.f32 %v4259_v39, %v4335_v38  ;;  %2106 = vst.msk [vmem:[#allocation2 + $0x140] sm:$0xff] %vm270_vm0, %v2041_v33  ;;  %v2042_v42 = vadd.f32 %v1910_v35, %v376_v36  ;;  %v2854_v36 = vadd.f32 %v2853_v30, %v2852_v20  ;;  %v2659_v35 = vadd.f32 %v2658_v25, %v2657_v21 }
 0x1c0   : > { %v4340_v43 = vld [vmem:[#allocation2 + $0x138] sm:$0xff] }
 0x1c1   : > { %v3321_v45 = vpack.c.bf16 %v2242_v40, %v2242_v40  ;;  %v2243_v47 = vadd.f32 %v4259_v39, %v4340_v43  ;;  %2107 = vst.msk [vmem:[#allocation2 + $0x148] sm:$0xff] %vm270_vm0, %v2042_v42  ;;  %v2857_v40 = vsel %vm270_vm0, %v2758_v26, 0.0  ;;  %v2759_v42 = vmul.f32 %v4326_v19, %v4326_v19 }
 0x1c2   : > { %v1625_v48 = vpop.f32.mrb[84].mxu0  ;;  %v1914_v50 = vpop.f32.mrb[84].mxu1  ;;  %v2761_v7 = vmul.f32 %v4340_v43, %v4340_v43 }
 0x1c3   : > { %v1627_v51 = vpop.f32.mrb[85].mxu0  ;;  %2563 = vst.msk [vmem:[%s4078_s30 + $0x98] sm:$0xf] %vm2524_vm1, %v3321_v45  ;;  %v3322_v52 = vpack.c.bf16 %v2243_v47, %v2243_v47  ;;  %v1915_v53 = vadd.f32 %v1914_v50, %v1625_v48  ;;  %v1916_v54 = vpop.f32.mrb[85].mxu1  ;;  %v2856_v47 = vadd.f32 %v2855_v32, %v2854_v36  ;;  %v2661_v48 = vadd.f32 %v2660_v46, %v2659_v35 }
 0x1c4   : > { %v1628_v55 = vpop.f32.mrb[86].mxu0  ;;  %v1917_v57 = vpop.f32.mrb[86].mxu1  ;;  %v2863_v21 = vsel %vm270_vm0, %v2761_v7, 0.0 }
 0x1c5   : > { %v1630_v34 = vpop.f32.mrb[87].mxu0  ;;  %2564 = vst.msk [vmem:[%s4078_s30 + $0x9c] sm:$0xf] %vm2524_vm1, %v3322_v52  ;;  %v2043_v61 = vadd.f32 %v1915_v53, %v377_v49  ;;  %v1918_v62 = vadd.f32 %v1917_v57, %v1628_v55  ;;  %v1919_v0 = vpop.f32.mrb[87].mxu1  ;;  %v381_v49 = vld [vmem:[#allocation2 + $0x170] sm:$0xff]  ;;  %v2662_v52 = vsel %vm270_vm0, %v4326_v19, 0.0  ;;  %v2760_v53 = vmul.f32 %v4335_v38, %v4335_v38 }
 0x1c6   : > { %v4354_v1 = vld [vmem:[#allocation2 + $0x140] sm:$0xff]  ;;  %v2858_v34 = vadd.f32 %v2857_v40, %v2856_v47  ;;  %v2664_v0 = vsel %vm270_vm0, %v4335_v38, 0.0 }
 0x1c7   : > { %v2244_v3 = vadd.f32 %v4259_v39, %v4354_v1  ;;  %2108 = vst.msk [vmem:[#allocation2 + $0x150] sm:$0xff] %vm270_vm0, %v2043_v61  ;;  %v2044_v4 = vadd.f32 %v1918_v62, %v378_v56  ;;  %v2859_v62 = vsel %vm270_vm0, %v2759_v42, 0.0  ;;  %v2861_v6 = vsel %vm270_vm0, %v2760_v53, 0.0 }
 0x1c8   : > { %v4362_v41 = vld [vmem:[#allocation2 + $0x148] sm:$0xff]  ;;  %v2860_v38 = vadd.f32 %v2859_v62, %v2858_v34 }
 0x1c9   : > { %v3323_v8 = vpack.c.bf16 %v2244_v3, %v2244_v3  ;;  %v2245_v9 = vadd.f32 %v4259_v39, %v4362_v41  ;;  %2109 = vst.msk [vmem:[#allocation2 + $0x158] sm:$0xff] %vm270_vm0, %v2044_v4  ;;  %v2663_v4 = vadd.f32 %v2662_v52, %v2661_v48  ;;  %v2763_v32 = vmul.f32 %v4362_v41, %v4362_v41 }
 0x1ca   : > { %v1633_v10 = vpop.f32.mrb[88].mxu0  ;;  %v1922_v12 = vpop.f32.mrb[88].mxu1  ;;  %v2670_v42 = vsel %vm270_vm0, %v4362_v41, 0.0 }
 0x1cb   : > { %v1635_v13 = vpop.f32.mrb[89].mxu0  ;;  %2565 = vst.msk [vmem:[%s4078_s30 + $0xa0] sm:$0xf] %vm2524_vm1, %v3323_v8  ;;  %v3324_v15 = vpack.c.bf16 %v2245_v9, %v2245_v9  ;;  %v1923_v60 = vadd.f32 %v1922_v12, %v1633_v10  ;;  %v1924_v17 = vpop.f32.mrb[89].mxu1  ;;  %v2665_v10 = vadd.f32 %v2664_v0, %v2663_v4  ;;  %v2666_v12 = vsel %vm270_vm0, %v4340_v43, 0.0 }
 0x1cc   : > { %v1636_v18 = vpop.f32.mrb[90].mxu0  ;;  %v1925_v23 = vpop.f32.mrb[90].mxu1  ;;  %v2762_v13 = vmul.f32 %v4354_v1, %v4354_v1  ;;  %v383_v17 = vld [vmem:[#allocation2 + $0x180] sm:$0xff]  ;;  %v2668_v43 = vsel %vm270_vm0, %v4354_v1, 0.0 }
 0x1cd   : > { %v1638_v24 = vpop.f32.mrb[91].mxu0  ;;  %2566 = vst.msk [vmem:[%s4078_s30 + $0xa4] sm:$0xf] %vm2524_vm1, %v3324_v15  ;;  %v2045_v27 = vadd.f32 %v1923_v60, %v379_v11  ;;  %v1926_v28 = vadd.f32 %v1925_v23, %v1636_v18  ;;  %v1927_v29 = vpop.f32.mrb[91].mxu1  ;;  %v2862_v60 = vadd.f32 %v2861_v6, %v2860_v38  ;;  %v2667_v26 = vadd.f32 %v2666_v12, %v2665_v10 }
 0x1ce   : > { %v4382_v31 = vld [vmem:[#allocation2 + $0x150] sm:$0xff]  ;;  %v2865_v36 = vsel %vm270_vm0, %v2762_v13, 0.0 }
 0x1cf   : > { %v2246_v33 = vadd.f32 %v4259_v39, %v4382_v31  ;;  %2110 = vst.msk [vmem:[#allocation2 + $0x160] sm:$0xff] %vm270_vm0, %v2045_v27  ;;  %v2046_v63 = vadd.f32 %v1926_v28, %v380_v22  ;;  %v384_v27 = vld [vmem:[#allocation2 + $0x188] sm:$0xff]  ;;  %v2669_v35 = vadd.f32 %v2668_v43, %v2667_v26 }
 0x1d0   : > { %v4390_v37 = vld [vmem:[#allocation2 + $0x158] sm:$0xff] }
 0x1d1   : > { %v3325_v44 = vpack.c.bf16 %v2246_v33, %v2246_v33  ;;  %v2247_v45 = vadd.f32 %v4259_v39, %v4390_v37  ;;  %2111 = vst.msk [vmem:[#allocation2 + $0x168] sm:$0xff] %vm270_vm0, %v2046_v63  ;;  %v2864_v63 = vadd.f32 %v2863_v21, %v2862_v60  ;;  %v2671_v53 = vadd.f32 %v2670_v42, %v2669_v35 }
 0x1d2   : > { %v1641_v16 = vpop.f32.mrb[92].mxu0  ;;  %v1930_v50 = vpop.f32.mrb[92].mxu1  ;;  %v2765_v34 = vmul.f32 %v4390_v37, %v4390_v37  ;;  %v2674_v4 = vsel %vm270_vm0, %v4390_v37, 0.0 }
 0x1d3   : > { %v1643_v51 = vpop.f32.mrb[93].mxu0  ;;  %2567 = vst.msk [vmem:[%s4078_s30 + $0xa8] sm:$0xf] %vm2524_vm1, %v3325_v44  ;;  %v3326_v54 = vpack.c.bf16 %v2247_v45, %v2247_v45  ;;  %v1931_v55 = vadd.f32 %v1930_v50, %v1641_v16  ;;  %v1932_v56 = vpop.f32.mrb[93].mxu1  ;;  %v2764_v44 = vmul.f32 %v4382_v31, %v4382_v31  ;;  %v2866_v47 = vadd.f32 %v2865_v36, %v2864_v63 }
 0x1d4   : > { %v1644_v57 = vpop.f32.mrb[94].mxu0  ;;  %v1933_v59 = vpop.f32.mrb[94].mxu1  ;;  %v2672_v50 = vsel %vm270_vm0, %v4382_v31, 0.0  ;;  %v2871_v12 = vsel %vm270_vm0, %v2765_v34, 0.0 }
 0x1d5   : > { %v1646_v61 = vpop.f32.mrb[95].mxu0  ;;  %2568 = vst.msk [vmem:[%s4078_s30 + $0xac] sm:$0xf] %vm2524_vm1, %v3326_v54  ;;  %v2047_v19 = vadd.f32 %v1931_v55, %v381_v49  ;;  %v1934_v2 = vadd.f32 %v1933_v59, %v1644_v57  ;;  %v1935_v3 = vpop.f32.mrb[95].mxu1  ;;  %v2867_v49 = vsel %vm270_vm0, %v2763_v32, 0.0  ;;  %v385_v54 = vld [vmem:[#allocation2 + $0x190] sm:$0xff]  ;;  %v2673_v0 = vadd.f32 %v2672_v50, %v2671_v53 }
 0x1d6   : > { %v4409_v5 = vld [vmem:[#allocation2 + $0x160] sm:$0xff]  ;;  %v2869_v57 = vsel %vm270_vm0, %v2764_v44, 0.0  ;;  %v2868_v62 = vadd.f32 %v2867_v49, %v2866_v47 }
 0x1d7   : > { %v2248_v8 = vadd.f32 %v4259_v39, %v4409_v5  ;;  %2112 = vst.msk [vmem:[#allocation2 + $0x170] sm:$0xff] %vm270_vm0, %v2047_v19  ;;  %v2048_v9 = vadd.f32 %v1934_v2, %v382_v58  ;;  %v386_v19 = vld [vmem:[#allocation2 + $0x198] sm:$0xff]  ;;  %v2766_v6 = vmul.f32 %v4409_v5, %v4409_v5  ;;  %v2676_v13 = vsel %vm270_vm0, %v4409_v5, 0.0 }
 0x1d8   : > { %v4417_v11 = vld [vmem:[#allocation2 + $0x168] sm:$0xff]  ;;  %v2870_v38 = vadd.f32 %v2869_v57, %v2868_v62 }
 0x1d9   : > { %v3327_v30 = vpack.c.bf16 %v2248_v8, %v2248_v8  ;;  %v2249_v14 = vadd.f32 %v4259_v39, %v4417_v11  ;;  %2113 = vst.msk [vmem:[#allocation2 + $0x178] sm:$0xff] %vm270_vm0, %v2048_v9  ;;  %v2873_v60 = vsel %vm270_vm0, %v2766_v6, 0.0 }
 0x1da   : > { %v1649_v15 = vpop.f32.mrb[96].mxu0  ;;  %v1938_v18 = vpop.f32.mrb[96].mxu1  ;;  %v2872_v21 = vadd.f32 %v2871_v12, %v2870_v38 }
 0x1db   : > { %v1651_v20 = vpop.f32.mrb[97].mxu0  ;;  %2569 = vst.msk [vmem:[%s4078_s30 + $0xb0] sm:$0xf] %vm2524_vm1, %v3327_v30  ;;  %v3328_v22 = vpack.c.bf16 %v2249_v14, %v2249_v14  ;;  %v1939_v23 = vadd.f32 %v1938_v18, %v1649_v15  ;;  %v1940_v24 = vpop.f32.mrb[97].mxu1  ;;  %v2675_v14 = vadd.f32 %v2674_v4, %v2673_v0  ;;  %v390_v4 = vld [vmem:[#allocation2 + $0x1b8] sm:$0xff] }
 0x1dc   : > { %v1652_v25 = vpop.f32.mrb[98].mxu0  ;;  %v1941_v28 = vpop.f32.mrb[98].mxu1  ;;  %v2874_v32 = vadd.f32 %v2873_v60, %v2872_v21 }
 0x1dd   : > { %v1654_v29 = vpop.f32.mrb[99].mxu0  ;;  %2570 = vst.msk [vmem:[%s4078_s30 + $0xb4] sm:$0xf] %vm2524_vm1, %v3328_v22  ;;  %v2049_v46 = vadd.f32 %v1939_v23, %v383_v17  ;;  %v1942_v33 = vadd.f32 %v1941_v28, %v1652_v25  ;;  %v1943_v1 = vpop.f32.mrb[99].mxu1  ;;  %v2767_v17 = vmul.f32 %v4417_v11, %v4417_v11  ;;  %v2677_v43 = vadd.f32 %v2676_v13, %v2675_v14  ;;  %v387_v22 = vld [vmem:[#allocation2 + $0x1a0] sm:$0xff] }
 0x1de   : > { %v4436_v40 = vld [vmem:[#allocation2 + $0x170] sm:$0xff]  ;;  %v2678_v25 = vsel %vm270_vm0, %v4417_v11, 0.0 }
 0x1df   : > { %v2250_v45 = vadd.f32 %v4259_v39, %v4436_v40  ;;  %2114 = vst.msk [vmem:[#allocation2 + $0x180] sm:$0xff] %vm270_vm0, %v2049_v46  ;;  %v2050_v16 = vadd.f32 %v1942_v33, %v384_v27  ;;  %v2768_v26 = vmul.f32 %v4436_v40, %v4436_v40  ;;  %v388_v46 = vld [vmem:[#allocation2 + $0x1a8] sm:$0xff]  ;;  %v2875_v63 = vsel %vm270_vm0, %v2767_v17, 0.0 }
 0x1e0   : > { %v4445_v48 = vld [vmem:[#allocation2 + $0x178] sm:$0xff]  ;;  %v2680_v35 = vsel %vm270_vm0, %v4436_v40, 0.0 }
 0x1e1   : > { %v3329_v51 = vpack.c.bf16 %v2250_v45, %v2250_v45  ;;  %v2251_v41 = vadd.f32 %v4259_v39, %v4445_v48  ;;  %2115 = vst.msk [vmem:[#allocation2 + $0x188] sm:$0xff] %vm270_vm0, %v2050_v16  ;;  %v2679_v45 = vadd.f32 %v2678_v25, %v2677_v43  ;;  %v2877_v47 = vsel %vm270_vm0, %v2768_v26, 0.0  ;;  %v391_v25 = vld [vmem:[#allocation2 + $0x1c0] sm:$0xff] }
 0x1e2   : > { %v1657_v52 = vpop.f32.mrb[100].mxu0  ;;  %v1946_v55 = vpop.f32.mrb[100].mxu1  ;;  %v2769_v49 = vmul.f32 %v4445_v48, %v4445_v48  ;;  %v2682_v53 = vsel %vm270_vm0, %v4445_v48, 0.0 }
 0x1e3   : > { %v1659_v56 = vpop.f32.mrb[101].mxu0  ;;  %2571 = vst.msk [vmem:[%s4078_s30 + $0xb8] sm:$0xf] %vm2524_vm1, %v3329_v51  ;;  %v3330_v31 = vpack.c.bf16 %v2251_v41, %v2251_v41  ;;  %v1947_v58 = vadd.f32 %v1946_v55, %v1657_v52  ;;  %v1948_v59 = vpop.f32.mrb[101].mxu1  ;;  %v2876_v41 = vadd.f32 %v2875_v63, %v2874_v32  ;;  %v2681_v40 = vadd.f32 %v2680_v35, %v2679_v45  ;;  %v392_v35 = vld [vmem:[#allocation2 + $0x1c8] sm:$0xff] }
 0x1e4   : > { %v1660_v61 = vpop.f32.mrb[102].mxu0  ;;  %v1949_v2 = vpop.f32.mrb[102].mxu1 }
 0x1e5   : > { %v1662_v3 = vpop.f32.mrb[103].mxu0  ;;  %2572 = vst.msk [vmem:[%s4078_s30 + $0xbc] sm:$0xf] %vm2524_vm1, %v3330_v31  ;;  %v2051_v7 = vadd.f32 %v1947_v58, %v385_v54  ;;  %v1950_v8 = vadd.f32 %v1949_v2, %v1660_v61  ;;  %v1951_v9 = vpop.f32.mrb[103].mxu1  ;;  %v2878_v34 = vadd.f32 %v2877_v47, %v2876_v41  ;;  %v389_v31 = vld [vmem:[#allocation2 + $0x1b0] sm:$0xff]  ;;  %v2879_v61 = vsel %vm270_vm0, %v2769_v49, 0.0 }
 0x1e6   : > { %v2181_v10 = vld [vmem:[#allocation2 + $0x180] sm:$0xff]  ;;  %v2683_v3 = vadd.f32 %v2682_v53, %v2681_v40 }
 0x1e7   : > { %v2252_v30 = vadd.f32 %v4259_v39, %v2181_v10  ;;  %2116 = vst.msk [vmem:[#allocation2 + $0x190] sm:$0xff] %vm270_vm0, %v2051_v7  ;;  %v2052_v37 = vadd.f32 %v1950_v8, %v386_v19  ;;  %v2770_v54 = vmul.f32 %v2181_v10, %v2181_v10  ;;  %v2684_v62 = vsel %vm270_vm0, %v2181_v10, 0.0 }
 0x1e8   : > { %v4469_v15 = vld [vmem:[#allocation2 + $0x188] sm:$0xff]  ;;  %v2880_v13 = vadd.f32 %v2879_v61, %v2878_v34 }
 0x1e9   : > { %v3331_v18 = vpack.c.bf16 %v2252_v30, %v2252_v30  ;;  %v2253_v20 = vadd.f32 %v4259_v39, %v4469_v15  ;;  %2117 = vst.msk [vmem:[#allocation2 + $0x198] sm:$0xff] %vm270_vm0, %v2052_v37  ;;  %v2881_v8 = vsel %vm270_vm0, %v2770_v54, 0.0  ;;  %v2771_v9 = vmul.f32 %v4469_v15, %v4469_v15 }
 0x1ea   : > { %v1665_v5 = vpop.f32.mrb[104].mxu0  ;;  %v1954_v23 = vpop.f32.mrb[104].mxu1  ;;  %v2685_v30 = vadd.f32 %v2684_v62, %v2683_v3  ;;  %v2686_v14 = vsel %vm270_vm0, %v4469_v15, 0.0  ;;  %v393_v62 = vld [vmem:[#allocation2 + $0x1d0] sm:$0xff] }
 0x1eb   : > { %v1667_v24 = vpop.f32.mrb[105].mxu0  ;;  %2573 = vst.msk [vmem:[%s4078_s30 + $0xc0] sm:$0xf] %vm2524_vm1, %v3331_v18  ;;  %v3332_v27 = vpack.c.bf16 %v2253_v20, %v2253_v20  ;;  %v1955_v28 = vadd.f32 %v1954_v23, %v1665_v5  ;;  %v1956_v29 = vpop.f32.mrb[105].mxu1  ;;  %v2882_v20 = vadd.f32 %v2881_v8, %v2880_v13  ;;  %v2883_v21 = vsel %vm270_vm0, %v2771_v9, 0.0  ;;  %v394_v9 = vld [vmem:[#allocation2 + $0x1d8] sm:$0xff] }
 0x1ec   : > { %v1668_v36 = vpop.f32.mrb[106].mxu0  ;;  %v1957_v33 = vpop.f32.mrb[106].mxu1  ;;  %v2687_v15 = vadd.f32 %v2686_v14, %v2685_v30 }
 0x1ed   : > { %v1670_v1 = vpop.f32.mrb[107].mxu0  ;;  %2574 = vst.msk [vmem:[%s4078_s30 + $0xc4] sm:$0xf] %vm2524_vm1, %v3332_v27  ;;  %v2053_v11 = vadd.f32 %v1955_v28, %v387_v22  ;;  %v1958_v42 = vadd.f32 %v1957_v33, %v1668_v36  ;;  %v1959_v44 = vpop.f32.mrb[107].mxu1 }
 0x1ee   : > { %v2183_v16 = vld [vmem:[#allocation2 + $0x190] sm:$0xff]  ;;  %v2884_v1 = vadd.f32 %v2883_v21, %v2882_v20 }
 0x1ef   : > { %v2254_v50 = vadd.f32 %v4259_v39, %v2183_v16  ;;  %2118 = vst.msk [vmem:[#allocation2 + $0x1a0] sm:$0xff] %vm270_vm0, %v2053_v11  ;;  %v2054_v51 = vadd.f32 %v1958_v42, %v388_v46  ;;  %v2772_v60 = vmul.f32 %v2183_v16, %v2183_v16  ;;  %v2688_v43 = vsel %vm270_vm0, %v2183_v16, 0.0 }
 0x1f0   : > { %v2184_v52 = vld [vmem:[#allocation2 + $0x198] sm:$0xff]  ;;  %v2689_v63 = vadd.f32 %v2688_v43, %v2687_v15 }
 0x1f1   : > { %v3333_v55 = vpack.c.bf16 %v2254_v50, %v2254_v50  ;;  %v2255_v56 = vadd.f32 %v4259_v39, %v2184_v52  ;;  %2119 = vst.msk [vmem:[#allocation2 + $0x1a8] sm:$0xff] %vm270_vm0, %v2054_v51  ;;  %v2885_v28 = vsel %vm270_vm0, %v2772_v60, 0.0  ;;  %v2773_v29 = vmul.f32 %v2184_v52, %v2184_v52 }
 0x1f2   : > { %v1673_v57 = vpop.f32.mrb[108].mxu0  ;;  %v1962_v58 = vpop.f32.mrb[108].mxu1  ;;  %v2690_v44 = vsel %vm270_vm0, %v2184_v52, 0.0  ;;  %v2886_v50 = vadd.f32 %v2885_v28, %v2884_v1 }
 0x1f3   : > { %v1675_v59 = vpop.f32.mrb[109].mxu0  ;;  %2575 = vst.msk [vmem:[%s4078_s30 + $0xc8] sm:$0xf] %vm2524_vm1, %v3333_v55  ;;  %v3334_v0 = vpack.c.bf16 %v2255_v56, %v2255_v56  ;;  %v1963_v48 = vadd.f32 %v1962_v58, %v1673_v57  ;;  %v1964_v19 = vpop.f32.mrb[109].mxu1  ;;  %v2887_v41 = vsel %vm270_vm0, %v2773_v29, 0.0  ;;  %v2691_v55 = vadd.f32 %v2690_v44, %v2689_v63  ;;  %v395_v29 = vld [vmem:[#allocation2 + $0x1e0] sm:$0xff] }
 0x1f4   : > { %v1676_v2 = vpop.f32.mrb[110].mxu0  ;;  %v1965_v6 = vpop.f32.mrb[110].mxu1  ;;  %v2888_v59 = vadd.f32 %v2887_v41, %v2886_v50  ;;  %v396_v44 = vld [vmem:[#allocation2 + $0x1e8] sm:$0xff] }
 0x1f5   : > { %v1678_v7 = vpop.f32.mrb[111].mxu0  ;;  %2576 = vst.msk [vmem:[%s4078_s30 + $0xcc] sm:$0xf] %vm2524_vm1, %v3334_v0  ;;  %v2055_v38 = vadd.f32 %v1963_v48, %v389_v31  ;;  %v1966_v12 = vadd.f32 %v1965_v6, %v1676_v2  ;;  %v1967_v10 = vpop.f32.mrb[111].mxu1 }
 0x1f6   : > { %v2185_v37 = vld [vmem:[#allocation2 + $0x1a0] sm:$0xff] }
 0x1f7   : > { %v2256_v17 = vadd.f32 %v4259_v39, %v2185_v37  ;;  %2120 = vst.msk [vmem:[#allocation2 + $0x1b0] sm:$0xff] %vm270_vm0, %v2055_v38  ;;  %v2056_v18 = vadd.f32 %v1966_v12, %v390_v4  ;;  %v2774_v45 = vmul.f32 %v2185_v37, %v2185_v37  ;;  %v2692_v40 = vsel %vm270_vm0, %v2185_v37, 0.0 }
 0x1f8   : > { %v2186_v5 = vld [vmem:[#allocation2 + $0x1a8] sm:$0xff]  ;;  %v2693_v61 = vadd.f32 %v2692_v40, %v2691_v55 }
 0x1f9   : > { %v3335_v22 = vpack.c.bf16 %v2256_v17, %v2256_v17  ;;  %v2257_v23 = vadd.f32 %v4259_v39, %v2186_v5  ;;  %2121 = vst.msk [vmem:[#allocation2 + $0x1b8] sm:$0xff] %vm270_vm0, %v2056_v18  ;;  %v2889_v56 = vsel %vm270_vm0, %v2774_v45, 0.0  ;;  %v2775_v57 = vmul.f32 %v2186_v5, %v2186_v5 }
 0x1fa   : > { %v1681_v24 = vpop.f32.mrb[112].mxu0  ;;  %v1970_v26 = vpop.f32.mrb[112].mxu1  ;;  %v2694_v19 = vsel %vm270_vm0, %v2186_v5, 0.0  ;;  %v2890_v8 = vadd.f32 %v2889_v56, %v2888_v59 }
 0x1fb   : > { %v1683_v27 = vpop.f32.mrb[113].mxu0  ;;  %2577 = vst.msk [vmem:[%s4078_s30 + $0xd0] sm:$0xf] %vm2524_vm1, %v3335_v22  ;;  %v3336_v36 = vpack.c.bf16 %v2257_v23, %v2257_v23  ;;  %v1971_v32 = vadd.f32 %v1970_v26, %v1681_v24  ;;  %v1972_v46 = vpop.f32.mrb[113].mxu1  ;;  %v2891_v10 = vsel %vm270_vm0, %v2775_v57, 0.0  ;;  %v2695_v60 = vadd.f32 %v2694_v19, %v2693_v61 }
 0x1fc   : > { %v1684_v33 = vpop.f32.mrb[114].mxu0  ;;  %v1973_v11 = vpop.f32.mrb[114].mxu1  ;;  %v2892_v43 = vadd.f32 %v2891_v10, %v2890_v8 }
 0x1fd   : > { %v1686_v42 = vpop.f32.mrb[115].mxu0  ;;  %2578 = vst.msk [vmem:[%s4078_s30 + $0xd4] sm:$0xf] %vm2524_vm1, %v3336_v36  ;;  %v2057_v16 = vadd.f32 %v1971_v32, %v391_v25  ;;  %v1974_v47 = vadd.f32 %v1973_v11, %v1684_v33  ;;  %v1975_v49 = vpop.f32.mrb[115].mxu1 }
 0x1fe   : > { %v2187_v51 = vld [vmem:[#allocation2 + $0x1b0] sm:$0xff] }
 0x1ff   : > { %v2258_v53 = vadd.f32 %v4259_v39, %v2187_v51  ;;  %2122 = vst.msk [vmem:[#allocation2 + $0x1c0] sm:$0xff] %vm270_vm0, %v2057_v16  ;;  %v2058_v54 = vadd.f32 %v1974_v47, %v392_v35  ;;  %v2776_v2 = vmul.f32 %v2187_v51, %v2187_v51  ;;  %v2696_v13 = vsel %vm270_vm0, %v2187_v51, 0.0 }
 0x200   : > { %v2188_v52 = vld [vmem:[#allocation2 + $0x1b8] sm:$0xff]  ;;  %v2697_v22 = vadd.f32 %v2696_v13, %v2695_v60 }
 0x201   : > { %v3337_v34 = vpack.c.bf16 %v2258_v53, %v2258_v53  ;;  %v2259_v31 = vadd.f32 %v4259_v39, %v2188_v52  ;;  %2123 = vst.msk [vmem:[#allocation2 + $0x1c8] sm:$0xff] %vm270_vm0, %v2058_v54  ;;  %v2893_v18 = vsel %vm270_vm0, %v2776_v2, 0.0  ;;  %v2777_v20 = vmul.f32 %v2188_v52, %v2188_v52  ;;  %v397_v2 = vld [vmem:[#allocation2 + $0x1f0] sm:$0xff]  ;;  %v398_v13 = vld [vmem:[#allocation2 + $0x1f8] sm:$0xff] }
 0x202   : > { %v1689_v58 = vpop.f32.mrb[116].mxu0  ;;  %v2698_v24 = vsel %vm270_vm0, %v2188_v52, 0.0  ;;  %v2894_v28 = vadd.f32 %v2893_v18, %v2892_v43 }
 0x203   : > { %v1978_v0 = vpop.f32.mrb[116].mxu1  ;;  %v1691_v48 = vpop.f32.mrb[117].mxu0  ;;  %2579 = vst.msk [vmem:[%s4078_s30 + $0xd8] sm:$0xf] %vm2524_vm1, %v3337_v34  ;;  %v3338_v3 = vpack.c.bf16 %v2259_v31, %v2259_v31  ;;  %v2895_v46 = vsel %vm270_vm0, %v2777_v20, 0.0  ;;  %v2699_v42 = vadd.f32 %v2698_v24, %v2697_v22 }
 0x204   : > { %v1979_v4 = vadd.f32 %v1978_v0, %v1689_v58  ;;  %v1980_v6 = vpop.f32.mrb[117].mxu1  ;;  %v1692_v7 = vpop.f32.mrb[118].mxu0  ;;  %v2896_v40 = vadd.f32 %v2895_v46, %v2894_v28 }
 0x205   : > { %v1981_v38 = vpop.f32.mrb[118].mxu1  ;;  %v1694_v12 = vpop.f32.mrb[119].mxu0  ;;  %2580 = vst.msk [vmem:[%s4078_s30 + $0xdc] sm:$0xf] %vm2524_vm1, %v3338_v3 }
 0x206   : > { %v2059_v30 = vadd.f32 %v1979_v4, %v393_v62  ;;  %v1982_v37 = vadd.f32 %v1981_v38, %v1692_v7  ;;  %v1983_v14 = vpop.f32.mrb[119].mxu1  ;;  %v2189_v17 = vld [vmem:[#allocation2 + $0x1c0] sm:$0xff] }
 0x207   : > { %v2260_v5 = vadd.f32 %v4259_v39, %v2189_v17  ;;  %v2778_v25 = vmul.f32 %v2189_v17, %v2189_v17  ;;  %v2700_v33 = vsel %vm270_vm0, %v2189_v17, 0.0  ;;  %v3598_v62 = vld [vmem:[%s4598_s2] ss:$0 sm:$0xff] }
 0x208   : > { %2124 = vst.msk [vmem:[#allocation2 + $0x1d0] sm:$0xff] %vm270_vm0, %v2059_v30  ;;  %v2060_v21 = vadd.f32 %v1982_v37, %v394_v9  ;;  %v2190_v23 = vld [vmem:[#allocation2 + $0x1c8] sm:$0xff]  ;;  %v2701_v53 = vadd.f32 %v2700_v33, %v2699_v42 }
 0x209   : > { %v3339_v15 = vpack.c.bf16 %v2260_v5, %v2260_v5  ;;  %v2261_v26 = vadd.f32 %v4259_v39, %v2190_v23  ;;  %v2897_v47 = vsel %vm270_vm0, %v2778_v25, 0.0  ;;  %v2779_v49 = vmul.f32 %v2190_v23, %v2190_v23 }
 0x20a   : > { %2125 = vst.msk [vmem:[#allocation2 + $0x1d8] sm:$0xff] %vm270_vm0, %v2060_v21  ;;  %v1697_v27 = vpop.f32.mrb[120].mxu0  ;;  %v2702_v55 = vsel %vm270_vm0, %v2190_v23, 0.0  ;;  %v2898_v34 = vadd.f32 %v2897_v47, %v2896_v40 }
 0x20b   : > { %v1986_v36 = vpop.f32.mrb[120].mxu1  ;;  %v1699_v32 = vpop.f32.mrb[121].mxu0  ;;  %2581 = vst.msk [vmem:[%s4078_s30 + $0xe0] sm:$0xf] %vm2524_vm1, %v3339_v15  ;;  %v3340_v1 = vpack.c.bf16 %v2261_v26, %v2261_v26  ;;  %v2899_v58 = vsel %vm270_vm0, %v2779_v49, 0.0  ;;  %v2703_v48 = vadd.f32 %v2702_v55, %v2701_v53 }
 0x20c   : > { %v1987_v63 = vadd.f32 %v1986_v36, %v1697_v27  ;;  %v1988_v35 = vpop.f32.mrb[121].mxu1  ;;  %v1700_v11 = vpop.f32.mrb[122].mxu0  ;;  %v2900_v12 = vadd.f32 %v2899_v58, %v2898_v34 }
 0x20d   : > { %v1989_v45 = vpop.f32.mrb[122].mxu1  ;;  %v1702_v16 = vpop.f32.mrb[123].mxu0  ;;  %2582 = vst.msk [vmem:[%s4078_s30 + $0xe4] sm:$0xf] %vm2524_vm1, %v3340_v1 }
 0x20e   : > { %v2061_v50 = vadd.f32 %v1987_v63, %v395_v29  ;;  %v1990_v51 = vadd.f32 %v1989_v45, %v1700_v11  ;;  %v1991_v41 = vpop.f32.mrb[123].mxu1 }
 0x20f   : > { %v2191_v54 = vld [vmem:[#allocation2 + $0x1d0] sm:$0xff] }
 0x210   : > { %v2262_v52 = vadd.f32 %v4259_v39, %v2191_v54  ;;  %v2780_v56 = vmul.f32 %v2191_v54, %v2191_v54  ;;  %2126 = vst.msk [vmem:[#allocation2 + $0x1e0] sm:$0xff] %vm270_vm0, %v2061_v50  ;;  %v2062_v57 = vadd.f32 %v1990_v51, %v396_v44  ;;  %v2704_v61 = vsel %vm270_vm0, %v2191_v54, 0.0 }
 0x211   : > { %v2192_v31 = vld [vmem:[#allocation2 + $0x1d8] sm:$0xff]  ;;  %v2705_v10 = vadd.f32 %v2704_v61, %v2703_v48  ;;  %v2919_v61 = vlaneseq }
 0x212   : > { %v3341_v59 = vpack.c.bf16 %v2262_v52, %v2262_v52  ;;  %v2263_v0 = vadd.f32 %v3598_v62, %v2192_v31  ;;  %2127 = vst.msk [vmem:[#allocation2 + $0x1e8] sm:$0xff] %vm270_vm0, %v2062_v57  ;;  %v1705_v39 = vpop.f32.mrb[124].mxu0  ;;  %v2781_v19 = vmul.f32 %v2192_v31, %v2192_v31  ;;  %v2901_v6 = vsel %vm270_vm0, %v2780_v56, 0.0 }
 0x213   : > { %v1994_v3 = vpop.f32.mrb[124].mxu1  ;;  %v1707_v4 = vpop.f32.mrb[125].mxu0  ;;  %v2706_v14 = vsel %vm270_vm0, %v2192_v31, 0.0  ;;  %v2902_v20 = vadd.f32 %v2901_v6, %v2900_v12  ;;  %v2920_v48 = vshrl.u32 %v2919_v61, 7 }
 0x214   : > { %2583 = vst.msk [vmem:[%s4078_s30 + $0xe8] sm:$0xf] %vm2524_vm1, %v3341_v59  ;;  %v3342_v7 = vpack.c.bf16 %v2263_v0, %v2263_v0  ;;  %v1995_v8 = vadd.f32 %v1994_v3, %v1705_v39  ;;  %v1996_v9 = vpop.f32.mrb[125].mxu1  ;;  %v1708_v38 = vpop.f32.mrb[126].mxu0  ;;  %v2903_v5 = vsel %vm270_vm0, %v2781_v19, 0.0  ;;  %v2707_v15 = vadd.f32 %v2706_v14, %v2705_v10 }
 0x215   : > { %v1997_v30 = vpop.f32.mrb[126].mxu1  ;;  %v1710_v37 = vpop.f32.mrb[127].mxu0  ;;  %v2904_v29 = vadd.f32 %v2903_v5, %v2902_v20  ;;  %vm2922_vm2 = vcmp.eq.s32.totalorder %v2920_v48, 1  ;;  %vm2921_vm3 = vcmp.eq.s32.totalorder %v2920_v48, 0 }
 0x216   : > { %2584 = vst.msk [vmem:[%s4078_s30 + $0xec] sm:$0xf] %vm2524_vm1, %v3342_v7  ;;  %v2063_v60 = vadd.f32 %v1995_v8, %v397_v2  ;;  %v1998_v17 = vadd.f32 %v1997_v30, %v1708_v38  ;;  %v1999_v18 = vpop.f32.mrb[127].mxu1 }
 0x217   : > { %v2193_v21 = vld [vmem:[#allocation2 + $0x1e0] sm:$0xff] }
 0x218   : > { %v2264_v43 = vadd.f32 %v3598_v62, %v2193_v21  ;;  %v2708_v22 = vsel %vm270_vm0, %v2193_v21, 0.0  ;;  %v2782_v23 = vmul.f32 %v2193_v21, %v2193_v21  ;;  %2128 = vst.msk [vmem:[#allocation2 + $0x1f0] sm:$0xff] %vm270_vm0, %v2063_v60  ;;  %v2064_v24 = vadd.f32 %v1998_v17, %v398_v13 }
 0x219   : > { %v2194_v25 = vld [vmem:[#allocation2 + $0x1e8] sm:$0xff]  ;;  %v2709_v36 = vadd.f32 %v2708_v22, %v2707_v15 }
 0x21a   : > { %v3343_v26 = vpack.c.bf16 %v2264_v43, %v2264_v43  ;;  %v2905_v27 = vsel %vm270_vm0, %v2782_v23, 0.0  ;;  %v2265_v28 = vadd.f32 %v3598_v62, %v2194_v25  ;;  %2129 = vst.msk [vmem:[#allocation2 + $0x1f8] sm:$0xff] %vm270_vm0, %v2064_v24  ;;  %v2783_v32 = vmul.f32 %v2194_v25, %v2194_v25 }
 0x21b   : > { %v2710_v33 = vsel %vm270_vm0, %v2194_v25, 0.0  ;;  %v2906_v1 = vadd.f32 %v2905_v27, %v2904_v29 }
 0x21c   : > { %2585 = vst.msk [vmem:[%s4078_s30 + $0xf0] sm:$0xf] %vm2524_vm1, %v3343_v26  ;;  %v3344_v46 = vpack.c.bf16 %v2265_v28, %v2265_v28  ;;  %v2907_v63 = vsel %vm270_vm0, %v2783_v32, 0.0  ;;  %v2711_v35 = vadd.f32 %v2710_v33, %v2709_v36 }
 0x21d   : > { %v2908_v16 = vadd.f32 %v2907_v63, %v2906_v1 }
 0x21e   : > { %2586 = vst.msk [vmem:[%s4078_s30 + $0xf4] sm:$0xf] %vm2524_vm1, %v3344_v46 }
 0x21f   : > { %v2195_v11 = vld [vmem:[#allocation2 + $0x1f0] sm:$0xff] }
 0x220   : > { %v2266_v42 = vadd.f32 %v3598_v62, %v2195_v11  ;;  %v2712_v44 = vsel %vm270_vm0, %v2195_v11, 0.0  ;;  %v2784_v45 = vmul.f32 %v2195_v11, %v2195_v11 }
 0x221   : > { %v2713_v47 = vadd.f32 %v2712_v44, %v2711_v35  ;;  %v2196_v49 = vld [vmem:[#allocation2 + $0x1f8] sm:$0xff] }
 0x222   : > { %v3345_v50 = vpack.c.bf16 %v2266_v42, %v2266_v42  ;;  %v2909_v51 = vsel %vm270_vm0, %v2784_v45, 0.0  ;;  %v2267_v41 = vadd.f32 %v3598_v62, %v2196_v49  ;;  %v2714_v40 = vsel %vm270_vm0, %v2196_v49, 0.0 }
 0x223   : > { %v2910_v53 = vadd.f32 %v2909_v51, %v2908_v16  ;;  %v2715_v54 = vadd.f32 %v2714_v40, %v2713_v47  ;;  %v2785_v55 = vmul.f32 %v2196_v49, %v2196_v49 }
 0x224   : > { %2587 = vst.msk [vmem:[%s4078_s30 + $0xf8] sm:$0xf] %vm2524_vm1, %v3345_v50  ;;  %v3346_v52 = vpack.c.bf16 %v2267_v41, %v2267_v41 }
 0x225   : > { %v2716_v56 = vrot.slane %v2715_v54, 4  ;;  %v2911_v57 = vsel %vm270_vm0, %v2785_v55, 0.0 }
 0x226   : > { %2588 = vst.msk [vmem:[%s4078_s30 + $0xfc] sm:$0xf] %vm2524_vm1, %v3346_v52  ;;  %v2912_v34 = vadd.f32 %v2911_v57, %v2910_v53 }
 0x227   : > { %v2717_v31 = vadd.f32 %v2716_v56, %v2715_v54 }
 0x228   : > { %v2913_v58 = vrot.slane %v2912_v34, 4 }
 0x229   : > { %v2718_v59 = vrot.slane %v2717_v31, 2 }
 0x22a   : > { %v2914_v62 = vadd.f32 %v2913_v58, %v2912_v34 }
 0x22b   : > { %v2719_v0 = vadd.f32 %v2718_v59, %v2717_v31 }
 0x22c   : > { %v2915_v39 = vrot.slane %v2914_v62, 2 }
 0x22d   : > { %v2720_v2 = vrot.slane %v2719_v0, 1 }
 0x22e   : > { %v2916_v19 = vadd.f32 %v2915_v39, %v2914_v62 }
 0x22f   : > { %v2721_v6 = vadd.f32 %v2720_v2, %v2719_v0 }
 0x230   : > { %v2917_v3 = vrot.slane %v2916_v19, 1 }
 0x232   : > { %v2918_v4 = vadd.f32 %v2917_v3, %v2916_v19 }
 0x234   : > { %v2923_v7 = vsel %vm2922_vm2, %v2918_v4, 0.0 }
 0x235   : > { %v2924_v8 = vsel %vm2921_vm3, %v2721_v6, %v2923_v7 }
 0x236   : > { %2925 = vst.msk [vmem:[%s264_s11] sm:$0xff] %vm270_vm0, %v2924_v8 }
 0x237 PF: > { %s15_s17 = sadd.s32 1, %s3621_s17   ;;  %s4601_s15 = smov %s3617_s16 }
 0x238   : > { %p12_p6 = scmp.ge.s32.totalorder %s15_s17, 4   ;;  %s4602_s16 = smov %s4604_s18 }
 0x23a   :  { %14 = sbr.rel (!%p12_p6) target bundleno = 2 (0x2), region = 85 }

// kernel: forward.12
= control target key start
LH: loop header
LB: loop body
LE: loop exit
PB: predicated region body
PF: predicated region fallthrough
CT: control target
= control target key end

     0   :  { %vm204_vm0 = vcmask 257024   ;;  %s448_s0 = inlined_call_operand.vmem [shape: bf16[128,32], index: 0, kind: input, shape index: {}]   ;;  %s449_s1 = inlined_call_operand.vmem [shape: f32[1,32], index: 1, kind: input, shape index: {}]   ;;  %s450_s2 = inlined_call_operand.vmem [shape: f32[1,32], index: 2, kind: input, shape index: {}]   ;;  %s451_s3 = inlined_call_operand.vmem [shape: bf16[128,32], index: 3, kind: output, shape index: {}]  }
   0x1   :  { %v260_v0 = vld [vmem:[%s448_s0] sm:$0xff]   ;;  %v291_v4 = vld [vmem:[%s448_s0 + $0x8] sm:$0xff]   ;;  %v292_v5 = vld [vmem:[%s448_s0 + $0x10] sm:$0xff]  }
   0x2   :  { %v324_v1 = vld [vmem:[%s449_s1] ss:$0 sm:$0xff]  ;;  %v261_v2 = vunpack.c.l.bf16 %v260_v0  ;;  %v262_v3 = vunpack.c.h.bf16 %v260_v0  ;;  %v293_v6 = vld [vmem:[%s448_s0 + $0x18] sm:$0xff]   ;;  %v265_v8 = vunpack.c.l.bf16 %v291_v4  ;;  %v266_v9 = vunpack.c.h.bf16 %v291_v4  ;;  %v295_v40 = vld [vmem:[%s448_s0 + $0x28] sm:$0xff]  }
   0x3   :  { %v338_v7 = vld [vmem:[%s450_s2] ss:$0 sm:$0xff]  ;;  %v269_v10 = vunpack.c.l.bf16 %v292_v5  ;;  %v270_v11 = vunpack.c.h.bf16 %v292_v5  ;;  %v273_v14 = vunpack.c.l.bf16 %v293_v6  ;;  %v274_v15 = vunpack.c.h.bf16 %v293_v6  ;;  %v296_v52 = vld [vmem:[%s448_s0 + $0x30] sm:$0xff]  }
   0x4   :  { %v53_v12 = vmul.f32 %v261_v2, %v324_v1  ;;  %v54_v13 = vmul.f32 %v262_v3, %v324_v1  ;;  %v55_v16 = vmul.f32 %v265_v8, %v324_v1  ;;  %v56_v17 = vmul.f32 %v266_v9, %v324_v1  ;;  %v294_v39 = vld [vmem:[%s448_s0 + $0x20] sm:$0xff]  }
   0x5   :  { %v57_v18 = vmul.f32 %v269_v10, %v324_v1  ;;  %v58_v19 = vmul.f32 %v270_v11, %v324_v1  ;;  %v59_v22 = vmul.f32 %v273_v14, %v324_v1  ;;  %v60_v23 = vmul.f32 %v274_v15, %v324_v1 }
   0x6   :  { %v76_v20 = vadd.f32 %v338_v7, %v53_v12  ;;  %v77_v21 = vadd.f32 %v338_v7, %v54_v13  ;;  %v78_v24 = vadd.f32 %v338_v7, %v55_v16  ;;  %v79_v25 = vadd.f32 %v338_v7, %v56_v17  ;;  %v297_v17 = vld [vmem:[%s448_s0 + $0x38] sm:$0xff]  }
   0x7   :  { %v80_v26 = vadd.f32 %v338_v7, %v57_v18  ;;  %v81_v27 = vadd.f32 %v338_v7, %v58_v19  ;;  %v82_v46 = vadd.f32 %v338_v7, %v59_v22  ;;  %v83_v47 = vadd.f32 %v338_v7, %v60_v23 }
   0x8   :  { %vm92_vm1 = vcmp.ge.f32.partialorder %v76_v20, 0.0  ;;  %v108_v28 = vmul.f32 0.2, %v76_v20  ;;  %vm93_vm2 = vcmp.ge.f32.partialorder %v77_v21, 0.0  ;;  %v109_v29 = vmul.f32 0.2, %v77_v21 }
   0x9   :  { %vm94_vm3 = vcmp.ge.f32.partialorder %v78_v24, 0.0  ;;  %v110_v30 = vmul.f32 0.2, %v78_v24  ;;  %vm95_vm4 = vcmp.ge.f32.partialorder %v79_v25, 0.0  ;;  %v111_v31 = vmul.f32 0.2, %v79_v25 }
   0xa   :  { %v124_v32 = vsel %vm92_vm1, %v76_v20, %v108_v28  ;;  %v125_v33 = vsel %vm93_vm2, %v77_v21, %v109_v29  ;;  %vm96_vm5 = vcmp.ge.f32.partialorder %v80_v26, 0.0  ;;  %v112_v34 = vmul.f32 0.2, %v80_v26 }
   0xb   :  { %v243_v35 = vpack.c.bf16 %v124_v32, %v124_v32  ;;  %v244_v36 = vpack.c.bf16 %v125_v33, %v125_v33  ;;  %v126_v37 = vsel %vm94_vm3, %v78_v24, %v110_v30  ;;  %v127_v38 = vsel %vm95_vm4, %v79_v25, %v111_v31 }
   0xc   :  { %v245_v41 = vpack.c.bf16 %v126_v37, %v126_v37  ;;  %v246_v42 = vpack.c.bf16 %v127_v38, %v127_v38  ;;  %v128_v43 = vsel %vm96_vm5, %v80_v26, %v112_v34  ;;  %vm97_vm6 = vcmp.ge.f32.partialorder %v81_v27, 0.0 }
   0xd   :  { %205 = vst.msk [vmem:[%s451_s3] sm:$0xf] %vm204_vm0, %v243_v35  ;;  %206 = vst.msk [vmem:[%s451_s3 + $0x4] sm:$0xf] %vm204_vm0, %v244_v36  ;;  %v247_v44 = vpack.c.bf16 %v128_v43, %v128_v43  ;;  %v113_v45 = vmul.f32 0.2, %v81_v27  ;;  %v277_v48 = vunpack.c.l.bf16 %v294_v39  ;;  %v278_v49 = vunpack.c.h.bf16 %v294_v39 }
   0xe   :  { %207 = vst.msk [vmem:[%s451_s3 + $0x8] sm:$0xf] %vm204_vm0, %v245_v41  ;;  %208 = vst.msk [vmem:[%s451_s3 + $0xc] sm:$0xf] %vm204_vm0, %v246_v42  ;;  %v281_v50 = vunpack.c.l.bf16 %v295_v40  ;;  %v282_v51 = vunpack.c.h.bf16 %v295_v40  ;;  %vm98_vm7 = vcmp.ge.f32.partialorder %v82_v46, 0.0  ;;  %vm99_vm8 = vcmp.ge.f32.partialorder %v83_v47, 0.0 }
   0xf   :  { %209 = vst.msk [vmem:[%s451_s3 + $0x10] sm:$0xf] %vm204_vm0, %v247_v44  ;;  %v129_v53 = vsel %vm97_vm6, %v81_v27, %v113_v45  ;;  %v114_v54 = vmul.f32 0.2, %v82_v46  ;;  %v115_v56 = vmul.f32 0.2, %v83_v47  ;;  %v61_v57 = vmul.f32 %v277_v48, %v324_v1 }
  0x10   :  { %v248_v55 = vpack.c.bf16 %v129_v53, %v129_v53  ;;  %v62_v58 = vmul.f32 %v278_v49, %v324_v1  ;;  %v63_v60 = vmul.f32 %v281_v50, %v324_v1  ;;  %v64_v61 = vmul.f32 %v282_v51, %v324_v1 }
  0x11   :  { %v130_v59 = vsel %vm98_vm7, %v82_v46, %v114_v54  ;;  %v285_v62 = vunpack.c.l.bf16 %v296_v52  ;;  %v131_v0 = vsel %vm99_vm8, %v83_v47, %v115_v56  ;;  %v84_v2 = vadd.f32 %v338_v7, %v61_v57 }
  0x12   :  { %210 = vst.msk [vmem:[%s451_s3 + $0x14] sm:$0xf] %vm204_vm0, %v248_v55  ;;  %v249_v63 = vpack.c.bf16 %v130_v59, %v130_v59  ;;  %v85_v3 = vadd.f32 %v338_v7, %v62_v58  ;;  %v250_v4 = vpack.c.bf16 %v131_v0, %v131_v0  ;;  %v86_v5 = vadd.f32 %v338_v7, %v63_v60 }
  0x13   :  { %v87_v6 = vadd.f32 %v338_v7, %v64_v61  ;;  %v65_v8 = vmul.f32 %v285_v62, %v324_v1  ;;  %vm100_vm9 = vcmp.ge.f32.partialorder %v84_v2, 0.0  ;;  %v116_v9 = vmul.f32 0.2, %v84_v2 }
  0x14   :  { %211 = vst.msk [vmem:[%s451_s3 + $0x18] sm:$0xf] %vm204_vm0, %v249_v63  ;;  %vm101_vm10 = vcmp.ge.f32.partialorder %v85_v3, 0.0  ;;  %v117_v10 = vmul.f32 0.2, %v85_v3  ;;  %vm102_vm11 = vcmp.ge.f32.partialorder %v86_v5, 0.0  ;;  %v286_v16 = vunpack.c.h.bf16 %v296_v52 }
  0x15   :  { %212 = vst.msk [vmem:[%s451_s3 + $0x1c] sm:$0xf] %vm204_vm0, %v250_v4  ;;  %v118_v11 = vmul.f32 0.2, %v86_v5  ;;  %vm103_vm12 = vcmp.ge.f32.partialorder %v87_v6, 0.0  ;;  %v132_v13 = vsel %vm100_vm9, %v84_v2, %v116_v9  ;;  %v88_v15 = vadd.f32 %v338_v7, %v65_v8 }
  0x16   :  { %v119_v12 = vmul.f32 0.2, %v87_v6  ;;  %v133_v14 = vsel %vm101_vm10, %v85_v3, %v117_v10  ;;  %v251_v18 = vpack.c.bf16 %v132_v13, %v132_v13  ;;  %v66_v25 = vmul.f32 %v286_v16, %v324_v1 }
  0x17   :  { %v252_v19 = vpack.c.bf16 %v133_v14, %v133_v14  ;;  %v134_v20 = vsel %vm102_vm11, %v86_v5, %v118_v11  ;;  %vm104_vm13 = vcmp.ge.f32.partialorder %v88_v15, 0.0  ;;  %v120_v24 = vmul.f32 0.2, %v88_v15 }
  0x18   :  { %v135_v21 = vsel %vm103_vm12, %v87_v6, %v119_v12  ;;  %v253_v22 = vpack.c.bf16 %v134_v20, %v134_v20  ;;  %213 = vst.msk [vmem:[%s451_s3 + $0x20] sm:$0xf] %vm204_vm0, %v251_v18  ;;  %v289_v26 = vunpack.c.l.bf16 %v297_v17  ;;  %v290_v27 = vunpack.c.h.bf16 %v297_v17 }
  0x19   :  { %v254_v23 = vpack.c.bf16 %v135_v21, %v135_v21  ;;  %214 = vst.msk [vmem:[%s451_s3 + $0x24] sm:$0xf] %vm204_vm0, %v252_v19  ;;  %v136_v28 = vsel %vm104_vm13, %v88_v15, %v120_v24  ;;  %v89_v30 = vadd.f32 %v338_v7, %v66_v25 }
  0x1a   :  { %215 = vst.msk [vmem:[%s451_s3 + $0x28] sm:$0xf] %vm204_vm0, %v253_v22  ;;  %v255_v29 = vpack.c.bf16 %v136_v28, %v136_v28  ;;  %v67_v31 = vmul.f32 %v289_v26, %v324_v1  ;;  %v68_v32 = vmul.f32 %v290_v27, %v324_v1 }
  0x1b   :  { %216 = vst.msk [vmem:[%s451_s3 + $0x2c] sm:$0xf] %vm204_vm0, %v254_v23  ;;  %vm105_vm14 = vcmp.ge.f32.partialorder %v89_v30, 0.0  ;;  %v121_v33 = vmul.f32 0.2, %v89_v30 }
  0x1c   :  { %217 = vst.msk [vmem:[%s451_s3 + $0x30] sm:$0xf] %vm204_vm0, %v255_v29  ;;  %v90_v34 = vadd.f32 %v338_v7, %v67_v31  ;;  %v91_v35 = vadd.f32 %v338_v7, %v68_v32 }
  0x1d   :  { %v137_v36 = vsel %vm105_vm14, %v89_v30, %v121_v33 }
  0x1e   :  { %vm106_vm15 = vcmp.ge.f32.partialorder %v90_v34, 0.0  ;;  %v122_v37 = vmul.f32 0.2, %v90_v34  ;;  %vm107_vm1 = vcmp.ge.f32.partialorder %v91_v35, 0.0  ;;  %v256_v38 = vpack.c.bf16 %v137_v36, %v137_v36 }
  0x1f   :  { %v123_v39 = vmul.f32 0.2, %v91_v35 }
  0x20   :  { %v138_v40 = vsel %vm106_vm15, %v90_v34, %v122_v37  ;;  %218 = vst.msk [vmem:[%s451_s3 + $0x34] sm:$0xf] %vm204_vm0, %v256_v38 }
  0x21   :  { %v257_v1 = vpack.c.bf16 %v138_v40, %v138_v40  ;;  %v139_v41 = vsel %vm107_vm1, %v91_v35, %v123_v39 }
  0x22   :  { %v258_v42 = vpack.c.bf16 %v139_v41, %v139_v41 }
  0x23   :  { %219 = vst.msk [vmem:[%s451_s3 + $0x38] sm:$0xf] %vm204_vm0, %v257_v1 }
  0x24   :  { %220 = vst.msk [vmem:[%s451_s3 + $0x3c] sm:$0xf] %vm204_vm0, %v258_v42 }

// kernel: forward.11
= control target key start
LH: loop header
LB: loop body
LE: loop exit
PB: predicated region body
PF: predicated region fallthrough
CT: control target
= control target key end

     0   :  { %vm21_vm0 = vcmask 261120   ;;  %vm1477_vm1 = vcmask 257024   ;;  %s2698_s1 = inlined_call_operand.vmem [shape: bf16[1024,32], index: 1, kind: input, shape index: {}]   ;;  %s2699_s0 = inlined_call_operand.vmem [shape: bf16[128,1024], index: 0, kind: input, shape index: {}]   ;;  %s2700_s2 = inlined_call_operand.vmem [shape: f32[1,32], index: 2, kind: input, shape index: {}]   ;;  %s2701_s3 = inlined_call_operand.vmem [shape: bf16[128,32], index: 3, kind: output, shape index: {0}]   ;;  %s2702_s4 = inlined_call_operand.vmem [shape: f32[1,8,32], index: 4, kind: output, shape index: {1}]  }
   0x1   :  { %v2017_v0 = vld [vmem:[%s2698_s1 + $0x40] sm:$0xff]   ;;  %v2021_v4 = vld [vmem:[%s2698_s1 + $0x48] sm:$0xff]   ;;  %v2025_v8 = vld [vmem:[%s2698_s1 + $0x50] sm:$0xff]  }
   0x2   :  { %v2018_v1 = vld [vmem:[%s2698_s1 + $0xc0] sm:$0xff]   ;;  %1760 = vmatprep.subr.bf16.mxu0 %v2017_v0  ;;  %v2022_v5 = vld [vmem:[%s2698_s1 + $0xc8] sm:$0xff]   ;;  %v2026_v9 = vld [vmem:[%s2698_s1 + $0xd0] sm:$0xff]  }
   0x3   :  { %v2019_v2 = vld [vmem:[%s2698_s1] sm:$0xff]   ;;  %1824 = vmatprep.subr.bf16.mxu1 %v2018_v1  ;;  %v2023_v6 = vld [vmem:[%s2698_s1 + $0x8] sm:$0xff]   ;;  %v2027_v10 = vld [vmem:[%s2698_s1 + $0x10] sm:$0xff]  }
   0x4   :  { %v2020_v3 = vld [vmem:[%s2698_s1 + $0x80] sm:$0xff]   ;;  %1761 = vmatpush3.bf16.msra.mxu0 %v2019_v2  ;;  %v2024_v7 = vld [vmem:[%s2698_s1 + $0x88] sm:$0xff]   ;;  %v2028_v11 = vld [vmem:[%s2698_s1 + $0x90] sm:$0xff]  }
   0x5   :  { %1825 = vmatpush3.bf16.msra.mxu1 %v2020_v3  ;;  %1762 = vmatprep.subr.bf16.mxu0 %v2021_v4  ;;  %v2029_v12 = vld [vmem:[%s2698_s1 + $0x58] sm:$0xff]   ;;  %v2033_v16 = vld [vmem:[%s2698_s1 + $0x60] sm:$0xff]   ;;  %v2037_v20 = vld [vmem:[%s2698_s1 + $0x68] sm:$0xff]  }
   0x6   :  { %1826 = vmatprep.subr.bf16.mxu1 %v2022_v5  ;;  %v2030_v13 = vld [vmem:[%s2698_s1 + $0xd8] sm:$0xff]   ;;  %v2034_v17 = vld [vmem:[%s2698_s1 + $0xe0] sm:$0xff]   ;;  %v2038_v21 = vld [vmem:[%s2698_s1 + $0xe8] sm:$0xff]  }
   0x7   :  { %v2031_v14 = vld [vmem:[%s2698_s1 + $0x18] sm:$0xff]   ;;  %v2035_v18 = vld [vmem:[%s2698_s1 + $0x20] sm:$0xff]   ;;  %v2039_v22 = vld [vmem:[%s2698_s1 + $0x28] sm:$0xff]  }
   0x8   :  { %1763 = vmatpush3.bf16.msra.mxu0 %v2023_v6  ;;  %v2032_v15 = vld [vmem:[%s2698_s1 + $0x98] sm:$0xff]   ;;  %v2036_v19 = vld [vmem:[%s2698_s1 + $0xa0] sm:$0xff]   ;;  %v2040_v23 = vld [vmem:[%s2698_s1 + $0xa8] sm:$0xff]  }
   0x9   :  { %1827 = vmatpush3.bf16.msra.mxu1 %v2024_v7  ;;  %1764 = vmatprep.subr.bf16.mxu0 %v2025_v8  ;;  %v2041_v24 = vld [vmem:[%s2698_s1 + $0x70] sm:$0xff]   ;;  %v2045_v28 = vld [vmem:[%s2698_s1 + $0x78] sm:$0xff]   ;;  %v54_v32 = vld [vmem:[%s2699_s0] sm:$0xff] }
   0xa   :  { %1828 = vmatprep.subr.bf16.mxu1 %v2026_v9  ;;  %v2042_v25 = vld [vmem:[%s2698_s1 + $0xf0] sm:$0xff]   ;;  %v2046_v29 = vld [vmem:[%s2698_s1 + $0xf8] sm:$0xff]   ;;  %v58_v33 = vld [vmem:[%s2699_s0 + $0x20] sm:$0xff] }
   0xb   :  { %v2043_v26 = vld [vmem:[%s2698_s1 + $0x30] sm:$0xff]   ;;  %v2047_v30 = vld [vmem:[%s2698_s1 + $0x38] sm:$0xff]   ;;  %v55_v34 = vld [vmem:[%s2699_s0 + $0x8] sm:$0xff]  ;;  %v1599_v35 = vcombine.low %v54_v32, %v58_v33  ;;  %v1600_v36 = vcombine.high %v54_v32, %v58_v33 }
   0xc   :  { %1765 = vmatpush3.bf16.msra.mxu0 %v2027_v10  ;;  %v2044_v27 = vld [vmem:[%s2698_s1 + $0xb0] sm:$0xff]   ;;  %v2048_v31 = vld [vmem:[%s2698_s1 + $0xb8] sm:$0xff]   ;;  %v59_v37 = vld [vmem:[%s2699_s0 + $0x28] sm:$0xff] }
   0xd   :  { %1829 = vmatpush3.bf16.msra.mxu1 %v2028_v11  ;;  %1766 = vmatprep.subr.bf16.mxu0 %v2029_v12  ;;  %v1601_v38 = vcombine.low %v55_v34, %v59_v37  ;;  %v1602_v39 = vcombine.high %v55_v34, %v59_v37  ;;  %v2049_v40 = vld [vmem:[%s2698_s1 + $0x140] sm:$0xff]   ;;  %v63_v47 = vld [vmem:[%s2699_s0 + $0x48] sm:$0xff]  ;;  %v2057_v62 = vld [vmem:[%s2698_s1 + $0x150] sm:$0xff]  }
   0xe   :  { %1830 = vmatprep.subr.bf16.mxu1 %v2030_v13  ;;  %982 = vmatprep.mubr.bf16.mxu0 %v1600_v36  ;;  %v2050_v41 = vld [vmem:[%s2698_s1 + $0x100] sm:$0xff]   ;;  %v67_v48 = vld [vmem:[%s2699_s0 + $0x68] sm:$0xff]  ;;  %v2058_v63 = vld [vmem:[%s2698_s1 + $0x110] sm:$0xff]  }
   0xf   :  { %1079 = vmatprep.mubr.bf16.mxu1 %v1602_v39  ;;  %v2051_v42 = vld [vmem:[%s2698_s1 + $0x1c0] sm:$0xff]   ;;  %v1610_v49 = vcombine.high %v63_v47, %v67_v48  ;;  %v2053_v50 = vld [vmem:[%s2698_s1 + $0x148] sm:$0xff]   ;;  %v1609_v53 = vcombine.low %v63_v47, %v67_v48  ;;  %v2059_v0 = vld [vmem:[%s2698_s1 + $0x1d0] sm:$0xff]  }
  0x10   :  { %1767 = vmatpush3.bf16.msra.mxu0 %v2031_v14  ;;  %v2052_v43 = vld [vmem:[%s2698_s1 + $0x180] sm:$0xff]   ;;  %v2054_v52 = vld [vmem:[%s2698_s1 + $0x108] sm:$0xff]   ;;  %v2060_v1 = vld [vmem:[%s2698_s1 + $0x190] sm:$0xff]  }
  0x11   :  { %1831 = vmatpush3.bf16.msra.mxu1 %v2032_v15  ;;  %1768 = vmatprep.subr.bf16.mxu0 %v2033_v16  ;;  %v62_v44 = vld [vmem:[%s2699_s0 + $0x40] sm:$0xff]  ;;  %v2055_v54 = vld [vmem:[%s2698_s1 + $0x1c8] sm:$0xff]   ;;  %v2061_v10 = vld [vmem:[%s2698_s1 + $0x158] sm:$0xff]  }
  0x12   :  { %1832 = vmatprep.subr.bf16.mxu1 %v2034_v17  ;;  %v66_v45 = vld [vmem:[%s2699_s0 + $0x60] sm:$0xff]  ;;  %v2056_v55 = vld [vmem:[%s2698_s1 + $0x188] sm:$0xff]   ;;  %v2062_v11 = vld [vmem:[%s2698_s1 + $0x118] sm:$0xff]  }
  0x13   :  { %v1608_v46 = vcombine.high %v62_v44, %v66_v45  ;;  %v1607_v51 = vcombine.low %v62_v44, %v66_v45  ;;  %v70_v56 = vld [vmem:[%s2699_s0 + $0x80] sm:$0xff]  ;;  %v71_v58 = vld [vmem:[%s2699_s0 + $0x88] sm:$0xff]  ;;  %v2063_v12 = vld [vmem:[%s2698_s1 + $0x1d8] sm:$0xff]  }
  0x14   :  { %1769 = vmatpush3.bf16.msra.mxu0 %v2035_v18  ;;  %v74_v57 = vld [vmem:[%s2699_s0 + $0xa0] sm:$0xff]  ;;  %v75_v59 = vld [vmem:[%s2699_s0 + $0xa8] sm:$0xff]  ;;  %v2064_v13 = vld [vmem:[%s2698_s1 + $0x198] sm:$0xff]  }
  0x15   :  { %1833 = vmatpush3.bf16.msra.mxu1 %v2036_v19  ;;  %1770 = vmatprep.subr.bf16.mxu0 %v2037_v20  ;;  %v1616_v60 = vcombine.high %v70_v56, %v74_v57  ;;  %v1618_v61 = vcombine.high %v71_v58, %v75_v59  ;;  %v1615_v2 = vcombine.low %v70_v56, %v74_v57  ;;  %v78_v3 = vld [vmem:[%s2699_s0 + $0xc0] sm:$0xff]  ;;  %v79_v5 = vld [vmem:[%s2699_s0 + $0xc8] sm:$0xff]  ;;  %v2074_v39 = vld [vmem:[%s2698_s1 + $0x130] sm:$0xff]  }
  0x16   :  { %1834 = vmatprep.subr.bf16.mxu1 %v2038_v21  ;;  %v82_v4 = vld [vmem:[%s2699_s0 + $0xe0] sm:$0xff]  ;;  %v1617_v6 = vcombine.low %v71_v58, %v75_v59  ;;  %v83_v8 = vld [vmem:[%s2699_s0 + $0xe8] sm:$0xff]  ;;  %v2078_v48 = vld [vmem:[%s2698_s1 + $0x138] sm:$0xff]  }
  0x17   :  { %v1624_v7 = vcombine.high %v78_v3, %v82_v4  ;;  %v1626_v9 = vcombine.high %v79_v5, %v83_v8  ;;  %v86_v14 = vld [vmem:[%s2699_s0 + $0x100] sm:$0xff]  ;;  %v87_v16 = vld [vmem:[%s2699_s0 + $0x108] sm:$0xff]  ;;  %v1623_v19 = vcombine.low %v78_v3, %v82_v4  ;;  %v1625_v21 = vcombine.low %v79_v5, %v83_v8  ;;  %v65_v8 = vld [vmem:[%s2699_s0 + $0x58] sm:$0xff] }
  0x18   :  { %1771 = vmatpush3.bf16.msra.mxu0 %v2039_v22  ;;  %v90_v15 = vld [vmem:[%s2699_s0 + $0x120] sm:$0xff]  ;;  %v91_v17 = vld [vmem:[%s2699_s0 + $0x128] sm:$0xff] }
  0x19   :  { %1835 = vmatpush3.bf16.msra.mxu1 %v2040_v23  ;;  %1772 = vmatprep.subr.bf16.mxu0 %v2041_v24  ;;  %v2065_v18 = vld [vmem:[%s2698_s1 + $0x160] sm:$0xff]   ;;  %v1632_v22 = vcombine.high %v86_v14, %v90_v15  ;;  %v1634_v24 = vcombine.high %v87_v16, %v91_v17  ;;  %v2071_v32 = vld [vmem:[%s2698_s1 + $0x1e8] sm:$0xff]   ;;  %v1631_v34 = vcombine.low %v86_v14, %v90_v15  ;;  %v72_v14 = vld [vmem:[%s2699_s0 + $0x90] sm:$0xff] }
  0x1a   :  { %1836 = vmatprep.subr.bf16.mxu1 %v2042_v25  ;;  %v2066_v20 = vld [vmem:[%s2698_s1 + $0x120] sm:$0xff]   ;;  %v2072_v33 = vld [vmem:[%s2698_s1 + $0x1a8] sm:$0xff]   ;;  %v76_v15 = vld [vmem:[%s2699_s0 + $0xb0] sm:$0xff] }
  0x1b   :  { %v2067_v23 = vld [vmem:[%s2698_s1 + $0x1e0] sm:$0xff]   ;;  %v103_v44 = vld [vmem:[%s2699_s0 + $0x188] sm:$0xff] }
  0x1c   :  { %1773 = vmatpush3.bf16.msra.mxu0 %v2043_v26  ;;  %v2068_v25 = vld [vmem:[%s2698_s1 + $0x1a0] sm:$0xff]   ;;  %v107_v45 = vld [vmem:[%s2699_s0 + $0x1a8] sm:$0xff] }
  0x1d   :  { %1837 = vmatpush3.bf16.msra.mxu1 %v2044_v27  ;;  %1774 = vmatprep.subr.bf16.mxu0 %v2045_v28  ;;  %v94_v26 = vld [vmem:[%s2699_s0 + $0x140] sm:$0xff]  ;;  %v2069_v28 = vld [vmem:[%s2698_s1 + $0x168] sm:$0xff]   ;;  %v1649_v59 = vcombine.low %v103_v44, %v107_v45 }
  0x1e   :  { %1838 = vmatprep.subr.bf16.mxu1 %v2046_v29  ;;  %v98_v27 = vld [vmem:[%s2699_s0 + $0x160] sm:$0xff]  ;;  %v95_v29 = vld [vmem:[%s2699_s0 + $0x148] sm:$0xff] }
  0x1f   :  { %v1640_v36 = vcombine.high %v94_v26, %v98_v27  ;;  %v1639_v47 = vcombine.low %v94_v26, %v98_v27  ;;  %v111_v56 = vld [vmem:[%s2699_s0 + $0x1c8] sm:$0xff]  ;;  %v1619_v26 = vcombine.low %v72_v14, %v76_v15 }
  0x20   :  { %1775 = vmatpush3.bf16.msra.mxu0 %v2047_v30  ;;  %v99_v30 = vld [vmem:[%s2699_s0 + $0x168] sm:$0xff] }
  0x21   :  { %1839 = vmatpush3.bf16.msra.mxu1 %v2048_v31  ;;  %1888 = vmatprep.subr.bf16.mxu0 %v2049_v40  ;;  %v2070_v31 = vld [vmem:[%s2698_s1 + $0x128] sm:$0xff]   ;;  %v1642_v37 = vcombine.high %v95_v29, %v99_v30  ;;  %v2075_v40 = vld [vmem:[%s2698_s1 + $0x1f0] sm:$0xff]  }
  0x22   :  { %1952 = vmatprep.subr.bf16.mxu1 %v2051_v42  ;;  %v106_v42 = vld [vmem:[%s2699_s0 + $0x1a0] sm:$0xff]  ;;  %v115_v57 = vld [vmem:[%s2699_s0 + $0x1e8] sm:$0xff] }
  0x23   :  { %983 = vmatmul.mubr.bf16.vlgmr.msra.gmra.mrb[0].mxu0 %v1599_v35  ;;  %v1633_v35 = vcombine.low %v87_v16, %v91_v17  ;;  %v1657_v3 = vcombine.low %v111_v56, %v115_v57  ;;  %v73_v16 = vld [vmem:[%s2699_s0 + $0x98] sm:$0xff] }
  0x24   :  { %1080 = vmatmul.mubr.bf16.vlgmr.msra.gmra.mrb[0].mxu1 %v1601_v38  ;;  %1889 = vmatpush3.bf16.msra.mxu0 %v2050_v41  ;;  %v2073_v38 = vld [vmem:[%s2698_s1 + $0x170] sm:$0xff]   ;;  %v102_v41 = vld [vmem:[%s2699_s0 + $0x180] sm:$0xff]  ;;  %v77_v17 = vld [vmem:[%s2699_s0 + $0xb8] sm:$0xff] }
  0x25   :  { %1953 = vmatpush3.bf16.msra.mxu1 %v2052_v43  ;;  %990 = vmatprep.mubr.bf16.mxu0 %v1608_v46  ;;  %v2076_v43 = vld [vmem:[%s2698_s1 + $0x1b0] sm:$0xff]   ;;  %v2077_v46 = vld [vmem:[%s2698_s1 + $0x178] sm:$0xff]   ;;  %v1647_v58 = vcombine.low %v102_v41, %v106_v42  ;;  %v1621_v27 = vcombine.low %v73_v16, %v77_v17 }
  0x26   :  { %1087 = vmatprep.mubr.bf16.mxu1 %v1610_v49  ;;  %1890 = vmatprep.subr.bf16.mxu0 %v2053_v50  ;;  %v1641_v49 = vcombine.low %v95_v29, %v99_v30  ;;  %v1648_v50 = vcombine.high %v102_v41, %v106_v42  ;;  %v88_v30 = vld [vmem:[%s2699_s0 + $0x110] sm:$0xff]  ;;  %v101_v41 = vld [vmem:[%s2699_s0 + $0x178] sm:$0xff] }
  0x27   :  { %1954 = vmatprep.subr.bf16.mxu1 %v2055_v54  ;;  %v110_v54 = vld [vmem:[%s2699_s0 + $0x1c0] sm:$0xff] }
  0x28   :  { %1891 = vmatpush3.bf16.msra.mxu0 %v2054_v52  ;;  %v1650_v52 = vcombine.high %v103_v44, %v107_v45 }
  0x29   :  { %1955 = vmatpush3.bf16.msra.mxu1 %v2056_v55  ;;  %1892 = vmatprep.subr.bf16.mxu0 %v2057_v62  ;;  %v114_v55 = vld [vmem:[%s2699_s0 + $0x1e0] sm:$0xff]  ;;  %v56_v62 = vld [vmem:[%s2699_s0 + $0x10] sm:$0xff] }
  0x2a   :  { %1956 = vmatprep.subr.bf16.mxu1 %v2059_v0  ;;  %v57_v0 = vld [vmem:[%s2699_s0 + $0x18] sm:$0xff] }
  0x2b   :  { %991 = vmatmul.mubr.bf16.gmra.mrb[4].mxu0 %v1607_v51  ;;  %v2079_v51 = vld [vmem:[%s2698_s1 + $0x1f8] sm:$0xff]  }
  0x2c   :  { %1088 = vmatmul.mubr.bf16.gmra.mrb[4].mxu1 %v1609_v53  ;;  %998 = vmatprep.mubr.bf16.mxu0 %v1616_v60  ;;  %v2080_v53 = vld [vmem:[%s2698_s1 + $0x1b8] sm:$0xff]   ;;  %v1656_v60 = vcombine.high %v110_v54, %v114_v55 }
  0x2d   :  { %1095 = vmatprep.mubr.bf16.mxu1 %v1618_v61  ;;  %1893 = vmatpush3.bf16.msra.mxu0 %v2058_v63  ;;  %v1658_v61 = vcombine.high %v111_v56, %v115_v57  ;;  %v60_v63 = vld [vmem:[%s2699_s0 + $0x30] sm:$0xff]  ;;  %v113_v56 = vld [vmem:[%s2699_s0 + $0x1d8] sm:$0xff] }
  0x2e   :  { %1957 = vmatpush3.bf16.msra.mxu1 %v2060_v1  ;;  %1894 = vmatprep.subr.bf16.mxu0 %v2061_v10  ;;  %v61_v1 = vld [vmem:[%s2699_s0 + $0x38] sm:$0xff]  ;;  %v1604_v4 = vcombine.high %v56_v62, %v60_v63  ;;  %v1603_v10 = vcombine.low %v56_v62, %v60_v63 }
  0x2f   :  { %1958 = vmatprep.subr.bf16.mxu1 %v2063_v12  ;;  %v1606_v5 = vcombine.high %v57_v0, %v61_v1  ;;  %v117_v57 = vld [vmem:[%s2699_s0 + $0x1f8] sm:$0xff] }
  0x30   :  { %v1661_v63 = vcombine.low %v113_v56, %v117_v57 }
  0x31   :  { %1895 = vmatpush3.bf16.msra.mxu0 %v2062_v11  ;;  %v1605_v11 = vcombine.low %v57_v0, %v61_v1  ;;  %v2081_v0 = vmov 0.0  }
  0x32   :  { %1959 = vmatpush3.bf16.msra.mxu1 %v2064_v13  ;;  %1896 = vmatprep.subr.bf16.mxu0 %v2065_v18  ;;  %22 = vst.msk [vmem:[#allocation2] sm:$0xff] %vm21_vm0, %v2081_v0  ;;  %23 = vst.msk [vmem:[#allocation2 + $0x8] sm:$0xff] %vm21_vm0, %v2081_v0 }
  0x33   :  { %999 = vmatmul.mubr.bf16.gmra.mrb[8].mxu0 %v1615_v2  ;;  %1960 = vmatprep.subr.bf16.mxu1 %v2067_v23  ;;  %v1655_v2 = vcombine.low %v110_v54, %v114_v55  ;;  %v84_v23 = vld [vmem:[%s2699_s0 + $0xf0] sm:$0xff]  ;;  %24 = vst.msk [vmem:[#allocation2 + $0x10] sm:$0xff] %vm21_vm0, %v2081_v0  ;;  %25 = vst.msk [vmem:[#allocation2 + $0x18] sm:$0xff] %vm21_vm0, %v2081_v0 }
  0x34   :  { %1096 = vmatmul.mubr.bf16.gmra.mrb[8].mxu1 %v1617_v6  ;;  %1006 = vmatprep.mubr.bf16.mxu0 %v1624_v7  ;;  %v64_v6 = vld [vmem:[%s2699_s0 + $0x50] sm:$0xff]  ;;  %26 = vst.msk [vmem:[#allocation2 + $0x20] sm:$0xff] %vm21_vm0, %v2081_v0  ;;  %27 = vst.msk [vmem:[#allocation2 + $0x28] sm:$0xff] %vm21_vm0, %v2081_v0 }
  0x35   :  { %1103 = vmatprep.mubr.bf16.mxu1 %v1626_v9  ;;  %1897 = vmatpush3.bf16.msra.mxu0 %v2066_v20  ;;  %v68_v7 = vld [vmem:[%s2699_s0 + $0x70] sm:$0xff]  ;;  %v69_v9 = vld [vmem:[%s2699_s0 + $0x78] sm:$0xff]  ;;  %v1620_v20 = vcombine.high %v72_v14, %v76_v15  ;;  %28 = vst.msk [vmem:[#allocation2 + $0x30] sm:$0xff] %vm21_vm0, %v2081_v0  ;;  %29 = vst.msk [vmem:[#allocation2 + $0x38] sm:$0xff] %vm21_vm0, %v2081_v0 }
  0x36   :  { %1961 = vmatpush3.bf16.msra.mxu1 %v2068_v25  ;;  %1898 = vmatprep.subr.bf16.mxu0 %v2069_v28  ;;  %v1612_v12 = vcombine.high %v64_v6, %v68_v7  ;;  %v1614_v13 = vcombine.high %v65_v8, %v69_v9  ;;  %v1611_v18 = vcombine.low %v64_v6, %v68_v7  ;;  %v85_v25 = vld [vmem:[%s2699_s0 + $0xf8] sm:$0xff]  ;;  %v112_v54 = vld [vmem:[%s2699_s0 + $0x1d0] sm:$0xff] }
  0x37   :  { %1962 = vmatprep.subr.bf16.mxu1 %v2071_v32  ;;  %v89_v32 = vld [vmem:[%s2699_s0 + $0x118] sm:$0xff]  ;;  %v116_v55 = vld [vmem:[%s2699_s0 + $0x1f0] sm:$0xff]  ;;  %30 = vst.msk [vmem:[#allocation2 + $0x40] sm:$0xff] %vm21_vm0, %v2081_v0  ;;  %31 = vst.msk [vmem:[#allocation2 + $0x48] sm:$0xff] %vm21_vm0, %v2081_v0 }
  0x38   :  { %v1659_v62 = vcombine.low %v112_v54, %v116_v55  ;;  %32 = vst.msk [vmem:[#allocation2 + $0x50] sm:$0xff] %vm21_vm0, %v2081_v0  ;;  %33 = vst.msk [vmem:[#allocation2 + $0x58] sm:$0xff] %vm21_vm0, %v2081_v0 }
  0x39   :  { %1899 = vmatpush3.bf16.msra.mxu0 %v2070_v31  ;;  %v92_v31 = vld [vmem:[%s2699_s0 + $0x130] sm:$0xff]  ;;  %34 = vst.msk [vmem:[#allocation2 + $0x60] sm:$0xff] %vm21_vm0, %v2081_v0  ;;  %35 = vst.msk [vmem:[#allocation2 + $0x68] sm:$0xff] %vm21_vm0, %v2081_v0 }
  0x3a   :  { %1963 = vmatpush3.bf16.msra.mxu1 %v2072_v33  ;;  %1900 = vmatprep.subr.bf16.mxu0 %v2073_v38  ;;  %v93_v33 = vld [vmem:[%s2699_s0 + $0x138] sm:$0xff]  ;;  %v96_v38 = vld [vmem:[%s2699_s0 + $0x150] sm:$0xff]  ;;  %v1635_v42 = vcombine.low %v88_v30, %v92_v31  ;;  %36 = vst.msk [vmem:[#allocation2 + $0x70] sm:$0xff] %vm21_vm0, %v2081_v0  ;;  %37 = vst.msk [vmem:[#allocation2 + $0x78] sm:$0xff] %vm21_vm0, %v2081_v0 }
  0x3b   :  { %1007 = vmatmul.mubr.bf16.gmra.mrb[12].mxu0 %v1623_v19  ;;  %1964 = vmatprep.subr.bf16.mxu1 %v2075_v40  ;;  %v1613_v19 = vcombine.low %v65_v8, %v69_v9  ;;  %v97_v40 = vld [vmem:[%s2699_s0 + $0x158] sm:$0xff] }
  0x3c   :  { %1104 = vmatmul.mubr.bf16.gmra.mrb[12].mxu1 %v1625_v21  ;;  %1014 = vmatprep.mubr.bf16.mxu0 %v1632_v22  ;;  %v1622_v21 = vcombine.high %v73_v16, %v77_v17  ;;  %v80_v22 = vld [vmem:[%s2699_s0 + $0xd0] sm:$0xff]  ;;  %v1646_v45 = vcombine.high %v97_v40, %v101_v41 }
  0x3d   :  { %1111 = vmatprep.mubr.bf16.mxu1 %v1634_v24  ;;  %1901 = vmatpush3.bf16.msra.mxu0 %v2074_v39  ;;  %v81_v24 = vld [vmem:[%s2699_s0 + $0xd8] sm:$0xff]  ;;  %v1628_v28 = vcombine.high %v80_v22, %v84_v23  ;;  %v100_v39 = vld [vmem:[%s2699_s0 + $0x170] sm:$0xff] }
  0x3e   :  { %1965 = vmatpush3.bf16.msra.mxu1 %v2076_v43  ;;  %1902 = vmatprep.subr.bf16.mxu0 %v2077_v46  ;;  %v1630_v29 = vcombine.high %v81_v24, %v85_v25  ;;  %v1637_v43 = vcombine.low %v89_v32, %v93_v33  ;;  %v1644_v44 = vcombine.high %v96_v38, %v100_v39  ;;  %v104_v46 = vld [vmem:[%s2699_s0 + $0x190] sm:$0xff] }
  0x3f   :  { %1966 = vmatprep.subr.bf16.mxu1 %v2079_v51  ;;  %v1645_v51 = vcombine.low %v97_v40, %v101_v41 }
  0x41   :  { %1903 = vmatpush3.bf16.msra.mxu0 %v2078_v48  ;;  %v105_v48 = vld [vmem:[%s2699_s0 + $0x198] sm:$0xff] }
  0x42   :  { %1967 = vmatpush3.bf16.msra.mxu1 %v2080_v53 }
  0x43   :  { %1015 = vmatmul.mubr.bf16.gmra.mrb[16].mxu0 %v1631_v34  ;;  %v1627_v34 = vcombine.low %v80_v22, %v84_v23 }
  0x44   :  { %1112 = vmatmul.mubr.bf16.gmra.mrb[16].mxu1 %v1633_v35  ;;  %1022 = vmatprep.mubr.bf16.mxu0 %v1640_v36  ;;  %v1629_v35 = vcombine.low %v81_v24, %v85_v25  ;;  %v1636_v36 = vcombine.high %v88_v30, %v92_v31 }
  0x45   :  { %1119 = vmatprep.mubr.bf16.mxu1 %v1642_v37  ;;  %v1638_v37 = vcombine.high %v89_v32, %v93_v33 }
  0x4b   :  { %1023 = vmatmul.mubr.bf16.gmra.mrb[20].mxu0 %v1639_v47  ;;  %v108_v47 = vld [vmem:[%s2699_s0 + $0x1b0] sm:$0xff] }
  0x4c   :  { %1120 = vmatmul.mubr.bf16.gmra.mrb[20].mxu1 %v1641_v49  ;;  %1030 = vmatprep.mubr.bf16.mxu0 %v1648_v50  ;;  %v109_v49 = vld [vmem:[%s2699_s0 + $0x1b8] sm:$0xff]  ;;  %v1643_v50 = vcombine.low %v96_v38, %v100_v39 }
  0x4d   :  { %1127 = vmatprep.mubr.bf16.mxu1 %v1650_v52  ;;  %v1652_v52 = vcombine.high %v104_v46, %v108_v47  ;;  %v1654_v53 = vcombine.high %v105_v48, %v109_v49 }
  0x53   :  { %1031 = vmatmul.mubr.bf16.gmra.mrb[24].mxu0 %v1647_v58  ;;  %v1651_v58 = vcombine.low %v104_v46, %v108_v47 }
  0x54   :  { %1128 = vmatmul.mubr.bf16.gmra.mrb[24].mxu1 %v1649_v59  ;;  %1038 = vmatprep.mubr.bf16.mxu0 %v1656_v60  ;;  %v1653_v59 = vcombine.low %v105_v48, %v109_v49  ;;  %v1660_v60 = vcombine.high %v112_v54, %v116_v55 }
  0x55   :  { %1135 = vmatprep.mubr.bf16.mxu1 %v1658_v61  ;;  %v1662_v61 = vcombine.high %v113_v56, %v117_v57 }
  0x5b   :  { %1039 = vmatmul.mubr.bf16.gmra.mrb[28].mxu0 %v1655_v2 }
  0x5c   :  { %1136 = vmatmul.mubr.bf16.gmra.mrb[28].mxu1 %v1657_v3  ;;  %1176 = vmatprep.mubr.bf16.mxu0 %v1604_v4 }
  0x5d   :  { %1273 = vmatprep.mubr.bf16.mxu1 %v1606_v5 }
  0x63   :  { %1177 = vmatmul.mubr.bf16.vlgmr.msra.gmra.mrb[32].mxu0 %v1603_v10 }
  0x64   :  { %1274 = vmatmul.mubr.bf16.vlgmr.msra.gmra.mrb[32].mxu1 %v1605_v11  ;;  %1184 = vmatprep.mubr.bf16.mxu0 %v1612_v12 }
  0x65   :  { %1281 = vmatprep.mubr.bf16.mxu1 %v1614_v13 }
  0x6b   :  { %1185 = vmatmul.mubr.bf16.gmra.mrb[36].mxu0 %v1611_v18 }
  0x6c   :  { %1282 = vmatmul.mubr.bf16.gmra.mrb[36].mxu1 %v1613_v19  ;;  %1192 = vmatprep.mubr.bf16.mxu0 %v1620_v20 }
  0x6d   :  { %1289 = vmatprep.mubr.bf16.mxu1 %v1622_v21 }
  0x73   :  { %1193 = vmatmul.mubr.bf16.gmra.mrb[40].mxu0 %v1619_v26 }
  0x74   :  { %1290 = vmatmul.mubr.bf16.gmra.mrb[40].mxu1 %v1621_v27  ;;  %1200 = vmatprep.mubr.bf16.mxu0 %v1628_v28 }
  0x75   :  { %1297 = vmatprep.mubr.bf16.mxu1 %v1630_v29 }
  0x7b   :  { %1201 = vmatmul.mubr.bf16.gmra.mrb[44].mxu0 %v1627_v34 }
  0x7c   :  { %1298 = vmatmul.mubr.bf16.gmra.mrb[44].mxu1 %v1629_v35  ;;  %1208 = vmatprep.mubr.bf16.mxu0 %v1636_v36 }
  0x7d   :  { %1305 = vmatprep.mubr.bf16.mxu1 %v1638_v37 }
  0x83   :  { %1209 = vmatmul.mubr.bf16.gmra.mrb[48].mxu0 %v1635_v42 }
  0x84   :  { %1306 = vmatmul.mubr.bf16.gmra.mrb[48].mxu1 %v1637_v43  ;;  %1216 = vmatprep.mubr.bf16.mxu0 %v1644_v44 }
  0x85   :  { %1313 = vmatprep.mubr.bf16.mxu1 %v1646_v45 }
  0x8b   :  { %1217 = vmatmul.mubr.bf16.gmra.mrb[52].mxu0 %v1643_v50 }
  0x8c   :  { %1314 = vmatmul.mubr.bf16.gmra.mrb[52].mxu1 %v1645_v51  ;;  %1224 = vmatprep.mubr.bf16.mxu0 %v1652_v52 }
  0x8d   :  { %1321 = vmatprep.mubr.bf16.mxu1 %v1654_v53 }
  0x93   :  { %1225 = vmatmul.mubr.bf16.gmra.mrb[56].mxu0 %v1651_v58 }
  0x94   :  { %1322 = vmatmul.mubr.bf16.gmra.mrb[56].mxu1 %v1653_v59  ;;  %1232 = vmatprep.mubr.bf16.mxu0 %v1660_v60 }
  0x95   :  { %1329 = vmatprep.mubr.bf16.mxu1 %v1662_v61 }
  0x9b   :  { %1233 = vmatmul.mubr.bf16.gmra.mrb[60].mxu0 %v1659_v62 }
  0x9c   :  { %1330 = vmatmul.mubr.bf16.gmra.mrb[60].mxu1 %v1661_v63 }
  0xf6   :  { %v1776_v1 = vpop.f32.mrb[0].mxu0 }
  0xf7   :  { %v1840_v2 = vpop.f32.mrb[0].mxu1  ;;  %v1777_v3 = vpop.f32.mrb[1].mxu0 }
  0xf8   :  { %v1778_v4 = vadd.f32 %v1777_v3, %v1776_v1  ;;  %v1841_v5 = vpop.f32.mrb[1].mxu1  ;;  %v1779_v6 = vpop.f32.mrb[2].mxu0 }
  0xf9   :  { %v1842_v7 = vadd.f32 %v1841_v5, %v1840_v2  ;;  %v1843_v8 = vpop.f32.mrb[2].mxu1  ;;  %v1780_v9 = vpop.f32.mrb[3].mxu0 }
  0xfa   :  { %v1781_v10 = vadd.f32 %v1780_v9, %v1779_v6  ;;  %v1844_v11 = vpop.f32.mrb[3].mxu1 }
  0xfb   :  { %v2507_v12 = vadd.f32 %v1842_v7, %v1778_v4  ;;  %v1845_v13 = vadd.f32 %v1844_v11, %v1843_v8 }
  0xfd   :  { %v2509_v14 = vadd.f32 %v1845_v13, %v1781_v10 }
  0xfe   :  { %v1782_v15 = vpop.f32.mrb[4].mxu0 }
  0xff   :  { %v1846_v16 = vpop.f32.mrb[4].mxu1  ;;  %v1783_v17 = vpop.f32.mrb[5].mxu0 }
 0x100   :  { %v1784_v18 = vadd.f32 %v1783_v17, %v1782_v15  ;;  %v1847_v19 = vpop.f32.mrb[5].mxu1  ;;  %v1785_v20 = vpop.f32.mrb[6].mxu0 }
 0x101   :  { %v1848_v21 = vadd.f32 %v1847_v19, %v1846_v16  ;;  %v1849_v22 = vpop.f32.mrb[6].mxu1  ;;  %v1786_v23 = vpop.f32.mrb[7].mxu0 }
 0x102   :  { %v1787_v24 = vadd.f32 %v1786_v23, %v1785_v20  ;;  %v1850_v25 = vpop.f32.mrb[7].mxu1 }
 0x103   :  { %v2511_v26 = vadd.f32 %v1848_v21, %v1784_v18  ;;  %v1851_v27 = vadd.f32 %v1850_v25, %v1849_v22 }
 0x105   :  { %v2513_v28 = vadd.f32 %v1851_v27, %v1787_v24 }
 0x106   :  { %v1788_v29 = vpop.f32.mrb[8].mxu0 }
 0x107   :  { %v1852_v30 = vpop.f32.mrb[8].mxu1  ;;  %v1789_v31 = vpop.f32.mrb[9].mxu0 }
 0x108   :  { %v1790_v32 = vadd.f32 %v1789_v31, %v1788_v29  ;;  %v1853_v33 = vpop.f32.mrb[9].mxu1  ;;  %v1791_v34 = vpop.f32.mrb[10].mxu0 }
 0x109   :  { %v1854_v35 = vadd.f32 %v1853_v33, %v1852_v30  ;;  %v1855_v36 = vpop.f32.mrb[10].mxu1  ;;  %v1792_v37 = vpop.f32.mrb[11].mxu0 }
 0x10a   :  { %v1793_v38 = vadd.f32 %v1792_v37, %v1791_v34  ;;  %v1856_v39 = vpop.f32.mrb[11].mxu1 }
 0x10b   :  { %v2515_v40 = vadd.f32 %v1854_v35, %v1790_v32  ;;  %v1857_v41 = vadd.f32 %v1856_v39, %v1855_v36 }
 0x10d   :  { %v2517_v42 = vadd.f32 %v1857_v41, %v1793_v38 }
 0x10e   :  { %v1794_v43 = vpop.f32.mrb[12].mxu0 }
 0x10f   :  { %v1858_v44 = vpop.f32.mrb[12].mxu1  ;;  %v1795_v45 = vpop.f32.mrb[13].mxu0 }
 0x110   :  { %v1796_v46 = vadd.f32 %v1795_v45, %v1794_v43  ;;  %v1859_v47 = vpop.f32.mrb[13].mxu1  ;;  %v1797_v48 = vpop.f32.mrb[14].mxu0 }
 0x111   :  { %v1860_v49 = vadd.f32 %v1859_v47, %v1858_v44  ;;  %v1861_v50 = vpop.f32.mrb[14].mxu1  ;;  %v1798_v51 = vpop.f32.mrb[15].mxu0 }
 0x112   :  { %v1799_v52 = vadd.f32 %v1798_v51, %v1797_v48  ;;  %v1862_v53 = vpop.f32.mrb[15].mxu1 }
 0x113   :  { %v2519_v54 = vadd.f32 %v1860_v49, %v1796_v46  ;;  %v1863_v55 = vadd.f32 %v1862_v53, %v1861_v50 }
 0x115   :  { %v2521_v56 = vadd.f32 %v1863_v55, %v1799_v52 }
 0x116   :  { %v1800_v57 = vpop.f32.mrb[16].mxu0 }
 0x117   :  { %v1864_v58 = vpop.f32.mrb[16].mxu1  ;;  %v1801_v59 = vpop.f32.mrb[17].mxu0 }
 0x118   :  { %v1802_v60 = vadd.f32 %v1801_v59, %v1800_v57  ;;  %v1865_v61 = vpop.f32.mrb[17].mxu1  ;;  %v1803_v62 = vpop.f32.mrb[18].mxu0 }
 0x119   :  { %v1866_v63 = vadd.f32 %v1865_v61, %v1864_v58  ;;  %v1867_v0 = vpop.f32.mrb[18].mxu1  ;;  %v1804_v1 = vpop.f32.mrb[19].mxu0 }
 0x11a   :  { %v1805_v2 = vadd.f32 %v1804_v1, %v1803_v62  ;;  %v1868_v3 = vpop.f32.mrb[19].mxu1 }
 0x11b   :  { %v2523_v4 = vadd.f32 %v1866_v63, %v1802_v60  ;;  %v1869_v5 = vadd.f32 %v1868_v3, %v1867_v0 }
 0x11d   :  { %v2525_v6 = vadd.f32 %v1869_v5, %v1805_v2 }
 0x11e   :  { %v1806_v7 = vpop.f32.mrb[20].mxu0 }
 0x11f   :  { %v1870_v8 = vpop.f32.mrb[20].mxu1  ;;  %v1807_v9 = vpop.f32.mrb[21].mxu0 }
 0x120   :  { %v1808_v10 = vadd.f32 %v1807_v9, %v1806_v7  ;;  %v1871_v11 = vpop.f32.mrb[21].mxu1  ;;  %v1809_v13 = vpop.f32.mrb[22].mxu0  ;;  %v38_v7 = vld [vmem:[#allocation2] sm:$0xff] }
 0x121   :  { %v1872_v15 = vadd.f32 %v1871_v11, %v1870_v8  ;;  %v1873_v16 = vpop.f32.mrb[22].mxu1  ;;  %v1810_v17 = vpop.f32.mrb[23].mxu0  ;;  %v39_v11 = vld [vmem:[#allocation2 + $0x8] sm:$0xff] }
 0x122   :  { %v1811_v18 = vadd.f32 %v1810_v17, %v1809_v13  ;;  %v1874_v19 = vpop.f32.mrb[23].mxu1 }
 0x123   :  { %v2527_v20 = vadd.f32 %v1872_v15, %v1808_v10  ;;  %v1875_v21 = vadd.f32 %v1874_v19, %v1873_v16 }
 0x125   :  { %v2529_v22 = vadd.f32 %v1875_v21, %v1811_v18 }
 0x126   :  { %v1812_v23 = vpop.f32.mrb[24].mxu0 }
 0x127   :  { %v1876_v24 = vpop.f32.mrb[24].mxu1  ;;  %v1813_v25 = vpop.f32.mrb[25].mxu0 }
 0x128   :  { %v1814_v27 = vadd.f32 %v1813_v25, %v1812_v23  ;;  %v1877_v29 = vpop.f32.mrb[25].mxu1  ;;  %v1815_v30 = vpop.f32.mrb[26].mxu0 }
 0x129   :  { %v1878_v31 = vadd.f32 %v1877_v29, %v1876_v24  ;;  %v1879_v32 = vpop.f32.mrb[26].mxu1  ;;  %v1816_v33 = vpop.f32.mrb[27].mxu0 }
 0x12a   :  { %v1817_v34 = vadd.f32 %v1816_v33, %v1815_v30  ;;  %v1880_v35 = vpop.f32.mrb[27].mxu1 }
 0x12b   :  { %v2531_v36 = vadd.f32 %v1878_v31, %v1814_v27  ;;  %v1881_v37 = vadd.f32 %v1880_v35, %v1879_v32  ;;  %v40_v31 = vld [vmem:[#allocation2 + $0x10] sm:$0xff]  ;;  %v2548_v35 = vld [vmem:[%s2700_s2] ss:$0 sm:$0xff] }
 0x12d   :  { %v2533_v38 = vadd.f32 %v1881_v37, %v1817_v34  ;;  %v41_v37 = vld [vmem:[#allocation2 + $0x18] sm:$0xff] }
 0x12e   :  { %v1818_v39 = vpop.f32.mrb[28].mxu0 }
 0x12f   :  { %v1882_v41 = vpop.f32.mrb[28].mxu1  ;;  %v1819_v43 = vpop.f32.mrb[29].mxu0 }
 0x130   :  { %v1820_v44 = vadd.f32 %v1819_v43, %v1818_v39  ;;  %v1883_v45 = vpop.f32.mrb[29].mxu1  ;;  %v1821_v46 = vpop.f32.mrb[30].mxu0 }
 0x131   :  { %v1884_v47 = vadd.f32 %v1883_v45, %v1882_v41  ;;  %v1885_v48 = vpop.f32.mrb[30].mxu1  ;;  %v1822_v49 = vpop.f32.mrb[31].mxu0 }
 0x132   :  { %v1823_v50 = vadd.f32 %v1822_v49, %v1821_v46  ;;  %v1886_v51 = vpop.f32.mrb[31].mxu1 }
 0x133   :  { %v2535_v52 = vadd.f32 %v1884_v47, %v1820_v44  ;;  %v1887_v53 = vadd.f32 %v1886_v51, %v1885_v48 }
 0x135   :  { %v2537_v55 = vadd.f32 %v1887_v53, %v1823_v50 }
 0x136   :  { %v1904_v57 = vpop.f32.mrb[32].mxu0 }
 0x137   :  { %v1968_v58 = vpop.f32.mrb[32].mxu1  ;;  %v1905_v59 = vpop.f32.mrb[33].mxu0 }
 0x138   :  { %v1906_v60 = vadd.f32 %v1905_v59, %v1904_v57  ;;  %v1969_v61 = vpop.f32.mrb[33].mxu1  ;;  %v1907_v62 = vpop.f32.mrb[34].mxu0 }
 0x139   :  { %v1970_v63 = vadd.f32 %v1969_v61, %v1968_v58  ;;  %v1971_v0 = vpop.f32.mrb[34].mxu1  ;;  %v1908_v1 = vpop.f32.mrb[35].mxu0 }
 0x13a   :  { %v1179_v2 = vadd.f32 %v1906_v60, %v2507_v12  ;;  %v1909_v3 = vadd.f32 %v1908_v1, %v1907_v62  ;;  %v1972_v5 = vpop.f32.mrb[35].mxu1 }
 0x13b   :  { %v1973_v8 = vadd.f32 %v1972_v5, %v1971_v0  ;;  %v42_v0 = vld [vmem:[#allocation2 + $0x20] sm:$0xff]  ;;  %v43_v5 = vld [vmem:[#allocation2 + $0x28] sm:$0xff] }
 0x13c   :  { %v1276_v9 = vadd.f32 %v1970_v63, %v1179_v2  ;;  %v1182_v10 = vadd.f32 %v1909_v3, %v2509_v14 }
 0x13e   :  { %v1338_v13 = vadd.f32 %v1276_v9, %v38_v7  ;;  %v1279_v15 = vadd.f32 %v1973_v8, %v1182_v10  ;;  %v1910_v16 = vpop.f32.mrb[36].mxu0 }
 0x13f   :  { %v1974_v17 = vpop.f32.mrb[36].mxu1  ;;  %v1911_v18 = vpop.f32.mrb[37].mxu0 }
 0x140   :  { %1355 = vst.msk [vmem:[#allocation2] sm:$0xff] %vm21_vm0, %v1338_v13  ;;  %v1339_v19 = vadd.f32 %v1279_v15, %v39_v11  ;;  %v1912_v21 = vadd.f32 %v1911_v18, %v1910_v16  ;;  %v1975_v23 = vpop.f32.mrb[37].mxu1  ;;  %v1913_v24 = vpop.f32.mrb[38].mxu0 }
 0x141   :  { %v1976_v12 = vadd.f32 %v1975_v23, %v1974_v17  ;;  %v1977_v25 = vpop.f32.mrb[38].mxu1  ;;  %v1914_v27 = vpop.f32.mrb[39].mxu0 }
 0x142   :  { %1356 = vst.msk [vmem:[#allocation2 + $0x8] sm:$0xff] %vm21_vm0, %v1339_v19  ;;  %v1187_v29 = vadd.f32 %v1912_v21, %v2511_v26  ;;  %v1915_v14 = vadd.f32 %v1914_v27, %v1913_v24  ;;  %v1978_v30 = vpop.f32.mrb[39].mxu1 }
 0x143   :  { %v1979_v32 = vadd.f32 %v1978_v30, %v1977_v25 }
 0x144   :  { %v1284_v33 = vadd.f32 %v1976_v12, %v1187_v29  ;;  %v1190_v34 = vadd.f32 %v1915_v14, %v2513_v28 }
 0x146   :  { %v1340_v39 = vadd.f32 %v1284_v33, %v40_v31  ;;  %v1287_v41 = vadd.f32 %v1979_v32, %v1190_v34  ;;  %v1916_v43 = vpop.f32.mrb[40].mxu0  ;;  %v44_v31 = vld [vmem:[#allocation2 + $0x30] sm:$0xff] }
 0x147   :  { %v2550_v44 = vld [vmem:[#allocation2] sm:$0xff]  ;;  %v1980_v45 = vpop.f32.mrb[40].mxu1  ;;  %v1917_v26 = vpop.f32.mrb[41].mxu0 }
 0x148   :  { %v1397_v46 = vadd.f32 %v2548_v35, %v2550_v44  ;;  %1357 = vst.msk [vmem:[#allocation2 + $0x10] sm:$0xff] %vm21_vm0, %v1340_v39  ;;  %v1341_v47 = vadd.f32 %v1287_v41, %v41_v37  ;;  %v1981_v28 = vpop.f32.mrb[41].mxu1  ;;  %v1919_v48 = vpop.f32.mrb[42].mxu0  ;;  %v1918_v50 = vadd.f32 %v1917_v26, %v1916_v43  ;;  %v1531_v27 = vmul.f32 %v2550_v44, %v2550_v44 }
 0x149   :  { %v1375_v49 = vld [vmem:[#allocation2 + $0x8] sm:$0xff]  ;;  %v1982_v51 = vadd.f32 %v1981_v28, %v1980_v45  ;;  %v1983_v53 = vpop.f32.mrb[42].mxu1  ;;  %v1920_v57 = vpop.f32.mrb[43].mxu0  ;;  %v1494_v43 = vsel %vm21_vm0, %v2550_v44, 0.0 }
 0x14a   :  { %v1744_v58 = vpack.c.bf16 %v1397_v46, %v1397_v46  ;;  %v1398_v59 = vadd.f32 %v2548_v35, %v1375_v49  ;;  %1358 = vst.msk [vmem:[#allocation2 + $0x18] sm:$0xff] %vm21_vm0, %v1341_v47  ;;  %v1984_v60 = vpop.f32.mrb[43].mxu1  ;;  %v1195_v61 = vadd.f32 %v1918_v50, %v2515_v40  ;;  %v1921_v62 = vadd.f32 %v1920_v57, %v1919_v48  ;;  %v45_v46 = vld [vmem:[#allocation2 + $0x38] sm:$0xff] }
 0x14b   :  { %v1985_v1 = vadd.f32 %v1984_v60, %v1983_v53  ;;  %v1532_v14 = vmul.f32 %v1375_v49, %v1375_v49  ;;  %v1495_v39 = vsel %vm21_vm0, %v1375_v49, 0.0  ;;  %v1547_v45 = vsel %vm21_vm0, %v1531_v27, 0.0 }
 0x14c   :  { %1478 = vst.msk [vmem:[%s2701_s3] sm:$0xf] %vm1477_vm1, %v1744_v58  ;;  %v1745_v63 = vpack.c.bf16 %v1398_v59, %v1398_v59  ;;  %v1292_v2 = vadd.f32 %v1982_v51, %v1195_v61  ;;  %v1198_v3 = vadd.f32 %v1921_v62, %v2517_v42 }
 0x14d   :  { %v1548_v48 = vsel %vm21_vm0, %v1532_v14, 0.0 }
 0x14e   :  { %1479 = vst.msk [vmem:[%s2701_s3 + $0x4] sm:$0xf] %vm1477_vm1, %v1745_v63  ;;  %v1922_v7 = vpop.f32.mrb[44].mxu0  ;;  %v1342_v8 = vadd.f32 %v1292_v2, %v42_v0  ;;  %v1295_v9 = vadd.f32 %v1985_v1, %v1198_v3 }
 0x14f   :  { %v1376_v40 = vld [vmem:[#allocation2 + $0x10] sm:$0xff]  ;;  %v1986_v10 = vpop.f32.mrb[44].mxu1  ;;  %v1923_v11 = vpop.f32.mrb[45].mxu0 }
 0x150   :  { %v1399_v13 = vadd.f32 %v2548_v35, %v1376_v40  ;;  %v1924_v15 = vadd.f32 %v1923_v11, %v1922_v7  ;;  %v1987_v16 = vpop.f32.mrb[45].mxu1  ;;  %v1925_v17 = vpop.f32.mrb[46].mxu0  ;;  %1359 = vst.msk [vmem:[#allocation2 + $0x20] sm:$0xff] %vm21_vm0, %v1342_v8  ;;  %v1343_v42 = vadd.f32 %v1295_v9, %v43_v5  ;;  %v1533_v34 = vmul.f32 %v1376_v40, %v1376_v40 }
 0x151   :  { %v1377_v18 = vld [vmem:[#allocation2 + $0x18] sm:$0xff]  ;;  %v1988_v19 = vadd.f32 %v1987_v16, %v1986_v10  ;;  %v1989_v21 = vpop.f32.mrb[46].mxu1  ;;  %v1926_v23 = vpop.f32.mrb[47].mxu0  ;;  %v1497_v49 = vsel %vm21_vm0, %v1376_v40, 0.0  ;;  %v1549_v7 = vadd.f32 %v1548_v48, %v1547_v45  ;;  %v46_v10 = vld [vmem:[#allocation2 + $0x40] sm:$0xff] }
 0x152   :  { %v1746_v24 = vpack.c.bf16 %v1399_v13, %v1399_v13  ;;  %v1400_v12 = vadd.f32 %v2548_v35, %v1377_v18  ;;  %v1990_v25 = vpop.f32.mrb[47].mxu1  ;;  %1360 = vst.msk [vmem:[#allocation2 + $0x28] sm:$0xff] %vm21_vm0, %v1343_v42  ;;  %v1203_v29 = vadd.f32 %v1924_v15, %v2519_v54  ;;  %v1927_v32 = vadd.f32 %v1926_v23, %v1925_v17 }
 0x153   :  { %v1991_v33 = vadd.f32 %v1990_v25, %v1989_v21  ;;  %v1550_v59 = vsel %vm21_vm0, %v1533_v34, 0.0  ;;  %v1534_v63 = vmul.f32 %v1377_v18, %v1377_v18  ;;  %v1499_v11 = vsel %vm21_vm0, %v1377_v18, 0.0  ;;  %v47_v18 = vld [vmem:[#allocation2 + $0x48] sm:$0xff] }
 0x154   :  { %1480 = vst.msk [vmem:[%s2701_s3 + $0x8] sm:$0xf] %vm1477_vm1, %v1746_v24  ;;  %v1747_v30 = vpack.c.bf16 %v1400_v12, %v1400_v12  ;;  %v1300_v37 = vadd.f32 %v1988_v19, %v1203_v29  ;;  %v1206_v54 = vadd.f32 %v1927_v32, %v2521_v56  ;;  %v1496_v56 = vadd.f32 %v1495_v39, %v1494_v43 }
 0x155   :  { %v1551_v16 = vadd.f32 %v1550_v59, %v1549_v7  ;;  %v1552_v19 = vsel %vm21_vm0, %v1534_v63, 0.0  ;;  %v49_v63 = vld [vmem:[#allocation2 + $0x58] sm:$0xff] }
 0x156   :  { %1481 = vst.msk [vmem:[%s2701_s3 + $0xc] sm:$0xf] %vm1477_vm1, %v1747_v30  ;;  %v1928_v41 = vpop.f32.mrb[48].mxu0  ;;  %v1344_v26 = vadd.f32 %v1300_v37, %v44_v31  ;;  %v1303_v51 = vadd.f32 %v1991_v33, %v1206_v54  ;;  %v1498_v40 = vadd.f32 %v1497_v49, %v1496_v56  ;;  %v48_v56 = vld [vmem:[#allocation2 + $0x50] sm:$0xff] }
 0x157   :  { %v1992_v47 = vpop.f32.mrb[48].mxu1  ;;  %v1929_v28 = vpop.f32.mrb[49].mxu0  ;;  %v1378_v50 = vld [vmem:[#allocation2 + $0x20] sm:$0xff]  ;;  %v1553_v34 = vadd.f32 %v1552_v19, %v1551_v16 }
 0x158   :  { %v1930_v53 = vadd.f32 %v1929_v28, %v1928_v41  ;;  %v1993_v57 = vpop.f32.mrb[49].mxu1  ;;  %v1931_v58 = vpop.f32.mrb[50].mxu0  ;;  %v1401_v44 = vadd.f32 %v2548_v35, %v1378_v50  ;;  %1361 = vst.msk [vmem:[#allocation2 + $0x30] sm:$0xff] %vm21_vm0, %v1344_v26  ;;  %v1345_v1 = vadd.f32 %v1303_v51, %v45_v46  ;;  %v1535_v13 = vmul.f32 %v1378_v50, %v1378_v50 }
 0x159   :  { %v1994_v60 = vadd.f32 %v1993_v57, %v1992_v47  ;;  %v1995_v61 = vpop.f32.mrb[50].mxu1  ;;  %v1932_v62 = vpop.f32.mrb[51].mxu0  ;;  %v1379_v0 = vld [vmem:[#allocation2 + $0x28] sm:$0xff]  ;;  %v1501_v21 = vsel %vm21_vm0, %v1378_v50, 0.0  ;;  %v1500_v12 = vadd.f32 %v1499_v11, %v1498_v40 }
 0x15a   :  { %v1211_v2 = vadd.f32 %v1930_v53, %v2523_v4  ;;  %v1933_v3 = vadd.f32 %v1932_v62, %v1931_v58  ;;  %v1996_v5 = vpop.f32.mrb[51].mxu1  ;;  %v1748_v8 = vpack.c.bf16 %v1401_v44, %v1401_v44  ;;  %v1402_v9 = vadd.f32 %v2548_v35, %v1379_v0  ;;  %1362 = vst.msk [vmem:[#allocation2 + $0x38] sm:$0xff] %vm21_vm0, %v1345_v1 }
 0x15b   :  { %v1997_v42 = vadd.f32 %v1996_v5, %v1995_v61  ;;  %v1554_v14 = vsel %vm21_vm0, %v1535_v13, 0.0  ;;  %v1502_v37 = vadd.f32 %v1501_v21, %v1500_v12  ;;  %v1503_v49 = vsel %vm21_vm0, %v1379_v0, 0.0 }
 0x15c   :  { %v1308_v15 = vadd.f32 %v1994_v60, %v1211_v2  ;;  %1482 = vst.msk [vmem:[%s2701_s3 + $0x10] sm:$0xf] %vm1477_vm1, %v1748_v8  ;;  %v1749_v4 = vpack.c.bf16 %v1402_v9, %v1402_v9  ;;  %v1214_v17 = vadd.f32 %v1933_v3, %v2525_v6  ;;  %v1536_v6 = vmul.f32 %v1379_v0, %v1379_v0 }
 0x15d   :  { %v1555_v48 = vadd.f32 %v1554_v14, %v1553_v34  ;;  %v1504_v60 = vadd.f32 %v1503_v49, %v1502_v37  ;;  %v50_v14 = vld [vmem:[#allocation2 + $0x60] sm:$0xff] }
 0x15e   :  { %v1346_v23 = vadd.f32 %v1308_v15, %v46_v10  ;;  %v1934_v24 = vpop.f32.mrb[52].mxu0  ;;  %1483 = vst.msk [vmem:[%s2701_s3 + $0x14] sm:$0xf] %vm1477_vm1, %v1749_v4  ;;  %v1311_v25 = vadd.f32 %v1997_v42, %v1214_v17  ;;  %v1556_v57 = vsel %vm21_vm0, %v1536_v6, 0.0 }
 0x15f   :  { %v1998_v27 = vpop.f32.mrb[52].mxu1  ;;  %v1935_v29 = vpop.f32.mrb[53].mxu0  ;;  %v1380_v30 = vld [vmem:[#allocation2 + $0x30] sm:$0xff]  ;;  %v1557_v1 = vadd.f32 %v1556_v57, %v1555_v48 }
 0x160   :  { %1363 = vst.msk [vmem:[#allocation2 + $0x40] sm:$0xff] %vm21_vm0, %v1346_v23  ;;  %v1936_v31 = vadd.f32 %v1935_v29, %v1934_v24  ;;  %v1999_v32 = vpop.f32.mrb[53].mxu1  ;;  %v1937_v33 = vpop.f32.mrb[54].mxu0  ;;  %v1403_v39 = vadd.f32 %v2548_v35, %v1380_v30  ;;  %v1347_v54 = vadd.f32 %v1311_v25, %v47_v18  ;;  %v1537_v45 = vmul.f32 %v1380_v30, %v1380_v30 }
 0x161   :  { %v2001_v41 = vpop.f32.mrb[54].mxu1  ;;  %v1938_v43 = vpop.f32.mrb[55].mxu0  ;;  %v2000_v46 = vadd.f32 %v1999_v32, %v1998_v27  ;;  %v1381_v51 = vld [vmem:[#allocation2 + $0x38] sm:$0xff] }
 0x162   :  { %v1219_v26 = vadd.f32 %v1936_v31, %v2527_v20  ;;  %v1939_v47 = vadd.f32 %v1938_v43, %v1937_v33  ;;  %v2002_v28 = vpop.f32.mrb[55].mxu1  ;;  %v1750_v50 = vpack.c.bf16 %v1403_v39, %v1403_v39  ;;  %1364 = vst.msk [vmem:[#allocation2 + $0x48] sm:$0xff] %vm21_vm0, %v1347_v54  ;;  %v1404_v58 = vadd.f32 %v2548_v35, %v1381_v51  ;;  %v51_v39 = vld [vmem:[#allocation2 + $0x68] sm:$0xff] }
 0x163   :  { %v2003_v53 = vadd.f32 %v2002_v28, %v2001_v41  ;;  %v1505_v20 = vsel %vm21_vm0, %v1380_v30, 0.0  ;;  %v1558_v61 = vsel %vm21_vm0, %v1537_v45, 0.0  ;;  %v1538_v2 = vmul.f32 %v1381_v51, %v1381_v51 }
 0x164   :  { %1484 = vst.msk [vmem:[%s2701_s3 + $0x18] sm:$0xf] %vm1477_vm1, %v1750_v50  ;;  %v1316_v59 = vadd.f32 %v2000_v46, %v1219_v26  ;;  %v1222_v44 = vadd.f32 %v1939_v47, %v2529_v22  ;;  %v1751_v62 = vpack.c.bf16 %v1404_v58, %v1404_v58  ;;  %v1506_v9 = vadd.f32 %v1505_v20, %v1504_v60 }
 0x165   :  { %v1559_v15 = vadd.f32 %v1558_v61, %v1557_v1  ;;  %v1507_v21 = vsel %vm21_vm0, %v1381_v51, 0.0  ;;  %v1560_v27 = vsel %vm21_vm0, %v1538_v2, 0.0 }
 0x166   :  { %v1940_v0 = vpop.f32.mrb[56].mxu0  ;;  %v1348_v5 = vadd.f32 %v1316_v59, %v48_v56  ;;  %v1319_v7 = vadd.f32 %v2003_v53, %v1222_v44  ;;  %1485 = vst.msk [vmem:[%s2701_s3 + $0x1c] sm:$0xf] %vm1477_vm1, %v1751_v62  ;;  %v1508_v32 = vadd.f32 %v1507_v21, %v1506_v9 }
 0x167   :  { %v1382_v3 = vld [vmem:[#allocation2 + $0x40] sm:$0xff]  ;;  %v2004_v40 = vpop.f32.mrb[56].mxu1  ;;  %v1941_v8 = vpop.f32.mrb[57].mxu0  ;;  %v1561_v54 = vadd.f32 %v1560_v27, %v1559_v15 }
 0x168   :  { %v1405_v22 = vadd.f32 %v2548_v35, %v1382_v3  ;;  %v1942_v10 = vadd.f32 %v1941_v8, %v1940_v0  ;;  %v2005_v11 = vpop.f32.mrb[57].mxu1  ;;  %v1943_v13 = vpop.f32.mrb[58].mxu0  ;;  %v1539_v16 = vmul.f32 %v1382_v3, %v1382_v3  ;;  %1365 = vst.msk [vmem:[#allocation2 + $0x50] sm:$0xff] %vm21_vm0, %v1348_v5  ;;  %v1349_v4 = vadd.f32 %v1319_v7, %v49_v63  ;;  %v52_v5 = vld [vmem:[#allocation2 + $0x70] sm:$0xff] }
 0x169   :  { %v2006_v17 = vadd.f32 %v2005_v11, %v2004_v40  ;;  %v2007_v42 = vpop.f32.mrb[58].mxu1  ;;  %v1944_v19 = vpop.f32.mrb[59].mxu0  ;;  %v1383_v18 = vld [vmem:[#allocation2 + $0x48] sm:$0xff]  ;;  %v1509_v6 = vsel %vm21_vm0, %v1382_v3, 0.0 }
 0x16a   :  { %v1752_v23 = vpack.c.bf16 %v1405_v22, %v1405_v22  ;;  %v1227_v24 = vadd.f32 %v1942_v10, %v2531_v36  ;;  %v1945_v12 = vadd.f32 %v1944_v19, %v1943_v13  ;;  %v2008_v25 = vpop.f32.mrb[59].mxu1  ;;  %v1406_v29 = vadd.f32 %v2548_v35, %v1383_v18  ;;  %1366 = vst.msk [vmem:[#allocation2 + $0x58] sm:$0xff] %vm21_vm0, %v1349_v4 }
 0x16b   :  { %v2009_v36 = vadd.f32 %v2008_v25, %v2007_v42  ;;  %v1562_v33 = vsel %vm21_vm0, %v1539_v16, 0.0  ;;  %v1540_v37 = vmul.f32 %v1383_v18, %v1383_v18  ;;  %v1510_v26 = vadd.f32 %v1509_v6, %v1508_v32  ;;  %v53_v16 = vld [vmem:[#allocation2 + $0x78] sm:$0xff] }
 0x16c   :  { %1486 = vst.msk [vmem:[%s2701_s3 + $0x20] sm:$0xf] %vm1477_vm1, %v1752_v23  ;;  %v1324_v30 = vadd.f32 %v2006_v17, %v1227_v24  ;;  %v1230_v31 = vadd.f32 %v1945_v12, %v2533_v38  ;;  %v1753_v34 = vpack.c.bf16 %v1406_v29, %v1406_v29  ;;  %v1563_v38 = vadd.f32 %v1562_v33, %v1561_v54 }
 0x16d   :  { %v1511_v28 = vsel %vm21_vm0, %v1383_v18, 0.0  ;;  %v1564_v57 = vsel %vm21_vm0, %v1540_v37, 0.0 }
 0x16e   :  { %v1350_v41 = vadd.f32 %v1324_v30, %v50_v14  ;;  %v1327_v43 = vadd.f32 %v2009_v36, %v1230_v31  ;;  %v1946_v45 = vpop.f32.mrb[60].mxu0  ;;  %1487 = vst.msk [vmem:[%s2701_s3 + $0x24] sm:$0xf] %vm1477_vm1, %v1753_v34  ;;  %v1512_v1 = vadd.f32 %v1511_v28, %v1510_v26  ;;  %v1565_v7 = vadd.f32 %v1564_v57, %v1563_v38 }
 0x16f   :  { %v2010_v46 = vpop.f32.mrb[60].mxu1  ;;  %v1947_v47 = vpop.f32.mrb[61].mxu0  ;;  %v1384_v48 = vld [vmem:[#allocation2 + $0x50] sm:$0xff] }
 0x170   :  { %1367 = vst.msk [vmem:[#allocation2 + $0x60] sm:$0xff] %vm21_vm0, %v1350_v41  ;;  %v1351_v49 = vadd.f32 %v1327_v43, %v51_v39  ;;  %v1948_v50 = vadd.f32 %v1947_v47, %v1946_v45  ;;  %v2011_v51 = vpop.f32.mrb[61].mxu1  ;;  %v1949_v53 = vpop.f32.mrb[62].mxu0  ;;  %v1407_v58 = vadd.f32 %v2548_v35, %v1384_v48  ;;  %v1541_v56 = vmul.f32 %v1384_v48, %v1384_v48 }
 0x171   :  { %v2012_v20 = vadd.f32 %v2011_v51, %v2010_v46  ;;  %v2013_v59 = vpop.f32.mrb[62].mxu1  ;;  %v1950_v44 = vpop.f32.mrb[63].mxu0  ;;  %v1513_v60 = vsel %vm21_vm0, %v1384_v48, 0.0  ;;  %v1385_v61 = vld [vmem:[#allocation2 + $0x58] sm:$0xff] }
 0x172   :  { %1368 = vst.msk [vmem:[#allocation2 + $0x68] sm:$0xff] %vm21_vm0, %v1351_v49  ;;  %v1235_v62 = vadd.f32 %v1948_v50, %v2535_v52  ;;  %v1951_v63 = vadd.f32 %v1950_v44, %v1949_v53  ;;  %v2014_v0 = vpop.f32.mrb[63].mxu1  ;;  %v1754_v2 = vpack.c.bf16 %v1407_v58, %v1407_v58  ;;  %v1408_v3 = vadd.f32 %v2548_v35, %v1385_v61 }
 0x173   :  { %v1566_v40 = vsel %vm21_vm0, %v1541_v56, 0.0  ;;  %v1542_v8 = vmul.f32 %v1385_v61, %v1385_v61  ;;  %v1514_v22 = vadd.f32 %v1513_v60, %v1512_v1  ;;  %v2015_v11 = vadd.f32 %v2014_v0, %v2013_v59 }
 0x174   :  { %v1332_v9 = vadd.f32 %v2012_v20, %v1235_v62  ;;  %1488 = vst.msk [vmem:[%s2701_s3 + $0x28] sm:$0xf] %vm1477_vm1, %v1754_v2  ;;  %v1755_v10 = vpack.c.bf16 %v1408_v3, %v1408_v3  ;;  %v1238_v52 = vadd.f32 %v1951_v63, %v2537_v55  ;;  %v1515_v13 = vsel %vm21_vm0, %v1385_v61, 0.0 }
 0x175   :  { %v1567_v4 = vadd.f32 %v1566_v40, %v1565_v7  ;;  %v1568_v19 = vsel %vm21_vm0, %v1542_v8, 0.0  ;;  %v1516_v18 = vadd.f32 %v1515_v13, %v1514_v22  ;;  %v1584_v20 = vlaneseq }
 0x176   :  { %v1352_v15 = vadd.f32 %v1332_v9, %v52_v5  ;;  %1489 = vst.msk [vmem:[%s2701_s3 + $0x2c] sm:$0xf] %vm1477_vm1, %v1755_v10  ;;  %v1335_v42 = vadd.f32 %v2015_v11, %v1238_v52 }
 0x177   :  { %v1386_v17 = vld [vmem:[#allocation2 + $0x60] sm:$0xff]  ;;  %v1569_v14 = vadd.f32 %v1568_v19, %v1567_v4  ;;  %v1585_v62 = vshrl.u32 %v1584_v20, 7 }
 0x178   :  { %v1409_v21 = vadd.f32 %v2548_v35, %v1386_v17  ;;  %v1517_v23 = vsel %vm21_vm0, %v1386_v17, 0.0  ;;  %v1543_v55 = vmul.f32 %v1386_v17, %v1386_v17  ;;  %1369 = vst.msk [vmem:[#allocation2 + $0x70] sm:$0xff] %vm21_vm0, %v1352_v15  ;;  %v1353_v12 = vadd.f32 %v1335_v42, %v53_v16 }
 0x179   :  { %v1387_v24 = vld [vmem:[#allocation2 + $0x68] sm:$0xff]  ;;  %v1518_v6 = vadd.f32 %v1517_v23, %v1516_v18  ;;  %vm1587_vm2 = vcmp.eq.s32.totalorder %v1585_v62, 1  ;;  %vm1586_vm3 = vcmp.eq.s32.totalorder %v1585_v62, 0 }
 0x17a   :  { %v1756_v25 = vpack.c.bf16 %v1409_v21, %v1409_v21  ;;  %v1570_v27 = vsel %vm21_vm0, %v1543_v55, 0.0  ;;  %v1410_v29 = vadd.f32 %v2548_v35, %v1387_v24  ;;  %v1544_v30 = vmul.f32 %v1387_v24, %v1387_v24  ;;  %1370 = vst.msk [vmem:[#allocation2 + $0x78] sm:$0xff] %vm21_vm0, %v1353_v12 }
 0x17b   :  { %v1519_v36 = vsel %vm21_vm0, %v1387_v24, 0.0  ;;  %v1571_v32 = vadd.f32 %v1570_v27, %v1569_v14 }
 0x17c   :  { %1490 = vst.msk [vmem:[%s2701_s3 + $0x30] sm:$0xf] %vm1477_vm1, %v1756_v25  ;;  %v1757_v31 = vpack.c.bf16 %v1410_v29, %v1410_v29  ;;  %v1572_v33 = vsel %vm21_vm0, %v1544_v30, 0.0  ;;  %v1520_v34 = vadd.f32 %v1519_v36, %v1518_v6 }
 0x17d   :  { %v1573_v43 = vadd.f32 %v1572_v33, %v1571_v32 }
 0x17e   :  { %1491 = vst.msk [vmem:[%s2701_s3 + $0x34] sm:$0xf] %vm1477_vm1, %v1757_v31 }
 0x17f   :  { %v1388_v37 = vld [vmem:[#allocation2 + $0x70] sm:$0xff] }
 0x180   :  { %v1411_v39 = vadd.f32 %v2548_v35, %v1388_v37  ;;  %v1521_v54 = vsel %vm21_vm0, %v1388_v37, 0.0  ;;  %v1545_v41 = vmul.f32 %v1388_v37, %v1388_v37 }
 0x181   :  { %v1522_v45 = vadd.f32 %v1521_v54, %v1520_v34  ;;  %v1389_v47 = vld [vmem:[#allocation2 + $0x78] sm:$0xff] }
 0x182   :  { %v1758_v26 = vpack.c.bf16 %v1411_v39, %v1411_v39  ;;  %v1574_v46 = vsel %vm21_vm0, %v1545_v41, 0.0  ;;  %v1412_v28 = vadd.f32 %v2548_v35, %v1389_v47  ;;  %v1523_v48 = vsel %vm21_vm0, %v1389_v47, 0.0 }
 0x183   :  { %v1575_v38 = vadd.f32 %v1574_v46, %v1573_v43  ;;  %v1546_v49 = vmul.f32 %v1389_v47, %v1389_v47  ;;  %v1524_v50 = vadd.f32 %v1523_v48, %v1522_v45 }
 0x184   :  { %1492 = vst.msk [vmem:[%s2701_s3 + $0x38] sm:$0xf] %vm1477_vm1, %v1758_v26  ;;  %v1759_v51 = vpack.c.bf16 %v1412_v28, %v1412_v28 }
 0x185   :  { %v1576_v53 = vsel %vm21_vm0, %v1546_v49, 0.0  ;;  %v1525_v57 = vrot.slane %v1524_v50, 4 }
 0x186   :  { %v1577_v58 = vadd.f32 %v1576_v53, %v1575_v38  ;;  %1493 = vst.msk [vmem:[%s2701_s3 + $0x3c] sm:$0xf] %vm1477_vm1, %v1759_v51 }
 0x187   :  { %v1526_v35 = vadd.f32 %v1525_v57, %v1524_v50 }
 0x188   :  { %v1578_v56 = vrot.slane %v1577_v58, 4 }
 0x189   :  { %v1527_v59 = vrot.slane %v1526_v35, 2 }
 0x18a   :  { %v1579_v44 = vadd.f32 %v1578_v56, %v1577_v58 }
 0x18b   :  { %v1528_v60 = vadd.f32 %v1527_v59, %v1526_v35 }
 0x18c   :  { %v1580_v61 = vrot.slane %v1579_v44, 2 }
 0x18d   :  { %v1529_v0 = vrot.slane %v1528_v60, 1 }
 0x18e   :  { %v1581_v63 = vadd.f32 %v1580_v61, %v1579_v44 }
 0x18f   :  { %v1530_v3 = vadd.f32 %v1529_v0, %v1528_v60 }
 0x190   :  { %v1582_v1 = vrot.slane %v1581_v63, 1 }
 0x192   :  { %v1583_v2 = vadd.f32 %v1582_v1, %v1581_v63 }
 0x194   :  { %v1588_v5 = vsel %vm1587_vm2, %v1583_v2, 0.0 }
 0x195   :  { %v1589_v7 = vsel %vm1586_vm3, %v1530_v3, %v1588_v5 }
 0x196   :  { %1590 = vst.msk [vmem:[%s2702_s4] sm:$0xff] %vm21_vm0, %v1589_v7 }

// kernel: forward.14
= control target key start
LH: loop header
LB: loop body
LE: loop exit
PB: predicated region body
PF: predicated region fallthrough
CT: control target
= control target key end

     0   :  { %vm106_vm0 = vcmask 519168   ;;  %s214_s0 = inlined_call_operand.vmem [shape: bf16[56,64], index: 0, kind: input, shape index: {}]   ;;  %s215_s1 = inlined_call_operand.vmem [shape: f32[1,64], index: 1, kind: input, shape index: {}]   ;;  %s216_s2 = inlined_call_operand.vmem [shape: f32[1,64], index: 2, kind: input, shape index: {}]   ;;  %s217_s3 = inlined_call_operand.vmem [shape: bf16[56,64], index: 3, kind: output, shape index: {}]  }
   0x1   :  { %v135_v0 = vld [vmem:[%s214_s0] sm:$0xff]   ;;  %v146_v4 = vld [vmem:[%s214_s0 + $0x8] sm:$0xff]   ;;  %v147_v5 = vld [vmem:[%s214_s0 + $0x10] sm:$0xff]  }
   0x2   :  { %v118_v1 = vld [vmem:[%s215_s1] ss:$0 sm:$0xff]  ;;  %v136_v2 = vunpack.c.l.bf16 %v135_v0  ;;  %v137_v3 = vunpack.c.h.bf16 %v135_v0  ;;  %v20_v6 = vld [vmem:[%s214_s0 + $0x18] sm:$0xf]  ;;  %v140_v8 = vunpack.c.l.bf16 %v146_v4  ;;  %v141_v9 = vunpack.c.h.bf16 %v146_v4 }
   0x3   :  { %v119_v7 = vld [vmem:[%s216_s2] ss:$0 sm:$0xff]  ;;  %v144_v10 = vunpack.c.l.bf16 %v147_v5  ;;  %v145_v11 = vunpack.c.h.bf16 %v147_v5  ;;  %v27_v14 = vunpack.c.l.bf16 %v20_v6 }
   0x4   :  { %v35_v12 = vmul.f32 %v136_v2, %v118_v1  ;;  %v36_v13 = vmul.f32 %v137_v3, %v118_v1  ;;  %v37_v15 = vmul.f32 %v140_v8, %v118_v1  ;;  %v38_v16 = vmul.f32 %v141_v9, %v118_v1 }
   0x5   :  { %v39_v17 = vmul.f32 %v144_v10, %v118_v1  ;;  %v40_v18 = vmul.f32 %v145_v11, %v118_v1  ;;  %v41_v21 = vmul.f32 %v118_v1, %v27_v14 }
   0x6   :  { %v49_v19 = vadd.f32 %v119_v7, %v35_v12  ;;  %v50_v20 = vadd.f32 %v119_v7, %v36_v13  ;;  %v51_v22 = vadd.f32 %v119_v7, %v37_v15  ;;  %v52_v23 = vadd.f32 %v119_v7, %v38_v16 }
   0x7   :  { %v53_v24 = vadd.f32 %v119_v7, %v39_v17  ;;  %v54_v25 = vadd.f32 %v119_v7, %v40_v18  ;;  %v55_v42 = vadd.f32 %v119_v7, %v41_v21 }
   0x8   :  { %vm56_vm1 = vcmp.ge.f32.partialorder %v49_v19, 0.0  ;;  %v63_v26 = vmul.f32 0.2, %v49_v19  ;;  %vm57_vm2 = vcmp.ge.f32.partialorder %v50_v20, 0.0  ;;  %v64_v27 = vmul.f32 0.2, %v50_v20 }
   0x9   :  { %vm58_vm3 = vcmp.ge.f32.partialorder %v51_v22, 0.0  ;;  %v65_v28 = vmul.f32 0.2, %v51_v22  ;;  %vm59_vm4 = vcmp.ge.f32.partialorder %v52_v23, 0.0  ;;  %v66_v29 = vmul.f32 0.2, %v52_v23 }
   0xa   :  { %v70_v30 = vsel %vm56_vm1, %v49_v19, %v63_v26  ;;  %v71_v31 = vsel %vm57_vm2, %v50_v20, %v64_v27  ;;  %vm60_vm5 = vcmp.ge.f32.partialorder %v53_v24, 0.0  ;;  %v67_v32 = vmul.f32 0.2, %v53_v24 }
   0xb   :  { %v127_v33 = vpack.c.bf16 %v70_v30, %v70_v30  ;;  %v128_v34 = vpack.c.bf16 %v71_v31, %v71_v31  ;;  %v72_v35 = vsel %vm58_vm3, %v51_v22, %v65_v28  ;;  %v73_v36 = vsel %vm59_vm4, %v52_v23, %v66_v29 }
   0xc   :  { %v129_v37 = vpack.c.bf16 %v72_v35, %v72_v35  ;;  %v130_v38 = vpack.c.bf16 %v73_v36, %v73_v36  ;;  %v74_v39 = vsel %vm60_vm5, %v53_v24, %v67_v32  ;;  %vm61_vm6 = vcmp.ge.f32.partialorder %v54_v25, 0.0 }
   0xd   :  { %107 = vst.msk [vmem:[%s217_s3] sm:$0xf] %vm106_vm0, %v127_v33  ;;  %108 = vst.msk [vmem:[%s217_s3 + $0x4] sm:$0xf] %vm106_vm0, %v128_v34  ;;  %v131_v40 = vpack.c.bf16 %v74_v39, %v74_v39  ;;  %v68_v41 = vmul.f32 0.2, %v54_v25 }
   0xe   :  { %109 = vst.msk [vmem:[%s217_s3 + $0x8] sm:$0xf] %vm106_vm0, %v129_v37  ;;  %110 = vst.msk [vmem:[%s217_s3 + $0xc] sm:$0xf] %vm106_vm0, %v130_v38  ;;  %vm62_vm7 = vcmp.ge.f32.partialorder %v55_v42, 0.0 }
   0xf   :  { %111 = vst.msk [vmem:[%s217_s3 + $0x10] sm:$0xf] %vm106_vm0, %v131_v40  ;;  %v75_v43 = vsel %vm61_vm6, %v54_v25, %v68_v41  ;;  %v69_v44 = vmul.f32 0.2, %v55_v42 }
  0x10   :  { %v132_v45 = vpack.c.bf16 %v75_v43, %v75_v43 }
  0x11   :  { %v76_v46 = vsel %vm62_vm7, %v55_v42, %v69_v44 }
  0x12   :  { %112 = vst.msk [vmem:[%s217_s3 + $0x14] sm:$0xf] %vm106_vm0, %v132_v45  ;;  %v133_v47 = vpack.c.bf16 %v76_v46, %v76_v46 }
  0x14   :  { %113 = vst.msk [vmem:[%s217_s3 + $0x18] sm:$0xf] %vm106_vm0, %v133_v47 }

// kernel: forward.13
= control target key start
LH: loop header
LB: loop body
LE: loop exit
PB: predicated region body
PF: predicated region fallthrough
CT: control target
= control target key end

     0   :  { %vm21_vm0 = vcmask 523264   ;;  %vm1992_vm1 = vcmask 519168   ;;  %s3397_s1 = inlined_call_operand.vmem [shape: bf16[2048,64], index: 1, kind: input, shape index: {}]   ;;  %s3398_s0 = inlined_call_operand.vmem [shape: bf16[56,2048], index: 0, kind: input, shape index: {}]   ;;  %s3399_s2 = inlined_call_operand.vmem [shape: f32[1,64], index: 2, kind: input, shape index: {}]   ;;  %s3400_s3 = inlined_call_operand.vmem [shape: bf16[56,64], index: 3, kind: output, shape index: {0}]   ;;  %s3401_s4 = inlined_call_operand.vmem [shape: f32[1,8,64], index: 4, kind: output, shape index: {1}]  }
   0x1   :  { %v2588_v0 = vld [vmem:[%s3397_s1 + $0x40] sm:$0xff]   ;;  %v2592_v4 = vld [vmem:[%s3397_s1 + $0x48] sm:$0xff]   ;;  %v2596_v8 = vld [vmem:[%s3397_s1 + $0x50] sm:$0xff]  }
   0x2   :  { %v2589_v1 = vld [vmem:[%s3397_s1 + $0xc0] sm:$0xff]   ;;  %2267 = vmatprep.subr.bf16.mxu0 %v2588_v0  ;;  %v2593_v5 = vld [vmem:[%s3397_s1 + $0xc8] sm:$0xff]   ;;  %v2597_v9 = vld [vmem:[%s3397_s1 + $0xd0] sm:$0xff]  }
   0x3   :  { %v2590_v2 = vld [vmem:[%s3397_s1] sm:$0xff]   ;;  %2307 = vmatprep.subr.bf16.mxu1 %v2589_v1  ;;  %v2594_v6 = vld [vmem:[%s3397_s1 + $0x8] sm:$0xff]   ;;  %v2598_v10 = vld [vmem:[%s3397_s1 + $0x10] sm:$0xff]  }
   0x4   :  { %v2591_v3 = vld [vmem:[%s3397_s1 + $0x80] sm:$0xff]   ;;  %2268 = vmatpush3.bf16.msra.mxu0 %v2590_v2  ;;  %v2595_v7 = vld [vmem:[%s3397_s1 + $0x88] sm:$0xff]   ;;  %v2599_v11 = vld [vmem:[%s3397_s1 + $0x90] sm:$0xff]  }
   0x5   :  { %2308 = vmatpush3.bf16.msra.mxu1 %v2591_v3  ;;  %2269 = vmatprep.subr.bf16.mxu0 %v2592_v4  ;;  %v2600_v12 = vld [vmem:[%s3397_s1 + $0x58] sm:$0xff]   ;;  %v2604_v16 = vld [vmem:[%s3397_s1 + $0x60] sm:$0xff]   ;;  %v2608_v20 = vld [vmem:[%s3397_s1 + $0x68] sm:$0xff]  }
   0x6   :  { %2309 = vmatprep.subr.bf16.mxu1 %v2593_v5  ;;  %v2601_v13 = vld [vmem:[%s3397_s1 + $0xd8] sm:$0xff]   ;;  %v2605_v17 = vld [vmem:[%s3397_s1 + $0xe0] sm:$0xff]   ;;  %v2609_v21 = vld [vmem:[%s3397_s1 + $0xe8] sm:$0xff]  }
   0x7   :  { %v2602_v14 = vld [vmem:[%s3397_s1 + $0x18] sm:$0xff]   ;;  %v2606_v18 = vld [vmem:[%s3397_s1 + $0x20] sm:$0xff]   ;;  %v2610_v22 = vld [vmem:[%s3397_s1 + $0x28] sm:$0xff]  }
   0x8   :  { %2270 = vmatpush3.bf16.msra.mxu0 %v2594_v6  ;;  %v2603_v15 = vld [vmem:[%s3397_s1 + $0x98] sm:$0xff]   ;;  %v2607_v19 = vld [vmem:[%s3397_s1 + $0xa0] sm:$0xff]   ;;  %v2611_v23 = vld [vmem:[%s3397_s1 + $0xa8] sm:$0xff]  }
   0x9   :  { %2310 = vmatpush3.bf16.msra.mxu1 %v2595_v7  ;;  %2271 = vmatprep.subr.bf16.mxu0 %v2596_v8  ;;  %v2612_v24 = vld [vmem:[%s3397_s1 + $0x70] sm:$0xff]   ;;  %v2616_v28 = vld [vmem:[%s3397_s1 + $0x78] sm:$0xff]   ;;  %v36_v32 = vld [vmem:[%s3398_s0] sm:$0xff] }
   0xa   :  { %2311 = vmatprep.subr.bf16.mxu1 %v2597_v9  ;;  %v2613_v25 = vld [vmem:[%s3397_s1 + $0xf0] sm:$0xff]   ;;  %v2617_v29 = vld [vmem:[%s3397_s1 + $0xf8] sm:$0xff]   ;;  %v44_v33 = vld [vmem:[%s3398_s0 + $0x40] sm:$0xff] }
   0xb   :  { %v2614_v26 = vld [vmem:[%s3397_s1 + $0x30] sm:$0xff]   ;;  %v2618_v30 = vld [vmem:[%s3397_s1 + $0x38] sm:$0xff]   ;;  %v37_v34 = vld [vmem:[%s3398_s0 + $0x8] sm:$0xff]  ;;  %v2060_v35 = vcombine.low %v36_v32, %v44_v33  ;;  %v2061_v36 = vcombine.high %v36_v32, %v44_v33 }
   0xc   :  { %2272 = vmatpush3.bf16.msra.mxu0 %v2598_v10  ;;  %v2615_v27 = vld [vmem:[%s3397_s1 + $0xb0] sm:$0xff]   ;;  %v2619_v31 = vld [vmem:[%s3397_s1 + $0xb8] sm:$0xff]   ;;  %v45_v37 = vld [vmem:[%s3398_s0 + $0x48] sm:$0xff] }
   0xd   :  { %2312 = vmatpush3.bf16.msra.mxu1 %v2599_v11  ;;  %2273 = vmatprep.subr.bf16.mxu0 %v2600_v12  ;;  %v2062_v38 = vcombine.low %v37_v34, %v45_v37  ;;  %v2063_v39 = vcombine.high %v37_v34, %v45_v37  ;;  %v2620_v40 = vld [vmem:[%s3397_s1 + $0x140] sm:$0xff]   ;;  %v2624_v44 = vld [vmem:[%s3397_s1 + $0x148] sm:$0xff]   ;;  %v2628_v56 = vld [vmem:[%s3397_s1 + $0x150] sm:$0xff]  }
   0xe   :  { %2313 = vmatprep.subr.bf16.mxu1 %v2601_v13  ;;  %1444 = vmatprep.mubr.bf16.mxu0 %v2061_v36  ;;  %v2621_v41 = vld [vmem:[%s3397_s1 + $0x1c0] sm:$0xff]   ;;  %v2625_v45 = vld [vmem:[%s3397_s1 + $0x1c8] sm:$0xff]   ;;  %v2629_v57 = vld [vmem:[%s3397_s1 + $0x1d0] sm:$0xff]  }
   0xf   :  { %1508 = vmatprep.mubr.bf16.mxu1 %v2063_v39  ;;  %v2622_v42 = vld [vmem:[%s3397_s1 + $0x100] sm:$0xff]   ;;  %v2626_v46 = vld [vmem:[%s3397_s1 + $0x108] sm:$0xff]   ;;  %v2630_v58 = vld [vmem:[%s3397_s1 + $0x110] sm:$0xff]  }
  0x10   :  { %2274 = vmatpush3.bf16.msra.mxu0 %v2602_v14  ;;  %v2623_v43 = vld [vmem:[%s3397_s1 + $0x180] sm:$0xff]   ;;  %v2627_v47 = vld [vmem:[%s3397_s1 + $0x188] sm:$0xff]   ;;  %v2631_v59 = vld [vmem:[%s3397_s1 + $0x190] sm:$0xff]  }
  0x11   :  { %2314 = vmatpush3.bf16.msra.mxu1 %v2603_v15  ;;  %2275 = vmatprep.subr.bf16.mxu0 %v2604_v16  ;;  %v52_v48 = vld [vmem:[%s3398_s0 + $0x80] sm:$0xff]  ;;  %v53_v51 = vld [vmem:[%s3398_s0 + $0x88] sm:$0xff]  ;;  %v2632_v60 = vld [vmem:[%s3397_s1 + $0x158] sm:$0xff]  }
  0x12   :  { %2315 = vmatprep.subr.bf16.mxu1 %v2605_v17  ;;  %v60_v49 = vld [vmem:[%s3398_s0 + $0xc0] sm:$0xff]  ;;  %v61_v52 = vld [vmem:[%s3398_s0 + $0xc8] sm:$0xff]  ;;  %v2633_v61 = vld [vmem:[%s3397_s1 + $0x1d8] sm:$0xff]  }
  0x13   :  { %v2077_v50 = vcombine.high %v52_v48, %v60_v49  ;;  %v2076_v53 = vcombine.low %v52_v48, %v60_v49  ;;  %v2079_v54 = vcombine.high %v53_v51, %v61_v52  ;;  %v2078_v55 = vcombine.low %v53_v51, %v61_v52  ;;  %v2634_v62 = vld [vmem:[%s3397_s1 + $0x118] sm:$0xff]   ;;  %v68_v0 = vld [vmem:[%s3398_s0 + $0x100] sm:$0xff]  ;;  %v69_v2 = vld [vmem:[%s3398_s0 + $0x108] sm:$0xff] }
  0x14   :  { %2276 = vmatpush3.bf16.msra.mxu0 %v2606_v18  ;;  %v2635_v63 = vld [vmem:[%s3397_s1 + $0x198] sm:$0xff]   ;;  %v76_v1 = vld [vmem:[%s3398_s0 + $0x140] sm:$0xff]  ;;  %v77_v3 = vld [vmem:[%s3398_s0 + $0x148] sm:$0xff] }
  0x15   :  { %2316 = vmatpush3.bf16.msra.mxu1 %v2607_v19  ;;  %2277 = vmatprep.subr.bf16.mxu0 %v2608_v20  ;;  %v2093_v4 = vcombine.high %v68_v0, %v76_v1  ;;  %v2095_v5 = vcombine.high %v69_v2, %v77_v3  ;;  %v2092_v6 = vcombine.low %v68_v0, %v76_v1  ;;  %v2636_v8 = vld [vmem:[%s3397_s1 + $0x160] sm:$0xff]   ;;  %v2640_v12 = vld [vmem:[%s3397_s1 + $0x168] sm:$0xff]   ;;  %v39_v32 = vld [vmem:[%s3398_s0 + $0x18] sm:$0xff] }
  0x16   :  { %2317 = vmatprep.subr.bf16.mxu1 %v2609_v21  ;;  %v2094_v7 = vcombine.low %v69_v2, %v77_v3  ;;  %v2637_v9 = vld [vmem:[%s3397_s1 + $0x1e0] sm:$0xff]   ;;  %v2641_v13 = vld [vmem:[%s3397_s1 + $0x1e8] sm:$0xff]   ;;  %v2648_v21 = vld [vmem:[%s3397_s1 + $0x170] sm:$0xff]  }
  0x17   :  { %v2638_v10 = vld [vmem:[%s3397_s1 + $0x120] sm:$0xff]   ;;  %v2642_v14 = vld [vmem:[%s3397_s1 + $0x128] sm:$0xff]   ;;  %v47_v33 = vld [vmem:[%s3398_s0 + $0x58] sm:$0xff] }
  0x18   :  { %2278 = vmatpush3.bf16.msra.mxu0 %v2610_v22  ;;  %v2639_v11 = vld [vmem:[%s3397_s1 + $0x1a0] sm:$0xff]   ;;  %v2643_v15 = vld [vmem:[%s3397_s1 + $0x1a8] sm:$0xff]   ;;  %v2066_v36 = vcombine.low %v39_v32, %v47_v33  ;;  %v55_v48 = vld [vmem:[%s3398_s0 + $0x98] sm:$0xff] }
  0x19   :  { %2318 = vmatpush3.bf16.msra.mxu1 %v2611_v23  ;;  %2279 = vmatprep.subr.bf16.mxu0 %v2612_v24  ;;  %v84_v16 = vld [vmem:[%s3398_s0 + $0x180] sm:$0xff]  ;;  %v85_v17 = vld [vmem:[%s3398_s0 + $0x188] sm:$0xff]  ;;  %v2649_v23 = vld [vmem:[%s3397_s1 + $0x1f0] sm:$0xff]  }
  0x1a   :  { %2319 = vmatprep.subr.bf16.mxu1 %v2613_v25  ;;  %v2109_v18 = vcombine.high %v84_v16, %v84_v16  ;;  %v2111_v19 = vcombine.high %v85_v17, %v85_v17  ;;  %v2108_v20 = vcombine.low %v84_v16, %v84_v16  ;;  %v2110_v22 = vcombine.low %v85_v17, %v85_v17  ;;  %v2650_v24 = vld [vmem:[%s3397_s1 + $0x130] sm:$0xff]   ;;  %v2656_v37 = vld [vmem:[%s3397_s1 + $0x240] sm:$0xff]   ;;  %v71_v1 = vld [vmem:[%s3398_s0 + $0x118] sm:$0xff] }
  0x1b   :  { %v2651_v25 = vld [vmem:[%s3397_s1 + $0x1b0] sm:$0xff]   ;;  %v2657_v39 = vld [vmem:[%s3397_s1 + $0x2c0] sm:$0xff]   ;;  %v79_v2 = vld [vmem:[%s3398_s0 + $0x158] sm:$0xff] }
  0x1c   :  { %2280 = vmatpush3.bf16.msra.mxu0 %v2614_v26  ;;  %v2652_v26 = vld [vmem:[%s3397_s1 + $0x178] sm:$0xff]  }
  0x1d   :  { %2320 = vmatpush3.bf16.msra.mxu1 %v2615_v27  ;;  %2281 = vmatprep.subr.bf16.mxu0 %v2616_v28  ;;  %v2653_v27 = vld [vmem:[%s3397_s1 + $0x1f8] sm:$0xff]  }
  0x1e   :  { %2321 = vmatprep.subr.bf16.mxu1 %v2617_v29  ;;  %v2654_v28 = vld [vmem:[%s3397_s1 + $0x138] sm:$0xff]  }
  0x1f   :  { %v2655_v29 = vld [vmem:[%s3397_s1 + $0x1b8] sm:$0xff]  }
  0x20   :  { %2282 = vmatpush3.bf16.msra.mxu0 %v2618_v30  ;;  %v38_v30 = vld [vmem:[%s3398_s0 + $0x10] sm:$0xff]  ;;  %v87_v16 = vld [vmem:[%s3398_s0 + $0x198] sm:$0xff] }
  0x21   :  { %2322 = vmatpush3.bf16.msra.mxu1 %v2619_v31  ;;  %2347 = vmatprep.subr.bf16.mxu0 %v2620_v40  ;;  %v46_v31 = vld [vmem:[%s3398_s0 + $0x50] sm:$0xff]  ;;  %v2658_v40 = vld [vmem:[%s3397_s1 + $0x200] sm:$0xff]  }
  0x22   :  { %2387 = vmatprep.subr.bf16.mxu1 %v2621_v41  ;;  %v2064_v34 = vcombine.low %v38_v30, %v46_v31  ;;  %v2659_v41 = vld [vmem:[%s3397_s1 + $0x280] sm:$0xff]  }
  0x23   :  { %1445 = vmatmul.mubr.bf16.vlgmr.msra.gmra.mrb[0].mxu0 %v2060_v35  ;;  %v2065_v35 = vcombine.high %v38_v30, %v46_v31 }
  0x24   :  { %1509 = vmatmul.mubr.bf16.vlgmr.msra.gmra.mrb[0].mxu1 %v2062_v38  ;;  %2348 = vmatpush3.bf16.msra.mxu0 %v2622_v42  ;;  %v2067_v38 = vcombine.high %v39_v32, %v47_v33  ;;  %v2660_v42 = vld [vmem:[%s3397_s1 + $0x248] sm:$0xff]  }
  0x25   :  { %2388 = vmatpush3.bf16.msra.mxu1 %v2623_v43  ;;  %2349 = vmatprep.subr.bf16.mxu0 %v2624_v44  ;;  %v2661_v43 = vld [vmem:[%s3397_s1 + $0x2c8] sm:$0xff]  }
  0x26   :  { %2389 = vmatprep.subr.bf16.mxu1 %v2625_v45  ;;  %1452 = vmatprep.mubr.bf16.mxu0 %v2077_v50  ;;  %v2662_v44 = vld [vmem:[%s3397_s1 + $0x208] sm:$0xff]   ;;  %v63_v50 = vld [vmem:[%s3398_s0 + $0xd8] sm:$0xff] }
  0x27   :  { %1516 = vmatprep.mubr.bf16.mxu1 %v2079_v54  ;;  %v2663_v45 = vld [vmem:[%s3397_s1 + $0x288] sm:$0xff]   ;;  %v2083_v52 = vcombine.high %v55_v48, %v63_v50  ;;  %v2664_v54 = vld [vmem:[%s3397_s1 + $0x250] sm:$0xff]  }
  0x28   :  { %2350 = vmatpush3.bf16.msra.mxu0 %v2626_v46  ;;  %v54_v46 = vld [vmem:[%s3398_s0 + $0x90] sm:$0xff]  ;;  %v41_v32 = vld [vmem:[%s3398_s0 + $0x28] sm:$0xff] }
  0x29   :  { %2390 = vmatpush3.bf16.msra.mxu1 %v2627_v47  ;;  %2351 = vmatprep.subr.bf16.mxu0 %v2628_v56  ;;  %v62_v47 = vld [vmem:[%s3398_s0 + $0xd0] sm:$0xff]  ;;  %v49_v33 = vld [vmem:[%s3398_s0 + $0x68] sm:$0xff] }
  0x2a   :  { %2391 = vmatprep.subr.bf16.mxu1 %v2629_v57  ;;  %v2081_v49 = vcombine.high %v54_v46, %v62_v47  ;;  %v2080_v51 = vcombine.low %v54_v46, %v62_v47  ;;  %v2666_v56 = vld [vmem:[%s3397_s1 + $0x210] sm:$0xff]   ;;  %v57_v46 = vld [vmem:[%s3398_s0 + $0xa8] sm:$0xff] }
  0x2b   :  { %1453 = vmatmul.mubr.bf16.gmra.mrb[4].mxu0 %v2076_v53  ;;  %v2082_v53 = vcombine.low %v55_v48, %v63_v50  ;;  %v2667_v57 = vld [vmem:[%s3397_s1 + $0x290] sm:$0xff]   ;;  %v65_v47 = vld [vmem:[%s3398_s0 + $0xe8] sm:$0xff] }
  0x2c   :  { %1517 = vmatmul.mubr.bf16.gmra.mrb[4].mxu1 %v2078_v55  ;;  %2352 = vmatpush3.bf16.msra.mxu0 %v2630_v58  ;;  %v2665_v55 = vld [vmem:[%s3397_s1 + $0x2d0] sm:$0xff]   ;;  %v2668_v58 = vld [vmem:[%s3397_s1 + $0x258] sm:$0xff]  }
  0x2d   :  { %2392 = vmatpush3.bf16.msra.mxu1 %v2631_v59  ;;  %2353 = vmatprep.subr.bf16.mxu0 %v2632_v60  ;;  %v2669_v59 = vld [vmem:[%s3397_s1 + $0x2d8] sm:$0xff]  }
  0x2e   :  { %2393 = vmatprep.subr.bf16.mxu1 %v2633_v61  ;;  %1460 = vmatprep.mubr.bf16.mxu0 %v2093_v4  ;;  %v2670_v60 = vld [vmem:[%s3397_s1 + $0x218] sm:$0xff]   ;;  %v2099_v4 = vcombine.high %v71_v1, %v79_v2 }
  0x2f   :  { %1524 = vmatprep.mubr.bf16.mxu1 %v2095_v5  ;;  %v2671_v61 = vld [vmem:[%s3397_s1 + $0x298] sm:$0xff]   ;;  %v2098_v5 = vcombine.low %v71_v1, %v79_v2 }
  0x30   :  { %2354 = vmatpush3.bf16.msra.mxu0 %v2634_v62  ;;  %v70_v62 = vld [vmem:[%s3398_s0 + $0x110] sm:$0xff] }
  0x31   :  { %2394 = vmatpush3.bf16.msra.mxu1 %v2635_v63  ;;  %2355 = vmatprep.subr.bf16.mxu0 %v2636_v8  ;;  %v78_v63 = vld [vmem:[%s3398_s0 + $0x150] sm:$0xff]  ;;  %v2674_v8 = vld [vmem:[%s3397_s1 + $0x220] sm:$0xff]  }
  0x32   :  { %2395 = vmatprep.subr.bf16.mxu1 %v2637_v9  ;;  %v2097_v0 = vcombine.high %v70_v62, %v78_v63  ;;  %v2096_v3 = vcombine.low %v70_v62, %v78_v63  ;;  %v2675_v9 = vld [vmem:[%s3397_s1 + $0x2a0] sm:$0xff]   ;;  %v73_v62 = vld [vmem:[%s3398_s0 + $0x128] sm:$0xff] }
  0x33   :  { %1461 = vmatmul.mubr.bf16.gmra.mrb[8].mxu0 %v2092_v6  ;;  %v2672_v6 = vld [vmem:[%s3397_s1 + $0x260] sm:$0xff]  }
  0x34   :  { %1525 = vmatmul.mubr.bf16.gmra.mrb[8].mxu1 %v2094_v7  ;;  %2356 = vmatpush3.bf16.msra.mxu0 %v2638_v10  ;;  %v2673_v7 = vld [vmem:[%s3397_s1 + $0x2e0] sm:$0xff]   ;;  %v2676_v10 = vld [vmem:[%s3397_s1 + $0x268] sm:$0xff]  }
  0x35   :  { %2396 = vmatpush3.bf16.msra.mxu1 %v2639_v11  ;;  %2357 = vmatprep.subr.bf16.mxu0 %v2640_v12  ;;  %v2677_v11 = vld [vmem:[%s3397_s1 + $0x2e8] sm:$0xff]  }
  0x36   :  { %2397 = vmatprep.subr.bf16.mxu1 %v2641_v13  ;;  %1468 = vmatprep.mubr.bf16.mxu0 %v2109_v18  ;;  %v2678_v12 = vld [vmem:[%s3397_s1 + $0x228] sm:$0xff]   ;;  %v2115_v18 = vcombine.high %v87_v16, %v87_v16 }
  0x37   :  { %1532 = vmatprep.mubr.bf16.mxu1 %v2111_v19  ;;  %v2679_v13 = vld [vmem:[%s3397_s1 + $0x2a8] sm:$0xff]   ;;  %v2114_v19 = vcombine.low %v87_v16, %v87_v16 }
  0x38   :  { %2358 = vmatpush3.bf16.msra.mxu0 %v2642_v14  ;;  %v86_v14 = vld [vmem:[%s3398_s0 + $0x190] sm:$0xff] }
  0x39   :  { %2398 = vmatpush3.bf16.msra.mxu1 %v2643_v15  ;;  %2359 = vmatprep.subr.bf16.mxu0 %v2648_v21  ;;  %v2113_v15 = vcombine.high %v86_v14, %v86_v14  ;;  %v2112_v17 = vcombine.low %v86_v14, %v86_v14  ;;  %v2685_v21 = vld [vmem:[%s3397_s1 + $0x2f0] sm:$0xff]  }
  0x3a   :  { %2399 = vmatprep.subr.bf16.mxu1 %v2649_v23  ;;  %v2687_v23 = vld [vmem:[%s3397_s1 + $0x2b0] sm:$0xff]  }
  0x3b   :  { %1469 = vmatmul.mubr.bf16.gmra.mrb[12].mxu0 %v2108_v20  ;;  %v2684_v20 = vld [vmem:[%s3397_s1 + $0x270] sm:$0xff]  }
  0x3c   :  { %1533 = vmatmul.mubr.bf16.gmra.mrb[12].mxu1 %v2110_v22  ;;  %2360 = vmatpush3.bf16.msra.mxu0 %v2650_v24  ;;  %v2686_v22 = vld [vmem:[%s3397_s1 + $0x230] sm:$0xff]   ;;  %v2688_v24 = vld [vmem:[%s3397_s1 + $0x278] sm:$0xff]  }
  0x3d   :  { %2400 = vmatpush3.bf16.msra.mxu1 %v2651_v25  ;;  %2361 = vmatprep.subr.bf16.mxu0 %v2652_v26  ;;  %v2689_v25 = vld [vmem:[%s3397_s1 + $0x2f8] sm:$0xff]  }
  0x3e   :  { %2401 = vmatprep.subr.bf16.mxu1 %v2653_v27  ;;  %1572 = vmatprep.mubr.bf16.mxu0 %v2065_v35  ;;  %v2690_v26 = vld [vmem:[%s3397_s1 + $0x238] sm:$0xff]   ;;  %v2071_v35 = vcombine.high %v41_v32, %v49_v33 }
  0x3f   :  { %1636 = vmatprep.mubr.bf16.mxu1 %v2067_v38  ;;  %v2691_v27 = vld [vmem:[%s3397_s1 + $0x2b8] sm:$0xff]   ;;  %v2694_v38 = vld [vmem:[%s3397_s1 + $0x300] sm:$0xff]  }
  0x40   :  { %2362 = vmatpush3.bf16.msra.mxu0 %v2654_v28  ;;  %v40_v28 = vld [vmem:[%s3398_s0 + $0x20] sm:$0xff] }
  0x41   :  { %2402 = vmatpush3.bf16.msra.mxu1 %v2655_v29  ;;  %2427 = vmatprep.subr.bf16.mxu0 %v2656_v37  ;;  %v48_v29 = vld [vmem:[%s3398_s0 + $0x60] sm:$0xff] }
  0x42   :  { %2467 = vmatprep.subr.bf16.mxu1 %v2657_v39  ;;  %v2068_v30 = vcombine.low %v40_v28, %v48_v29  ;;  %v2069_v31 = vcombine.high %v40_v28, %v48_v29  ;;  %v2693_v37 = vld [vmem:[%s3397_s1 + $0x3c0] sm:$0xff]   ;;  %v43_v28 = vld [vmem:[%s3398_s0 + $0x38] sm:$0xff] }
  0x43   :  { %1573 = vmatmul.mubr.bf16.vlgmr.msra.gmra.mrb[16].mxu0 %v2064_v34  ;;  %v2070_v34 = vcombine.low %v41_v32, %v49_v33  ;;  %v2695_v39 = vld [vmem:[%s3397_s1 + $0x380] sm:$0xff]   ;;  %v58_v32 = vld [vmem:[%s3398_s0 + $0xb0] sm:$0xff] }
  0x44   :  { %1637 = vmatmul.mubr.bf16.vlgmr.msra.gmra.mrb[16].mxu1 %v2066_v36  ;;  %2428 = vmatpush3.bf16.msra.mxu0 %v2658_v40  ;;  %v2692_v36 = vld [vmem:[%s3397_s1 + $0x340] sm:$0xff]   ;;  %v2696_v40 = vld [vmem:[%s3397_s1 + $0x348] sm:$0xff]   ;;  %v66_v33 = vld [vmem:[%s3398_s0 + $0xf0] sm:$0xff] }
  0x45   :  { %2468 = vmatpush3.bf16.msra.mxu1 %v2659_v41  ;;  %2429 = vmatprep.subr.bf16.mxu0 %v2660_v42  ;;  %v2697_v41 = vld [vmem:[%s3397_s1 + $0x3c8] sm:$0xff]  }
  0x46   :  { %2469 = vmatprep.subr.bf16.mxu1 %v2661_v43  ;;  %1580 = vmatprep.mubr.bf16.mxu0 %v2081_v49  ;;  %v2698_v42 = vld [vmem:[%s3397_s1 + $0x308] sm:$0xff]   ;;  %v2087_v49 = vcombine.high %v57_v46, %v65_v47 }
  0x47   :  { %1644 = vmatprep.mubr.bf16.mxu1 %v2083_v52  ;;  %v2699_v43 = vld [vmem:[%s3397_s1 + $0x388] sm:$0xff]   ;;  %v2700_v52 = vld [vmem:[%s3397_s1 + $0x350] sm:$0xff]  }
  0x48   :  { %2430 = vmatpush3.bf16.msra.mxu0 %v2662_v44  ;;  %v56_v44 = vld [vmem:[%s3398_s0 + $0xa0] sm:$0xff] }
  0x49   :  { %2470 = vmatpush3.bf16.msra.mxu1 %v2663_v45  ;;  %2431 = vmatprep.subr.bf16.mxu0 %v2664_v54  ;;  %v64_v45 = vld [vmem:[%s3398_s0 + $0xe0] sm:$0xff]  ;;  %v2702_v54 = vld [vmem:[%s3397_s1 + $0x310] sm:$0xff]  }
  0x4a   :  { %2471 = vmatprep.subr.bf16.mxu1 %v2665_v55  ;;  %v2085_v48 = vcombine.high %v56_v44, %v64_v45  ;;  %v2084_v50 = vcombine.low %v56_v44, %v64_v45  ;;  %v2703_v55 = vld [vmem:[%s3397_s1 + $0x390] sm:$0xff]   ;;  %v2088_v44 = vcombine.low %v58_v32, %v66_v33 }
  0x4b   :  { %1581 = vmatmul.mubr.bf16.gmra.mrb[20].mxu0 %v2080_v51  ;;  %v2086_v51 = vcombine.low %v57_v46, %v65_v47 }
  0x4c   :  { %1645 = vmatmul.mubr.bf16.gmra.mrb[20].mxu1 %v2082_v53  ;;  %2432 = vmatpush3.bf16.msra.mxu0 %v2666_v56  ;;  %v2701_v53 = vld [vmem:[%s3397_s1 + $0x3d0] sm:$0xff]   ;;  %v2704_v56 = vld [vmem:[%s3397_s1 + $0x358] sm:$0xff]  }
  0x4d   :  { %2472 = vmatpush3.bf16.msra.mxu1 %v2667_v57  ;;  %2433 = vmatprep.subr.bf16.mxu0 %v2668_v58  ;;  %v2705_v57 = vld [vmem:[%s3397_s1 + $0x3d8] sm:$0xff]  }
  0x4e   :  { %2473 = vmatprep.subr.bf16.mxu1 %v2669_v59  ;;  %1588 = vmatprep.mubr.bf16.mxu0 %v2097_v0  ;;  %v2706_v58 = vld [vmem:[%s3397_s1 + $0x318] sm:$0xff]   ;;  %v81_v0 = vld [vmem:[%s3398_s0 + $0x168] sm:$0xff] }
  0x4f   :  { %1652 = vmatprep.mubr.bf16.mxu1 %v2099_v4  ;;  %v2707_v59 = vld [vmem:[%s3397_s1 + $0x398] sm:$0xff]   ;;  %v2103_v2 = vcombine.high %v73_v62, %v81_v0  ;;  %v2708_v4 = vld [vmem:[%s3397_s1 + $0x360] sm:$0xff]  }
  0x50   :  { %2434 = vmatpush3.bf16.msra.mxu0 %v2670_v60  ;;  %v72_v60 = vld [vmem:[%s3398_s0 + $0x120] sm:$0xff] }
  0x51   :  { %2474 = vmatpush3.bf16.msra.mxu1 %v2671_v61  ;;  %2435 = vmatprep.subr.bf16.mxu0 %v2672_v6  ;;  %v80_v61 = vld [vmem:[%s3398_s0 + $0x160] sm:$0xff] }
  0x52   :  { %2475 = vmatprep.subr.bf16.mxu1 %v2673_v7  ;;  %v2101_v63 = vcombine.high %v72_v60, %v80_v61  ;;  %v2100_v1 = vcombine.low %v72_v60, %v80_v61  ;;  %v2710_v6 = vld [vmem:[%s3397_s1 + $0x320] sm:$0xff]  }
  0x53   :  { %1589 = vmatmul.mubr.bf16.gmra.mrb[24].mxu0 %v2096_v3  ;;  %v2102_v3 = vcombine.low %v73_v62, %v81_v0  ;;  %v2711_v7 = vld [vmem:[%s3397_s1 + $0x3a0] sm:$0xff]  }
  0x54   :  { %1653 = vmatmul.mubr.bf16.gmra.mrb[24].mxu1 %v2098_v5  ;;  %2436 = vmatpush3.bf16.msra.mxu0 %v2674_v8  ;;  %v2709_v5 = vld [vmem:[%s3397_s1 + $0x3e0] sm:$0xff]   ;;  %v2712_v8 = vld [vmem:[%s3397_s1 + $0x368] sm:$0xff]  }
  0x55   :  { %2476 = vmatpush3.bf16.msra.mxu1 %v2675_v9  ;;  %2437 = vmatprep.subr.bf16.mxu0 %v2676_v10  ;;  %v2713_v9 = vld [vmem:[%s3397_s1 + $0x3e8] sm:$0xff]  }
  0x56   :  { %2477 = vmatprep.subr.bf16.mxu1 %v2677_v11  ;;  %1596 = vmatprep.mubr.bf16.mxu0 %v2113_v15  ;;  %v2714_v10 = vld [vmem:[%s3397_s1 + $0x328] sm:$0xff]  }
  0x57   :  { %1660 = vmatprep.mubr.bf16.mxu1 %v2115_v18  ;;  %v2715_v11 = vld [vmem:[%s3397_s1 + $0x3a8] sm:$0xff]   ;;  %v2720_v18 = vld [vmem:[%s3397_s1 + $0x370] sm:$0xff]  }
  0x58   :  { %2438 = vmatpush3.bf16.msra.mxu0 %v2678_v12  ;;  %v88_v12 = vld [vmem:[%s3398_s0 + $0x1a0] sm:$0xff] }
  0x59   :  { %2478 = vmatpush3.bf16.msra.mxu1 %v2679_v13  ;;  %2439 = vmatprep.subr.bf16.mxu0 %v2684_v20  ;;  %v89_v13 = vld [vmem:[%s3398_s0 + $0x1a8] sm:$0xff]  ;;  %v2117_v14 = vcombine.high %v88_v12, %v88_v12  ;;  %v2116_v16 = vcombine.low %v88_v12, %v88_v12  ;;  %v2722_v20 = vld [vmem:[%s3397_s1 + $0x330] sm:$0xff]  }
  0x5a   :  { %2479 = vmatprep.subr.bf16.mxu1 %v2685_v21  ;;  %v2119_v15 = vcombine.high %v89_v13, %v89_v13  ;;  %v2723_v21 = vld [vmem:[%s3397_s1 + $0x3b0] sm:$0xff]  }
  0x5b   :  { %1597 = vmatmul.mubr.bf16.gmra.mrb[28].mxu0 %v2112_v17  ;;  %v2118_v17 = vcombine.low %v89_v13, %v89_v13 }
  0x5c   :  { %1661 = vmatmul.mubr.bf16.gmra.mrb[28].mxu1 %v2114_v19  ;;  %2440 = vmatpush3.bf16.msra.mxu0 %v2686_v22  ;;  %v2721_v19 = vld [vmem:[%s3397_s1 + $0x3f0] sm:$0xff]   ;;  %v2724_v22 = vld [vmem:[%s3397_s1 + $0x378] sm:$0xff]  }
  0x5d   :  { %2480 = vmatpush3.bf16.msra.mxu1 %v2687_v23  ;;  %2441 = vmatprep.subr.bf16.mxu0 %v2688_v24  ;;  %v2725_v23 = vld [vmem:[%s3397_s1 + $0x3f8] sm:$0xff]  }
  0x5e   :  { %2481 = vmatprep.subr.bf16.mxu1 %v2689_v25  ;;  %1700 = vmatprep.mubr.bf16.mxu0 %v2069_v31  ;;  %v2726_v24 = vld [vmem:[%s3397_s1 + $0x338] sm:$0xff]  }
  0x5f   :  { %1764 = vmatprep.mubr.bf16.mxu1 %v2071_v35  ;;  %v2727_v25 = vld [vmem:[%s3397_s1 + $0x3b8] sm:$0xff]  }
  0x60   :  { %2442 = vmatpush3.bf16.msra.mxu0 %v2690_v26  ;;  %v42_v26 = vld [vmem:[%s3398_s0 + $0x30] sm:$0xff]  ;;  %v51_v31 = vld [vmem:[%s3398_s0 + $0x78] sm:$0xff] }
  0x61   :  { %2482 = vmatpush3.bf16.msra.mxu1 %v2691_v27  ;;  %2507 = vmatprep.subr.bf16.mxu0 %v2692_v36  ;;  %v50_v27 = vld [vmem:[%s3398_s0 + $0x70] sm:$0xff]  ;;  %v2075_v35 = vcombine.high %v43_v28, %v51_v31  ;;  %v2089_v36 = vcombine.high %v58_v32, %v66_v33 }
  0x62   :  { %2547 = vmatprep.subr.bf16.mxu1 %v2693_v37  ;;  %v2072_v29 = vcombine.low %v42_v26, %v50_v27  ;;  %v59_v37 = vld [vmem:[%s3398_s0 + $0xb8] sm:$0xff] }
  0x63   :  { %1701 = vmatmul.mubr.bf16.vlgmr.msra.gmra.mrb[32].mxu0 %v2068_v30  ;;  %v2073_v30 = vcombine.high %v42_v26, %v50_v27 }
  0x64   :  { %1765 = vmatmul.mubr.bf16.vlgmr.msra.gmra.mrb[32].mxu1 %v2070_v34  ;;  %2508 = vmatpush3.bf16.msra.mxu0 %v2694_v38  ;;  %v2074_v34 = vcombine.low %v43_v28, %v51_v31  ;;  %v67_v38 = vld [vmem:[%s3398_s0 + $0xf8] sm:$0xff] }
  0x65   :  { %2548 = vmatpush3.bf16.msra.mxu1 %v2695_v39  ;;  %2509 = vmatprep.subr.bf16.mxu0 %v2696_v40  ;;  %v2091_v39 = vcombine.high %v59_v37, %v67_v38  ;;  %v74_v40 = vld [vmem:[%s3398_s0 + $0x130] sm:$0xff]  ;;  %v2090_v45 = vcombine.low %v59_v37, %v67_v38 }
  0x66   :  { %2549 = vmatprep.subr.bf16.mxu1 %v2697_v41  ;;  %1708 = vmatprep.mubr.bf16.mxu0 %v2085_v48  ;;  %v82_v41 = vld [vmem:[%s3398_s0 + $0x170] sm:$0xff] }
  0x67   :  { %1772 = vmatprep.mubr.bf16.mxu1 %v2087_v49  ;;  %v2105_v46 = vcombine.high %v74_v40, %v82_v41  ;;  %v90_v48 = vld [vmem:[%s3398_s0 + $0x1b0] sm:$0xff]  ;;  %v91_v49 = vld [vmem:[%s3398_s0 + $0x1b8] sm:$0xff] }
  0x68   :  { %2510 = vmatpush3.bf16.msra.mxu0 %v2698_v42  ;;  %v75_v42 = vld [vmem:[%s3398_s0 + $0x138] sm:$0xff] }
  0x69   :  { %2550 = vmatpush3.bf16.msra.mxu1 %v2699_v43  ;;  %2511 = vmatprep.subr.bf16.mxu0 %v2700_v52  ;;  %v83_v43 = vld [vmem:[%s3398_s0 + $0x178] sm:$0xff]  ;;  %v2121_v52 = vcombine.high %v90_v48, %v90_v48 }
  0x6a   :  { %2551 = vmatprep.subr.bf16.mxu1 %v2701_v53  ;;  %v2107_v47 = vcombine.high %v75_v42, %v83_v43  ;;  %v2123_v53 = vcombine.high %v91_v49, %v91_v49 }
  0x6b   :  { %1709 = vmatmul.mubr.bf16.gmra.mrb[36].mxu0 %v2084_v50  ;;  %v2104_v50 = vcombine.low %v74_v40, %v82_v41 }
  0x6c   :  { %1773 = vmatmul.mubr.bf16.gmra.mrb[36].mxu1 %v2086_v51  ;;  %2512 = vmatpush3.bf16.msra.mxu0 %v2702_v54  ;;  %v2106_v51 = vcombine.low %v75_v42, %v83_v43  ;;  %v2120_v54 = vcombine.low %v90_v48, %v90_v48 }
  0x6d   :  { %2552 = vmatpush3.bf16.msra.mxu1 %v2703_v55  ;;  %2513 = vmatprep.subr.bf16.mxu0 %v2704_v56  ;;  %v2122_v55 = vcombine.low %v91_v49, %v91_v49  ;;  %v2732_v56 = vmov 0.0  }
  0x6e   :  { %2553 = vmatprep.subr.bf16.mxu1 %v2705_v57  ;;  %1716 = vmatprep.mubr.bf16.mxu0 %v2101_v63  ;;  %22 = vst.msk [vmem:[#allocation2] sm:$0xff] %vm21_vm0, %v2732_v56  ;;  %23 = vst.msk [vmem:[#allocation2 + $0x8] sm:$0xff] %vm21_vm0, %v2732_v56 }
  0x6f   :  { %1780 = vmatprep.mubr.bf16.mxu1 %v2103_v2  ;;  %24 = vst.msk [vmem:[#allocation2 + $0x10] sm:$0xff] %vm21_vm0, %v2732_v56  ;;  %25 = vst.msk [vmem:[#allocation2 + $0x18] sm:$0xff] %vm21_vm0, %v2732_v56 }
  0x70   :  { %2514 = vmatpush3.bf16.msra.mxu0 %v2706_v58  ;;  %26 = vst.msk [vmem:[#allocation2 + $0x20] sm:$0xff] %vm21_vm0, %v2732_v56  ;;  %27 = vst.msk [vmem:[#allocation2 + $0x28] sm:$0xff] %vm21_vm0, %v2732_v56 }
  0x71   :  { %2554 = vmatpush3.bf16.msra.mxu1 %v2707_v59  ;;  %2515 = vmatprep.subr.bf16.mxu0 %v2708_v4  ;;  %28 = vst.msk [vmem:[#allocation2 + $0x30] sm:$0xff] %vm21_vm0, %v2732_v56 }
  0x72   :  { %2555 = vmatprep.subr.bf16.mxu1 %v2709_v5 }
  0x73   :  { %1717 = vmatmul.mubr.bf16.gmra.mrb[40].mxu0 %v2100_v1 }
  0x74   :  { %1781 = vmatmul.mubr.bf16.gmra.mrb[40].mxu1 %v2102_v3  ;;  %2516 = vmatpush3.bf16.msra.mxu0 %v2710_v6 }
  0x75   :  { %2556 = vmatpush3.bf16.msra.mxu1 %v2711_v7  ;;  %2517 = vmatprep.subr.bf16.mxu0 %v2712_v8 }
  0x76   :  { %2557 = vmatprep.subr.bf16.mxu1 %v2713_v9  ;;  %1724 = vmatprep.mubr.bf16.mxu0 %v2117_v14 }
  0x77   :  { %1788 = vmatprep.mubr.bf16.mxu1 %v2119_v15 }
  0x78   :  { %2518 = vmatpush3.bf16.msra.mxu0 %v2714_v10 }
  0x79   :  { %2558 = vmatpush3.bf16.msra.mxu1 %v2715_v11  ;;  %2519 = vmatprep.subr.bf16.mxu0 %v2720_v18 }
  0x7a   :  { %2559 = vmatprep.subr.bf16.mxu1 %v2721_v19 }
  0x7b   :  { %1725 = vmatmul.mubr.bf16.gmra.mrb[44].mxu0 %v2116_v16 }
  0x7c   :  { %1789 = vmatmul.mubr.bf16.gmra.mrb[44].mxu1 %v2118_v17  ;;  %2520 = vmatpush3.bf16.msra.mxu0 %v2722_v20 }
  0x7d   :  { %2560 = vmatpush3.bf16.msra.mxu1 %v2723_v21  ;;  %2521 = vmatprep.subr.bf16.mxu0 %v2724_v22 }
  0x7e   :  { %2561 = vmatprep.subr.bf16.mxu1 %v2725_v23  ;;  %1828 = vmatprep.mubr.bf16.mxu0 %v2073_v30 }
  0x7f   :  { %1892 = vmatprep.mubr.bf16.mxu1 %v2075_v35 }
  0x80   :  { %2522 = vmatpush3.bf16.msra.mxu0 %v2726_v24 }
  0x81   :  { %2562 = vmatpush3.bf16.msra.mxu1 %v2727_v25 }
  0x83   :  { %1829 = vmatmul.mubr.bf16.vlgmr.msra.gmra.mrb[48].mxu0 %v2072_v29 }
  0x84   :  { %1893 = vmatmul.mubr.bf16.vlgmr.msra.gmra.mrb[48].mxu1 %v2074_v34  ;;  %1836 = vmatprep.mubr.bf16.mxu0 %v2089_v36 }
  0x85   :  { %1900 = vmatprep.mubr.bf16.mxu1 %v2091_v39 }
  0x8b   :  { %1837 = vmatmul.mubr.bf16.gmra.mrb[52].mxu0 %v2088_v44 }
  0x8c   :  { %1901 = vmatmul.mubr.bf16.gmra.mrb[52].mxu1 %v2090_v45  ;;  %1844 = vmatprep.mubr.bf16.mxu0 %v2105_v46 }
  0x8d   :  { %1908 = vmatprep.mubr.bf16.mxu1 %v2107_v47 }
  0x93   :  { %1845 = vmatmul.mubr.bf16.gmra.mrb[56].mxu0 %v2104_v50 }
  0x94   :  { %1909 = vmatmul.mubr.bf16.gmra.mrb[56].mxu1 %v2106_v51  ;;  %1852 = vmatprep.mubr.bf16.mxu0 %v2121_v52 }
  0x95   :  { %1916 = vmatprep.mubr.bf16.mxu1 %v2123_v53 }
  0x9b   :  { %1853 = vmatmul.mubr.bf16.gmra.mrb[60].mxu0 %v2120_v54 }
  0x9c   :  { %1917 = vmatmul.mubr.bf16.gmra.mrb[60].mxu1 %v2122_v55 }
  0xf6   :  { %v2283_v57 = vpop.f32.mrb[0].mxu0 }
  0xf7   :  { %v2323_v58 = vpop.f32.mrb[0].mxu1  ;;  %v2284_v59 = vpop.f32.mrb[1].mxu0 }
  0xf8   :  { %v2285_v60 = vadd.f32 %v2284_v59, %v2283_v57  ;;  %v2324_v61 = vpop.f32.mrb[1].mxu1  ;;  %v2286_v62 = vpop.f32.mrb[2].mxu0 }
  0xf9   :  { %v2325_v63 = vadd.f32 %v2324_v61, %v2323_v58  ;;  %v2326_v0 = vpop.f32.mrb[2].mxu1  ;;  %v2287_v1 = vpop.f32.mrb[3].mxu0 }
  0xfa   :  { %v2288_v2 = vadd.f32 %v2287_v1, %v2286_v62  ;;  %v2327_v3 = vpop.f32.mrb[3].mxu1 }
  0xfb   :  { %v1511_v4 = vadd.f32 %v2325_v63, %v2285_v60  ;;  %v2328_v5 = vadd.f32 %v2327_v3, %v2326_v0 }
  0xfd   :  { %v1514_v6 = vadd.f32 %v2328_v5, %v2288_v2 }
  0xfe   :  { %v2289_v7 = vpop.f32.mrb[4].mxu0 }
  0xff   :  { %v2329_v8 = vpop.f32.mrb[4].mxu1  ;;  %v2290_v9 = vpop.f32.mrb[5].mxu0 }
 0x100   :  { %v2291_v10 = vadd.f32 %v2290_v9, %v2289_v7  ;;  %v2330_v11 = vpop.f32.mrb[5].mxu1  ;;  %v2292_v12 = vpop.f32.mrb[6].mxu0 }
 0x101   :  { %v2331_v13 = vadd.f32 %v2330_v11, %v2329_v8  ;;  %v2332_v14 = vpop.f32.mrb[6].mxu1  ;;  %v2293_v15 = vpop.f32.mrb[7].mxu0 }
 0x102   :  { %v2294_v16 = vadd.f32 %v2293_v15, %v2292_v12  ;;  %v2333_v17 = vpop.f32.mrb[7].mxu1 }
 0x103   :  { %v1519_v18 = vadd.f32 %v2331_v13, %v2291_v10  ;;  %v2334_v19 = vadd.f32 %v2333_v17, %v2332_v14 }
 0x105   :  { %v1522_v20 = vadd.f32 %v2334_v19, %v2294_v16 }
 0x106   :  { %v2295_v21 = vpop.f32.mrb[8].mxu0 }
 0x107   :  { %v2335_v22 = vpop.f32.mrb[8].mxu1  ;;  %v2296_v23 = vpop.f32.mrb[9].mxu0 }
 0x108   :  { %v2336_v24 = vpop.f32.mrb[9].mxu1  ;;  %v2297_v25 = vadd.f32 %v2296_v23, %v2295_v21  ;;  %v2298_v27 = vpop.f32.mrb[10].mxu0 }
 0x109   :  { %v2337_v26 = vadd.f32 %v2336_v24, %v2335_v22  ;;  %v2338_v28 = vpop.f32.mrb[10].mxu1  ;;  %v2299_v29 = vpop.f32.mrb[11].mxu0 }
 0x10a   :  { %v2339_v30 = vpop.f32.mrb[11].mxu1  ;;  %v2300_v32 = vadd.f32 %v2299_v29, %v2298_v27 }
 0x10b   :  { %v1527_v31 = vadd.f32 %v2337_v26, %v2297_v25  ;;  %v2340_v33 = vadd.f32 %v2339_v30, %v2338_v28 }
 0x10d   :  { %v1530_v34 = vadd.f32 %v2340_v33, %v2300_v32 }
 0x10e   :  { %v2301_v35 = vpop.f32.mrb[12].mxu0 }
 0x10f   :  { %v2341_v36 = vpop.f32.mrb[12].mxu1  ;;  %v2302_v37 = vpop.f32.mrb[13].mxu0 }
 0x110   :  { %v2342_v38 = vpop.f32.mrb[13].mxu1  ;;  %v2303_v39 = vadd.f32 %v2302_v37, %v2301_v35  ;;  %v2304_v41 = vpop.f32.mrb[14].mxu0 }
 0x111   :  { %v2343_v40 = vadd.f32 %v2342_v38, %v2341_v36  ;;  %v2344_v42 = vpop.f32.mrb[14].mxu1  ;;  %v2305_v43 = vpop.f32.mrb[15].mxu0 }
 0x112   :  { %v2345_v44 = vpop.f32.mrb[15].mxu1 }
 0x113   :  { %v1535_v45 = vadd.f32 %v2343_v40, %v2303_v39 }
 0x116   :  { %v2363_v46 = vpop.f32.mrb[16].mxu0 }
 0x117   :  { %v2403_v47 = vpop.f32.mrb[16].mxu1  ;;  %v2364_v48 = vpop.f32.mrb[17].mxu0 }
 0x118   :  { %v2365_v49 = vadd.f32 %v2364_v48, %v2363_v46  ;;  %v2404_v50 = vpop.f32.mrb[17].mxu1  ;;  %v2366_v51 = vpop.f32.mrb[18].mxu0 }
 0x119   :  { %v2405_v52 = vadd.f32 %v2404_v50, %v2403_v47  ;;  %v2406_v53 = vpop.f32.mrb[18].mxu1  ;;  %v2367_v54 = vpop.f32.mrb[19].mxu0 }
 0x11a   :  { %v1575_v55 = vadd.f32 %v2365_v49, %v1511_v4  ;;  %v2368_v56 = vadd.f32 %v2367_v54, %v2366_v51  ;;  %v2407_v57 = vpop.f32.mrb[19].mxu1 }
 0x11b   :  { %v2408_v58 = vadd.f32 %v2407_v57, %v2406_v53 }
 0x11c   :  { %v1639_v59 = vadd.f32 %v2405_v52, %v1575_v55  ;;  %v1578_v60 = vadd.f32 %v2368_v56, %v1514_v6 }
 0x11e   :  { %v1642_v61 = vadd.f32 %v2408_v58, %v1578_v60  ;;  %v2369_v62 = vpop.f32.mrb[20].mxu0 }
 0x11f   :  { %v2409_v63 = vpop.f32.mrb[20].mxu1  ;;  %v2370_v0 = vpop.f32.mrb[21].mxu0 }
 0x120   :  { %v2371_v1 = vadd.f32 %v2370_v0, %v2369_v62  ;;  %v2410_v2 = vpop.f32.mrb[21].mxu1  ;;  %v2372_v3 = vpop.f32.mrb[22].mxu0 }
 0x121   :  { %v2411_v5 = vadd.f32 %v2410_v2, %v2409_v63  ;;  %v2412_v7 = vpop.f32.mrb[22].mxu1  ;;  %v2373_v8 = vpop.f32.mrb[23].mxu0 }
 0x122   :  { %v1583_v9 = vadd.f32 %v2371_v1, %v1519_v18  ;;  %v2374_v10 = vadd.f32 %v2373_v8, %v2372_v3  ;;  %v2413_v11 = vpop.f32.mrb[23].mxu1 }
 0x123   :  { %v2414_v12 = vadd.f32 %v2413_v11, %v2412_v7 }
 0x124   :  { %v1647_v4 = vadd.f32 %v2411_v5, %v1583_v9  ;;  %v1586_v13 = vadd.f32 %v2374_v10, %v1522_v20 }
 0x126   :  { %v1650_v14 = vadd.f32 %v2414_v12, %v1586_v13  ;;  %v2375_v15 = vpop.f32.mrb[24].mxu0 }
 0x127   :  { %v2415_v16 = vpop.f32.mrb[24].mxu1  ;;  %v2376_v6 = vpop.f32.mrb[25].mxu0 }
 0x128   :  { %v2377_v17 = vadd.f32 %v2376_v6, %v2375_v15  ;;  %v2416_v19 = vpop.f32.mrb[25].mxu1  ;;  %v2378_v21 = vpop.f32.mrb[26].mxu0 }
 0x129   :  { %v2417_v22 = vadd.f32 %v2416_v19, %v2415_v16  ;;  %v2418_v23 = vpop.f32.mrb[26].mxu1  ;;  %v2379_v24 = vpop.f32.mrb[27].mxu0 }
 0x12a   :  { %v1591_v25 = vadd.f32 %v2377_v17, %v1527_v31  ;;  %v2380_v26 = vadd.f32 %v2379_v24, %v2378_v21  ;;  %v2419_v27 = vpop.f32.mrb[27].mxu1 }
 0x12b   :  { %v2420_v28 = vadd.f32 %v2419_v27, %v2418_v23 }
 0x12c   :  { %v1655_v18 = vadd.f32 %v2417_v22, %v1591_v25  ;;  %v1594_v29 = vadd.f32 %v2380_v26, %v1530_v34 }
 0x12e   :  { %v1658_v30 = vadd.f32 %v2420_v28, %v1594_v29  ;;  %v2381_v32 = vpop.f32.mrb[28].mxu0 }
 0x12f   :  { %v2421_v33 = vpop.f32.mrb[28].mxu1  ;;  %v2382_v20 = vpop.f32.mrb[29].mxu0 }
 0x130   :  { %v2383_v35 = vadd.f32 %v2382_v20, %v2381_v32  ;;  %v2422_v36 = vpop.f32.mrb[29].mxu1  ;;  %v2384_v37 = vpop.f32.mrb[30].mxu0 }
 0x131   :  { %v2423_v38 = vadd.f32 %v2422_v36, %v2421_v33  ;;  %v2424_v39 = vpop.f32.mrb[30].mxu1  ;;  %v2385_v40 = vpop.f32.mrb[31].mxu0 }
 0x132   :  { %v1599_v41 = vadd.f32 %v2383_v35, %v1535_v45  ;;  %v2425_v42 = vpop.f32.mrb[31].mxu1 }
 0x134   :  { %v1663_v43 = vadd.f32 %v2423_v38, %v1599_v41 }
 0x136   :  { %v2443_v44 = vpop.f32.mrb[32].mxu0 }
 0x137   :  { %v2483_v31 = vpop.f32.mrb[32].mxu1  ;;  %v2444_v46 = vpop.f32.mrb[33].mxu0 }
 0x138   :  { %v2445_v47 = vadd.f32 %v2444_v46, %v2443_v44  ;;  %v2484_v48 = vpop.f32.mrb[33].mxu1  ;;  %v2446_v49 = vpop.f32.mrb[34].mxu0 }
 0x139   :  { %v2485_v34 = vadd.f32 %v2484_v48, %v2483_v31  ;;  %v2486_v50 = vpop.f32.mrb[34].mxu1  ;;  %v2447_v51 = vpop.f32.mrb[35].mxu0 }
 0x13a   :  { %v1703_v52 = vadd.f32 %v2445_v47, %v1639_v59  ;;  %v2448_v53 = vadd.f32 %v2447_v51, %v2446_v49  ;;  %v2487_v54 = vpop.f32.mrb[35].mxu1 }
 0x13b   :  { %v2488_v55 = vadd.f32 %v2487_v54, %v2486_v50 }
 0x13c   :  { %v1767_v56 = vadd.f32 %v2485_v34, %v1703_v52  ;;  %v1706_v57 = vadd.f32 %v2448_v53, %v1642_v61  ;;  %v29_v52 = vld [vmem:[#allocation2] sm:$0xff] }
 0x13e   :  { %v1770_v58 = vadd.f32 %v2488_v55, %v1706_v57  ;;  %v2449_v60 = vpop.f32.mrb[36].mxu0  ;;  %v30_v57 = vld [vmem:[#allocation2 + $0x8] sm:$0xff] }
 0x13f   :  { %v2489_v45 = vpop.f32.mrb[36].mxu1  ;;  %v2450_v62 = vpop.f32.mrb[37].mxu0 }
 0x140   :  { %v2490_v63 = vpop.f32.mrb[37].mxu1  ;;  %v2451_v0 = vadd.f32 %v2450_v62, %v2449_v60  ;;  %v2452_v2 = vpop.f32.mrb[38].mxu0 }
 0x141   :  { %v2491_v1 = vadd.f32 %v2490_v63, %v2489_v45  ;;  %v2492_v3 = vpop.f32.mrb[38].mxu1  ;;  %v2453_v5 = vpop.f32.mrb[39].mxu0 }
 0x142   :  { %v2493_v7 = vpop.f32.mrb[39].mxu1  ;;  %v1711_v8 = vadd.f32 %v2451_v0, %v1647_v4  ;;  %v2454_v9 = vadd.f32 %v2453_v5, %v2452_v2 }
 0x143   :  { %v2494_v10 = vadd.f32 %v2493_v7, %v2492_v3 }
 0x144   :  { %v3317_v59 = vadd.f32 %v2491_v1, %v1711_v8  ;;  %v1714_v11 = vadd.f32 %v2454_v9, %v1650_v14 }
 0x146   :  { %v3319_v12 = vadd.f32 %v2494_v10, %v1714_v11  ;;  %v2455_v61 = vpop.f32.mrb[40].mxu0  ;;  %v31_v10 = vld [vmem:[#allocation2 + $0x10] sm:$0xff] }
 0x147   :  { %v2495_v13 = vpop.f32.mrb[40].mxu1  ;;  %v2456_v15 = vpop.f32.mrb[41].mxu0 }
 0x148   :  { %v2457_v16 = vadd.f32 %v2456_v15, %v2455_v61  ;;  %v2496_v6 = vpop.f32.mrb[41].mxu1  ;;  %v2458_v17 = vpop.f32.mrb[42].mxu0  ;;  %v3334_v15 = vld [vmem:[%s3399_s2] ss:$0 sm:$0xff] }
 0x149   :  { %v2497_v19 = vadd.f32 %v2496_v6, %v2495_v13  ;;  %v2498_v21 = vpop.f32.mrb[42].mxu1  ;;  %v2459_v22 = vpop.f32.mrb[43].mxu0 }
 0x14a   :  { %v1719_v23 = vadd.f32 %v2457_v16, %v1655_v18  ;;  %v2460_v24 = vadd.f32 %v2459_v22, %v2458_v17  ;;  %v2499_v25 = vpop.f32.mrb[43].mxu1  ;;  %v32_v16 = vld [vmem:[#allocation2 + $0x18] sm:$0xff] }
 0x14b   :  { %v2500_v4 = vadd.f32 %v2499_v25, %v2498_v21 }
 0x14c   :  { %v3321_v26 = vadd.f32 %v2497_v19, %v1719_v23  ;;  %v1722_v27 = vadd.f32 %v2460_v24, %v1658_v30 }
 0x14e   :  { %v3323_v28 = vadd.f32 %v2500_v4, %v1722_v27  ;;  %v2461_v14 = vpop.f32.mrb[44].mxu0 }
 0x14f   :  { %v2501_v29 = vpop.f32.mrb[44].mxu1  ;;  %v2462_v32 = vpop.f32.mrb[45].mxu0 }
 0x150   :  { %v2502_v33 = vpop.f32.mrb[45].mxu1  ;;  %v2463_v20 = vadd.f32 %v2462_v32, %v2461_v14  ;;  %v2464_v36 = vpop.f32.mrb[46].mxu0 }
 0x151   :  { %v2503_v35 = vadd.f32 %v2502_v33, %v2501_v29  ;;  %v2504_v37 = vpop.f32.mrb[46].mxu1  ;;  %v2465_v38 = vpop.f32.mrb[47].mxu0 }
 0x152   :  { %v2505_v39 = vpop.f32.mrb[47].mxu1  ;;  %v1727_v40 = vadd.f32 %v2463_v20, %v1663_v43 }
 0x153   :  { %v33_v39 = vld [vmem:[#allocation2 + $0x20] sm:$0xff] }
 0x154   :  { %v3325_v18 = vadd.f32 %v2503_v35, %v1727_v40 }
 0x156   :  { %v2523_v41 = vpop.f32.mrb[48].mxu0 }
 0x157   :  { %v2563_v42 = vpop.f32.mrb[48].mxu1  ;;  %v2524_v44 = vpop.f32.mrb[49].mxu0 }
 0x158   :  { %v2525_v31 = vadd.f32 %v2524_v44, %v2523_v41  ;;  %v2564_v30 = vpop.f32.mrb[49].mxu1  ;;  %v2526_v46 = vpop.f32.mrb[50].mxu0  ;;  %v34_v44 = vld [vmem:[#allocation2 + $0x28] sm:$0xff] }
 0x159   :  { %v2565_v47 = vadd.f32 %v2564_v30, %v2563_v42  ;;  %v2566_v48 = vpop.f32.mrb[50].mxu1  ;;  %v2527_v49 = vpop.f32.mrb[51].mxu0 }
 0x15a   :  { %v1831_v34 = vadd.f32 %v2525_v31, %v1767_v56  ;;  %v2528_v50 = vadd.f32 %v2527_v49, %v2526_v46  ;;  %v2567_v51 = vpop.f32.mrb[51].mxu1 }
 0x15b   :  { %v2568_v53 = vadd.f32 %v2567_v51, %v2566_v48 }
 0x15c   :  { %v1895_v54 = vadd.f32 %v2565_v47, %v1831_v34  ;;  %v1834_v55 = vadd.f32 %v2528_v50, %v1770_v58 }
 0x15e   :  { %v1924_v43 = vadd.f32 %v1895_v54, %v29_v52  ;;  %v1898_v60 = vadd.f32 %v2568_v53, %v1834_v55  ;;  %v2529_v45 = vpop.f32.mrb[52].mxu0 }
 0x15f   :  { %v2569_v62 = vpop.f32.mrb[52].mxu1  ;;  %v2530_v63 = vpop.f32.mrb[53].mxu0 }
 0x160   :  { %1932 = vst.msk [vmem:[#allocation2] sm:$0xff] %vm21_vm0, %v1924_v43  ;;  %v1925_v0 = vadd.f32 %v1898_v60, %v30_v57  ;;  %v2531_v1 = vadd.f32 %v2530_v63, %v2529_v45  ;;  %v2570_v2 = vpop.f32.mrb[53].mxu1  ;;  %v2532_v3 = vpop.f32.mrb[54].mxu0 }
 0x161   :  { %v2571_v5 = vadd.f32 %v2570_v2, %v2569_v62  ;;  %v2572_v56 = vpop.f32.mrb[54].mxu1  ;;  %v2533_v7 = vpop.f32.mrb[55].mxu0 }
 0x162   :  { %1933 = vst.msk [vmem:[#allocation2 + $0x8] sm:$0xff] %vm21_vm0, %v1925_v0  ;;  %v1839_v8 = vadd.f32 %v2531_v1, %v3317_v59  ;;  %v2534_v58 = vadd.f32 %v2533_v7, %v2532_v3  ;;  %v2573_v9 = vpop.f32.mrb[55].mxu1 }
 0x163   :  { %v2574_v11 = vadd.f32 %v2573_v9, %v2572_v56 }
 0x164   :  { %v1903_v61 = vadd.f32 %v2571_v5, %v1839_v8  ;;  %v1842_v13 = vadd.f32 %v2534_v58, %v3319_v12  ;;  %v35_v8 = vld [vmem:[#allocation2 + $0x30] sm:$0xff] }
 0x166   :  { %v1926_v6 = vadd.f32 %v1903_v61, %v31_v10  ;;  %v1906_v17 = vadd.f32 %v2574_v11, %v1842_v13  ;;  %v2535_v19 = vpop.f32.mrb[56].mxu0 }
 0x167   :  { %v1942_v21 = vld [vmem:[#allocation2] sm:$0xff]  ;;  %v2575_v22 = vpop.f32.mrb[56].mxu1  ;;  %v2536_v23 = vpop.f32.mrb[57].mxu0 }
 0x168   :  { %v1956_v59 = vadd.f32 %v3334_v15, %v1942_v21  ;;  %1934 = vst.msk [vmem:[#allocation2 + $0x10] sm:$0xff] %vm21_vm0, %v1926_v6  ;;  %v1927_v24 = vadd.f32 %v1906_v17, %v32_v16  ;;  %v2576_v25 = vpop.f32.mrb[57].mxu1  ;;  %v2538_v4 = vpop.f32.mrb[58].mxu0  ;;  %v2537_v27 = vadd.f32 %v2536_v23, %v2535_v19  ;;  %v2019_v34 = vmul.f32 %v1942_v21, %v1942_v21 }
 0x169   :  { %v1943_v12 = vld [vmem:[#allocation2 + $0x8] sm:$0xff]  ;;  %v2577_v14 = vadd.f32 %v2576_v25, %v2575_v22  ;;  %v2578_v29 = vpop.f32.mrb[58].mxu1  ;;  %v2539_v32 = vpop.f32.mrb[59].mxu0  ;;  %v2000_v1 = vsel %vm21_vm0, %v1942_v21, 0.0 }
 0x16a   :  { %v2260_v33 = vpack.c.bf16 %v1956_v59, %v1956_v59  ;;  %v1957_v20 = vadd.f32 %v3334_v15, %v1943_v12  ;;  %1935 = vst.msk [vmem:[#allocation2 + $0x18] sm:$0xff] %vm21_vm0, %v1927_v24  ;;  %v2579_v35 = vpop.f32.mrb[59].mxu1  ;;  %v1847_v36 = vadd.f32 %v2537_v27, %v3321_v26  ;;  %v2540_v37 = vadd.f32 %v2539_v32, %v2538_v4 }
 0x16b   :  { %v2580_v40 = vadd.f32 %v2579_v35, %v2578_v29  ;;  %v2020_v26 = vmul.f32 %v1943_v12, %v1943_v12  ;;  %v2026_v58 = vsel %vm21_vm0, %v2019_v34, 0.0 }
 0x16c   :  { %1993 = vst.msk [vmem:[%s3400_s3] sm:$0xf] %vm1992_vm1, %v2260_v33  ;;  %v2261_v38 = vpack.c.bf16 %v1957_v20, %v1957_v20  ;;  %v1911_v41 = vadd.f32 %v2577_v14, %v1847_v36  ;;  %v1850_v42 = vadd.f32 %v2540_v37, %v3323_v28  ;;  %v2001_v28 = vsel %vm21_vm0, %v1943_v12, 0.0 }
 0x16d   :  { %v2027_v2 = vsel %vm21_vm0, %v2020_v26, 0.0  ;;  %v2002_v56 = vadd.f32 %v2001_v28, %v2000_v1 }
 0x16e   :  { %1994 = vst.msk [vmem:[%s3400_s3 + $0x4] sm:$0xf] %vm1992_vm1, %v2261_v38  ;;  %v2541_v31 = vpop.f32.mrb[60].mxu0  ;;  %v1928_v46 = vadd.f32 %v1911_v41, %v33_v39  ;;  %v1914_v47 = vadd.f32 %v2580_v40, %v1850_v42  ;;  %v2028_v61 = vadd.f32 %v2027_v2, %v2026_v58 }
 0x16f   :  { %v1944_v30 = vld [vmem:[#allocation2 + $0x10] sm:$0xff]  ;;  %v2581_v48 = vpop.f32.mrb[60].mxu1  ;;  %v2542_v49 = vpop.f32.mrb[61].mxu0 }
 0x170   :  { %v1958_v50 = vadd.f32 %v3334_v15, %v1944_v30  ;;  %v2543_v51 = vadd.f32 %v2542_v49, %v2541_v31  ;;  %v2582_v52 = vpop.f32.mrb[61].mxu1  ;;  %v2544_v53 = vpop.f32.mrb[62].mxu0  ;;  %v2021_v54 = vmul.f32 %v1944_v30, %v1944_v30  ;;  %1936 = vst.msk [vmem:[#allocation2 + $0x20] sm:$0xff] %vm21_vm0, %v1928_v46  ;;  %v1929_v57 = vadd.f32 %v1914_v47, %v34_v44 }
 0x171   :  { %v1945_v55 = vld [vmem:[#allocation2 + $0x18] sm:$0xff]  ;;  %v2583_v43 = vadd.f32 %v2582_v52, %v2581_v48  ;;  %v2584_v60 = vpop.f32.mrb[62].mxu1  ;;  %v2545_v45 = vpop.f32.mrb[63].mxu0  ;;  %v2003_v3 = vsel %vm21_vm0, %v1944_v30, 0.0  ;;  %v2045_v48 = vlaneseq }
 0x172   :  { %v2262_v62 = vpack.c.bf16 %v1958_v50, %v1958_v50  ;;  %v1959_v63 = vadd.f32 %v3334_v15, %v1945_v55  ;;  %v2585_v0 = vpop.f32.mrb[63].mxu1  ;;  %1937 = vst.msk [vmem:[#allocation2 + $0x28] sm:$0xff] %vm21_vm0, %v1929_v57  ;;  %v1855_v5 = vadd.f32 %v2543_v51, %v3325_v18  ;;  %v2029_v9 = vsel %vm21_vm0, %v2021_v54, 0.0 }
 0x173   :  { %v2022_v10 = vmul.f32 %v1945_v55, %v1945_v55  ;;  %v2004_v13 = vadd.f32 %v2003_v3, %v2002_v56  ;;  %v2005_v18 = vsel %vm21_vm0, %v1945_v55, 0.0  ;;  %v2030_v6 = vadd.f32 %v2029_v9, %v2028_v61 }
 0x174   :  { %1995 = vst.msk [vmem:[%s3400_s3 + $0x8] sm:$0xf] %vm1992_vm1, %v2262_v62  ;;  %v2263_v7 = vpack.c.bf16 %v1959_v63, %v1959_v63  ;;  %v1919_v11 = vadd.f32 %v2583_v43, %v1855_v5  ;;  %v2046_v51 = vshrl.u32 %v2045_v48, 7 }
 0x175   :  { %v2031_v19 = vsel %vm21_vm0, %v2022_v10, 0.0  ;;  %v2006_v59 = vadd.f32 %v2005_v18, %v2004_v13 }
 0x176   :  { %1996 = vst.msk [vmem:[%s3400_s3 + $0xc] sm:$0xf] %vm1992_vm1, %v2263_v7  ;;  %v1930_v16 = vadd.f32 %v1919_v11, %v35_v8  ;;  %v2032_v27 = vadd.f32 %v2031_v19, %v2030_v6  ;;  %vm2048_vm2 = vcmp.eq.s32.totalorder %v2046_v51, 1  ;;  %vm2047_vm3 = vcmp.eq.s32.totalorder %v2046_v51, 0 }
 0x177   :  { %v1946_v17 = vld [vmem:[#allocation2 + $0x20] sm:$0xff] }
 0x178   :  { %v1960_v21 = vadd.f32 %v3334_v15, %v1946_v17  ;;  %v2007_v22 = vsel %vm21_vm0, %v1946_v17, 0.0  ;;  %v2023_v23 = vmul.f32 %v1946_v17, %v1946_v17  ;;  %1938 = vst.msk [vmem:[#allocation2 + $0x30] sm:$0xff] %vm21_vm0, %v1930_v16 }
 0x179   :  { %v1947_v24 = vld [vmem:[#allocation2 + $0x28] sm:$0xff]  ;;  %v2008_v14 = vadd.f32 %v2007_v22, %v2006_v59 }
 0x17a   :  { %v2264_v25 = vpack.c.bf16 %v1960_v21, %v1960_v21  ;;  %v2033_v4 = vsel %vm21_vm0, %v2023_v23, 0.0  ;;  %v1961_v12 = vadd.f32 %v3334_v15, %v1947_v24  ;;  %v2024_v29 = vmul.f32 %v1947_v24, %v1947_v24 }
 0x17b   :  { %v2009_v33 = vsel %vm21_vm0, %v1947_v24, 0.0  ;;  %v2034_v20 = vadd.f32 %v2033_v4, %v2032_v27 }
 0x17c   :  { %1997 = vst.msk [vmem:[%s3400_s3 + $0x10] sm:$0xf] %vm1992_vm1, %v2264_v25  ;;  %v2265_v32 = vpack.c.bf16 %v1961_v12, %v1961_v12  ;;  %v2035_v35 = vsel %vm21_vm0, %v2024_v29, 0.0  ;;  %v2010_v36 = vadd.f32 %v2009_v33, %v2008_v14 }
 0x17d   :  { %v2036_v41 = vadd.f32 %v2035_v35, %v2034_v20 }
 0x17e   :  { %1998 = vst.msk [vmem:[%s3400_s3 + $0x14] sm:$0xf] %vm1992_vm1, %v2265_v32 }
 0x17f   :  { %v1948_v37 = vld [vmem:[#allocation2 + $0x30] sm:$0xff] }
 0x180   :  { %v1962_v38 = vadd.f32 %v3334_v15, %v1948_v37  ;;  %v2011_v39 = vsel %vm21_vm0, %v1948_v37, 0.0  ;;  %v2025_v40 = vmul.f32 %v1948_v37, %v1948_v37 }
 0x181   :  { %v2012_v42 = vadd.f32 %v2011_v39, %v2010_v36 }
 0x182   :  { %v2266_v44 = vpack.c.bf16 %v1962_v38, %v1962_v38  ;;  %v2037_v31 = vsel %vm21_vm0, %v2025_v40, 0.0 }
 0x183   :  { %v2013_v26 = vrot.slane %v2012_v42, 4  ;;  %v2038_v30 = vadd.f32 %v2037_v31, %v2036_v41 }
 0x184   :  { %1999 = vst.msk [vmem:[%s3400_s3 + $0x18] sm:$0xf] %vm1992_vm1, %v2266_v44 }
 0x185   :  { %v2014_v46 = vadd.f32 %v2013_v26, %v2012_v42  ;;  %v2039_v47 = vrot.slane %v2038_v30, 4 }
 0x187   :  { %v2015_v49 = vrot.slane %v2014_v46, 2  ;;  %v2040_v15 = vadd.f32 %v2039_v47, %v2038_v30 }
 0x189   :  { %v2016_v34 = vadd.f32 %v2015_v49, %v2014_v46  ;;  %v2041_v50 = vrot.slane %v2040_v15, 2 }
 0x18b   :  { %v2042_v52 = vadd.f32 %v2041_v50, %v2040_v15  ;;  %v2017_v53 = vrot.slane %v2016_v34, 1 }
 0x18d   :  { %v2043_v28 = vrot.slane %v2042_v52, 1  ;;  %v2018_v55 = vadd.f32 %v2017_v53, %v2016_v34 }
 0x18f   :  { %v2044_v54 = vadd.f32 %v2043_v28, %v2042_v52 }
 0x191   :  { %v2049_v57 = vsel %vm2048_vm2, %v2044_v54, 0.0 }
 0x192   :  { %v2050_v43 = vsel %vm2047_vm3, %v2018_v55, %v2049_v57 }
 0x193   :  { %2051 = vst.msk [vmem:[%s3401_s4] sm:$0xff] %vm21_vm0, %v2050_v43 }

// kernel: forward.15
= control target key start
LH: loop header
LB: loop body
LE: loop exit
PB: predicated region body
PF: predicated region fallthrough
CT: control target
= control target key end

     0   :  { %s2392_s12 = smov 0   ;;  %s2394_s13 = smov 0   ;;  %s2634_s0 = inlined_call_operand.vmem [shape: bf16[16,4096], index: 0, kind: input, shape index: {}]   ;;  %s2635_s1 = inlined_call_operand.vmem [shape: bf16[4096,128], index: 1, kind: input, shape index: {}]   ;;  %s2636_s2 = inlined_call_operand.vmem [shape: f32[1,128], index: 2, kind: input, shape index: {}]   ;;  %s2637_s3 = inlined_call_operand.vmem [shape: f32[16,128], index: 3, kind: output, shape index: {}]  }
   0x1   :  { %s2396_s14 = smov 0   ;;  %s2398_s15 = smov 0  }
   0x2   :  { %s2400_s16 = smov 0  }
   0x3 LB: > { %s22_s17 = sadd.s32 1, %s2365_s15  ;;  %p41_p1 = scmp.ne.s32.totalorder %s2357_s13, %s2353_s12  ;;  %s2369_s16 = sphi %s2400_s16, %s13_s16   ;;  %s2365_s15 = sphi %s2398_s15, %s2641_s15   ;;  %s2361_s14 = sphi %s2396_s14, %s2640_s14   ;;  %s2357_s13 = sphi %s2394_s13, %s2639_s13   ;;  %s2353_s12 = sphi %s2392_s12, %s2638_s12  }
   0x4   : > { %p23_p0 = scmp.ge.s32.totalorder %s22_s17, 2  ;;  %p42_p2 = scmp.eq.s32.totalorder %s2369_s16, 0 }
   0x5   : > { %s34_s19 = sadd.s32 1, %s2357_s13  ;;  %p1826_p5 = scmp.ge.s32.totalorder %s2369_s16, 2 }
   0x6   : > { %s2643_s17 = smov (%p23_p0, %s22_s17), 0  ;;  %p43_p3 = por %p42_p2, %p41_p1 }
   0x7   : > { %s30_s18 = ssub.s32 %s2365_s15, %s2643_s17  ;;  %143 = sbr.rel (%p1826_p5) target bundleno = 26 (0x1a), region = 20 }
   0x8   : > { %p32_p4 = scmp.eq.s32.totalorder %s30_s18, 0 }
   0xa   : > { %s2427_s20 = scalar_select %p32_p4, %s2357_s13, %s34_s19  }
   0xe   : > { %146 = sbr.rel (!%p43_p3) target bundleno = 26 (0x1a), region = 24  ;;  %s148_s21 = sand.u32 (%p43_p3), 1, %s2357_s13  }
   0xf   : > { %s1985_s22 = sshll.u32 (%p43_p3), %s2365_s15, 6  ;;  %s1827_s23 = sshll.u32 (%p43_p3), %s148_s21, 7 }
  0x10   : > { %s2435_s26 = scalar_lea.vmem (%p43_p3), %s2634_s0, %s1985_s22  ;;  %s150_s27 = scalar_lea.vmem (%p43_p3), [#allocation3], %s1827_s23 }
  0x11   : > { %v169_v0 = vld [vmem:[%s2435_s26] sm:$0xff] (%p43_p3)  ;;  %v171_v1 = vld [vmem:[%s2435_s26 + $0x8] sm:$0xff] (%p43_p3)  ;;  %v173_v2 = vld [vmem:[%s2435_s26 + $0x10] sm:$0xff] (%p43_p3) }
  0x12   : > { %170 = vst [vmem:[%s150_s27] sm:$0xff] (%p43_p3), %v169_v0  ;;  %172 = vst [vmem:[%s150_s27 + $0x8] sm:$0xff] (%p43_p3), %v171_v1  ;;  %v175_v3 = vld [vmem:[%s2435_s26 + $0x18] sm:$0xff] (%p43_p3)  ;;  %v177_v4 = vld [vmem:[%s2435_s26 + $0x20] sm:$0xff] (%p43_p3) }
  0x13   : > { %174 = vst [vmem:[%s150_s27 + $0x10] sm:$0xff] (%p43_p3), %v173_v2  ;;  %v179_v5 = vld [vmem:[%s2435_s26 + $0x28] sm:$0xff] (%p43_p3)  ;;  %176 = vst [vmem:[%s150_s27 + $0x18] sm:$0xff] (%p43_p3), %v175_v3  ;;  %v181_v6 = vld [vmem:[%s2435_s26 + $0x30] sm:$0xff] (%p43_p3) }
  0x14   : > { %178 = vst [vmem:[%s150_s27 + $0x20] sm:$0xff] (%p43_p3), %v177_v4  ;;  %180 = vst [vmem:[%s150_s27 + $0x28] sm:$0xff] (%p43_p3), %v179_v5  ;;  %v183_v7 = vld [vmem:[%s2435_s26 + $0x38] sm:$0xff] (%p43_p3)  ;;  %v185_v8 = vld [vmem:[%s2435_s26 + $0x80] sm:$0xff] (%p43_p3) }
  0x15   : > { %182 = vst [vmem:[%s150_s27 + $0x30] sm:$0xff] %v181_v6  ;;  %184 = vst [vmem:[%s150_s27 + $0x38] sm:$0xff] %v183_v7  ;;  %v187_v9 = vld [vmem:[%s2435_s26 + $0x88] sm:$0xff]  ;;  %v189_v10 = vld [vmem:[%s2435_s26 + $0x90] sm:$0xff] }
  0x16   : > { %186 = vst [vmem:[%s150_s27 + $0x40] sm:$0xff] %v185_v8  ;;  %v191_v11 = vld [vmem:[%s2435_s26 + $0x98] sm:$0xff]  ;;  %188 = vst [vmem:[%s150_s27 + $0x48] sm:$0xff] %v187_v9  ;;  %v193_v12 = vld [vmem:[%s2435_s26 + $0xa0] sm:$0xff] }
  0x17   : > { %190 = vst [vmem:[%s150_s27 + $0x50] sm:$0xff] %v189_v10  ;;  %192 = vst [vmem:[%s150_s27 + $0x58] sm:$0xff] %v191_v11  ;;  %v195_v13 = vld [vmem:[%s2435_s26 + $0xa8] sm:$0xff]  ;;  %v197_v14 = vld [vmem:[%s2435_s26 + $0xb0] sm:$0xff] }
  0x18   : > { %194 = vst [vmem:[%s150_s27 + $0x60] sm:$0xff] %v193_v12  ;;  %196 = vst [vmem:[%s150_s27 + $0x68] sm:$0xff] %v195_v13  ;;  %v199_v15 = vld [vmem:[%s2435_s26 + $0xb8] sm:$0xff] }
  0x19   : > { %198 = vst [vmem:[%s150_s27 + $0x70] sm:$0xff] %v197_v14  ;;  %200 = vst [vmem:[%s150_s27 + $0x78] sm:$0xff] %v199_v15 }
  0x1a PF: > { %p1830_p6 = scmp.ge.s32.totalorder %s2369_s16, 1  ;;  %p214_p7 = scmp.lt.s32.totalorder %s2369_s16, 3 }
  0x1c   : > { %p215_p8 = pnand %p1830_p6, %p214_p7 }
  0x1d   : > { %s221_s28 = sand.u32 (!%p215_p8), 1, %s2353_s12   ;;  %s1832_s29 = sshll.u32 (!%p215_p8), %s2361_s14, 8 }
  0x1e   : > { %218 = sbr.rel (%p215_p8) target bundleno = 408 (0x198), region = 51  ;;  %s1831_s30 = sshll.u32 (!%p215_p8), %s221_s28, 7 }
  0x1f   : > { %p252_p9 = scmp.lt.s32.totalorder (!%p215_p8), %s1832_s29, 511  ;;  %s2462_s8 = scalar_lea.vmem (!%p215_p8), [#allocation3], %s1831_s30 }
  0x20   : > { %p1834_p10 = scmp.ne.s32.totalorder (!%p215_p8), %s2361_s14, 0 }
  0x25   : > { %s2645_s29 = smov (!%p252_p9, %s1832_s29), 511  ;;  %267 = sbr.rel (%p1834_p10) target bundleno = 44 (0x2c), region = 59 }
  0x26   : > { %s1833_s4 = sshll.u32 %s2645_s29, 2  ;;  %v2371_v16 = vmov (!%p1834_p10), 0.0  }
  0x27   : > { %s2460_s7 = scalar_lea.vmem %s2635_s1, %s1833_s4  ;;  %268 = vst [vmem:[#allocation2] sm:$0xff] (!%p1834_p10), %v2371_v16  ;;  %269 = vst [vmem:[#allocation2 + $0x8] sm:$0xff] (!%p1834_p10), %v2371_v16 }
  0x2c PF: > { %v2203_v17 = vld [vmem:[%s2460_s7 + $0x40] sm:$0xff]   ;;  %v2207_v21 = vld [vmem:[%s2460_s7 + $0x48] sm:$0xff]   ;;  %v2211_v25 = vld [vmem:[%s2460_s7 + $0x50] sm:$0xff]   ;;  %p1979_p11 = scmp.ne.s32.totalorder %s2361_s14, 1 }
  0x2d   : > { %v2204_v18 = vld [vmem:[%s2460_s7 + $0xc0] sm:$0xff]   ;;  %1986 = vmatprep.subr.bf16.mxu0 %v2203_v17  ;;  %v2208_v22 = vld [vmem:[%s2460_s7 + $0xc8] sm:$0xff]   ;;  %v2212_v26 = vld [vmem:[%s2460_s7 + $0xd0] sm:$0xff]  }
  0x2e   : > { %v2205_v19 = vld [vmem:[%s2460_s7] sm:$0xff]   ;;  %2008 = vmatprep.subr.bf16.mxu1 %v2204_v18  ;;  %v2209_v23 = vld [vmem:[%s2460_s7 + $0x8] sm:$0xff]   ;;  %v2213_v27 = vld [vmem:[%s2460_s7 + $0x10] sm:$0xff]  }
  0x2f   : > { %v2206_v20 = vld [vmem:[%s2460_s7 + $0x80] sm:$0xff]   ;;  %1987 = vmatpush3.bf16.msra.mxu0 %v2205_v19  ;;  %v2210_v24 = vld [vmem:[%s2460_s7 + $0x88] sm:$0xff]   ;;  %v2214_v28 = vld [vmem:[%s2460_s7 + $0x90] sm:$0xff]  }
  0x30   : > { %2009 = vmatpush3.bf16.msra.mxu1 %v2206_v20  ;;  %1988 = vmatprep.subr.bf16.mxu0 %v2207_v21  ;;  %v2215_v29 = vld [vmem:[%s2460_s7 + $0x58] sm:$0xff]   ;;  %v2219_v33 = vld [vmem:[%s2460_s7 + $0x60] sm:$0xff]   ;;  %v2223_v37 = vld [vmem:[%s2460_s7 + $0x68] sm:$0xff]  }
  0x31   : > { %2010 = vmatprep.subr.bf16.mxu1 %v2208_v22  ;;  %v2216_v30 = vld [vmem:[%s2460_s7 + $0xd8] sm:$0xff]   ;;  %v2220_v34 = vld [vmem:[%s2460_s7 + $0xe0] sm:$0xff]   ;;  %v2224_v38 = vld [vmem:[%s2460_s7 + $0xe8] sm:$0xff]  }
  0x32   : > { %v2217_v31 = vld [vmem:[%s2460_s7 + $0x18] sm:$0xff]   ;;  %v2221_v35 = vld [vmem:[%s2460_s7 + $0x20] sm:$0xff]   ;;  %v2225_v39 = vld [vmem:[%s2460_s7 + $0x28] sm:$0xff]  }
  0x33   : > { %1989 = vmatpush3.bf16.msra.mxu0 %v2209_v23  ;;  %v2218_v32 = vld [vmem:[%s2460_s7 + $0x98] sm:$0xff]   ;;  %v2222_v36 = vld [vmem:[%s2460_s7 + $0xa0] sm:$0xff]   ;;  %v2226_v40 = vld [vmem:[%s2460_s7 + $0xa8] sm:$0xff]  }
  0x34   : > { %2011 = vmatpush3.bf16.msra.mxu1 %v2210_v24  ;;  %1990 = vmatprep.subr.bf16.mxu0 %v2211_v25  ;;  %v2227_v41 = vld [vmem:[%s2460_s7 + $0x70] sm:$0xff]   ;;  %v2231_v45 = vld [vmem:[%s2460_s7 + $0x78] sm:$0xff]   ;;  %v2235_v57 = vld [vmem:[%s2460_s7 + $0x140] sm:$0xff]  }
  0x35   : > { %2012 = vmatprep.subr.bf16.mxu1 %v2212_v26  ;;  %v2228_v42 = vld [vmem:[%s2460_s7 + $0xf0] sm:$0xff]   ;;  %v2232_v46 = vld [vmem:[%s2460_s7 + $0xf8] sm:$0xff]   ;;  %v2236_v58 = vld [vmem:[%s2460_s7 + $0x1c0] sm:$0xff]  }
  0x36   : > { %v2229_v43 = vld [vmem:[%s2460_s7 + $0x30] sm:$0xff]   ;;  %v2233_v47 = vld [vmem:[%s2460_s7 + $0x38] sm:$0xff]   ;;  %v2237_v59 = vld [vmem:[%s2460_s7 + $0x100] sm:$0xff]  }
  0x37   : > { %1991 = vmatpush3.bf16.msra.mxu0 %v2213_v27  ;;  %v2230_v44 = vld [vmem:[%s2460_s7 + $0xb0] sm:$0xff]   ;;  %v2234_v48 = vld [vmem:[%s2460_s7 + $0xb8] sm:$0xff]   ;;  %v2238_v60 = vld [vmem:[%s2460_s7 + $0x180] sm:$0xff]  }
  0x38   : > { %2013 = vmatpush3.bf16.msra.mxu1 %v2214_v28  ;;  %1992 = vmatprep.subr.bf16.mxu0 %v2215_v29  ;;  %v272_v49 = vld [vmem:[%s2462_s8] sm:$0xff]  ;;  %v273_v51 = vld [vmem:[%s2462_s8 + $0x8] sm:$0xff]  ;;  %v2239_v61 = vld [vmem:[%s2460_s7 + $0x148] sm:$0xff]  }
  0x39   : > { %2014 = vmatprep.subr.bf16.mxu1 %v2216_v30  ;;  %v280_v50 = vld [vmem:[%s2462_s8 + $0x40] sm:$0xff]  ;;  %v281_v54 = vld [vmem:[%s2462_s8 + $0x48] sm:$0xff]  ;;  %v2240_v62 = vld [vmem:[%s2460_s7 + $0x1c8] sm:$0xff]  }
  0x3a   : > { %v1835_v52 = vcombine.low %v272_v49, %v280_v50  ;;  %v1836_v53 = vcombine.high %v272_v49, %v280_v50  ;;  %v1837_v55 = vcombine.low %v273_v51, %v281_v54  ;;  %v1838_v56 = vcombine.high %v273_v51, %v281_v54  ;;  %v2241_v63 = vld [vmem:[%s2460_s7 + $0x108] sm:$0xff]   ;;  %v2243_v1 = vld [vmem:[%s2460_s7 + $0x150] sm:$0xff]   ;;  %v2247_v5 = vld [vmem:[%s2460_s7 + $0x158] sm:$0xff]  }
  0x3b   : > { %1993 = vmatpush3.bf16.msra.mxu0 %v2217_v31  ;;  %v2242_v0 = vld [vmem:[%s2460_s7 + $0x188] sm:$0xff]   ;;  %v2244_v2 = vld [vmem:[%s2460_s7 + $0x1d0] sm:$0xff]   ;;  %v2248_v6 = vld [vmem:[%s2460_s7 + $0x1d8] sm:$0xff]  }
  0x3c   : > { %2015 = vmatpush3.bf16.msra.mxu1 %v2218_v32  ;;  %1994 = vmatprep.subr.bf16.mxu0 %v2219_v33  ;;  %v2245_v3 = vld [vmem:[%s2460_s7 + $0x110] sm:$0xff]   ;;  %v2249_v7 = vld [vmem:[%s2460_s7 + $0x118] sm:$0xff]   ;;  %v2251_v9 = vld [vmem:[%s2460_s7 + $0x160] sm:$0xff]  }
  0x3d   : > { %2016 = vmatprep.subr.bf16.mxu1 %v2220_v34  ;;  %1424 = vmatprep.mubr.bf16.mxu0 %v1836_v53  ;;  %v2246_v4 = vld [vmem:[%s2460_s7 + $0x190] sm:$0xff]   ;;  %v2250_v8 = vld [vmem:[%s2460_s7 + $0x198] sm:$0xff]   ;;  %v2252_v10 = vld [vmem:[%s2460_s7 + $0x1e0] sm:$0xff]  }
  0x3e   : > { %1465 = vmatprep.mubr.bf16.mxu1 %v1838_v56  ;;  %v2253_v11 = vld [vmem:[%s2460_s7 + $0x120] sm:$0xff]   ;;  %v2255_v13 = vld [vmem:[%s2460_s7 + $0x168] sm:$0xff]   ;;  %v2259_v17 = vld [vmem:[%s2460_s7 + $0x170] sm:$0xff]  }
  0x3f   : > { %1995 = vmatpush3.bf16.msra.mxu0 %v2221_v35  ;;  %v2254_v12 = vld [vmem:[%s2460_s7 + $0x1a0] sm:$0xff]   ;;  %v2256_v14 = vld [vmem:[%s2460_s7 + $0x1e8] sm:$0xff]   ;;  %v2260_v18 = vld [vmem:[%s2460_s7 + $0x1f0] sm:$0xff]  }
  0x40   : > { %2017 = vmatpush3.bf16.msra.mxu1 %v2222_v36  ;;  %1996 = vmatprep.subr.bf16.mxu0 %v2223_v37  ;;  %v2257_v15 = vld [vmem:[%s2460_s7 + $0x128] sm:$0xff]   ;;  %v2261_v19 = vld [vmem:[%s2460_s7 + $0x130] sm:$0xff]   ;;  %v2263_v21 = vld [vmem:[%s2460_s7 + $0x178] sm:$0xff]  }
  0x41   : > { %2018 = vmatprep.subr.bf16.mxu1 %v2224_v38  ;;  %v2258_v16 = vld [vmem:[%s2460_s7 + $0x1a8] sm:$0xff]   ;;  %v2262_v20 = vld [vmem:[%s2460_s7 + $0x1b0] sm:$0xff]   ;;  %v2264_v22 = vld [vmem:[%s2460_s7 + $0x1f8] sm:$0xff]  }
  0x42   : > { %v2265_v23 = vld [vmem:[%s2460_s7 + $0x138] sm:$0xff]   ;;  %v274_v25 = vld [vmem:[%s2462_s8 + $0x10] sm:$0xff]  ;;  %v275_v29 = vld [vmem:[%s2462_s8 + $0x18] sm:$0xff] }
  0x43   : > { %1997 = vmatpush3.bf16.msra.mxu0 %v2225_v39  ;;  %v2266_v24 = vld [vmem:[%s2460_s7 + $0x1b8] sm:$0xff]   ;;  %v282_v26 = vld [vmem:[%s2462_s8 + $0x50] sm:$0xff]  ;;  %v283_v30 = vld [vmem:[%s2462_s8 + $0x58] sm:$0xff] }
  0x44   : > { %2019 = vmatpush3.bf16.msra.mxu1 %v2226_v40  ;;  %1998 = vmatprep.subr.bf16.mxu0 %v2227_v41  ;;  %v1839_v27 = vcombine.low %v274_v25, %v282_v26  ;;  %v1840_v28 = vcombine.high %v274_v25, %v282_v26  ;;  %v1841_v31 = vcombine.low %v275_v29, %v283_v30  ;;  %v2267_v33 = vld [vmem:[%s2460_s7 + $0x240] sm:$0xff]   ;;  %v2271_v37 = vld [vmem:[%s2460_s7 + $0x248] sm:$0xff]   ;;  %v2275_v41 = vld [vmem:[%s2460_s7 + $0x250] sm:$0xff]  }
  0x45   : > { %2020 = vmatprep.subr.bf16.mxu1 %v2228_v42  ;;  %v1842_v32 = vcombine.high %v275_v29, %v283_v30  ;;  %v2268_v34 = vld [vmem:[%s2460_s7 + $0x2c0] sm:$0xff]   ;;  %v2272_v38 = vld [vmem:[%s2460_s7 + $0x2c8] sm:$0xff]   ;;  %v2276_v42 = vld [vmem:[%s2460_s7 + $0x2d0] sm:$0xff]  }
  0x46   : > { %v2269_v35 = vld [vmem:[%s2460_s7 + $0x200] sm:$0xff]   ;;  %v2273_v39 = vld [vmem:[%s2460_s7 + $0x208] sm:$0xff]  }
  0x47   : > { %1999 = vmatpush3.bf16.msra.mxu0 %v2229_v43  ;;  %v2270_v36 = vld [vmem:[%s2460_s7 + $0x280] sm:$0xff]   ;;  %v2274_v40 = vld [vmem:[%s2460_s7 + $0x288] sm:$0xff]   ;;  %v2277_v43 = vld [vmem:[%s2460_s7 + $0x210] sm:$0xff]  }
  0x48   : > { %2021 = vmatpush3.bf16.msra.mxu1 %v2230_v44  ;;  %2000 = vmatprep.subr.bf16.mxu0 %v2231_v45  ;;  %v2278_v44 = vld [vmem:[%s2460_s7 + $0x290] sm:$0xff]   ;;  %v2279_v45 = vld [vmem:[%s2460_s7 + $0x258] sm:$0xff]   ;;  %v2283_v49 = vld [vmem:[%s2460_s7 + $0x260] sm:$0xff]  }
  0x49   : > { %2022 = vmatprep.subr.bf16.mxu1 %v2232_v46  ;;  %v2280_v46 = vld [vmem:[%s2460_s7 + $0x2d8] sm:$0xff]   ;;  %v2284_v50 = vld [vmem:[%s2460_s7 + $0x2e0] sm:$0xff]   ;;  %v2287_v53 = vld [vmem:[%s2460_s7 + $0x268] sm:$0xff]  }
  0x4a   : > { %v2285_v51 = vld [vmem:[%s2460_s7 + $0x220] sm:$0xff]   ;;  %v2288_v54 = vld [vmem:[%s2460_s7 + $0x2e8] sm:$0xff]  }
  0x4b   : > { %2001 = vmatpush3.bf16.msra.mxu0 %v2233_v47  ;;  %v2281_v47 = vld [vmem:[%s2460_s7 + $0x218] sm:$0xff]   ;;  %v2290_v56 = vld [vmem:[%s2460_s7 + $0x2a8] sm:$0xff]   ;;  %v2315_v25 = vld [vmem:[%s2460_s7 + $0x360] sm:$0xff]  }
  0x4c   : > { %2023 = vmatpush3.bf16.msra.mxu1 %v2234_v48  ;;  %2030 = vmatprep.subr.bf16.mxu0 %v2235_v57  ;;  %v2282_v48 = vld [vmem:[%s2460_s7 + $0x298] sm:$0xff]   ;;  %v2291_v57 = vld [vmem:[%s2460_s7 + $0x270] sm:$0xff]   ;;  %v2316_v26 = vld [vmem:[%s2460_s7 + $0x3e0] sm:$0xff]  }
  0x4d   : > { %2052 = vmatprep.subr.bf16.mxu1 %v2236_v58  ;;  %v2292_v58 = vld [vmem:[%s2460_s7 + $0x2f0] sm:$0xff]   ;;  %v2319_v29 = vld [vmem:[%s2460_s7 + $0x368] sm:$0xff]  }
  0x4e   : > { %1425 = vmatmul.mubr.bf16.vlgmr.msra.gmra.mrb[0].mxu0 %v1835_v52  ;;  %v2286_v52 = vld [vmem:[%s2460_s7 + $0x2a0] sm:$0xff]   ;;  %v2320_v30 = vld [vmem:[%s2460_s7 + $0x3e8] sm:$0xff]  }
  0x4f   : > { %1466 = vmatmul.mubr.bf16.vlgmr.msra.gmra.mrb[0].mxu1 %v1837_v55  ;;  %2031 = vmatpush3.bf16.msra.mxu0 %v2237_v59  ;;  %v2289_v55 = vld [vmem:[%s2460_s7 + $0x228] sm:$0xff]   ;;  %v2293_v59 = vld [vmem:[%s2460_s7 + $0x230] sm:$0xff]  }
  0x50   : > { %2053 = vmatpush3.bf16.msra.mxu1 %v2238_v60  ;;  %2032 = vmatprep.subr.bf16.mxu0 %v2239_v61  ;;  %v2294_v60 = vld [vmem:[%s2460_s7 + $0x2b0] sm:$0xff]   ;;  %v2295_v61 = vld [vmem:[%s2460_s7 + $0x278] sm:$0xff]  }
  0x51   : > { %2054 = vmatprep.subr.bf16.mxu1 %v2240_v62  ;;  %1506 = vmatprep.mubr.bf16.mxu0 %v1840_v28  ;;  %v2296_v62 = vld [vmem:[%s2460_s7 + $0x2f8] sm:$0xff]   ;;  %v2318_v28 = vld [vmem:[%s2460_s7 + $0x3a0] sm:$0xff]  }
  0x52   : > { %1547 = vmatprep.mubr.bf16.mxu1 %v1842_v32  ;;  %v2322_v32 = vld [vmem:[%s2460_s7 + $0x3a8] sm:$0xff]  }
  0x53   : > { %2033 = vmatpush3.bf16.msra.mxu0 %v2241_v63  ;;  %v2297_v63 = vld [vmem:[%s2460_s7 + $0x238] sm:$0xff]  }
  0x54   : > { %2055 = vmatpush3.bf16.msra.mxu1 %v2242_v0  ;;  %2034 = vmatprep.subr.bf16.mxu0 %v2243_v1  ;;  %v2298_v0 = vld [vmem:[%s2460_s7 + $0x2b8] sm:$0xff]   ;;  %v276_v1 = vld [vmem:[%s2462_s8 + $0x20] sm:$0xff] }
  0x55   : > { %2056 = vmatprep.subr.bf16.mxu1 %v2244_v2  ;;  %v284_v2 = vld [vmem:[%s2462_s8 + $0x60] sm:$0xff] }
  0x57   : > { %2035 = vmatpush3.bf16.msra.mxu0 %v2245_v3  ;;  %v277_v3 = vld [vmem:[%s2462_s8 + $0x28] sm:$0xff] }
  0x58   : > { %2057 = vmatpush3.bf16.msra.mxu1 %v2246_v4  ;;  %2036 = vmatprep.subr.bf16.mxu0 %v2247_v5  ;;  %v285_v4 = vld [vmem:[%s2462_s8 + $0x68] sm:$0xff]  ;;  %v1843_v5 = vcombine.low %v276_v1, %v284_v2 }
  0x59   : > { %2058 = vmatprep.subr.bf16.mxu1 %v2248_v6  ;;  %v1844_v6 = vcombine.high %v276_v1, %v284_v2 }
  0x5b   : > { %2037 = vmatpush3.bf16.msra.mxu0 %v2249_v7  ;;  %v1845_v7 = vcombine.low %v277_v3, %v285_v4 }
  0x5c   : > { %2059 = vmatpush3.bf16.msra.mxu1 %v2250_v8  ;;  %2038 = vmatprep.subr.bf16.mxu0 %v2251_v9  ;;  %v1846_v8 = vcombine.high %v277_v3, %v285_v4  ;;  %v2299_v9 = vld [vmem:[%s2460_s7 + $0x340] sm:$0xff]  }
  0x5d   : > { %2060 = vmatprep.subr.bf16.mxu1 %v2252_v10  ;;  %v2300_v10 = vld [vmem:[%s2460_s7 + $0x3c0] sm:$0xff]  }
  0x5f   : > { %2039 = vmatpush3.bf16.msra.mxu0 %v2253_v11  ;;  %v2301_v11 = vld [vmem:[%s2460_s7 + $0x300] sm:$0xff]  }
  0x60   : > { %2061 = vmatpush3.bf16.msra.mxu1 %v2254_v12  ;;  %2040 = vmatprep.subr.bf16.mxu0 %v2255_v13  ;;  %v2302_v12 = vld [vmem:[%s2460_s7 + $0x380] sm:$0xff]   ;;  %v2303_v13 = vld [vmem:[%s2460_s7 + $0x348] sm:$0xff]  }
  0x61   : > { %2062 = vmatprep.subr.bf16.mxu1 %v2256_v14  ;;  %v2304_v14 = vld [vmem:[%s2460_s7 + $0x3c8] sm:$0xff]  }
  0x63   : > { %2041 = vmatpush3.bf16.msra.mxu0 %v2257_v15  ;;  %v2305_v15 = vld [vmem:[%s2460_s7 + $0x308] sm:$0xff]  }
  0x64   : > { %2063 = vmatpush3.bf16.msra.mxu1 %v2258_v16  ;;  %2042 = vmatprep.subr.bf16.mxu0 %v2259_v17  ;;  %v2306_v16 = vld [vmem:[%s2460_s7 + $0x388] sm:$0xff]   ;;  %v2307_v17 = vld [vmem:[%s2460_s7 + $0x350] sm:$0xff]  }
  0x65   : > { %2064 = vmatprep.subr.bf16.mxu1 %v2260_v18  ;;  %v2308_v18 = vld [vmem:[%s2460_s7 + $0x3d0] sm:$0xff]  }
  0x67   : > { %2043 = vmatpush3.bf16.msra.mxu0 %v2261_v19  ;;  %v2309_v19 = vld [vmem:[%s2460_s7 + $0x310] sm:$0xff]  }
  0x68   : > { %2065 = vmatpush3.bf16.msra.mxu1 %v2262_v20  ;;  %2044 = vmatprep.subr.bf16.mxu0 %v2263_v21  ;;  %v2310_v20 = vld [vmem:[%s2460_s7 + $0x390] sm:$0xff]   ;;  %v2311_v21 = vld [vmem:[%s2460_s7 + $0x358] sm:$0xff]  }
  0x69   : > { %2066 = vmatprep.subr.bf16.mxu1 %v2264_v22  ;;  %v2312_v22 = vld [vmem:[%s2460_s7 + $0x3d8] sm:$0xff]  }
  0x6b   : > { %2045 = vmatpush3.bf16.msra.mxu0 %v2265_v23  ;;  %v2313_v23 = vld [vmem:[%s2460_s7 + $0x318] sm:$0xff]  }
  0x6c   : > { %2067 = vmatpush3.bf16.msra.mxu1 %v2266_v24  ;;  %2074 = vmatprep.subr.bf16.mxu0 %v2267_v33  ;;  %v2314_v24 = vld [vmem:[%s2460_s7 + $0x398] sm:$0xff]   ;;  %v2323_v33 = vld [vmem:[%s2460_s7 + $0x370] sm:$0xff]  }
  0x6d   : > { %2096 = vmatprep.subr.bf16.mxu1 %v2268_v34  ;;  %v2324_v34 = vld [vmem:[%s2460_s7 + $0x3f0] sm:$0xff]  }
  0x6e   : > { %1507 = vmatmul.mubr.bf16.vlgmr.msra.gmra.mrb[4].mxu0 %v1839_v27  ;;  %v2317_v27 = vld [vmem:[%s2460_s7 + $0x320] sm:$0xff]  }
  0x6f   : > { %1548 = vmatmul.mubr.bf16.vlgmr.msra.gmra.mrb[4].mxu1 %v1841_v31  ;;  %2075 = vmatpush3.bf16.msra.mxu0 %v2269_v35  ;;  %v2321_v31 = vld [vmem:[%s2460_s7 + $0x328] sm:$0xff]   ;;  %v2325_v35 = vld [vmem:[%s2460_s7 + $0x330] sm:$0xff]  }
  0x70   : > { %2097 = vmatpush3.bf16.msra.mxu1 %v2270_v36  ;;  %2076 = vmatprep.subr.bf16.mxu0 %v2271_v37  ;;  %v2326_v36 = vld [vmem:[%s2460_s7 + $0x3b0] sm:$0xff]   ;;  %v2327_v37 = vld [vmem:[%s2460_s7 + $0x378] sm:$0xff]  }
  0x71   : > { %2098 = vmatprep.subr.bf16.mxu1 %v2272_v38  ;;  %1588 = vmatprep.mubr.bf16.mxu0 %v1844_v6  ;;  %v2328_v38 = vld [vmem:[%s2460_s7 + $0x3f8] sm:$0xff]  }
  0x72   : > { %1629 = vmatprep.mubr.bf16.mxu1 %v1846_v8 }
  0x73   : > { %2077 = vmatpush3.bf16.msra.mxu0 %v2273_v39  ;;  %v2329_v39 = vld [vmem:[%s2460_s7 + $0x338] sm:$0xff]  }
  0x74   : > { %2099 = vmatpush3.bf16.msra.mxu1 %v2274_v40  ;;  %2078 = vmatprep.subr.bf16.mxu0 %v2275_v41  ;;  %v2330_v40 = vld [vmem:[%s2460_s7 + $0x3b8] sm:$0xff]   ;;  %v278_v41 = vld [vmem:[%s2462_s8 + $0x30] sm:$0xff] }
  0x75   : > { %2100 = vmatprep.subr.bf16.mxu1 %v2276_v42  ;;  %v286_v42 = vld [vmem:[%s2462_s8 + $0x70] sm:$0xff] }
  0x77   : > { %2079 = vmatpush3.bf16.msra.mxu0 %v2277_v43  ;;  %v279_v43 = vld [vmem:[%s2462_s8 + $0x38] sm:$0xff] }
  0x78   : > { %2101 = vmatpush3.bf16.msra.mxu1 %v2278_v44  ;;  %2080 = vmatprep.subr.bf16.mxu0 %v2279_v45  ;;  %v1847_v44 = vcombine.low %v278_v41, %v286_v42  ;;  %v1848_v45 = vcombine.high %v278_v41, %v286_v42 }
  0x79   : > { %2102 = vmatprep.subr.bf16.mxu1 %v2280_v46  ;;  %v287_v46 = vld [vmem:[%s2462_s8 + $0x78] sm:$0xff] }
  0x7b   : > { %2081 = vmatpush3.bf16.msra.mxu0 %v2281_v47  ;;  %v1849_v47 = vcombine.low %v279_v43, %v287_v46 }
  0x7c   : > { %2103 = vmatpush3.bf16.msra.mxu1 %v2282_v48  ;;  %2082 = vmatprep.subr.bf16.mxu0 %v2283_v49  ;;  %v1850_v48 = vcombine.high %v279_v43, %v287_v46  ;;  %v270_v43 = vld [vmem:[#allocation2] sm:$0xff] }
  0x7d   : > { %2104 = vmatprep.subr.bf16.mxu1 %v2284_v50 }
  0x7f   : > { %2083 = vmatpush3.bf16.msra.mxu0 %v2285_v51 }
  0x80   : > { %2105 = vmatpush3.bf16.msra.mxu1 %v2286_v52  ;;  %2084 = vmatprep.subr.bf16.mxu0 %v2287_v53 }
  0x81   : > { %2106 = vmatprep.subr.bf16.mxu1 %v2288_v54 }
  0x83   : > { %2085 = vmatpush3.bf16.msra.mxu0 %v2289_v55 }
  0x84   : > { %2107 = vmatpush3.bf16.msra.mxu1 %v2290_v56  ;;  %2086 = vmatprep.subr.bf16.mxu0 %v2291_v57 }
  0x85   : > { %2108 = vmatprep.subr.bf16.mxu1 %v2292_v58 }
  0x87   : > { %2087 = vmatpush3.bf16.msra.mxu0 %v2293_v59 }
  0x88   : > { %2109 = vmatpush3.bf16.msra.mxu1 %v2294_v60  ;;  %2088 = vmatprep.subr.bf16.mxu0 %v2295_v61 }
  0x89   : > { %2110 = vmatprep.subr.bf16.mxu1 %v2296_v62 }
  0x8b   : > { %2089 = vmatpush3.bf16.msra.mxu0 %v2297_v63 }
  0x8c   : > { %2111 = vmatpush3.bf16.msra.mxu1 %v2298_v0  ;;  %2118 = vmatprep.subr.bf16.mxu0 %v2299_v9 }
  0x8d   : > { %2140 = vmatprep.subr.bf16.mxu1 %v2300_v10 }
  0x8e   : > { %1589 = vmatmul.mubr.bf16.vlgmr.msra.gmra.mrb[8].mxu0 %v1843_v5 }
  0x8f   : > { %1630 = vmatmul.mubr.bf16.vlgmr.msra.gmra.mrb[8].mxu1 %v1845_v7  ;;  %2119 = vmatpush3.bf16.msra.mxu0 %v2301_v11 }
  0x90   : > { %2141 = vmatpush3.bf16.msra.mxu1 %v2302_v12  ;;  %2120 = vmatprep.subr.bf16.mxu0 %v2303_v13 }
  0x91   : > { %2142 = vmatprep.subr.bf16.mxu1 %v2304_v14  ;;  %1670 = vmatprep.mubr.bf16.mxu0 %v1848_v45 }
  0x92   : > { %1711 = vmatprep.mubr.bf16.mxu1 %v1850_v48 }
  0x93   : > { %2121 = vmatpush3.bf16.msra.mxu0 %v2305_v15 }
  0x94   : > { %2143 = vmatpush3.bf16.msra.mxu1 %v2306_v16  ;;  %2122 = vmatprep.subr.bf16.mxu0 %v2307_v17 }
  0x95   : > { %2144 = vmatprep.subr.bf16.mxu1 %v2308_v18 }
  0x97   : > { %2123 = vmatpush3.bf16.msra.mxu0 %v2309_v19 }
  0x98   : > { %2145 = vmatpush3.bf16.msra.mxu1 %v2310_v20  ;;  %2124 = vmatprep.subr.bf16.mxu0 %v2311_v21 }
  0x99   : > { %2146 = vmatprep.subr.bf16.mxu1 %v2312_v22 }
  0x9b   : > { %2125 = vmatpush3.bf16.msra.mxu0 %v2313_v23 }
  0x9c   : > { %2147 = vmatpush3.bf16.msra.mxu1 %v2314_v24  ;;  %2126 = vmatprep.subr.bf16.mxu0 %v2315_v25 }
  0x9d   : > { %2148 = vmatprep.subr.bf16.mxu1 %v2316_v26 }
  0x9f   : > { %2127 = vmatpush3.bf16.msra.mxu0 %v2317_v27 }
  0xa0   : > { %2149 = vmatpush3.bf16.msra.mxu1 %v2318_v28  ;;  %2128 = vmatprep.subr.bf16.mxu0 %v2319_v29 }
  0xa1   : > { %2150 = vmatprep.subr.bf16.mxu1 %v2320_v30 }
  0xa3   : > { %2129 = vmatpush3.bf16.msra.mxu0 %v2321_v31 }
  0xa4   : > { %2151 = vmatpush3.bf16.msra.mxu1 %v2322_v32  ;;  %2130 = vmatprep.subr.bf16.mxu0 %v2323_v33 }
  0xa5   : > { %2152 = vmatprep.subr.bf16.mxu1 %v2324_v34 }
  0xa7   : > { %2131 = vmatpush3.bf16.msra.mxu0 %v2325_v35 }
  0xa8   : > { %2153 = vmatpush3.bf16.msra.mxu1 %v2326_v36  ;;  %2132 = vmatprep.subr.bf16.mxu0 %v2327_v37 }
  0xa9   : > { %2154 = vmatprep.subr.bf16.mxu1 %v2328_v38 }
  0xab   : > { %2133 = vmatpush3.bf16.msra.mxu0 %v2329_v39 }
  0xac   : > { %2155 = vmatpush3.bf16.msra.mxu1 %v2330_v40 }
  0xae   : > { %1671 = vmatmul.mubr.bf16.vlgmr.msra.gmra.mrb[12].mxu0 %v1847_v44 }
  0xaf   : > { %1712 = vmatmul.mubr.bf16.vlgmr.msra.gmra.mrb[12].mxu1 %v1849_v47  ;;  %v271_v47 = vld [vmem:[#allocation2 + $0x8] sm:$0xff] }
 0x121   : > { %v2002_v49 = vpop.f32.mrb[0].mxu0 }
 0x122   : > { %v2024_v50 = vpop.f32.mrb[0].mxu1  ;;  %v2003_v51 = vpop.f32.mrb[1].mxu0 }
 0x123   : > { %v2004_v52 = vadd.f32 %v2003_v51, %v2002_v49  ;;  %v2025_v53 = vpop.f32.mrb[1].mxu1  ;;  %v2005_v54 = vpop.f32.mrb[2].mxu0 }
 0x124   : > { %v2026_v55 = vadd.f32 %v2025_v53, %v2024_v50  ;;  %v2027_v56 = vpop.f32.mrb[2].mxu1  ;;  %v2006_v57 = vpop.f32.mrb[3].mxu0 }
 0x125   : > { %v2007_v58 = vadd.f32 %v2006_v57, %v2005_v54  ;;  %v2028_v59 = vpop.f32.mrb[3].mxu1 }
 0x126   : > { %v1468_v60 = vadd.f32 %v2026_v55, %v2004_v52  ;;  %v2029_v61 = vadd.f32 %v2028_v59, %v2027_v56  ;;  %v1980_v52 = vld [vmem:[%s2636_s2] ss:$0 sm:$0xff] (!%p1979_p11) }
 0x128   : > { %v1471_v62 = vadd.f32 %v2029_v61, %v2007_v58 }
 0x141   : > { %v2046_v63 = vpop.f32.mrb[4].mxu0 }
 0x142   : > { %v2068_v0 = vpop.f32.mrb[4].mxu1  ;;  %v2047_v1 = vpop.f32.mrb[5].mxu0 }
 0x143   : > { %v2048_v2 = vadd.f32 %v2047_v1, %v2046_v63  ;;  %v2069_v3 = vpop.f32.mrb[5].mxu1  ;;  %v2049_v4 = vpop.f32.mrb[6].mxu0 }
 0x144   : > { %v2070_v5 = vadd.f32 %v2069_v3, %v2068_v0  ;;  %v2071_v6 = vpop.f32.mrb[6].mxu1  ;;  %v2050_v7 = vpop.f32.mrb[7].mxu0 }
 0x145   : > { %v1509_v8 = vadd.f32 %v2048_v2, %v1468_v60  ;;  %v2051_v9 = vadd.f32 %v2050_v7, %v2049_v4  ;;  %v2072_v10 = vpop.f32.mrb[7].mxu1 }
 0x146   : > { %v2073_v11 = vadd.f32 %v2072_v10, %v2071_v6 }
 0x147   : > { %v1550_v12 = vadd.f32 %v2070_v5, %v1509_v8  ;;  %v1512_v13 = vadd.f32 %v2051_v9, %v1471_v62 }
 0x149   : > { %v1553_v14 = vadd.f32 %v2073_v11, %v1512_v13 }
 0x161   : > { %v2090_v15 = vpop.f32.mrb[8].mxu0 }
 0x162   : > { %v2112_v16 = vpop.f32.mrb[8].mxu1  ;;  %v2091_v17 = vpop.f32.mrb[9].mxu0 }
 0x163   : > { %v2113_v18 = vpop.f32.mrb[9].mxu1  ;;  %v2092_v19 = vadd.f32 %v2091_v17, %v2090_v15  ;;  %v2093_v21 = vpop.f32.mrb[10].mxu0 }
 0x164   : > { %v2114_v20 = vadd.f32 %v2113_v18, %v2112_v16  ;;  %v2115_v22 = vpop.f32.mrb[10].mxu1  ;;  %v2094_v23 = vpop.f32.mrb[11].mxu0 }
 0x165   : > { %v2116_v24 = vpop.f32.mrb[11].mxu1  ;;  %v1591_v25 = vadd.f32 %v2092_v19, %v1550_v12  ;;  %v2095_v26 = vadd.f32 %v2094_v23, %v2093_v21 }
 0x166   : > { %v2117_v27 = vadd.f32 %v2116_v24, %v2115_v22 }
 0x167   : > { %v1632_v28 = vadd.f32 %v2114_v20, %v1591_v25  ;;  %v1594_v29 = vadd.f32 %v2095_v26, %v1553_v14 }
 0x169   : > { %v1635_v30 = vadd.f32 %v2117_v27, %v1594_v29 }
 0x181   : > { %v2134_v31 = vpop.f32.mrb[12].mxu0 }
 0x182   : > { %v2156_v32 = vpop.f32.mrb[12].mxu1  ;;  %v2135_v33 = vpop.f32.mrb[13].mxu0 }
 0x183   : > { %v2136_v34 = vadd.f32 %v2135_v33, %v2134_v31  ;;  %v2157_v35 = vpop.f32.mrb[13].mxu1  ;;  %v2137_v36 = vpop.f32.mrb[14].mxu0 }
 0x184   : > { %v2158_v37 = vadd.f32 %v2157_v35, %v2156_v32  ;;  %v2159_v38 = vpop.f32.mrb[14].mxu1  ;;  %v2138_v39 = vpop.f32.mrb[15].mxu0 }
 0x185   : > { %v1673_v40 = vadd.f32 %v2136_v34, %v1632_v28  ;;  %v2139_v41 = vadd.f32 %v2138_v39, %v2137_v36  ;;  %v2160_v42 = vpop.f32.mrb[15].mxu1 }
 0x186   : > { %v2161_v44 = vadd.f32 %v2160_v42, %v2159_v38 }
 0x187   : > { %v1714_v45 = vadd.f32 %v2158_v37, %v1673_v40  ;;  %v1676_v46 = vadd.f32 %v2139_v41, %v1635_v30  ;;  %1727 = sbr.rel (%p1979_p11) target bundleno = 408 (0x198), region = 63 }
 0x189   : > { %v1720_v48 = vadd.f32 %v1714_v45, %v270_v43  ;;  %v1717_v49 = vadd.f32 %v2161_v44, %v1676_v46 }
 0x18b   : > { %1722 = vst [vmem:[#allocation2] sm:$0xff] %v1720_v48  ;;  %v1721_v50 = vadd.f32 %v1717_v49, %v271_v47 }
 0x18d   : > { %1723 = vst [vmem:[#allocation2 + $0x8] sm:$0xff] %v1721_v50 }
 0x192   : > { %v1728_v51 = vld [vmem:[#allocation2] sm:$0xff] }
 0x193   : > { %v1737_v54 = vadd.f32 %v1980_v52, %v1728_v51 }
 0x194   : > { %v1729_v53 = vld [vmem:[#allocation2 + $0x8] sm:$0xff] }
 0x195   : > { %v1738_v55 = vadd.f32 %v1980_v52, %v1729_v53  ;;  %1739 = vst [vmem:[%s2637_s3] sm:$0xff] %v1737_v54 }
 0x197   : > { %1740 = vst [vmem:[%s2637_s3 + $0x8] sm:$0xff] %v1738_v55 }
 0x198 PF: > { %s13_s16 = sadd.s32 1, %s2369_s16   ;;  %s2638_s12 = smov %s2357_s13 }
 0x199   : > { %p10_p12 = scmp.ge.s32.totalorder %s13_s16, 4   ;;  %s2639_s13 = smov %s2427_s20 }
 0x19a   : > { %s2640_s14 = smov %s2365_s15  ;;  %s2641_s15 = smov %s2643_s17 }
 0x19b   :  { %12 = sbr.rel (!%p10_p12) target bundleno = 3 (0x3), region = 101 }

</bundles_post_ra>
